<compile_context>
chip_gen: v7x
topology: tpu7x:2x2x1
jax: 0.10.0
libtpu: 0.0.40
codegen_flags: <defaults>
</compile_context>

<pallas_src>
import functools

import jax
import jax.numpy as jnp
from jax.experimental import pallas as pl
from jax.experimental.pallas import tpu as pltpu

jax.config.update("jax_default_matmul_precision", "highest")

LANE = 128


def _round_up(x, m):
    return (x + m - 1) // m * m


# ----------------------------------------------------------------------------
# Kernel
# ----------------------------------------------------------------------------
def rssm_kernel(
    # activations (batch tile)
    state_ref, act_ref, eps1_ref, eps2_ref,
    # encoder
    we0_ref, be0_ref, we1_ref, be1_ref, we2_ref, be2_ref,
    # fused dynamics/reward/done heads
    wza_ref, bh1_ref, wh2_ref, bh2_ref,
    # decoder
    wd0_ref, bd0_ref, wd1_ref, bd1_ref, wd2_ref, bd2_ref,
    # lane-dense outputs
    post_ref, head_ref, obs_ref,
    *, compute_dtype,
):
    def dense(x, w_ref, b_ref, relu=False):
        y = jnp.dot(x.astype(compute_dtype), w_ref[...],
                    preferred_element_type=jnp.float32) + b_ref[...]
        return jnp.maximum(y, 0.0) if relu else y

    # ---- encoder -----------------------------------------------------------
    h = dense(state_ref[...], we0_ref, be0_ref, relu=True)
    h = dense(h, we1_ref, be1_ref, relu=True)
    post = dense(h, we2_ref, be2_ref)           # (TB, 256): [mu | logvar] 128-lane blocks
    post_ref[...] = post

    # posterior reparameterization, kept in 128-lane padded form (pad lanes stay 0:
    # mu pad = 0, eps pad = 0, so 0 + 0*exp(0.5*0) = 0)
    z = post[:, :LANE] + eps1_ref[...].astype(jnp.float32) * jnp.exp(0.5 * post[:, LANE:])

    # cat([z, action]) without a concat: action already sits at lanes [L, L+A)
    # of act_ref, and z's pad lanes are exactly zero there.
    za = z + act_ref[...].astype(jnp.float32)

    # ---- fused dynamics / reward / done heads ------------------------------
    hh = dense(za, wza_ref, bh1_ref, relu=True)  # (TB, 3H) = [h_dyn | h_rew | h_done]
    head = dense(hh, wh2_ref, bh2_ref)           # (TB, 512): [mu_n | logvar_n | reward | done_logit]
    head_ref[:, : 3 * LANE] = head[:, : 3 * LANE]
    head_ref[:, 3 * LANE:] = jax.nn.sigmoid(head[:, 3 * LANE:])   # sigmoid only on done block

    # prior reparameterization (padded form, pad lanes stay 0)
    z_next = (head[:, :LANE]
              + eps2_ref[...].astype(jnp.float32) * jnp.exp(0.5 * head[:, LANE:2 * LANE]))

    # ---- decoder ------------------------------------------------------------
    o = dense(z_next, wd0_ref, bd0_ref, relu=True)
    o = dense(o, wd1_ref, bd1_ref, relu=True)
    obs_ref[...] = dense(o, wd2_ref, bd2_ref)    # (TB, pad128(input_dim))


# ----------------------------------------------------------------------------
# Parameter init (PyTorch nn.Linear-like, transposed layout: W is (in, out))
# ----------------------------------------------------------------------------
def init_rssm_params(key, input_dim, action_dim, hidden_dim, latent_dim):
    def linear(k, fan_in, fan_out, zero=False):
        if zero:
            return (jnp.zeros((fan_in, fan_out), jnp.float32),
                    jnp.zeros((1, fan_out), jnp.float32))
        kw, kb = jax.random.split(k)
        bound = 1.0 / (fan_in ** 0.5)
        w = jax.random.uniform(kw, (fan_in, fan_out), jnp.float32, -bound, bound)
        b = jax.random.uniform(kb, (1, fan_out), jnp.float32, -bound, bound)
        return w, b

    keys = jax.random.split(key, 12)
    p = {}
    p["we0"], p["be0"] = linear(keys[0], input_dim, hidden_dim)
    p["we1"], p["be1"] = linear(keys[1], hidden_dim, hidden_dim)
    p["we2"], p["be2"] = linear(keys[2], hidden_dim, 2 * latent_dim)
    p["wd0"], p["bd0"] = linear(keys[3], latent_dim, hidden_dim)
    p["wd1"], p["bd1"] = linear(keys[4], hidden_dim, hidden_dim)
    p["wd2"], p["bd2"] = linear(keys[5], hidden_dim, input_dim)
    p["wdy0"], p["bdy0"] = linear(keys[6], latent_dim + action_dim, hidden_dim)
    p["wdy1"], p["bdy1"] = linear(keys[7], hidden_dim, 2 * latent_dim)
    p["wr0"], p["br0"] = linear(keys[8], latent_dim + action_dim, hidden_dim)
    p["wr1"], p["br1"] = linear(keys[9], hidden_dim, 1, zero=True)   # nn.init.zeros_
    p["wdo0"], p["bdo0"] = linear(keys[10], latent_dim + action_dim, hidden_dim)
    p["wdo1"], p["bdo1"] = linear(keys[11], hidden_dim, 1)
    return p


# ----------------------------------------------------------------------------
# One-time fusion / padding of parameters into the kernel's lane layout
# ----------------------------------------------------------------------------
def prepare_fused_params(p, *, input_dim, action_dim, hidden_dim, latent_dim,
                         compute_dtype=jnp.float32):
    D, A, H, L = input_dim, action_dim, hidden_dim, latent_dim
    assert L <= LANE and L + A <= LANE, "latent_dim + action_dim must fit in 128 lanes"
    D_pad = _round_up(D, LANE)
    f32 = jnp.float32

    def wcast(x):  # weights in compute_dtype (bf16 on v6e/v7x), biases stay f32
        return x.astype(compute_dtype)

    fp = {}
    # encoder
    fp["we0"], fp["be0"] = wcast(p["we0"]), p["be0"].astype(f32)
    fp["we1"], fp["be1"] = wcast(p["we1"]), p["be1"].astype(f32)
    # final encoder layer: mu -> lanes [0,L), logvar -> lanes [128,128+L)
    we2 = jnp.zeros((H, 2 * LANE), f32)
    we2 = we2.at[:, :L].set(p["we2"][:, :L]).at[:, LANE:LANE + L].set(p["we2"][:, L:2 * L])
    be2 = jnp.zeros((1, 2 * LANE), f32)
    be2 = be2.at[:, :L].set(p["be2"][:, :L]).at[:, LANE:LANE + L].set(p["be2"][:, L:2 * L])
    fp["we2"], fp["be2"] = wcast(we2), be2

    # fused head layer 1: input = [z | action] packed in one 128-lane buffer
    w_cat = jnp.concatenate([p["wdy0"], p["wr0"], p["wdo0"]], axis=1)   # (L+A, 3H)
    wza = jnp.zeros((LANE, 3 * H), f32).at[:L + A, :].set(w_cat)
    bh1 = jnp.concatenate([p["bdy0"], p["br0"], p["bdo0"]], axis=1)     # (1, 3H)
    fp["wza"], fp["bh1"] = wcast(wza), bh1.astype(f32)

    # fused head layer 2 (block-diagonal), output blocks at 128-lane boundaries:
    #   [ mu_next | logvar_next | reward | done_logit ]
    wh2 = jnp.zeros((3 * H, 4 * LANE), f32)
    wh2 = wh2.at[:H, :L].set(p["wdy1"][:, :L])
    wh2 = wh2.at[:H, LANE:LANE + L].set(p["wdy1"][:, L:2 * L])
    wh2 = wh2.at[H:2 * H, 2 * LANE:2 * LANE + 1].set(p["wr1"])
    wh2 = wh2.at[2 * H:3 * H, 3 * LANE:3 * LANE + 1].set(p["wdo1"])
    bh2 = jnp.zeros((1, 4 * LANE), f32)
    bh2 = bh2.at[:, :L].set(p["bdy1"][:, :L])
    bh2 = bh2.at[:, LANE:LANE + L].set(p["bdy1"][:, L:2 * L])
    bh2 = bh2.at[:, 2 * LANE:2 * LANE + 1].set(p["br1"])
    bh2 = bh2.at[:, 3 * LANE:3 * LANE + 1].set(p["bdo1"])
    fp["wh2"], fp["bh2"] = wcast(wh2), bh2

    # decoder: first layer takes the 128-lane padded z_next, last layer output padded to 128*k
    wd0 = jnp.zeros((LANE, H), f32).at[:L, :].set(p["wd0"])
    fp["wd0"], fp["bd0"] = wcast(wd0), p["bd0"].astype(f32)
    fp["wd1"], fp["bd1"] = wcast(p["wd1"]), p["bd1"].astype(f32)
    wd2 = jnp.zeros((H, D_pad), f32).at[:, :D].set(p["wd2"])
    bd2 = jnp.zeros((1, D_pad), f32).at[:, :D].set(p["bd2"])
    fp["wd2"], fp["bd2"] = wcast(wd2), bd2
    return fp


_PARAM_ORDER = ("we0", "be0", "we1", "be1", "we2", "be2",
                "wza", "bh1", "wh2", "bh2",
                "wd0", "bd0", "wd1", "bd1", "wd2", "bd2")


# ----------------------------------------------------------------------------
# Wrapper
# ----------------------------------------------------------------------------
def rssm_forward(state, action, eps1, eps2, fused, *, latent_dim,
                 batch_tile=128, compute_dtype=jnp.float32):
    B, D = state.shape
    A = action.shape[1]
    L = latent_dim
    D_pad = _round_up(D, LANE)

    # lane-layout the small activations once (XLA side, cheap):
    # action lives at lanes [L, L+A), eps at lanes [0, L) of 128-wide buffers.
    state_c = state.astype(compute_dtype)
    act_p = jnp.zeros((B, LANE), compute_dtype).at[:, L:L + A].set(action.astype(compute_dtype))
    eps1_p = jnp.zeros((B, LANE), compute_dtype).at[:, :L].set(eps1.astype(compute_dtype))
    eps2_p = jnp.zeros((B, LANE), compute_dtype).at[:, :L].set(eps2.astype(compute_dtype))

    # batch tiling (grid over batch; weights resident across grid steps)
    TB = min(batch_tile, _round_up(B, 8))
    B_pad = _round_up(B, TB)
    if B_pad != B:
        pad = ((0, B_pad - B), (0, 0))
        state_c, act_p, eps1_p, eps2_p = (jnp.pad(x, pad)
                                          for x in (state_c, act_p, eps1_p, eps2_p))
    n_tiles = B_pad // TB

    def act_spec(width):
        return pl.BlockSpec((TB, width), lambda i: (i, 0))

    def resident_spec(arr):  # same block every step -> stays in VMEM, no re-DMA
        return pl.BlockSpec(arr.shape, lambda i: (0, 0))

    weights = [fused[k] for k in _PARAM_ORDER]
    in_specs = ([act_spec(D), act_spec(LANE), act_spec(LANE), act_spec(LANE)]
                + [resident_spec(w) for w in weights])

    out_shape = (
        jax.ShapeDtypeStruct((B_pad, 2 * LANE), jnp.float32),   # [mu | logvar]
        jax.ShapeDtypeStruct((B_pad, 4 * LANE), jnp.float32),   # [mu_n | logvar_n | reward | done]
        jax.ShapeDtypeStruct((B_pad, D_pad), jnp.float32),      # next_obs (lane padded)
    )
    out_specs = (act_spec(2 * LANE), act_spec(4 * LANE), act_spec(D_pad))

    kernel = functools.partial(rssm_kernel, compute_dtype=compute_dtype)
    post, head, obs = pl.pallas_call(
        kernel,
        out_shape=out_shape,
        grid=(n_tiles,),
        in_specs=in_specs,
        out_specs=out_specs,
        compiler_params=pltpu.CompilerParams(
            dimension_semantics=("parallel",)),   # v7x: split batch tiles across 2 TCs
    )(state_c, act_p, eps1_p, eps2_p, *weights)

    # slice the lane-dense slabs back into the module's 7 outputs (XLA side)
    next_obs = obs[:B, :D]
    mu, logvar = post[:B, :L], post[:B, LANE:LANE + L]
    mu_next, logvar_next = head[:B, :L], head[:B, LANE:LANE + L]
    reward = head[:B, 2 * LANE:2 * LANE + 1]
    done = head[:B, 3 * LANE:3 * LANE + 1]
    return next_obs, reward, done, mu, logvar, mu_next, logvar_next


# ----------------------------------------------------------------------------
# Pure-JAX reference (mirrors the PyTorch forward, unfused)
# ----------------------------------------------------------------------------
def rssm_reference(state, action, eps1, eps2, p, *, latent_dim):
    L = latent_dim
    relu = jax.nn.relu
    h = relu(state @ p["we0"] + p["be0"])
    h = relu(h @ p["we1"] + p["be1"])
    h = h @ p["we2"] + p["be2"]
    mu, logvar = h[:, :L], h[:, L:]
    z = mu + eps1 * jnp.exp(0.5 * logvar)
    za = jnp.concatenate([z, action], axis=1)
    d = relu(za @ p["wdy0"] + p["bdy0"]) @ p["wdy1"] + p["bdy1"]
    mu_n, logvar_n = d[:, :L], d[:, L:]
    z_next = mu_n + eps2 * jnp.exp(0.5 * logvar_n)
    reward = relu(za @ p["wr0"] + p["br0"]) @ p["wr1"] + p["br1"]
    done = jax.nn.sigmoid(relu(za @ p["wdo0"] + p["bdo0"]) @ p["wdo1"] + p["bdo1"])
    o = relu(z_next @ p["wd0"] + p["bd0"])
    o = relu(o @ p["wd1"] + p["bd1"])
    next_obs = o @ p["wd2"] + p["bd2"]
    return next_obs, reward, done, mu, logvar, mu_n, logvar_n


if __name__ == "__main__":
    # Small shapes consistent with the module; batch sized to exercise the grid.
    B, D, A, H, L = 256, 32, 8, 32, 16

    key = jax.random.PRNGKey(0)
    kp, ks, ka, ke1, ke2 = jax.random.split(key, 5)
    params = init_rssm_params(kp, D, A, H, L)
    state = jax.random.normal(ks, (B, D), jnp.float32)
    action = jax.random.normal(ka, (B, A), jnp.float32)
    eps1 = jax.random.normal(ke1, (B, L), jnp.float32)   # torch.randn_like equivalents
    eps2 = jax.random.normal(ke2, (B, L), jnp.float32)

    ref = rssm_reference(state, action, eps1, eps2, params, latent_dim=L)
    names = ("next_obs", "reward", "done", "mu", "logvar", "mu_next", "logvar_next")

    # --- f32 path: validates the fused / lane-padded algebra -----------------
    fused32 = prepare_fused_params(params, input_dim=D, action_dim=A,
                                   hidden_dim=H, latent_dim=L,
                                   compute_dtype=jnp.float32)
    fwd32 = jax.jit(functools.partial(rssm_forward, latent_dim=L,
                                      compute_dtype=jnp.float32))
    out32 = jax.block_until_ready(fwd32(state, action, eps1, eps2, fused32))
    for name, got, want in zip(names, out32, ref):
        assert got.shape == want.shape, (name, got.shape, want.shape)
        assert jnp.allclose(got, want, rtol=2e-2, atol=2e-2), (
            name, float(jnp.max(jnp.abs(got - want))))

    # --- bf16 weights/activations path (v6e/v7x recommendation) --------------
    fused16 = prepare_fused_params(params, input_dim=D, action_dim=A,
                                   hidden_dim=H, latent_dim=L,
                                   compute_dtype=jnp.bfloat16)
    fwd16 = jax.jit(functools.partial(rssm_forward, latent_dim=L,
                                      compute_dtype=jnp.bfloat16))
    out16 = jax.block_until_ready(fwd16(state, action, eps1, eps2, fused16))
    for name, got, want in zip(names, out16, ref):
        assert got.shape == want.shape, (name, got.shape, want.shape)
        assert bool(jnp.all(jnp.isfinite(got))), name

    print("KERNEL_OK")
</pallas_src>

<mosaic_0001>
module attributes {stable_mosaic.version = 11 : i64} {
  func.func @rssm_kernel(%arg0: i32, %arg1: memref<128x32xf32, #tpu.memory_space<vmem>>, %arg2: memref<128x128xf32, #tpu.memory_space<vmem>>, %arg3: memref<128x128xf32, #tpu.memory_space<vmem>>, %arg4: memref<128x128xf32, #tpu.memory_space<vmem>>, %arg5: memref<32x32xf32, #tpu.memory_space<vmem>>, %arg6: memref<1x32xf32, #tpu.memory_space<vmem>>, %arg7: memref<32x32xf32, #tpu.memory_space<vmem>>, %arg8: memref<1x32xf32, #tpu.memory_space<vmem>>, %arg9: memref<32x256xf32, #tpu.memory_space<vmem>>, %arg10: memref<1x256xf32, #tpu.memory_space<vmem>>, %arg11: memref<128x96xf32, #tpu.memory_space<vmem>>, %arg12: memref<1x96xf32, #tpu.memory_space<vmem>>, %arg13: memref<96x512xf32, #tpu.memory_space<vmem>>, %arg14: memref<1x512xf32, #tpu.memory_space<vmem>>, %arg15: memref<128x32xf32, #tpu.memory_space<vmem>>, %arg16: memref<1x32xf32, #tpu.memory_space<vmem>>, %arg17: memref<32x32xf32, #tpu.memory_space<vmem>>, %arg18: memref<1x32xf32, #tpu.memory_space<vmem>>, %arg19: memref<32x128xf32, #tpu.memory_space<vmem>>, %arg20: memref<1x128xf32, #tpu.memory_space<vmem>>, %arg21: memref<128x256xf32, #tpu.memory_space<vmem>>, %arg22: memref<128x512xf32, #tpu.memory_space<vmem>>, %arg23: memref<128x128xf32, #tpu.memory_space<vmem>>) attributes {dimension_semantics = [#tpu.dimension_semantics<parallel>], iteration_bounds = array<i64: 2>, scalar_prefetch = 0 : i64, scratch_operands = 0 : i64, tpu.core_type = #tpu.core_type<tc>, window_params = [{transform_indices = @transform_0, window_bounds = array<i64: 128, 32>}, {transform_indices = @transform_1, window_bounds = array<i64: 128, 128>}, {transform_indices = @transform_2, window_bounds = array<i64: 128, 128>}, {transform_indices = @transform_3, window_bounds = array<i64: 128, 128>}, {pipeline_mode = #tpu.pipeline_mode<synchronous>, transform_indices = @transform_4, window_bounds = array<i64: 32, 32>}, {pipeline_mode = #tpu.pipeline_mode<synchronous>, transform_indices = @transform_5, window_bounds = array<i64: 1, 32>}, {pipeline_mode = #tpu.pipeline_mode<synchronous>, transform_indices = @transform_6, window_bounds = array<i64: 32, 32>}, {pipeline_mode = #tpu.pipeline_mode<synchronous>, transform_indices = @transform_7, window_bounds = array<i64: 1, 32>}, {pipeline_mode = #tpu.pipeline_mode<synchronous>, transform_indices = @transform_8, window_bounds = array<i64: 32, 256>}, {pipeline_mode = #tpu.pipeline_mode<synchronous>, transform_indices = @transform_9, window_bounds = array<i64: 1, 256>}, {pipeline_mode = #tpu.pipeline_mode<synchronous>, transform_indices = @transform_10, window_bounds = array<i64: 128, 96>}, {pipeline_mode = #tpu.pipeline_mode<synchronous>, transform_indices = @transform_11, window_bounds = array<i64: 1, 96>}, {pipeline_mode = #tpu.pipeline_mode<synchronous>, transform_indices = @transform_12, window_bounds = array<i64: 96, 512>}, {pipeline_mode = #tpu.pipeline_mode<synchronous>, transform_indices = @transform_13, window_bounds = array<i64: 1, 512>}, {pipeline_mode = #tpu.pipeline_mode<synchronous>, transform_indices = @transform_14, window_bounds = array<i64: 128, 32>}, {pipeline_mode = #tpu.pipeline_mode<synchronous>, transform_indices = @transform_15, window_bounds = array<i64: 1, 32>}, {pipeline_mode = #tpu.pipeline_mode<synchronous>, transform_indices = @transform_16, window_bounds = array<i64: 32, 32>}, {pipeline_mode = #tpu.pipeline_mode<synchronous>, transform_indices = @transform_17, window_bounds = array<i64: 1, 32>}, {pipeline_mode = #tpu.pipeline_mode<synchronous>, transform_indices = @transform_18, window_bounds = array<i64: 32, 128>}, {pipeline_mode = #tpu.pipeline_mode<synchronous>, transform_indices = @transform_19, window_bounds = array<i64: 1, 128>}, {transform_indices = @transform_20, window_bounds = array<i64: 128, 256>}, {transform_indices = @transform_21, window_bounds = array<i64: 128, 512>}, {transform_indices = @transform_22, window_bounds = array<i64: 128, 128>}]} {
    %c0 = arith.constant 0 : index
    %c0_0 = arith.constant 0 : index
    %0 = vector.load %arg1[%c0, %c0_0] : memref<128x32xf32, #tpu.memory_space<vmem>>, vector<128x32xf32>
    %c0_1 = arith.constant 0 : index
    %c0_2 = arith.constant 0 : index
    %1 = vector.load %arg5[%c0_1, %c0_2] : memref<32x32xf32, #tpu.memory_space<vmem>>, vector<32x32xf32>
    %cst = arith.constant dense<0.000000e+00> : vector<128x32xf32>
    %2 = tpu.matmul %0, %1, %cst {dimension_numbers = #tpu.dot_dimension_numbers<[1], [0], [0], [1], [0, 0, 1, 1], [], []>, precision = #tpu.contract_precision<fp32>} : vector<128x32xf32>, vector<32x32xf32>, vector<128x32xf32> -> vector<128x32xf32>
    %c0_3 = arith.constant 0 : index
    %c0_4 = arith.constant 0 : index
    %3 = vector.load %arg6[%c0_3, %c0_4] : memref<1x32xf32, #tpu.memory_space<vmem>>, vector<1x32xf32>
    %4 = vector.broadcast %3 : vector<1x32xf32> to vector<128x32xf32>
    %5 = arith.addf %2, %4 : vector<128x32xf32>
    %cst_5 = arith.constant 0.000000e+00 : f32
    %6 = vector.broadcast %cst_5 : f32 to vector<128x32xf32>
    %7 = arith.maximumf %5, %6 : vector<128x32xf32>
    %c0_6 = arith.constant 0 : index
    %c0_7 = arith.constant 0 : index
    %8 = vector.load %arg7[%c0_6, %c0_7] : memref<32x32xf32, #tpu.memory_space<vmem>>, vector<32x32xf32>
    %cst_8 = arith.constant dense<0.000000e+00> : vector<128x32xf32>
    %9 = tpu.matmul %7, %8, %cst_8 {dimension_numbers = #tpu.dot_dimension_numbers<[1], [0], [0], [1], [0, 0, 1, 1], [], []>, precision = #tpu.contract_precision<fp32>} : vector<128x32xf32>, vector<32x32xf32>, vector<128x32xf32> -> vector<128x32xf32>
    %c0_9 = arith.constant 0 : index
    %c0_10 = arith.constant 0 : index
    %10 = vector.load %arg8[%c0_9, %c0_10] : memref<1x32xf32, #tpu.memory_space<vmem>>, vector<1x32xf32>
    %11 = vector.broadcast %10 : vector<1x32xf32> to vector<128x32xf32>
    %12 = arith.addf %9, %11 : vector<128x32xf32>
    %cst_11 = arith.constant 0.000000e+00 : f32
    %13 = vector.broadcast %cst_11 : f32 to vector<128x32xf32>
    %14 = arith.maximumf %12, %13 : vector<128x32xf32>
    %c0_12 = arith.constant 0 : index
    %c0_13 = arith.constant 0 : index
    %15 = vector.load %arg9[%c0_12, %c0_13] : memref<32x256xf32, #tpu.memory_space<vmem>>, vector<32x256xf32>
    %cst_14 = arith.constant dense<0.000000e+00> : vector<128x256xf32>
    %16 = tpu.matmul %14, %15, %cst_14 {dimension_numbers = #tpu.dot_dimension_numbers<[1], [0], [0], [1], [0, 0, 1, 1], [], []>, precision = #tpu.contract_precision<fp32>} : vector<128x32xf32>, vector<32x256xf32>, vector<128x256xf32> -> vector<128x256xf32>
    %c0_15 = arith.constant 0 : index
    %c0_16 = arith.constant 0 : index
    %17 = vector.load %arg10[%c0_15, %c0_16] : memref<1x256xf32, #tpu.memory_space<vmem>>, vector<1x256xf32>
    %18 = vector.broadcast %17 : vector<1x256xf32> to vector<128x256xf32>
    %19 = arith.addf %16, %18 : vector<128x256xf32>
    %c0_17 = arith.constant 0 : index
    %c0_18 = arith.constant 0 : index
    %20 = vector.load %arg21[%c0_17, %c0_18] : memref<128x256xf32, #tpu.memory_space<vmem>>, vector<128x256xf32>
    tpu.vector_store %arg21[%c0_17, %c0_18], %19 {strides = array<i32>} : memref<128x256xf32, #tpu.memory_space<vmem>>, vector<128x256xf32>,
    %21 = vector.extract_strided_slice %19 {offsets = [0, 0], sizes = [128, 128], strides = [1, 1]} : vector<128x256xf32> to vector<128x128xf32>
    %c0_19 = arith.constant 0 : index
    %c0_20 = arith.constant 0 : index
    %22 = vector.load %arg3[%c0_19, %c0_20] : memref<128x128xf32, #tpu.memory_space<vmem>>, vector<128x128xf32>
    %23 = vector.extract_strided_slice %19 {offsets = [0, 128], sizes = [128, 128], strides = [1, 1]} : vector<128x256xf32> to vector<128x128xf32>
    %cst_21 = arith.constant 5.000000e-01 : f32
    %24 = vector.broadcast %cst_21 : f32 to vector<128x128xf32>
    %25 = arith.mulf %24, %23 : vector<128x128xf32>
    %26 = math.exp %25 : vector<128x128xf32>
    %27 = arith.mulf %22, %26 : vector<128x128xf32>
    %28 = arith.addf %21, %27 : vector<128x128xf32>
    %c0_22 = arith.constant 0 : index
    %c0_23 = arith.constant 0 : index
    %29 = vector.load %arg2[%c0_22, %c0_23] : memref<128x128xf32, #tpu.memory_space<vmem>>, vector<128x128xf32>
    %30 = arith.addf %28, %29 : vector<128x128xf32>
    %c0_24 = arith.constant 0 : index
    %c0_25 = arith.constant 0 : index
    %31 = vector.load %arg11[%c0_24, %c0_25] : memref<128x96xf32, #tpu.memory_space<vmem>>, vector<128x96xf32>
    %cst_26 = arith.constant dense<0.000000e+00> : vector<128x96xf32>
    %32 = tpu.matmul %30, %31, %cst_26 {dimension_numbers = #tpu.dot_dimension_numbers<[1], [0], [0], [1], [0, 0, 1, 1], [], []>, precision = #tpu.contract_precision<fp32>} : vector<128x128xf32>, vector<128x96xf32>, vector<128x96xf32> -> vector<128x96xf32>
    %c0_27 = arith.constant 0 : index
    %c0_28 = arith.constant 0 : index
    %33 = vector.load %arg12[%c0_27, %c0_28] : memref<1x96xf32, #tpu.memory_space<vmem>>, vector<1x96xf32>
    %34 = vector.broadcast %33 : vector<1x96xf32> to vector<128x96xf32>
    %35 = arith.addf %32, %34 : vector<128x96xf32>
    %cst_29 = arith.constant 0.000000e+00 : f32
    %36 = vector.broadcast %cst_29 : f32 to vector<128x96xf32>
    %37 = arith.maximumf %35, %36 : vector<128x96xf32>
    %c0_30 = arith.constant 0 : index
    %c0_31 = arith.constant 0 : index
    %38 = vector.load %arg13[%c0_30, %c0_31] : memref<96x512xf32, #tpu.memory_space<vmem>>, vector<96x512xf32>
    %cst_32 = arith.constant dense<0.000000e+00> : vector<128x512xf32>
    %39 = tpu.matmul %37, %38, %cst_32 {dimension_numbers = #tpu.dot_dimension_numbers<[1], [0], [0], [1], [0, 0, 1, 1], [], []>, precision = #tpu.contract_precision<fp32>} : vector<128x96xf32>, vector<96x512xf32>, vector<128x512xf32> -> vector<128x512xf32>
    %c0_33 = arith.constant 0 : index
    %c0_34 = arith.constant 0 : index
    %40 = vector.load %arg14[%c0_33, %c0_34] : memref<1x512xf32, #tpu.memory_space<vmem>>, vector<1x512xf32>
    %41 = vector.broadcast %40 : vector<1x512xf32> to vector<128x512xf32>
    %42 = arith.addf %39, %41 : vector<128x512xf32>
    %43 = vector.extract_strided_slice %42 {offsets = [0, 0], sizes = [128, 384], strides = [1, 1]} : vector<128x512xf32> to vector<128x384xf32>
    %c0_35 = arith.constant 0 : index
    %c0_36 = arith.constant 0 : index
    %44 = vector.load %arg22[%c0_35, %c0_36] : memref<128x512xf32, #tpu.memory_space<vmem>>, vector<128x384xf32>
    tpu.vector_store %arg22[%c0_35, %c0_36], %43 {strides = array<i32>} : memref<128x512xf32, #tpu.memory_space<vmem>>, vector<128x384xf32>,
    %45 = vector.extract_strided_slice %42 {offsets = [0, 384], sizes = [128, 128], strides = [1, 1]} : vector<128x512xf32> to vector<128x128xf32>
    %46 = arith.negf %45 : vector<128x128xf32>
    %47 = math.exp %46 : vector<128x128xf32>
    %cst_37 = arith.constant 1.000000e+00 : f32
    %48 = vector.broadcast %cst_37 : f32 to vector<128x128xf32>
    %49 = arith.addf %48, %47 : vector<128x128xf32>
    %50 = arith.divf %48, %49 : vector<128x128xf32>
    %c0_38 = arith.constant 0 : index
    %c384 = arith.constant 384 : index
    %51 = vector.load %arg22[%c0_38, %c384] : memref<128x512xf32, #tpu.memory_space<vmem>>, vector<128x128xf32>
    tpu.vector_store %arg22[%c0_38, %c384], %50 {strides = array<i32>} : memref<128x512xf32, #tpu.memory_space<vmem>>, vector<128x128xf32>,
    %52 = vector.extract_strided_slice %42 {offsets = [0, 0], sizes = [128, 128], strides = [1, 1]} : vector<128x512xf32> to vector<128x128xf32>
    %c0_39 = arith.constant 0 : index
    %c0_40 = arith.constant 0 : index
    %53 = vector.load %arg4[%c0_39, %c0_40] : memref<128x128xf32, #tpu.memory_space<vmem>>, vector<128x128xf32>
    %54 = vector.extract_strided_slice %42 {offsets = [0, 128], sizes = [128, 128], strides = [1, 1]} : vector<128x512xf32> to vector<128x128xf32>
    %cst_41 = arith.constant 5.000000e-01 : f32
    %55 = vector.broadcast %cst_41 : f32 to vector<128x128xf32>
    %56 = arith.mulf %55, %54 : vector<128x128xf32>
    %57 = math.exp %56 : vector<128x128xf32>
    %58 = arith.mulf %53, %57 : vector<128x128xf32>
    %59 = arith.addf %52, %58 : vector<128x128xf32>
    %c0_42 = arith.constant 0 : index
    %c0_43 = arith.constant 0 : index
    %60 = vector.load %arg15[%c0_42, %c0_43] : memref<128x32xf32, #tpu.memory_space<vmem>>, vector<128x32xf32>
    %cst_44 = arith.constant dense<0.000000e+00> : vector<128x32xf32>
    %61 = tpu.matmul %59, %60, %cst_44 {dimension_numbers = #tpu.dot_dimension_numbers<[1], [0], [0], [1], [0, 0, 1, 1], [], []>, precision = #tpu.contract_precision<fp32>} : vector<128x128xf32>, vector<128x32xf32>, vector<128x32xf32> -> vector<128x32xf32>
    %c0_45 = arith.constant 0 : index
    %c0_46 = arith.constant 0 : index
    %62 = vector.load %arg16[%c0_45, %c0_46] : memref<1x32xf32, #tpu.memory_space<vmem>>, vector<1x32xf32>
    %63 = vector.broadcast %62 : vector<1x32xf32> to vector<128x32xf32>
    %64 = arith.addf %61, %63 : vector<128x32xf32>
    %cst_47 = arith.constant 0.000000e+00 : f32
    %65 = vector.broadcast %cst_47 : f32 to vector<128x32xf32>
    %66 = arith.maximumf %64, %65 : vector<128x32xf32>
    %c0_48 = arith.constant 0 : index
    %c0_49 = arith.constant 0 : index
    %67 = vector.load %arg17[%c0_48, %c0_49] : memref<32x32xf32, #tpu.memory_space<vmem>>, vector<32x32xf32>
    %cst_50 = arith.constant dense<0.000000e+00> : vector<128x32xf32>
    %68 = tpu.matmul %66, %67, %cst_50 {dimension_numbers = #tpu.dot_dimension_numbers<[1], [0], [0], [1], [0, 0, 1, 1], [], []>, precision = #tpu.contract_precision<fp32>} : vector<128x32xf32>, vector<32x32xf32>, vector<128x32xf32> -> vector<128x32xf32>
    %c0_51 = arith.constant 0 : index
    %c0_52 = arith.constant 0 : index
    %69 = vector.load %arg18[%c0_51, %c0_52] : memref<1x32xf32, #tpu.memory_space<vmem>>, vector<1x32xf32>
    %70 = vector.broadcast %69 : vector<1x32xf32> to vector<128x32xf32>
    %71 = arith.addf %68, %70 : vector<128x32xf32>
    %cst_53 = arith.constant 0.000000e+00 : f32
    %72 = vector.broadcast %cst_53 : f32 to vector<128x32xf32>
    %73 = arith.maximumf %71, %72 : vector<128x32xf32>
    %c0_54 = arith.constant 0 : index
    %c0_55 = arith.constant 0 : index
    %74 = vector.load %arg19[%c0_54, %c0_55] : memref<32x128xf32, #tpu.memory_space<vmem>>, vector<32x128xf32>
    %cst_56 = arith.constant dense<0.000000e+00> : vector<128x128xf32>
    %75 = tpu.matmul %73, %74, %cst_56 {dimension_numbers = #tpu.dot_dimension_numbers<[1], [0], [0], [1], [0, 0, 1, 1], [], []>, precision = #tpu.contract_precision<fp32>} : vector<128x32xf32>, vector<32x128xf32>, vector<128x128xf32> -> vector<128x128xf32>
    %c0_57 = arith.constant 0 : index
    %c0_58 = arith.constant 0 : index
    %76 = vector.load %arg20[%c0_57, %c0_58] : memref<1x128xf32, #tpu.memory_space<vmem>>, vector<1x128xf32>
    %77 = vector.broadcast %76 : vector<1x128xf32> to vector<128x128xf32>
    %78 = arith.addf %75, %77 : vector<128x128xf32>
    %c0_59 = arith.constant 0 : index
    %c0_60 = arith.constant 0 : index
    %79 = vector.load %arg23[%c0_59, %c0_60] : memref<128x128xf32, #tpu.memory_space<vmem>>, vector<128x128xf32>
    tpu.vector_store %arg23[%c0_59, %c0_60], %78 {strides = array<i32>} : memref<128x128xf32, #tpu.memory_space<vmem>>, vector<128x128xf32>,
    return
  }
  func.func @transform_0(%arg0: i32) -> (i32, i32) {
    %c0_i32 = arith.constant 0 : i32
    %c0_i32_0 = arith.constant 0 : i32
    return %arg0, %c0_i32 : i32, i32
  }
  func.func @transform_1(%arg0: i32) -> (i32, i32) {
    %c0_i32 = arith.constant 0 : i32
    %c0_i32_0 = arith.constant 0 : i32
    return %arg0, %c0_i32 : i32, i32
  }
  func.func @transform_2(%arg0: i32) -> (i32, i32) {
    %c0_i32 = arith.constant 0 : i32
    %c0_i32_0 = arith.constant 0 : i32
    return %arg0, %c0_i32 : i32, i32
  }
  func.func @transform_3(%arg0: i32) -> (i32, i32) {
    %c0_i32 = arith.constant 0 : i32
    %c0_i32_0 = arith.constant 0 : i32
    return %arg0, %c0_i32 : i32, i32
  }
  func.func @transform_4(%arg0: i32) -> (i32, i32) {
    %c0_i32 = arith.constant 0 : i32
    %c0_i32_0 = arith.constant 0 : i32
    %c0_i32_1 = arith.constant 0 : i32
    return %c0_i32, %c0_i32_0 : i32, i32
  }
  func.func @transform_5(%arg0: i32) -> (i32, i32) {
    %c0_i32 = arith.constant 0 : i32
    %c0_i32_0 = arith.constant 0 : i32
    %c0_i32_1 = arith.constant 0 : i32
    return %c0_i32, %c0_i32_0 : i32, i32
  }
  func.func @transform_6(%arg0: i32) -> (i32, i32) {
    %c0_i32 = arith.constant 0 : i32
    %c0_i32_0 = arith.constant 0 : i32
    %c0_i32_1 = arith.constant 0 : i32
    return %c0_i32, %c0_i32_0 : i32, i32
  }
  func.func @transform_7(%arg0: i32) -> (i32, i32) {
    %c0_i32 = arith.constant 0 : i32
    %c0_i32_0 = arith.constant 0 : i32
    %c0_i32_1 = arith.constant 0 : i32
    return %c0_i32, %c0_i32_0 : i32, i32
  }
  func.func @transform_8(%arg0: i32) -> (i32, i32) {
    %c0_i32 = arith.constant 0 : i32
    %c0_i32_0 = arith.constant 0 : i32
    %c0_i32_1 = arith.constant 0 : i32
    return %c0_i32, %c0_i32_0 : i32, i32
  }
  func.func @transform_9(%arg0: i32) -> (i32, i32) {
    %c0_i32 = arith.constant 0 : i32
    %c0_i32_0 = arith.constant 0 : i32
    %c0_i32_1 = arith.constant 0 : i32
    return %c0_i32, %c0_i32_0 : i32, i32
  }
  func.func @transform_10(%arg0: i32) -> (i32, i32) {
    %c0_i32 = arith.constant 0 : i32
    %c0_i32_0 = arith.constant 0 : i32
    %c0_i32_1 = arith.constant 0 : i32
    return %c0_i32, %c0_i32_0 : i32, i32
  }
  func.func @transform_11(%arg0: i32) -> (i32, i32) {
    %c0_i32 = arith.constant 0 : i32
    %c0_i32_0 = arith.constant 0 : i32
    %c0_i32_1 = arith.constant 0 : i32
    return %c0_i32, %c0_i32_0 : i32, i32
  }
  func.func @transform_12(%arg0: i32) -> (i32, i32) {
    %c0_i32 = arith.constant 0 : i32
    %c0_i32_0 = arith.constant 0 : i32
    %c0_i32_1 = arith.constant 0 : i32
    return %c0_i32, %c0_i32_0 : i32, i32
  }
  func.func @transform_13(%arg0: i32) -> (i32, i32) {
    %c0_i32 = arith.constant 0 : i32
    %c0_i32_0 = arith.constant 0 : i32
    %c0_i32_1 = arith.constant 0 : i32
    return %c0_i32, %c0_i32_0 : i32, i32
  }
  func.func @transform_14(%arg0: i32) -> (i32, i32) {
    %c0_i32 = arith.constant 0 : i32
    %c0_i32_0 = arith.constant 0 : i32
    %c0_i32_1 = arith.constant 0 : i32
    return %c0_i32, %c0_i32_0 : i32, i32
  }
  func.func @transform_15(%arg0: i32) -> (i32, i32) {
    %c0_i32 = arith.constant 0 : i32
    %c0_i32_0 = arith.constant 0 : i32
    %c0_i32_1 = arith.constant 0 : i32
    return %c0_i32, %c0_i32_0 : i32, i32
  }
  func.func @transform_16(%arg0: i32) -> (i32, i32) {
    %c0_i32 = arith.constant 0 : i32
    %c0_i32_0 = arith.constant 0 : i32
    %c0_i32_1 = arith.constant 0 : i32
    return %c0_i32, %c0_i32_0 : i32, i32
  }
  func.func @transform_17(%arg0: i32) -> (i32, i32) {
    %c0_i32 = arith.constant 0 : i32
    %c0_i32_0 = arith.constant 0 : i32
    %c0_i32_1 = arith.constant 0 : i32
    return %c0_i32, %c0_i32_0 : i32, i32
  }
  func.func @transform_18(%arg0: i32) -> (i32, i32) {
    %c0_i32 = arith.constant 0 : i32
    %c0_i32_0 = arith.constant 0 : i32
    %c0_i32_1 = arith.constant 0 : i32
    return %c0_i32, %c0_i32_0 : i32, i32
  }
  func.func @transform_19(%arg0: i32) -> (i32, i32) {
    %c0_i32 = arith.constant 0 : i32
    %c0_i32_0 = arith.constant 0 : i32
    %c0_i32_1 = arith.constant 0 : i32
    return %c0_i32, %c0_i32_0 : i32, i32
  }
  func.func @transform_20(%arg0: i32) -> (i32, i32) {
    %c0_i32 = arith.constant 0 : i32
    %c0_i32_0 = arith.constant 0 : i32
    return %arg0, %c0_i32 : i32, i32
  }
  func.func @transform_21(%arg0: i32) -> (i32, i32) {
    %c0_i32 = arith.constant 0 : i32
    %c0_i32_0 = arith.constant 0 : i32
    return %arg0, %c0_i32 : i32, i32
  }
  func.func @transform_22(%arg0: i32) -> (i32, i32) {
    %c0_i32 = arith.constant 0 : i32
    %c0_i32_0 = arith.constant 0 : i32
    return %arg0, %c0_i32 : i32, i32
  }
}

</mosaic_0001>

<bundles_post_ra>
// kernel: rssm_forward.1
= control target key start
LH: loop header
LB: loop body
LE: loop exit
PB: predicated region body
PF: predicated region fallthrough
CT: control target
= control target key end

     0   :  { %s23135_s0 = inlined_call_operand.vmem [shape: f32[256,32], index: 0, kind: input, shape index: {}]   ;;  %s23136_s1 = inlined_call_operand.vmem [shape: f32[256,128], index: 1, kind: input, shape index: {}]   ;;  %s23137_s2 = inlined_call_operand.vmem [shape: f32[256,128], index: 2, kind: input, shape index: {}]   ;;  %s23138_s3 = inlined_call_operand.vmem [shape: f32[256,128], index: 3, kind: input, shape index: {}]   ;;  %s23139_s4 = inlined_call_operand.vmem [shape: f32[32,32], index: 4, kind: input, shape index: {}]   ;;  %s23140_s5 = inlined_call_operand.vmem [shape: f32[1,32], index: 5, kind: input, shape index: {}]   ;;  %s23141_s6 = inlined_call_operand.vmem [shape: f32[32,32], index: 6, kind: input, shape index: {}]   ;;  %s23142_s7 = inlined_call_operand.vmem [shape: f32[1,32], index: 7, kind: input, shape index: {}]   ;;  %s23143_s8 = inlined_call_operand.vmem [shape: f32[32,256], index: 8, kind: input, shape index: {}]   ;;  %s23144_s9 = inlined_call_operand.vmem [shape: f32[1,256], index: 9, kind: input, shape index: {}]   ;;  %s23145_s10 = inlined_call_operand.vmem [shape: f32[128,96], index: 10, kind: input, shape index: {}]   ;;  %s23146_s11 = inlined_call_operand.vmem [shape: f32[1,96], index: 11, kind: input, shape index: {}]   ;;  %s23147_s12 = inlined_call_operand.vmem [shape: f32[96,512], index: 12, kind: input, shape index: {}]   ;;  %s23148_s13 = inlined_call_operand.vmem [shape: f32[1,512], index: 13, kind: input, shape index: {}]   ;;  %s23149_s14 = inlined_call_operand.vmem [shape: f32[128,32], index: 14, kind: input, shape index: {}]   ;;  %s23150_s15 = inlined_call_operand.vmem [shape: f32[1,32], index: 15, kind: input, shape index: {}]   ;;  %s23151_s16 = inlined_call_operand.vmem [shape: f32[32,32], index: 16, kind: input, shape index: {}]   ;;  %s23152_s17 = inlined_call_operand.vmem [shape: f32[1,32], index: 17, kind: input, shape index: {}]   ;;  %s23153_s18 = inlined_call_operand.vmem [shape: f32[32,128], index: 18, kind: input, shape index: {}]   ;;  %s23154_s19 = inlined_call_operand.vmem [shape: f32[1,128], index: 19, kind: input, shape index: {}]   ;;  %s23155_s20 = inlined_call_operand.vmem [shape: f32[256,256], index: 20, kind: output, shape index: {0}]   ;;  %s23156_s21 = inlined_call_operand.vmem [shape: f32[256,512], index: 21, kind: output, shape index: {1}]   ;;  %s23157_s22 = inlined_call_operand.vmem [shape: f32[256,128], index: 22, kind: output, shape index: {2}]  }
   0x1   :  { %23549 = sst [smem:[#allocation97_spill]] %s23135_s0 }
   0x2   :  { %23550 = sst [smem:[#allocation98_spill]] %s23136_s1 }
   0x3   :  { %23551 = sst [smem:[#allocation99_spill]] %s23137_s2 }
   0x4   :  { %23552 = sst [smem:[#allocation100_spill]] %s23138_s3  ;;  %s17964_s3 = smov 0  }
   0x5   :  { %23553 = sst [smem:[#allocation101_spill]] %s23139_s4 }
   0x6   :  { %23554 = sst [smem:[#allocation102_spill]] %s23140_s5 }
   0x7   :  { %23555 = sst [smem:[#allocation103_spill]] %s23141_s6 }
   0x8 LB: > { %s13288_s28 = sadd.s32 4294967295, %s17846_s3   ;;  %p13292_p0 = scmp.ge.s32.totalorder %s17846_s3, 1  ;;  %s17846_s3 = sphi %s17964_s3, %s33_s3  }
   0x9   : > { %p651_p1 = scmp.lt.s32.totalorder %s17846_s3, 3 }
   0xb   : > { %p652_p2 = pnand %p13292_p0, %p651_p1 }
   0xd   : > { %655 = sbr.rel (%p652_p2) target bundleno = 3587 (0xe03), region = 100 }
  0x14   : > { %s23556_s4 = sld [smem:[#allocation101_spill]]  ;;  %s13293_s24 = sshll.u32 %s13288_s28, 4  ;;  %vm811_vm0 = vcmask 261120   ;;  %vm6112_vm1 = vcmask 785408  }
  0x15   : > { %p741_p3 = scmp.lt.s32.totalorder %s13293_s24, 31  ;;  %s23557_s28 = sld [smem:[#allocation97_spill]] }
  0x16   : > { %s23559_s23 = sld [smem:[#allocation103_spill]]  ;;  %s23560_s30 = sld [smem:[#allocation102_spill]] }
  0x17   : > { %s24081_s24 = smov (!%p741_p3, %s13293_s24), 31  ;;  %s24019_s1 = sld [smem:[#allocation100_spill]] }
  0x18   : > { %s18000_s26 = sshll.u32 %s24081_s24, 3  ;;  %s13333_s5 = sshll.u32 %s24081_s24, 4 }
  0x19   : > { %s19497_s2 = scalar_lea.vmem %s23155_s20, %s13333_s5  ;;  %s23599_s5 = sld [smem:[#allocation98_spill]] }
  0x1a   : > { %v800_v0 = vld [vmem:[%s23556_s4] sm:$0xff]  ;;  %v801_v1 = vld [vmem:[%s23556_s4 + $0x8] sm:$0xff]  ;;  %v802_v2 = vld [vmem:[%s23556_s4 + $0x10] sm:$0xff]  ;;  %s13334_s27 = sshll.u32 %s24081_s24, 5 }
  0x1b   : > { %v861_v3 = vand.u32 4294901760, %v800_v0  ;;  %v864_v4 = vand.u32 4294901760, %v801_v1  ;;  %v803_v5 = vld [vmem:[%s23556_s4 + $0x18] sm:$0xff]  ;;  %v867_v6 = vand.u32 4294901760, %v802_v2  ;;  %s18010_s29 = scalar_lea.vmem %s23557_s28, %s18000_s26 }
  0x1c   : > { %v870_v7 = vand.u32 4294901760, %v803_v5  ;;  %v784_v18 = vld [vmem:[%s18010_s29] sm:$0xff]  ;;  %v785_v21 = vld [vmem:[%s18010_s29 + $0x8] sm:$0xff]  ;;  %v786_v22 = vld [vmem:[%s18010_s29 + $0x10] sm:$0xff] }
  0x1d   : > { %v17984_v8 = vpack.c.bf16 %v864_v4, %v861_v3  ;;  %v17988_v9 = vsub.f32 %v800_v0, %v861_v3  ;;  %v17990_v10 = vsub.f32 %v801_v1, %v864_v4  ;;  %v17992_v11 = vsub.f32 %v802_v2, %v867_v6  ;;  %v787_v28 = vld [vmem:[%s18010_s29 + $0x18] sm:$0xff]  ;;  %v788_v29 = vld [vmem:[%s18010_s29 + $0x20] sm:$0xff]  ;;  %v789_v30 = vld [vmem:[%s18010_s29 + $0x28] sm:$0xff] }
  0x1e   : > { %v17994_v12 = vpack.c.bf16 %v870_v7, %v867_v6  ;;  %v17996_v13 = vsub.f32 %v803_v5, %v870_v7  ;;  %v813_v25 = vsel %vm811_vm0, %v784_v18, 0  ;;  %v816_v26 = vsel %vm811_vm0, %v785_v21, 0  ;;  %v790_v36 = vld [vmem:[%s18010_s29 + $0x30] sm:$0xff]  ;;  %v791_v45 = vld [vmem:[%s18010_s29 + $0x38] sm:$0xff]  ;;  %v792_v2 = vld [vmem:[%s18010_s29 + $0x40] sm:$0xff] }
  0x1f   : > { %15640 = vmatprep.subr.bf16.mxu0 %v17984_v8  ;;  %v1092_v14 = vand.u32 4294901760, %v17988_v9  ;;  %v1099_v15 = vand.u32 4294901760, %v17990_v10  ;;  %v1106_v16 = vand.u32 4294901760, %v17992_v11  ;;  %v819_v27 = vsel %vm811_vm0, %v786_v22, 0  ;;  %s19532_s6 = scalar_lea.vmem %s23599_s5, %s18000_s26  ;;  %s21826_s5 = scalar_lea.vmem %s24019_s1, %s18000_s26 }
  0x20   : > { %15642 = vmatpush3.bf16.msra.mxu0 %v17984_v8  ;;  %v1113_v17 = vand.u32 4294901760, %v17996_v13  ;;  %v18037_v32 = vand.u32 4294901760, %v813_v25  ;;  %v18039_v35 = vand.u32 4294901760, %v816_v26  ;;  %v18043_v37 = vand.u32 4294901760, %v819_v27 }
  0x21   : > { %15644 = vmatprep.subr.bf16.mxu0 %v17994_v12  ;;  %v1093_v19 = vsub.f32 %v17988_v9, %v1092_v14  ;;  %v1100_v20 = vsub.f32 %v17990_v10, %v1099_v15  ;;  %v18022_v23 = vsub.f32 %v17992_v11, %v1106_v16  ;;  %v18024_v24 = vpack.c.bf16 %v1099_v15, %v1092_v14 }
  0x22   : > { %v18035_v31 = vsub.f32 %v17996_v13, %v1113_v17  ;;  %v822_v38 = vsel %vm811_vm0, %v787_v28, 0  ;;  %v825_v39 = vsel %vm811_vm0, %v788_v29, 0  ;;  %v828_v40 = vsel %vm811_vm0, %v789_v30, 0 }
  0x23   : > { %v1094_v33 = vand.u32 4294901760, %v1093_v19  ;;  %v1101_v34 = vand.u32 4294901760, %v1100_v20  ;;  %v18049_v41 = vsub.f32 %v813_v25, %v18037_v32  ;;  %v18052_v43 = vsub.f32 %v816_v26, %v18039_v35  ;;  %v793_v19 = vld [vmem:[%s18010_s29 + $0x48] sm:$0xff]  ;;  %v794_v20 = vld [vmem:[%s18010_s29 + $0x50] sm:$0xff] }
  0x24   : > { %15646 = vmatpush3.bf16.msra.mxu0 %v17994_v12  ;;  %v18054_v44 = vand.u32 4294901760, %v822_v38  ;;  %v18058_v46 = vsub.f32 %v819_v27, %v18043_v37  ;;  %v18060_v47 = vand.u32 4294901760, %v825_v39  ;;  %v18062_v48 = vand.u32 4294901760, %v828_v40 }
  0x25   : > { %v15647_v42 = vpack.c.bf16 %v1101_v34, %v1094_v33  ;;  %v831_v49 = vsel %vm811_vm0, %v790_v36, 0  ;;  %v931_v50 = vand.u32 4294901760, %v18049_v41  ;;  %v941_v51 = vand.u32 4294901760, %v18052_v43  ;;  %v795_v33 = vld [vmem:[%s18010_s29 + $0x58] sm:$0xff]  ;;  %v796_v34 = vld [vmem:[%s18010_s29 + $0x60] sm:$0xff]  ;;  %v797_v36 = vld [vmem:[%s18010_s29 + $0x68] sm:$0xff] }
  0x26   : > { %v18068_v52 = vsub.f32 %v822_v38, %v18054_v44  ;;  %v18070_v53 = vand.u32 4294901760, %v831_v49  ;;  %v951_v54 = vand.u32 4294901760, %v18058_v46  ;;  %v18074_v55 = vsub.f32 %v825_v39, %v18060_v47 }
  0x27   : > { %15648 = vmatprep.subr.bf16.mxu0 %v15647_v42  ;;  %v18077_v56 = vsub.f32 %v828_v40, %v18062_v48  ;;  %v834_v57 = vsel %vm811_vm0, %v791_v45, 0  ;;  %v932_v58 = vsub.f32 %v18049_v41, %v931_v50  ;;  %v942_v59 = vsub.f32 %v18052_v43, %v941_v51 }
  0x28   : > { %v961_v60 = vand.u32 4294901760, %v18068_v52  ;;  %v18088_v61 = vsub.f32 %v831_v49, %v18070_v53  ;;  %v952_v62 = vsub.f32 %v18058_v46, %v951_v54  ;;  %v971_v63 = vand.u32 4294901760, %v18074_v55 }
  0x29   : > { %v981_v0 = vand.u32 4294901760, %v18077_v56  ;;  %v18095_v1 = vand.u32 4294901760, %v834_v57  ;;  %v933_v3 = vand.u32 4294901760, %v932_v58  ;;  %v943_v4 = vand.u32 4294901760, %v942_v59 }
  0x2a   : > { %v962_v5 = vsub.f32 %v18068_v52, %v961_v60  ;;  %v991_v6 = vand.u32 4294901760, %v18088_v61  ;;  %v953_v7 = vand.u32 4294901760, %v952_v62  ;;  %v972_v14 = vsub.f32 %v18074_v55, %v971_v63 }
  0x2b   : > { %v982_v15 = vsub.f32 %v18077_v56, %v981_v0  ;;  %v18109_v18 = vsub.f32 %v834_v57, %v18095_v1  ;;  %14207 = vmatprep.mubr.f32.mxu0 %v933_v3  ;;  %v837_v22 = vsel %vm811_vm0, %v792_v2, 0  ;;  %v1108_v25 = vand.u32 4294901760, %v18022_v23 }
  0x2c   : > { %v963_v21 = vand.u32 4294901760, %v962_v5  ;;  %v18117_v26 = vpack.c.bf16 %v17990_v10, %v17988_v9  ;;  %14208 = vmatmul.mubr.f32.vlgmr.msra.gmra.mrb[0].mxu0 %v943_v4  ;;  %v973_v27 = vand.u32 4294901760, %v972_v14  ;;  %v992_v28 = vsub.f32 %v18088_v61, %v991_v6  ;;  %v799_v5 = vld [vmem:[%s18010_s29 + $0x78] sm:$0xff] }
  0x2d   : > { %v1001_v29 = vand.u32 4294901760, %v18109_v18  ;;  %v18123_v30 = vand.u32 4294901760, %v837_v22  ;;  %15650 = vmatpush3.bf16.msra.mxu0 %v15647_v42  ;;  %14210 = vmatprep.mubr.f32.mxu0 %v953_v7  ;;  %v983_v23 = vand.u32 4294901760, %v982_v15  ;;  %v1115_v9 = vand.u32 4294901760, %v18035_v31  ;;  %v798_v42 = vld [vmem:[%s18010_s29 + $0x70] sm:$0xff]  ;;  %s23598_s29 = sld [smem:[#allocation99_spill]] }
  0x2e   : > { %v840_v10 = vsel %vm811_vm0, %v793_v19, 0  ;;  %v843_v38 = vsel %vm811_vm0, %v794_v20, 0  ;;  %v846_v31 = vsel %vm811_vm0, %v795_v33, 0  ;;  %v849_v58 = vsel %vm811_vm0, %v796_v34, 0 }
  0x2f   : > { %v1002_v39 = vsub.f32 %v18109_v18, %v1001_v29  ;;  %v18135_v40 = vsub.f32 %v837_v22, %v18123_v30  ;;  %v18137_v45 = vand.u32 4294901760, %v840_v10  ;;  %v18139_v49 = vand.u32 4294901760, %v843_v38 }
  0x30   : > { %v15651_v57 = vpack.c.bf16 %v1115_v9, %v1108_v25  ;;  %v852_v59 = vsel %vm811_vm0, %v797_v36, 0  ;;  %14211 = vmatmul.mubr.f32.gmra.mrb[2].mxu0 %v963_v21  ;;  %v993_v62 = vand.u32 4294901760, %v992_v28  ;;  %v18153_v7 = vand.u32 4294901760, %v846_v31 }
  0x31   : > { %v1011_v2 = vand.u32 4294901760, %v18135_v40  ;;  %v18147_v3 = vsub.f32 %v840_v10, %v18137_v45  ;;  %v18150_v4 = vsub.f32 %v843_v38, %v18139_v49  ;;  %14213 = vmatprep.mubr.f32.mxu0 %v973_v27  ;;  %v18155_v14 = vand.u32 4294901760, %v849_v58 }
  0x32   : > { %15652 = vmatprep.subr.bf16.mxu0 %v15651_v57  ;;  %v18157_v15 = vand.u32 4294901760, %v852_v59  ;;  %v855_v19 = vsel %vm811_vm0, %v798_v42, 0  ;;  %v1003_v27 = vand.u32 4294901760, %v1002_v39  ;;  %v18168_v28 = vsub.f32 %v846_v31, %v18153_v7 }
  0x33   : > { %v1012_v20 = vsub.f32 %v18135_v40, %v1011_v2  ;;  %v1021_v21 = vand.u32 4294901760, %v18147_v3  ;;  %15654 = vmatpush3.bf16.msra.mxu0 %v15651_v57  ;;  %v1031_v22 = vand.u32 4294901760, %v18150_v4  ;;  %v18165_v25 = vand.u32 4294901760, %v855_v19 }
  0x34   : > { %v18171_v33 = vsub.f32 %v849_v58, %v18155_v14  ;;  %v858_v34 = vsel %vm811_vm0, %v799_v5, 0  ;;  %15656 = vmatprep.subr.bf16.mxu0 %v18117_v26  ;;  %14214 = vmatmul.mubr.f32.gmra.mrb[4].mxu0 %v983_v23  ;;  %v18182_v38 = vsub.f32 %v852_v59, %v18157_v15  ;;  %v23160_v39 = vand.u32 4294901760, %v18168_v28 }
  0x35   : > { %v1013_v36 = vand.u32 4294901760, %v1012_v20  ;;  %v1022_v9 = vsub.f32 %v18147_v3, %v1021_v21  ;;  %v1032_v10 = vsub.f32 %v18150_v4, %v1031_v22  ;;  %14216 = vmatprep.mubr.f32.mxu0 %v993_v62  ;;  %v18187_v57 = vsub.f32 %v855_v19, %v18165_v25 }
  0x36   : > { %v1051_v42 = vand.u32 4294901760, %v18171_v33  ;;  %v18189_v23 = vand.u32 4294901760, %v858_v34  ;;  %v18195_v31 = vpack.c.bf16 %v1113_v17, %v1106_v16  ;;  %v1042_v59 = vsub.f32 %v18168_v28, %v23160_v39 }
  0x37   : > { %v1023_v58 = vand.u32 4294901760, %v1022_v9  ;;  %v1061_v62 = vand.u32 4294901760, %v18182_v38  ;;  %v1033_v19 = vand.u32 4294901760, %v1032_v10  ;;  %v1071_v16 = vand.u32 4294901760, %v18187_v57 }
  0x38   : > { %14217 = vmatmul.mubr.f32.gmra.mrb[6].mxu0 %v1003_v27  ;;  %v18202_v5 = vsub.f32 %v858_v34, %v18189_v23  ;;  %v1052_v20 = vsub.f32 %v18171_v33, %v1051_v42  ;;  %v1043_v17 = vand.u32 4294901760, %v1042_v59 }
  0x39   : > { %14219 = vmatprep.mubr.f32.mxu0 %v1013_v36  ;;  %v1062_v27 = vsub.f32 %v18182_v38, %v1061_v62  ;;  %v1072_v34 = vsub.f32 %v18187_v57, %v1071_v16 }
  0x3a   : > { %v1081_v9 = vand.u32 4294901760, %v18202_v5  ;;  %v1053_v39 = vand.u32 4294901760, %v1052_v20 }
  0x3b   : > { %v1063_v36 = vand.u32 4294901760, %v1062_v27 }
  0x3c   : > { %14220 = vmatmul.mubr.f32.gmra.mrb[8].mxu0 %v1023_v58  ;;  %v1082_v10 = vsub.f32 %v18202_v5, %v1081_v9  ;;  %v1073_v58 = vand.u32 4294901760, %v1072_v34 }
  0x3d   : > { %14222 = vmatprep.mubr.f32.mxu0 %v1033_v19  ;;  %v15659_v19 = vpack.c.bf16 %v17996_v13, %v17992_v11  ;;  %v23558_v11 = vand.u32 4294901760, %v18168_v28 }
  0x3e   : > { %v1083_v59 = vand.u32 4294901760, %v1082_v10 }
  0x40   : > { %14223 = vmatmul.mubr.f32.gmra.mrb[10].mxu0 %v1043_v17 }
  0x41   : > { %14225 = vmatprep.mubr.f32.mxu0 %v1053_v39 }
  0x44   : > { %14226 = vmatmul.mubr.f32.gmra.mrb[12].mxu0 %v1063_v36 }
  0x45   : > { %14228 = vmatprep.mubr.f32.mxu0 %v1073_v58 }
  0x48   : > { %14229 = vmatmul.mubr.f32.gmra.mrb[14].mxu0 %v1083_v59 }
  0x49   : > { %14239 = vmatprep.mubr.f32.mxu0 %v18037_v32 }
  0x4c   : > { %14240 = vmatmul.mubr.f32.vlgmr.msra.gmra.mrb[0].mxu0 %v18039_v35 }
  0x4d   : > { %15658 = vmatpush3.bf16.msra.mxu0 %v18117_v26  ;;  %14242 = vmatprep.mubr.f32.mxu0 %v18043_v37 }
  0x4e   : > { %15660 = vmatprep.subr.bf16.mxu0 %v15659_v19 }
  0x50   : > { %14243 = vmatmul.mubr.f32.gmra.mrb[2].mxu0 %v18054_v44 }
  0x51   : > { %14245 = vmatprep.mubr.f32.mxu0 %v18060_v47  ;;  %15662 = vmatpush3.bf16.msra.mxu0 %v15659_v19 }
  0x52   : > { %15664 = vmatprep.subr.bf16.mxu0 %v17984_v8 }
  0x54   : > { %14246 = vmatmul.mubr.f32.gmra.mrb[4].mxu0 %v18062_v48 }
  0x55   : > { %14248 = vmatprep.mubr.f32.mxu0 %v18070_v53 }
  0x58   : > { %14249 = vmatmul.mubr.f32.gmra.mrb[6].mxu0 %v18095_v1 }
  0x59   : > { %14251 = vmatprep.mubr.f32.mxu0 %v18123_v30 }
  0x5c   : > { %14252 = vmatmul.mubr.f32.gmra.mrb[8].mxu0 %v18137_v45 }
  0x5d   : > { %14254 = vmatprep.mubr.f32.mxu0 %v18139_v49 }
  0x60   : > { %14255 = vmatmul.mubr.f32.gmra.mrb[10].mxu0 %v18153_v7 }
  0x61   : > { %14257 = vmatprep.mubr.f32.mxu0 %v18155_v14 }
  0x64   : > { %14258 = vmatmul.mubr.f32.gmra.mrb[12].mxu0 %v18157_v15 }
  0x65   : > { %14260 = vmatprep.mubr.f32.mxu0 %v18165_v25 }
  0x68   : > { %14261 = vmatmul.mubr.f32.gmra.mrb[14].mxu0 %v18189_v23 }
  0x69   : > { %14271 = vmatprep.mubr.f32.mxu0 %v18049_v41 }
  0x6c   : > { %14272 = vmatmul.mubr.f32.vlgmr.msra.gmra.mrb[0].mxu0 %v18052_v43 }
  0x6d   : > { %15666 = vmatpush3.bf16.msra.mxu0 %v17984_v8  ;;  %14274 = vmatprep.mubr.f32.mxu0 %v18058_v46 }
  0x6e   : > { %15668 = vmatprep.subr.bf16.mxu0 %v17994_v12 }
  0x70   : > { %14275 = vmatmul.mubr.f32.gmra.mrb[2].mxu0 %v18068_v52 }
  0x71   : > { %14277 = vmatprep.mubr.f32.mxu0 %v18074_v55  ;;  %15670 = vmatpush3.bf16.msra.mxu0 %v17994_v12 }
  0x72   : > { %15672 = vmatprep.subr.bf16.mxu0 %v18024_v24 }
  0x74   : > { %14278 = vmatmul.mubr.f32.gmra.mrb[4].mxu0 %v18077_v56 }
  0x75   : > { %14280 = vmatprep.mubr.f32.mxu0 %v18088_v61 }
  0x78   : > { %14281 = vmatmul.mubr.f32.gmra.mrb[6].mxu0 %v18109_v18 }
  0x79   : > { %14283 = vmatprep.mubr.f32.mxu0 %v18135_v40  ;;  %v18389_v40 = vld [vmem:[%s23560_s30] ss:$0 sm:$0xff]  ;;  %s19518_s30 = scalar_lea.vmem %s23598_s29, %s18000_s26 }
  0x7c   : > { %14284 = vmatmul.mubr.f32.gmra.mrb[8].mxu0 %v18147_v3 }
  0x7d   : > { %14286 = vmatprep.mubr.f32.mxu0 %v18150_v4 }
  0x80   : > { %14287 = vmatmul.mubr.f32.gmra.mrb[10].mxu0 %v18168_v28 }
  0x81   : > { %14289 = vmatprep.mubr.f32.mxu0 %v18171_v33 }
  0x84   : > { %14290 = vmatmul.mubr.f32.gmra.mrb[12].mxu0 %v18182_v38 }
  0x85   : > { %14292 = vmatprep.mubr.f32.mxu0 %v18187_v57 }
  0x88   : > { %14293 = vmatmul.mubr.f32.gmra.mrb[14].mxu0 %v18202_v5 }
  0x89   : > { %14303 = vmatprep.mubr.f32.mxu0 %v931_v50 }
  0x8c   : > { %14304 = vmatmul.mubr.f32.vlgmr.msra.gmra.mrb[0].mxu0 %v941_v51 }
  0x8d   : > { %15674 = vmatpush3.bf16.msra.mxu0 %v18024_v24  ;;  %14306 = vmatprep.mubr.f32.mxu0 %v951_v54 }
  0x8e   : > { %15676 = vmatprep.subr.bf16.mxu0 %v18195_v31 }
  0x90   : > { %14307 = vmatmul.mubr.f32.gmra.mrb[2].mxu0 %v961_v60 }
  0x91   : > { %14309 = vmatprep.mubr.f32.mxu0 %v971_v63  ;;  %15678 = vmatpush3.bf16.msra.mxu0 %v18195_v31 }
  0x92   : > { %15680 = vmatprep.subr.bf16.mxu0 %v17984_v8 }
  0x94   : > { %14310 = vmatmul.mubr.f32.gmra.mrb[4].mxu0 %v981_v0 }
  0x95   : > { %14312 = vmatprep.mubr.f32.mxu0 %v991_v6 }
  0x98   : > { %14313 = vmatmul.mubr.f32.gmra.mrb[6].mxu0 %v1001_v29 }
  0x99   : > { %14315 = vmatprep.mubr.f32.mxu0 %v1011_v2 }
  0x9c   : > { %14316 = vmatmul.mubr.f32.gmra.mrb[8].mxu0 %v1021_v21 }
  0x9d   : > { %14318 = vmatprep.mubr.f32.mxu0 %v1031_v22 }
  0xa0   : > { %14319 = vmatmul.mubr.f32.gmra.mrb[10].mxu0 %v23558_v11 }
  0xa1   : > { %14321 = vmatprep.mubr.f32.mxu0 %v1051_v42 }
  0xa4   : > { %14322 = vmatmul.mubr.f32.gmra.mrb[12].mxu0 %v1061_v62 }
  0xa5   : > { %14324 = vmatprep.mubr.f32.mxu0 %v1071_v16 }
  0xa8   : > { %14325 = vmatmul.mubr.f32.gmra.mrb[14].mxu0 %v1081_v9 }
  0xa9   : > { %14335 = vmatprep.mubr.f32.mxu0 %v18037_v32 }
  0xac   : > { %14336 = vmatmul.mubr.f32.vlgmr.msra.gmra.mrb[0].mxu0 %v18039_v35 }
  0xad   : > { %15682 = vmatpush3.bf16.msra.mxu0 %v17984_v8  ;;  %14338 = vmatprep.mubr.f32.mxu0 %v18043_v37  ;;  %v2006_v8 = vld [vmem:[%s23559_s23] sm:$0xff] }
  0xae   : > { %15684 = vmatprep.subr.bf16.mxu0 %v17994_v12  ;;  %v2066_v13 = vand.u32 4294901760, %v2006_v8 }
  0xb0   : > { %14339 = vmatmul.mubr.f32.gmra.mrb[2].mxu0 %v18054_v44  ;;  %v18349_v46 = vsub.f32 %v2006_v8, %v2066_v13 }
  0xb1   : > { %14341 = vmatprep.mubr.f32.mxu0 %v18060_v47  ;;  %15686 = vmatpush3.bf16.msra.mxu0 %v17994_v12  ;;  %v2007_v12 = vld [vmem:[%s23559_s23 + $0x8] sm:$0xff] }
  0xb2   : > { %v2069_v24 = vand.u32 4294901760, %v2007_v12 }
  0xb4   : > { %14342 = vmatmul.mubr.f32.gmra.mrb[4].mxu0 %v18062_v48 }
  0xb5   : > { %14344 = vmatprep.mubr.f32.mxu0 %v18070_v53 }
  0xb8   : > { %14345 = vmatmul.mubr.f32.gmra.mrb[6].mxu0 %v18095_v1 }
  0xb9   : > { %14347 = vmatprep.mubr.f32.mxu0 %v18123_v30 }
  0xbc   : > { %14348 = vmatmul.mubr.f32.gmra.mrb[8].mxu0 %v18137_v45 }
  0xbd   : > { %14350 = vmatprep.mubr.f32.mxu0 %v18139_v49 }
  0xc0   : > { %14351 = vmatmul.mubr.f32.gmra.mrb[10].mxu0 %v18153_v7 }
  0xc1   : > { %14353 = vmatprep.mubr.f32.mxu0 %v18155_v14 }
  0xc4   : > { %14354 = vmatmul.mubr.f32.gmra.mrb[12].mxu0 %v18157_v15 }
  0xc5   : > { %14356 = vmatprep.mubr.f32.mxu0 %v18165_v25 }
  0xc8   : > { %14357 = vmatmul.mubr.f32.gmra.mrb[14].mxu0 %v18189_v23 }
  0xc9   : > { %14367 = vmatprep.mubr.f32.mxu0 %v18037_v32  ;;  %v18335_v32 = vpack.c.bf16 %v2069_v24, %v2066_v13 }
  0xcb   : > { %15688 = vmatprep.subr.bf16.mxu1 %v18335_v32 }
  0xcc   : > { %14368 = vmatmul.mubr.f32.vlgmr.msra.gmra.mrb[0].mxu0 %v18039_v35  ;;  %v2008_v35 = vld [vmem:[%s23559_s23 + $0x10] sm:$0xff]  ;;  %15690 = vmatpush3.bf16.msra.mxu1 %v18335_v32 }
  0xcd   : > { %14370 = vmatprep.mubr.f32.mxu0 %v18043_v37  ;;  %v2009_v37 = vld [vmem:[%s23559_s23 + $0x18] sm:$0xff]  ;;  %v2072_v41 = vand.u32 4294901760, %v2008_v35 }
  0xce   : > { %v2075_v43 = vand.u32 4294901760, %v2009_v37 }
  0xcf   : > { %v18364_v56 = vsub.f32 %v2008_v35, %v2072_v41 }
  0xd0   : > { %14371 = vmatmul.mubr.f32.gmra.mrb[2].mxu0 %v18054_v44  ;;  %v18345_v44 = vpack.c.bf16 %v2075_v43, %v2072_v41  ;;  %v18366_v60 = vsub.f32 %v2009_v37, %v2075_v43 }
  0xd1   : > { %14373 = vmatprep.mubr.f32.mxu0 %v18060_v47  ;;  %v18351_v47 = vsub.f32 %v2007_v12, %v2069_v24  ;;  %v2311_v61 = vand.u32 4294901760, %v18364_v56 }
  0xd2   : > { %15692 = vmatprep.subr.bf16.mxu1 %v18345_v44  ;;  %v2318_v63 = vand.u32 4294901760, %v18366_v60 }
  0xd3   : > { %15694 = vmatpush3.bf16.msra.mxu1 %v18345_v44  ;;  %v2304_v50 = vand.u32 4294901760, %v18351_v47  ;;  %v2312_v0 = vsub.f32 %v18364_v56, %v2311_v61  ;;  %v18380_v29 = vpack.c.bf16 %v18351_v47, %v18349_v46 }
  0xd4   : > { %14374 = vmatmul.mubr.f32.gmra.mrb[4].mxu0 %v18062_v48  ;;  %v2297_v48 = vand.u32 4294901760, %v18349_v46 }
  0xd5   : > { %14376 = vmatprep.mubr.f32.mxu0 %v18070_v53  ;;  %v2305_v52 = vsub.f32 %v18351_v47, %v2304_v50  ;;  %v2313_v6 = vand.u32 4294901760, %v2312_v0 }
  0xd6   : > { %v2298_v51 = vsub.f32 %v18349_v46, %v2297_v48  ;;  %v15723_v46 = vpack.c.bf16 %v2318_v63, %v2311_v61 }
  0xd7   : > { %v2306_v54 = vand.u32 4294901760, %v2305_v52 }
  0xd8   : > { %14377 = vmatmul.mubr.f32.gmra.mrb[6].mxu0 %v18095_v1  ;;  %v2299_v53 = vand.u32 4294901760, %v2298_v51  ;;  %v2319_v1 = vsub.f32 %v18366_v60, %v2318_v63 }
  0xd9   : > { %14379 = vmatprep.mubr.f32.mxu0 %v18123_v30  ;;  %v18384_v30 = vpack.c.bf16 %v18366_v60, %v18364_v56 }
  0xda   : > { %v18361_v55 = vpack.c.bf16 %v2306_v54, %v2299_v53  ;;  %v2320_v18 = vand.u32 4294901760, %v2319_v1 }
  0xdc   : > { %14380 = vmatmul.mubr.f32.gmra.mrb[8].mxu0 %v18137_v45  ;;  %15696 = vmatprep.subr.bf16.mxu1 %v18361_v55  ;;  %v18376_v26 = vpack.c.bf16 %v2320_v18, %v2313_v6 }
  0xdd   : > { %14382 = vmatprep.mubr.f32.mxu0 %v18139_v49 }
  0xe0   : > { %14383 = vmatmul.mubr.f32.gmra.mrb[10].mxu0 %v18153_v7 }
  0xe1   : > { %14385 = vmatprep.mubr.f32.mxu0 %v18155_v14 }
  0xe4   : > { %14386 = vmatmul.mubr.f32.gmra.mrb[12].mxu0 %v18157_v15 }
  0xe5   : > { %14388 = vmatprep.mubr.f32.mxu0 %v18165_v25 }
  0xe8   : > { %14389 = vmatmul.mubr.f32.gmra.mrb[14].mxu0 %v18189_v23 }
 0x19f   : > { %v14369_v45 = vpop.f32.mrb[0].mxu0 }
 0x1a0   : > { %v16551_v49 = vadd.f32 %v14369_v45, %v18389_v40  ;;  %v1896_v2 = vpop.f32.mrb[1].mxu0 }
 0x1a1   : > { %v16552_v3 = vadd.f32 %v18389_v40, %v1896_v2 }
 0x1a2   : > { %v1991_v4 = vmax.f32 %v16551_v49, 0.0 }
 0x1a3   : > { %v1990_v7 = vmax.f32 %v16552_v3, 0.0  ;;  %v14372_v14 = vpop.f32.mrb[2].mxu0 }
 0x1a4   : > { %v2021_v15 = vsel %vm811_vm0, %v1991_v4, 0  ;;  %v16553_v21 = vadd.f32 %v14372_v14, %v18389_v40  ;;  %v1908_v22 = vpop.f32.mrb[3].mxu0 }
 0x1a5   : > { %v18395_v25 = vand.u32 4294901760, %v2021_v15  ;;  %v2018_v28 = vsel %vm811_vm0, %v1990_v7, 0  ;;  %v16554_v33 = vadd.f32 %v18389_v40, %v1908_v22 }
 0x1a6   : > { %v18399_v38 = vand.u32 4294901760, %v2018_v28  ;;  %v1993_v39 = vmax.f32 %v16553_v21, 0.0 }
 0x1a7   : > { %v18402_v42 = vsub.f32 %v2021_v15, %v18395_v25  ;;  %v1992_v57 = vmax.f32 %v16554_v33, 0.0  ;;  %v14375_v23 = vpop.f32.mrb[4].mxu0 }
 0x1a8   : > { %v18405_v31 = vsub.f32 %v2018_v28, %v18399_v38  ;;  %v2027_v62 = vsel %vm811_vm0, %v1993_v39, 0  ;;  %v16555_v5 = vadd.f32 %v14375_v23, %v18389_v40  ;;  %v1920_v20 = vpop.f32.mrb[5].mxu0 }
 0x1a9   : > { %v18409_v16 = vand.u32 4294901760, %v2027_v62  ;;  %v2024_v17 = vsel %vm811_vm0, %v1992_v57, 0  ;;  %v16556_v27 = vadd.f32 %v18389_v40, %v1920_v20  ;;  %v2146_v9 = vand.u32 4294901760, %v18402_v42 }
 0x1aa   : > { %v18414_v34 = vand.u32 4294901760, %v2024_v17  ;;  %v1995_v36 = vmax.f32 %v16555_v5, 0.0  ;;  %v2136_v10 = vand.u32 4294901760, %v18405_v31 }
 0x1ab   : > { %v18418_v58 = vsub.f32 %v2027_v62, %v18409_v16  ;;  %v1994_v59 = vmax.f32 %v16556_v27, 0.0  ;;  %v14378_v19 = vpop.f32.mrb[6].mxu0  ;;  %v2147_v11 = vsub.f32 %v18402_v42, %v2146_v9 }
 0x1ac   : > { %v18424_v8 = vsub.f32 %v2024_v17, %v18414_v34  ;;  %v2033_v12 = vsel %vm811_vm0, %v1995_v36, 0  ;;  %v16557_v13 = vadd.f32 %v14378_v19, %v18389_v40  ;;  %v1932_v24 = vpop.f32.mrb[7].mxu0  ;;  %v2137_v35 = vsub.f32 %v18405_v31, %v2136_v10 }
 0x1ad   : > { %v18431_v37 = vand.u32 4294901760, %v2033_v12  ;;  %v2030_v41 = vsel %vm811_vm0, %v1994_v59, 0  ;;  %v16558_v43 = vadd.f32 %v18389_v40, %v1932_v24  ;;  %v2148_v18 = vand.u32 4294901760, %v2147_v11 }
 0x1ae   : > { %v18435_v51 = vand.u32 4294901760, %v2030_v41  ;;  %v1997_v52 = vmax.f32 %v16557_v13, 0.0  ;;  %v2138_v53 = vand.u32 4294901760, %v2137_v35  ;;  %v2156_v54 = vand.u32 4294901760, %v18424_v8 }
 0x1af   : > { %v18439_v0 = vsub.f32 %v2033_v12, %v18431_v37  ;;  %v1996_v1 = vmax.f32 %v16558_v43, 0.0  ;;  %v14381_v6 = vpop.f32.mrb[8].mxu0  ;;  %v2166_v45 = vand.u32 4294901760, %v18418_v58 }
 0x1b0   : > { %v18443_v49 = vsub.f32 %v2030_v41, %v18435_v51  ;;  %v2039_v2 = vsel %vm811_vm0, %v1997_v52, 0  ;;  %v16559_v3 = vadd.f32 %v14381_v6, %v18389_v40  ;;  %v1944_v4 = vpop.f32.mrb[9].mxu0  ;;  %14399 = vmatprep.mubr.f32.mxu1 %v2138_v53  ;;  %v2157_v7 = vsub.f32 %v18424_v8, %v2156_v54 }
 0x1b1   : > { %v18450_v14 = vand.u32 4294901760, %v2039_v2  ;;  %v2036_v15 = vsel %vm811_vm0, %v1996_v1, 0  ;;  %v16560_v21 = vadd.f32 %v18389_v40, %v1944_v4  ;;  %14400 = vmatmul.mubr.f32.vlgmr.msra.gmra.mrb[0].mxu1 %v2148_v18  ;;  %v2167_v22 = vsub.f32 %v18418_v58, %v2166_v45 }
 0x1b2   : > { %v18457_v28 = vand.u32 4294901760, %v2036_v15  ;;  %v1999_v33 = vmax.f32 %v16559_v3, 0.0  ;;  %15698 = vmatpush3.bf16.msra.mxu1 %v18361_v55  ;;  %v2158_v39 = vand.u32 4294901760, %v2157_v7  ;;  %v2176_v57 = vand.u32 4294901760, %v18443_v49 }
 0x1b3   : > { %v18462_v23 = vsub.f32 %v2039_v2, %v18450_v14  ;;  %v1998_v62 = vmax.f32 %v16560_v21, 0.0  ;;  %v14384_v5 = vpop.f32.mrb[10].mxu0  ;;  %v2168_v20 = vand.u32 4294901760, %v2167_v22  ;;  %v2186_v17 = vand.u32 4294901760, %v18439_v0  ;;  %15700 = vmatprep.subr.bf16.mxu1 %v18376_v26 }
 0x1b4   : > { %v18467_v27 = vsub.f32 %v2036_v15, %v18457_v28  ;;  %v2045_v36 = vsel %vm811_vm0, %v1999_v33, 0  ;;  %v16561_v55 = vadd.f32 %v14384_v5, %v18389_v40  ;;  %v1956_v59 = vpop.f32.mrb[11].mxu0  ;;  %14402 = vmatprep.mubr.f32.mxu1 %v2158_v39  ;;  %v2177_v19 = vsub.f32 %v18443_v49, %v2176_v57 }
 0x1b5   : > { %v18474_v11 = vand.u32 4294901760, %v2045_v36  ;;  %v2042_v12 = vsel %vm811_vm0, %v1998_v62, 0  ;;  %v16562_v13 = vadd.f32 %v18389_v40, %v1956_v59  ;;  %14403 = vmatmul.mubr.f32.gmra.mrb[2].mxu1 %v2168_v20  ;;  %v2187_v24 = vsub.f32 %v18439_v0, %v2186_v17 }
 0x1b6   : > { %v18481_v35 = vand.u32 4294901760, %v2042_v12  ;;  %v2001_v41 = vmax.f32 %v16561_v55, 0.0  ;;  %v2178_v43 = vand.u32 4294901760, %v2177_v19  ;;  %v2196_v52 = vand.u32 4294901760, %v18467_v27  ;;  %15702 = vmatpush3.bf16.msra.mxu1 %v18376_v26 }
 0x1b7   : > { %v18486_v53 = vsub.f32 %v2045_v36, %v18474_v11  ;;  %v2000_v1 = vmax.f32 %v16562_v13, 0.0  ;;  %v14387_v6 = vpop.f32.mrb[12].mxu0  ;;  %v2188_v18 = vand.u32 4294901760, %v2187_v24  ;;  %v2206_v2 = vand.u32 4294901760, %v18462_v23  ;;  %15704 = vmatprep.subr.bf16.mxu1 %v18380_v29 }
 0x1b8   : > { %v18491_v3 = vsub.f32 %v2042_v12, %v18481_v35  ;;  %v2051_v4 = vsel %vm811_vm0, %v2001_v41, 0  ;;  %v16563_v7 = vadd.f32 %v14387_v6, %v18389_v40  ;;  %v1968_v15 = vpop.f32.mrb[13].mxu0  ;;  %14405 = vmatprep.mubr.f32.mxu1 %v2178_v43  ;;  %v2197_v26 = vsub.f32 %v18467_v27, %v2196_v52 }
 0x1b9   : > { %v18498_v21 = vand.u32 4294901760, %v2051_v4  ;;  %v2048_v22 = vsel %vm811_vm0, %v2000_v1, 0  ;;  %v16564_v33 = vadd.f32 %v18389_v40, %v1968_v15  ;;  %14406 = vmatmul.mubr.f32.gmra.mrb[4].mxu1 %v2188_v18  ;;  %v2207_v39 = vsub.f32 %v18462_v23, %v2206_v2 }
 0x1ba   : > { %v18505_v62 = vand.u32 4294901760, %v2048_v22  ;;  %v2003_v5 = vmax.f32 %v16563_v7, 0.0  ;;  %v2198_v20 = vand.u32 4294901760, %v2197_v26  ;;  %v23164_v36 = vand.u32 4294901760, %v18491_v3 }
 0x1bb   : > { %v18509_v55 = vsub.f32 %v2051_v4, %v18498_v21  ;;  %v2002_v59 = vmax.f32 %v16564_v33, 0.0  ;;  %v14390_v19 = vpop.f32.mrb[14].mxu0  ;;  %v2208_v12 = vand.u32 4294901760, %v2207_v39  ;;  %v23163_v13 = vand.u32 4294901760, %v18486_v53 }
 0x1bc   : > { %v18513_v24 = vsub.f32 %v2048_v22, %v18505_v62  ;;  %v2057_v41 = vsel %vm811_vm0, %v2003_v5, 0  ;;  %v16565_v43 = vadd.f32 %v14390_v19, %v18389_v40  ;;  %v1980_v1 = vpop.f32.mrb[15].mxu0  ;;  %14408 = vmatprep.mubr.f32.mxu1 %v2198_v20  ;;  %v2217_v6 = vsub.f32 %v18491_v3, %v23164_v36 }
 0x1bd   : > { %v18520_v18 = vand.u32 4294901760, %v2057_v41  ;;  %v2054_v4 = vsel %vm811_vm0, %v2002_v59, 0  ;;  %v16566_v7 = vadd.f32 %v18389_v40, %v1980_v1  ;;  %14409 = vmatmul.mubr.f32.gmra.mrb[6].mxu1 %v2208_v12  ;;  %v2227_v15 = vsub.f32 %v18486_v53, %v23163_v13 }
 0x1be   : > { %v18527_v26 = vand.u32 4294901760, %v2054_v4  ;;  %v2005_v22 = vmax.f32 %v16565_v43, 0.0  ;;  %v2218_v33 = vand.u32 4294901760, %v2217_v6  ;;  %v23161_v39 = vand.u32 4294901760, %v18513_v24 }
 0x1bf   : > { %v18531_v5 = vsub.f32 %v2057_v41, %v18520_v18  ;;  %v2004_v20 = vmax.f32 %v16566_v7, 0.0  ;;  %v2228_v19 = vand.u32 4294901760, %v2227_v15  ;;  %v23162_v59 = vand.u32 4294901760, %v18509_v55 }
 0x1c0   : > { %v18535_v40 = vsub.f32 %v2054_v4, %v18527_v26  ;;  %v2063_v12 = vsel %vm811_vm0, %v2005_v22, 0  ;;  %14411 = vmatprep.mubr.f32.mxu1 %v2218_v33  ;;  %v2237_v43 = vsub.f32 %v18513_v24, %v23161_v39  ;;  %v23561_v47 = vand.u32 4294901760, %v18491_v3 }
 0x1c1   : > { %v18541_v1 = vand.u32 4294901760, %v2063_v12  ;;  %v2060_v6 = vsel %vm811_vm0, %v2004_v20, 0  ;;  %14412 = vmatmul.mubr.f32.gmra.mrb[8].mxu1 %v2228_v19  ;;  %v2247_v41 = vsub.f32 %v18509_v55, %v23162_v59  ;;  %v23165_v7 = vand.u32 4294901760, %v18531_v5 }
 0x1c2   : > { %v18548_v4 = vand.u32 4294901760, %v2060_v6  ;;  %v2238_v15 = vand.u32 4294901760, %v2237_v43  ;;  %v23168_v22 = vand.u32 4294901760, %v18535_v40  ;;  %v23564_v56 = vand.u32 4294901760, %v18509_v55 }
 0x1c3   : > { %v18552_v33 = vsub.f32 %v2063_v12, %v18541_v1  ;;  %v2248_v39 = vand.u32 4294901760, %v2247_v41  ;;  %v2267_v20 = vsub.f32 %v18531_v5, %v23165_v7  ;;  %v23565_v60 = vand.u32 4294901760, %v18535_v40 }
 0x1c4   : > { %v18558_v19 = vsub.f32 %v2060_v6, %v18548_v4  ;;  %14414 = vmatprep.mubr.f32.mxu1 %v2238_v15  ;;  %v2257_v59 = vsub.f32 %v18535_v40, %v23168_v22  ;;  %v23566_v61 = vand.u32 4294901760, %v18531_v5 }
 0x1c5   : > { %14415 = vmatmul.mubr.f32.gmra.mrb[10].mxu1 %v2248_v39  ;;  %v23166_v43 = vand.u32 4294901760, %v18552_v33  ;;  %v2268_v36 = vand.u32 4294901760, %v2267_v20 }
 0x1c6   : > { %v2258_v13 = vand.u32 4294901760, %v2257_v59  ;;  %v23167_v12 = vand.u32 4294901760, %v18558_v19  ;;  %v3213_v59 = vld [vmem:[%s23143_s8 + $0x10] sm:$0xff]  ;;  %v23567_v63 = vand.u32 4294901760, %v18558_v19 }
 0x1c7   : > { %v2287_v41 = vsub.f32 %v18552_v33, %v23166_v43  ;;  %v3285_v20 = vand.u32 4294901760, %v3213_v59 }
 0x1c8   : > { %14417 = vmatprep.mubr.f32.mxu1 %v2258_v13  ;;  %v2277_v6 = vsub.f32 %v18558_v19, %v23167_v12 }
 0x1c9   : > { %14418 = vmatmul.mubr.f32.gmra.mrb[12].mxu1 %v2268_v36  ;;  %v2288_v7 = vand.u32 4294901760, %v2287_v41  ;;  %v3211_v36 = vld [vmem:[%s23143_s8] sm:$0xff]  ;;  %v18615_v22 = vsub.f32 %v3213_v59, %v3285_v20 }
 0x1ca   : > { %v2278_v15 = vand.u32 4294901760, %v2277_v6 }
 0x1cc   : > { %14420 = vmatprep.mubr.f32.mxu1 %v2278_v15 }
 0x1cd   : > { %14421 = vmatmul.mubr.f32.gmra.mrb[14].mxu1 %v2288_v7  ;;  %v3281_v7 = vand.u32 4294901760, %v3211_v36 }
 0x1ce   : > { %14431 = vmatprep.mubr.f32.mxu1 %v18399_v38 }
 0x1cf   : > { %v18610_v43 = vsub.f32 %v3211_v36, %v3281_v7  ;;  %v18613_v12 = vpack.c.bf16 %v3285_v20, %v3281_v7  ;;  %v18788_v20 = vld [vmem:[%s23142_s7] ss:$0 sm:$0xff] }
 0x1d1   : > { %14432 = vmatmul.mubr.f32.vlgmr.msra.gmra.mrb[0].mxu1 %v18395_v25 }
 0x1d2   : > { %15706 = vmatpush3.bf16.msra.mxu1 %v18380_v29  ;;  %14434 = vmatprep.mubr.f32.mxu1 %v18414_v34  ;;  %v3212_v29 = vld [vmem:[%s23143_s8 + $0x8] sm:$0xff] }
 0x1d3   : > { %15708 = vmatprep.subr.bf16.mxu1 %v18384_v30  ;;  %v3279_v13 = vand.u32 4294901760, %v3212_v29 }
 0x1d5   : > { %14435 = vmatmul.mubr.f32.gmra.mrb[2].mxu1 %v18409_v16  ;;  %v18606_v6 = vsub.f32 %v3212_v29, %v3279_v13  ;;  %v15719_v29 = vpack.c.bf16 %v2304_v50, %v2297_v48  ;;  %v23562_v48 = vand.u32 4294901760, %v18486_v53  ;;  %v23563_v50 = vand.u32 4294901760, %v18513_v24 }
 0x1d6   : > { %14437 = vmatprep.mubr.f32.mxu1 %v18435_v51  ;;  %15710 = vmatpush3.bf16.msra.mxu1 %v18384_v30  ;;  %v3214_v30 = vld [vmem:[%s23143_s8 + $0x18] sm:$0xff] }
 0x1d7   : > { %15712 = vmatprep.subr.bf16.mxu1 %v18335_v32  ;;  %v3283_v39 = vand.u32 4294901760, %v3214_v30 }
 0x1d9   : > { %14438 = vmatmul.mubr.f32.gmra.mrb[4].mxu1 %v18431_v37  ;;  %v18604_v41 = vpack.c.bf16 %v3283_v39, %v3279_v13  ;;  %v18608_v15 = vsub.f32 %v3214_v30, %v3283_v39  ;;  %v15753_v39 = vpack.c.bf16 %v18615_v22, %v18610_v43 }
 0x1da   : > { %14440 = vmatprep.mubr.f32.mxu1 %v18457_v28 }
 0x1db   : > { %15736 = vmatprep.subr.bf16.mxu0 %v18604_v41  ;;  %v15751_v13 = vpack.c.bf16 %v18608_v15, %v18606_v6 }
 0x1dc   : > { %15738 = vmatpush1.bf16.msra.mxu0 %v18613_v12 }
 0x1dd   : > { %14441 = vmatmul.mubr.f32.gmra.mrb[6].mxu1 %v18450_v14 }
 0x1de   : > { %14443 = vmatprep.mubr.f32.mxu1 %v18481_v35 }
 0x1e1   : > { %14444 = vmatmul.mubr.f32.gmra.mrb[8].mxu1 %v18474_v11 }
 0x1e2   : > { %14446 = vmatprep.mubr.f32.mxu1 %v18505_v62 }
 0x1e5   : > { %14447 = vmatmul.mubr.f32.gmra.mrb[10].mxu1 %v18498_v21 }
 0x1e6   : > { %14449 = vmatprep.mubr.f32.mxu1 %v18527_v26 }
 0x1e9   : > { %14450 = vmatmul.mubr.f32.gmra.mrb[12].mxu1 %v18520_v18 }
 0x1ea   : > { %14452 = vmatprep.mubr.f32.mxu1 %v18548_v4 }
 0x1ed   : > { %14453 = vmatmul.mubr.f32.gmra.mrb[14].mxu1 %v18541_v1 }
 0x1ee   : > { %14463 = vmatprep.mubr.f32.mxu1 %v18405_v31 }
 0x1f1   : > { %14464 = vmatmul.mubr.f32.vlgmr.msra.gmra.mrb[0].mxu1 %v18402_v42  ;;  %v23568_v42 = vand.u32 4294901760, %v18552_v33 }
 0x1f2   : > { %15714 = vmatpush3.bf16.msra.mxu1 %v18335_v32  ;;  %14466 = vmatprep.mubr.f32.mxu1 %v18424_v8 }
 0x1f3   : > { %15716 = vmatprep.subr.bf16.mxu1 %v18345_v44 }
 0x1f5   : > { %14467 = vmatmul.mubr.f32.gmra.mrb[2].mxu1 %v18418_v58 }
 0x1f6   : > { %14469 = vmatprep.mubr.f32.mxu1 %v18443_v49  ;;  %15718 = vmatpush3.bf16.msra.mxu1 %v18345_v44  ;;  %v3542_v49 = vand.u32 4294901760, %v18608_v15 }
 0x1f7   : > { %15720 = vmatprep.subr.bf16.mxu1 %v15719_v29 }
 0x1f9   : > { %14470 = vmatmul.mubr.f32.gmra.mrb[4].mxu1 %v18439_v0  ;;  %v23183_v0 = vmov 0.0  }
 0x1fa   : > { %14472 = vmatprep.mubr.f32.mxu1 %v18467_v27  ;;  %3351 = vmatprep.mubr.f32.mxu0 %v23183_v0 }
 0x1fd   : > { %14473 = vmatmul.mubr.f32.gmra.mrb[6].mxu1 %v18462_v23  ;;  %v3543_v23 = vsub.f32 %v18608_v15, %v3542_v49 }
 0x1fe   : > { %14475 = vmatprep.mubr.f32.mxu1 %v18491_v3 }
 0x201   : > { %14476 = vmatmul.mubr.f32.gmra.mrb[8].mxu1 %v18486_v53 }
 0x202   : > { %14478 = vmatprep.mubr.f32.mxu1 %v18513_v24 }
 0x205   : > { %14479 = vmatmul.mubr.f32.gmra.mrb[10].mxu1 %v18509_v55 }
 0x206   : > { %14481 = vmatprep.mubr.f32.mxu1 %v18535_v40 }
 0x209   : > { %14482 = vmatmul.mubr.f32.gmra.mrb[12].mxu1 %v18531_v5 }
 0x20a   : > { %14484 = vmatprep.mubr.f32.mxu1 %v18558_v19 }
 0x20d   : > { %14485 = vmatmul.mubr.f32.gmra.mrb[14].mxu1 %v18552_v33 }
 0x20e   : > { %14495 = vmatprep.mubr.f32.mxu1 %v2136_v10  ;;  %v3217_v10 = vld [vmem:[%s23143_s8 + $0x30] sm:$0xff] }
 0x20f   : > { %v3293_v8 = vand.u32 4294901760, %v3217_v10 }
 0x211   : > { %14496 = vmatmul.mubr.f32.vlgmr.msra.gmra.mrb[0].mxu1 %v2146_v9 }
 0x212   : > { %15722 = vmatpush3.bf16.msra.mxu1 %v15719_v29  ;;  %14498 = vmatprep.mubr.f32.mxu1 %v2156_v54  ;;  %v18735_v54 = vsub.f32 %v3217_v10, %v3293_v8 }
 0x213   : > { %15724 = vmatprep.subr.bf16.mxu1 %v15723_v46 }
 0x215   : > { %14499 = vmatmul.mubr.f32.gmra.mrb[2].mxu1 %v2166_v45  ;;  %v3530_v45 = vand.u32 4294901760, %v18606_v6 }
 0x216   : > { %14501 = vmatprep.mubr.f32.mxu1 %v2176_v57  ;;  %15726 = vmatpush3.bf16.msra.mxu1 %v15723_v46 }
 0x217   : > { %15728 = vmatprep.subr.bf16.mxu1 %v18335_v32  ;;  %v3531_v57 = vsub.f32 %v18606_v6, %v3530_v45 }
 0x219   : > { %14502 = vmatmul.mubr.f32.gmra.mrb[4].mxu1 %v2186_v17 }
 0x21a   : > { %14504 = vmatprep.mubr.f32.mxu1 %v2196_v52 }
 0x21d   : > { %14505 = vmatmul.mubr.f32.gmra.mrb[6].mxu1 %v2206_v2 }
 0x21e   : > { %14507 = vmatprep.mubr.f32.mxu1 %v23561_v47 }
 0x221   : > { %14508 = vmatmul.mubr.f32.gmra.mrb[8].mxu1 %v23562_v48 }
 0x222   : > { %14510 = vmatprep.mubr.f32.mxu1 %v23563_v50 }
 0x225   : > { %14511 = vmatmul.mubr.f32.gmra.mrb[10].mxu1 %v23564_v56 }
 0x226   : > { %14513 = vmatprep.mubr.f32.mxu1 %v23565_v60 }
 0x229   : > { %14514 = vmatmul.mubr.f32.gmra.mrb[12].mxu1 %v23566_v61 }
 0x22a   : > { %14516 = vmatprep.mubr.f32.mxu1 %v23567_v63 }
 0x22d   : > { %14517 = vmatmul.mubr.f32.gmra.mrb[14].mxu1 %v23568_v42 }
 0x22e   : > { %14527 = vmatprep.mubr.f32.mxu1 %v18399_v38 }
 0x231   : > { %14528 = vmatmul.mubr.f32.vlgmr.msra.gmra.mrb[0].mxu1 %v18395_v25 }
 0x232   : > { %15730 = vmatpush3.bf16.msra.mxu1 %v18335_v32  ;;  %14530 = vmatprep.mubr.f32.mxu1 %v18414_v34  ;;  %v3216_v32 = vld [vmem:[%s23143_s8 + $0x28] sm:$0xff] }
 0x233   : > { %15732 = vmatprep.subr.bf16.mxu1 %v18345_v44 }
 0x235   : > { %14531 = vmatmul.mubr.f32.gmra.mrb[2].mxu1 %v18409_v16 }
 0x236   : > { %14533 = vmatprep.mubr.f32.mxu1 %v18435_v51  ;;  %15734 = vmatpush3.bf16.msra.mxu1 %v18345_v44  ;;  %v3218_v44 = vld [vmem:[%s23143_s8 + $0x38] sm:$0xff] }
 0x239   : > { %14534 = vmatmul.mubr.f32.gmra.mrb[4].mxu1 %v18431_v37 }
 0x23a   : > { %14536 = vmatprep.mubr.f32.mxu1 %v18457_v28 }
 0x23d   : > { %14537 = vmatmul.mubr.f32.gmra.mrb[6].mxu1 %v18450_v14 }
 0x23e   : > { %14539 = vmatprep.mubr.f32.mxu1 %v18481_v35 }
 0x241   : > { %14540 = vmatmul.mubr.f32.gmra.mrb[8].mxu1 %v18474_v11 }
 0x242   : > { %14542 = vmatprep.mubr.f32.mxu1 %v18505_v62 }
 0x245   : > { %14543 = vmatmul.mubr.f32.gmra.mrb[10].mxu1 %v18498_v21 }
 0x246   : > { %14545 = vmatprep.mubr.f32.mxu1 %v18527_v26 }
 0x249   : > { %14546 = vmatmul.mubr.f32.gmra.mrb[12].mxu1 %v18520_v18 }
 0x24a   : > { %14548 = vmatprep.mubr.f32.mxu1 %v18548_v4 }
 0x24d   : > { %14549 = vmatmul.mubr.f32.gmra.mrb[14].mxu1 %v18541_v1 }
 0x24e   : > { %14559 = vmatprep.mubr.f32.mxu1 %v18399_v38  ;;  %v3291_v38 = vand.u32 4294901760, %v3218_v44 }
 0x250   : > { %v18722_v9 = vsub.f32 %v3218_v44, %v3291_v38 }
 0x251   : > { %14560 = vmatmul.mubr.f32.vlgmr.msra.gmra.mrb[0].mxu1 %v18395_v25  ;;  %v3287_v25 = vand.u32 4294901760, %v3216_v32 }
 0x252   : > { %14562 = vmatprep.mubr.f32.mxu1 %v18414_v34  ;;  %v3215_v34 = vld [vmem:[%s23143_s8 + $0x20] sm:$0xff] }
 0x253   : > { %v18718_v31 = vpack.c.bf16 %v3291_v38, %v3287_v25  ;;  %v3289_v58 = vand.u32 4294901760, %v3215_v34 }
 0x255   : > { %14563 = vmatmul.mubr.f32.gmra.mrb[2].mxu1 %v18409_v16  ;;  %v18720_v16 = vsub.f32 %v3216_v32, %v3287_v25  ;;  %15740 = vmatprep.subr.bf16.mxu0 %v18718_v31 }
 0x256   : > { %14565 = vmatprep.mubr.f32.mxu1 %v18435_v51  ;;  %v18733_v51 = vsub.f32 %v3215_v34, %v3289_v58 }
 0x257   : > { %v15755_v59 = vpack.c.bf16 %v18722_v9, %v18720_v16 }
 0x258   : > { %v15757_v7 = vpack.c.bf16 %v18735_v54, %v18733_v51 }
 0x259   : > { %14566 = vmatmul.mubr.f32.gmra.mrb[4].mxu1 %v18431_v37  ;;  %v18731_v37 = vpack.c.bf16 %v3293_v8, %v3289_v58 }
 0x25a   : > { %14568 = vmatprep.mubr.f32.mxu1 %v18457_v28  ;;  %v3548_v28 = vand.u32 4294901760, %v18615_v22 }
 0x25b   : > { %15742 = vmatpush1.bf16.msra.mxu0 %v18731_v37 }
 0x25c   : > { %v3549_v27 = vsub.f32 %v18615_v22, %v3548_v28 }
 0x25d   : > { %14569 = vmatmul.mubr.f32.gmra.mrb[6].mxu1 %v18450_v14  ;;  %v3536_v14 = vand.u32 4294901760, %v18610_v43 }
 0x25e   : > { %14571 = vmatprep.mubr.f32.mxu1 %v18481_v35  ;;  %v3544_v35 = vand.u32 4294901760, %v3543_v23  ;;  %v3550_v53 = vand.u32 4294901760, %v3549_v27 }
 0x25f   : > { %v3537_v17 = vsub.f32 %v18610_v43, %v3536_v14  ;;  %v15769_v6 = vpack.c.bf16 %v3548_v28, %v3536_v14 }
 0x261   : > { %14572 = vmatmul.mubr.f32.gmra.mrb[8].mxu1 %v18474_v11  ;;  %v3532_v11 = vand.u32 4294901760, %v3531_v57  ;;  %v3538_v52 = vand.u32 4294901760, %v3537_v17 }
 0x262   : > { %14574 = vmatprep.mubr.f32.mxu1 %v18505_v62  ;;  %v3566_v62 = vand.u32 4294901760, %v18722_v9 }
 0x263   : > { %v15743_v2 = vpack.c.bf16 %v3544_v35, %v3532_v11  ;;  %v18755_v3 = vpack.c.bf16 %v3550_v53, %v3538_v52 }
 0x264   : > { %v3567_v24 = vsub.f32 %v18722_v9, %v3566_v62 }
 0x265   : > { %14575 = vmatmul.mubr.f32.gmra.mrb[10].mxu1 %v18498_v21  ;;  %15744 = vmatprep.subr.bf16.mxu0 %v15743_v2  ;;  %v3554_v21 = vand.u32 4294901760, %v18720_v16 }
 0x266   : > { %14577 = vmatprep.mubr.f32.mxu1 %v18527_v26  ;;  %v23176_v26 = vand.u32 4294901760, %v18735_v54  ;;  %v3568_v40 = vand.u32 4294901760, %v3567_v24 }
 0x267   : > { %v3555_v55 = vsub.f32 %v18720_v16, %v3554_v21  ;;  %v15771_v15 = vpack.c.bf16 %v3566_v62, %v3554_v21 }
 0x269   : > { %14578 = vmatmul.mubr.f32.gmra.mrb[12].mxu1 %v18520_v18  ;;  %v23180_v18 = vand.u32 4294901760, %v18733_v51  ;;  %v3556_v5 = vand.u32 4294901760, %v3555_v55 }
 0x26a   : > { %14580 = vmatprep.mubr.f32.mxu1 %v18548_v4  ;;  %v3573_v4 = vsub.f32 %v18735_v54, %v23176_v26 }
 0x26b   : > { %v18773_v33 = vpack.c.bf16 %v3568_v40, %v3556_v5 }
 0x26c   : > { %v3574_v30 = vand.u32 4294901760, %v3573_v4 }
 0x26d   : > { %14581 = vmatmul.mubr.f32.gmra.mrb[14].mxu1 %v18541_v1  ;;  %v3561_v1 = vsub.f32 %v18733_v51, %v23180_v18 }
 0x26f   : > { %v3562_v19 = vand.u32 4294901760, %v3561_v1 }
 0x271   : > { %v18775_v36 = vpack.c.bf16 %v3574_v30, %v3562_v19 }
 0x324   : > { %v14561_v29 = vpop.f32.mrb[0].mxu1 }
 0x325   : > { %v16567_v46 = vadd.f32 %v14561_v29, %v18788_v20  ;;  %v3101_v47 = vpop.f32.mrb[1].mxu1 }
 0x326   : > { %v16568_v48 = vadd.f32 %v18788_v20, %v3101_v47 }
 0x327   : > { %v3196_v50 = vmax.f32 %v16567_v46, 0.0 }
 0x328   : > { %v3195_v56 = vmax.f32 %v16568_v48, 0.0  ;;  %v14564_v60 = vpop.f32.mrb[2].mxu1 }
 0x329   : > { %v3235_v61 = vsel %vm811_vm0, %v3196_v50, 0  ;;  %v16569_v63 = vadd.f32 %v14564_v60, %v18788_v20  ;;  %v3113_v42 = vpop.f32.mrb[3].mxu1 }
 0x32a   : > { %v18794_v32 = vand.u32 4294901760, %v3235_v61  ;;  %v3232_v44 = vsel %vm811_vm0, %v3195_v56, 0  ;;  %v16570_v25 = vadd.f32 %v18788_v20, %v3113_v42 }
 0x32b   : > { %v18798_v38 = vand.u32 4294901760, %v3232_v44  ;;  %v3198_v34 = vmax.f32 %v16569_v63, 0.0 }
 0x32c   : > { %v18801_v10 = vsub.f32 %v3235_v61, %v18794_v32  ;;  %v3197_v58 = vmax.f32 %v16570_v25, 0.0  ;;  %v14567_v8 = vpop.f32.mrb[4].mxu1 }
 0x32d   : > { %v18804_v57 = vsub.f32 %v3232_v44, %v18798_v38  ;;  %v3241_v23 = vsel %vm811_vm0, %v3198_v34, 0  ;;  %v16571_v17 = vadd.f32 %v14567_v8, %v18788_v20  ;;  %v3125_v27 = vpop.f32.mrb[5].mxu1 }
 0x32e   : > { %v18808_v11 = vand.u32 4294901760, %v3241_v23  ;;  %v3238_v35 = vsel %vm811_vm0, %v3197_v58, 0  ;;  %v16572_v52 = vadd.f32 %v18788_v20, %v3125_v27  ;;  %v23174_v53 = vand.u32 4294901760, %v18801_v10 }
 0x32f   : > { %v3354_v2 = vand.u32 4294901760, %v18804_v57  ;;  %v18814_v55 = vand.u32 4294901760, %v3238_v35  ;;  %v3200_v24 = vmax.f32 %v16571_v17, 0.0  ;;  %v23571_v22 = vand.u32 4294901760, %v18801_v10 }
 0x330   : > { %v3199_v5 = vmax.f32 %v16572_v52, 0.0  ;;  %v14570_v40 = vpop.f32.mrb[6].mxu1  ;;  %v18820_v4 = vsub.f32 %v3241_v23, %v18808_v11  ;;  %v3366_v48 = vsub.f32 %v18801_v10, %v23174_v53 }
 0x331   : > { %v3355_v1 = vsub.f32 %v18804_v57, %v3354_v2  ;;  %v18823_v19 = vsub.f32 %v3238_v35, %v18814_v55  ;;  %v3137_v30 = vpop.f32.mrb[7].mxu1  ;;  %v16573_v46 = vadd.f32 %v14570_v40, %v18788_v20  ;;  %v3247_v56 = vsel %vm811_vm0, %v3200_v24, 0 }
 0x332   : > { %v3244_v29 = vsel %vm811_vm0, %v3199_v5, 0  ;;  %v16574_v47 = vadd.f32 %v18788_v20, %v3137_v30  ;;  %v18835_v25 = vand.u32 4294901760, %v3247_v56  ;;  %v3367_v8 = vand.u32 4294901760, %v3366_v48 }
 0x333   : > { %v3356_v50 = vand.u32 4294901760, %v3355_v1  ;;  %v18832_v60 = vand.u32 4294901760, %v3244_v29  ;;  %v23172_v61 = vand.u32 4294901760, %v18823_v19  ;;  %v3202_v34 = vmax.f32 %v16573_v46, 0.0 }
 0x334   : > { %v3201_v63 = vmax.f32 %v16574_v47, 0.0  ;;  %v14573_v42 = vpop.f32.mrb[8].mxu1  ;;  %v23170_v17 = vand.u32 4294901760, %v18820_v4  ;;  %v18850_v24 = vsub.f32 %v3247_v56, %v18835_v25  ;;  %v23572_v43 = vand.u32 4294901760, %v18823_v19 }
 0x335   : > { %v3149_v44 = vpop.f32.mrb[9].mxu1  ;;  %3357 = vmatmul.mubr.f32.vlgmr.msra.gmra.mrb[16].mxu0 %v3356_v50  ;;  %v18840_v58 = vsub.f32 %v3244_v29, %v18832_v60  ;;  %v3377_v23 = vsub.f32 %v18823_v19, %v23172_v61  ;;  %v3253_v5 = vsel %vm811_vm0, %v3202_v34, 0  ;;  %v16575_v40 = vadd.f32 %v14573_v42, %v18788_v20 }
 0x336   : > { %15746 = vmatpush1.bf16.msra.mxu0 %v18755_v3  ;;  %3362 = vmatprep.mubr.f32.mxu0 %v23183_v0  ;;  %v3250_v27 = vsel %vm811_vm0, %v3201_v63, 0  ;;  %v16576_v35 = vadd.f32 %v18788_v20, %v3149_v44  ;;  %v3388_v30 = vsub.f32 %v18820_v4, %v23170_v17  ;;  %v18865_v50 = vand.u32 4294901760, %v3253_v5 }
 0x337   : > { %15748 = vmatprep.subr.bf16.mxu0 %v18773_v33  ;;  %v18856_v1 = vand.u32 4294901760, %v3250_v27  ;;  %v3378_v33 = vand.u32 4294901760, %v3377_v23  ;;  %v23169_v29 = vand.u32 4294901760, %v18840_v58  ;;  %v23171_v44 = vand.u32 4294901760, %v18850_v24 }
 0x338   : > { %v14576_v52 = vpop.f32.mrb[10].mxu1  ;;  %v3203_v46 = vmax.f32 %v16576_v35, 0.0  ;;  %v3389_v63 = vand.u32 4294901760, %v3388_v30  ;;  %v18878_v35 = vsub.f32 %v3253_v5, %v18865_v50  ;;  %v23573_v16 = vand.u32 4294901760, %v18820_v4 }
 0x339   : > { %v3161_v3 = vpop.f32.mrb[11].mxu1  ;;  %3368 = vmatmul.mubr.f32.gmra.mrb[18].mxu0 %v3367_v8  ;;  %v18869_v56 = vsub.f32 %v3250_v27, %v18856_v1  ;;  %v3399_v42 = vsub.f32 %v18840_v58, %v23169_v29  ;;  %v23574_v9 = vand.u32 4294901760, %v18840_v58 }
 0x33a   : > { %3373 = vmatprep.mubr.f32.mxu0 %v23183_v0  ;;  %15750 = vmatpush1.bf16.msra.mxu0 %v18775_v36  ;;  %v3204_v36 = vmax.f32 %v16575_v40, 0.0  ;;  %v16578_v34 = vadd.f32 %v18788_v20, %v3161_v3  ;;  %v16577_v40 = vadd.f32 %v14576_v52, %v18788_v20  ;;  %v23175_v17 = vand.u32 4294901760, %v18878_v35 }
 0x33b   : > { %15752 = vmatprep.subr.bf16.mxu0 %v15751_v13  ;;  %v3256_v13 = vsel %vm811_vm0, %v3203_v46, 0  ;;  %v3400_v30 = vand.u32 4294901760, %v3399_v42  ;;  %v3410_v46 = vsub.f32 %v18850_v24, %v23171_v44  ;;  %v23173_v3 = vand.u32 4294901760, %v18869_v56 }
 0x33c   : > { %v14579_v47 = vpop.f32.mrb[12].mxu1  ;;  %v3259_v27 = vsel %vm811_vm0, %v3204_v36, 0  ;;  %v3205_v29 = vmax.f32 %v16578_v34, 0.0  ;;  %v3206_v5 = vmax.f32 %v16577_v40, 0.0 }
 0x33d   : > { %v3173_v48 = vpop.f32.mrb[13].mxu1  ;;  %3379 = vmatmul.mubr.f32.gmra.mrb[20].mxu0 %v3378_v33  ;;  %v18883_v33 = vand.u32 4294901760, %v3256_v13  ;;  %v3411_v36 = vand.u32 4294901760, %v3410_v46  ;;  %v3421_v42 = vsub.f32 %v18869_v56, %v23173_v3  ;;  %v3432_v3 = vsub.f32 %v18878_v35, %v23175_v17 }
 0x33e   : > { %3384 = vmatprep.mubr.f32.mxu0 %v23183_v0  ;;  %v3262_v44 = vsel %vm811_vm0, %v3205_v29, 0  ;;  %v16580_v34 = vadd.f32 %v18788_v20, %v3173_v48  ;;  %v3265_v40 = vsel %vm811_vm0, %v3206_v5, 0 }
 0x33f   : > { %v18893_v52 = vsub.f32 %v3256_v13, %v18883_v33  ;;  %v16579_v13 = vadd.f32 %v14579_v47, %v18788_v20  ;;  %v18907_v46 = vand.u32 4294901760, %v3262_v44  ;;  %v3422_v61 = vand.u32 4294901760, %v3421_v42 }
 0x340   : > { %v14582_v8 = vpop.f32.mrb[14].mxu1  ;;  %v3207_v48 = vmax.f32 %v16580_v34, 0.0  ;;  %v3433_v5 = vand.u32 4294901760, %v3432_v3 }
 0x341   : > { %v3185_v23 = vpop.f32.mrb[15].mxu1  ;;  %3390 = vmatmul.mubr.f32.gmra.mrb[22].mxu0 %v3389_v63  ;;  %v18889_v63 = vand.u32 4294901760, %v3259_v27  ;;  %v23177_v29 = vand.u32 4294901760, %v18893_v52  ;;  %v18917_v47 = vsub.f32 %v3262_v44, %v18907_v46  ;;  %v16581_v44 = vadd.f32 %v14582_v8, %v18788_v20 }
 0x342   : > { %3395 = vmatprep.mubr.f32.mxu0 %v23183_v0  ;;  %v3268_v17 = vsel %vm811_vm0, %v3207_v48, 0  ;;  %v16582_v34 = vadd.f32 %v18788_v20, %v3185_v23  ;;  %v23578_v14 = vand.u32 4294901760, %v18893_v52 }
 0x343   : > { %v3443_v42 = vsub.f32 %v18893_v52, %v23177_v29  ;;  %v18931_v3 = vand.u32 4294901760, %v3268_v17  ;;  %v23179_v48 = vand.u32 4294901760, %v18917_v47  ;;  %v23580_v21 = vand.u32 4294901760, %v18917_v47 }
 0x344   : > { %v3209_v23 = vmax.f32 %v16582_v34, 0.0 }
 0x345   : > { %3401 = vmatmul.mubr.f32.gmra.mrb[24].mxu0 %v3400_v30  ;;  %v18902_v30 = vsub.f32 %v3259_v27, %v18889_v63  ;;  %v3208_v27 = vmax.f32 %v16579_v13, 0.0  ;;  %v3444_v26 = vand.u32 4294901760, %v3443_v42  ;;  %v18941_v20 = vsub.f32 %v3268_v17, %v18931_v3 }
 0x346   : > { %3406 = vmatprep.mubr.f32.mxu0 %v23183_v0 }
 0x347   : > { %v23178_v53 = vand.u32 4294901760, %v18902_v30  ;;  %v3271_v13 = vsel %vm811_vm0, %v3208_v27, 0  ;;  %v3465_v27 = vsub.f32 %v18917_v47, %v23179_v48  ;;  %v23182_v48 = vand.u32 4294901760, %v18941_v20 }
 0x348   : > { %v23579_v28 = vand.u32 4294901760, %v18902_v30 }
 0x349   : > { %3412 = vmatmul.mubr.f32.gmra.mrb[26].mxu0 %v3411_v36  ;;  %v18913_v36 = vand.u32 4294901760, %v3265_v40  ;;  %v3454_v29 = vsub.f32 %v18902_v30, %v23178_v53  ;;  %v3274_v53 = vsel %vm811_vm0, %v3209_v23, 0  ;;  %v3466_v17 = vand.u32 4294901760, %v3465_v27 }
 0x34a   : > { %3417 = vmatprep.mubr.f32.mxu0 %v23183_v0 }
 0x34b   : > { %v3455_v8 = vand.u32 4294901760, %v3454_v29 }
 0x34d   : > { %3423 = vmatmul.mubr.f32.gmra.mrb[28].mxu0 %v3422_v61  ;;  %v18926_v61 = vsub.f32 %v3265_v40, %v18913_v36  ;;  %v3210_v40 = vmax.f32 %v16581_v44, 0.0  ;;  %v18953_v44 = vand.u32 4294901760, %v3274_v53 }
 0x34e   : > { %3428 = vmatprep.mubr.f32.mxu0 %v23183_v0 }
 0x34f   : > { %v23181_v42 = vand.u32 4294901760, %v18926_v61  ;;  %v3277_v34 = vsel %vm811_vm0, %v3210_v40, 0  ;;  %v3487_v40 = vsub.f32 %v18941_v20, %v23182_v48  ;;  %v23581_v62 = vand.u32 4294901760, %v18926_v61 }
 0x350   : > { %v18959_v18 = vand.u32 4294901760, %v3277_v34 }
 0x351   : > { %3434 = vmatmul.mubr.f32.gmra.mrb[30].mxu0 %v3433_v5  ;;  %v18937_v5 = vand.u32 4294901760, %v3271_v13  ;;  %v3476_v29 = vsub.f32 %v18926_v61, %v23181_v42 }
 0x352   : > { %3439 = vmatprep.mubr.f32.mxu0 %v23183_v0  ;;  %v18971_v27 = vsub.f32 %v3277_v34, %v18959_v18 }
 0x353   : > { %v3477_v23 = vand.u32 4294901760, %v3476_v29 }
 0x354   : > { %v3519_v48 = vand.u32 4294901760, %v18971_v27 }
 0x355   : > { %3445 = vmatmul.mubr.f32.gmra.mrb[32].mxu0 %v3444_v26  ;;  %v18949_v26 = vsub.f32 %v3271_v13, %v18937_v5  ;;  %v18963_v13 = vsub.f32 %v3274_v53, %v18953_v44 }
 0x356   : > { %3450 = vmatprep.mubr.f32.mxu0 %v23183_v0 }
 0x357   : > { %v3508_v53 = vand.u32 4294901760, %v18963_v13 }
 0x359   : > { %3456 = vmatmul.mubr.f32.gmra.mrb[34].mxu0 %v3455_v8  ;;  %v3497_v8 = vand.u32 4294901760, %v18949_v26 }
 0x35a   : > { %3461 = vmatprep.mubr.f32.mxu0 %v23183_v0 }
 0x35b   : > { %v3498_v42 = vsub.f32 %v18949_v26, %v3497_v8 }
 0x35d   : > { %3467 = vmatmul.mubr.f32.gmra.mrb[36].mxu0 %v3466_v17  ;;  %v3488_v17 = vand.u32 4294901760, %v3487_v40  ;;  %v3499_v29 = vand.u32 4294901760, %v3498_v42  ;;  %v3520_v40 = vsub.f32 %v18971_v27, %v3519_v48 }
 0x35e   : > { %3472 = vmatprep.mubr.f32.mxu0 %v23183_v0 }
 0x361   : > { %3478 = vmatmul.mubr.f32.gmra.mrb[38].mxu0 %v3477_v23  ;;  %v3509_v23 = vsub.f32 %v18963_v13, %v3508_v53 }
 0x362   : > { %3483 = vmatprep.mubr.f32.mxu0 %v23183_v0 }
 0x363   : > { %v3510_v34 = vand.u32 4294901760, %v3509_v23 }
 0x365   : > { %3489 = vmatmul.mubr.f32.gmra.mrb[40].mxu0 %v3488_v17  ;;  %v3521_v17 = vand.u32 4294901760, %v3520_v40 }
 0x366   : > { %3494 = vmatprep.mubr.f32.mxu0 %v23183_v0 }
 0x369   : > { %3500 = vmatmul.mubr.f32.gmra.mrb[42].mxu0 %v3499_v29 }
 0x36a   : > { %3505 = vmatprep.mubr.f32.mxu0 %v23183_v0 }
 0x36d   : > { %3511 = vmatmul.mubr.f32.gmra.mrb[44].mxu0 %v3510_v34 }
 0x36e   : > { %3516 = vmatprep.mubr.f32.mxu0 %v23183_v0 }
 0x371   : > { %3522 = vmatmul.mubr.f32.gmra.mrb[46].mxu0 %v3521_v17 }
 0x372   : > { %3632 = vmatprep.mubr.f32.mxu0 %v23183_v0 }
 0x375   : > { %3634 = vmatmul.mubr.f32.vlgmr.msra.gmra.mrb[16].mxu0 %v18798_v38 }
 0x376   : > { %15754 = vmatpush1.bf16.msra.mxu0 %v15753_v39  ;;  %3639 = vmatprep.mubr.f32.mxu0 %v23183_v0  ;;  %v15767_v39 = vpack.c.bf16 %v3542_v49, %v3530_v45  ;;  %v23569_v45 = vand.u32 4294901760, %v18733_v51  ;;  %v23570_v49 = vand.u32 4294901760, %v18735_v54  ;;  %v23575_v51 = vand.u32 4294901760, %v18850_v24 }
 0x377   : > { %15756 = vmatprep.subr.bf16.mxu0 %v15755_v59  ;;  %v23577_v54 = vand.u32 4294901760, %v18878_v35 }
 0x378   : > { %v15773_v59 = vpack.c.bf16 %v23570_v49, %v23569_v45 }
 0x379   : > { %3641 = vmatmul.mubr.f32.gmra.mrb[18].mxu0 %v18794_v32 }
 0x37a   : > { %3646 = vmatprep.mubr.f32.mxu0 %v23183_v0  ;;  %15758 = vmatpush1.bf16.msra.mxu0 %v15757_v7  ;;  %v23582_v7 = vand.u32 4294901760, %v18941_v20 }
 0x37b   : > { %15760 = vmatprep.subr.bf16.mxu0 %v18604_v41 }
 0x37d   : > { %3648 = vmatmul.mubr.f32.gmra.mrb[20].mxu0 %v18814_v55 }
 0x37e   : > { %3653 = vmatprep.mubr.f32.mxu0 %v23183_v0 }
 0x381   : > { %3655 = vmatmul.mubr.f32.gmra.mrb[22].mxu0 %v18808_v11 }
 0x382   : > { %3660 = vmatprep.mubr.f32.mxu0 %v23183_v0 }
 0x385   : > { %3662 = vmatmul.mubr.f32.gmra.mrb[24].mxu0 %v18832_v60 }
 0x386   : > { %3667 = vmatprep.mubr.f32.mxu0 %v23183_v0 }
 0x389   : > { %3669 = vmatmul.mubr.f32.gmra.mrb[26].mxu0 %v18835_v25 }
 0x38a   : > { %3674 = vmatprep.mubr.f32.mxu0 %v23183_v0 }
 0x38d   : > { %3676 = vmatmul.mubr.f32.gmra.mrb[28].mxu0 %v18856_v1 }
 0x38e   : > { %3681 = vmatprep.mubr.f32.mxu0 %v23183_v0 }
 0x391   : > { %3683 = vmatmul.mubr.f32.gmra.mrb[30].mxu0 %v18865_v50 }
 0x392   : > { %3688 = vmatprep.mubr.f32.mxu0 %v23183_v0 }
 0x395   : > { %3690 = vmatmul.mubr.f32.gmra.mrb[32].mxu0 %v18883_v33 }
 0x396   : > { %3695 = vmatprep.mubr.f32.mxu0 %v23183_v0 }
 0x399   : > { %3697 = vmatmul.mubr.f32.gmra.mrb[34].mxu0 %v18889_v63 }
 0x39a   : > { %3702 = vmatprep.mubr.f32.mxu0 %v23183_v0 }
 0x39d   : > { %3704 = vmatmul.mubr.f32.gmra.mrb[36].mxu0 %v18907_v46 }
 0x39e   : > { %3709 = vmatprep.mubr.f32.mxu0 %v23183_v0 }
 0x3a1   : > { %3711 = vmatmul.mubr.f32.gmra.mrb[38].mxu0 %v18913_v36 }
 0x3a2   : > { %3716 = vmatprep.mubr.f32.mxu0 %v23183_v0 }
 0x3a5   : > { %3718 = vmatmul.mubr.f32.gmra.mrb[40].mxu0 %v18931_v3 }
 0x3a6   : > { %3723 = vmatprep.mubr.f32.mxu0 %v23183_v0 }
 0x3a9   : > { %3725 = vmatmul.mubr.f32.gmra.mrb[42].mxu0 %v18937_v5 }
 0x3aa   : > { %3730 = vmatprep.mubr.f32.mxu0 %v23183_v0 }
 0x3ad   : > { %3732 = vmatmul.mubr.f32.gmra.mrb[44].mxu0 %v18953_v44 }
 0x3ae   : > { %3737 = vmatprep.mubr.f32.mxu0 %v23183_v0 }
 0x3b1   : > { %3739 = vmatmul.mubr.f32.gmra.mrb[46].mxu0 %v18959_v18 }
 0x3b2   : > { %3825 = vmatprep.mubr.f32.mxu0 %v23183_v0 }
 0x3b5   : > { %3828 = vmatmul.mubr.f32.vlgmr.msra.gmra.mrb[16].mxu0 %v18804_v57 }
 0x3b6   : > { %15762 = vmatpush1.bf16.msra.mxu0 %v18613_v12  ;;  %3833 = vmatprep.mubr.f32.mxu0 %v23183_v0 }
 0x3b7   : > { %15764 = vmatprep.subr.bf16.mxu0 %v18718_v31 }
 0x3b9   : > { %3836 = vmatmul.mubr.f32.gmra.mrb[18].mxu0 %v18801_v10  ;;  %v4719_v10 = vld [vmem:[%s23145_s10 + $0x10] sm:$0xff] }
 0x3ba   : > { %3841 = vmatprep.mubr.f32.mxu0 %v23183_v0  ;;  %15766 = vmatpush1.bf16.msra.mxu0 %v18731_v37  ;;  %v4747_v57 = vand.u32 4294901760, %v4719_v10 }
 0x3bb   : > { %15768 = vmatprep.subr.bf16.mxu0 %v15767_v39 }
 0x3bd   : > { %3844 = vmatmul.mubr.f32.gmra.mrb[20].mxu0 %v18823_v19 }
 0x3be   : > { %3849 = vmatprep.mubr.f32.mxu0 %v23183_v0 }
 0x3c1   : > { %3852 = vmatmul.mubr.f32.gmra.mrb[22].mxu0 %v18820_v4  ;;  %v4722_v4 = vld [vmem:[%s23145_s10 + $0x28] sm:$0xff] }
 0x3c2   : > { %3857 = vmatprep.mubr.f32.mxu0 %v23183_v0 }
 0x3c5   : > { %3860 = vmatmul.mubr.f32.gmra.mrb[24].mxu0 %v18840_v58  ;;  %v4723_v58 = vld [vmem:[%s23145_s10 + $0x30] sm:$0xff] }
 0x3c6   : > { %3865 = vmatprep.mubr.f32.mxu0 %v23183_v0 }
 0x3c9   : > { %3868 = vmatmul.mubr.f32.gmra.mrb[26].mxu0 %v18850_v24  ;;  %v4724_v24 = vld [vmem:[%s23145_s10 + $0x38] sm:$0xff] }
 0x3ca   : > { %3873 = vmatprep.mubr.f32.mxu0 %v23183_v0 }
 0x3cd   : > { %3876 = vmatmul.mubr.f32.gmra.mrb[28].mxu0 %v18869_v56 }
 0x3ce   : > { %3881 = vmatprep.mubr.f32.mxu0 %v23183_v0 }
 0x3d1   : > { %3884 = vmatmul.mubr.f32.gmra.mrb[30].mxu0 %v18878_v35  ;;  %v19238_v35 = vld [vmem:[%s23145_s10 + $0x40] sm:$0xff] }
 0x3d2   : > { %3889 = vmatprep.mubr.f32.mxu0 %v23183_v0 }
 0x3d5   : > { %3892 = vmatmul.mubr.f32.gmra.mrb[32].mxu0 %v18893_v52 }
 0x3d6   : > { %3897 = vmatprep.mubr.f32.mxu0 %v23183_v0 }
 0x3d9   : > { %3900 = vmatmul.mubr.f32.gmra.mrb[34].mxu0 %v18902_v30 }
 0x3da   : > { %3905 = vmatprep.mubr.f32.mxu0 %v23183_v0 }
 0x3dd   : > { %3908 = vmatmul.mubr.f32.gmra.mrb[36].mxu0 %v18917_v47 }
 0x3de   : > { %3913 = vmatprep.mubr.f32.mxu0 %v23183_v0 }
 0x3e1   : > { %3916 = vmatmul.mubr.f32.gmra.mrb[38].mxu0 %v18926_v61 }
 0x3e2   : > { %3921 = vmatprep.mubr.f32.mxu0 %v23183_v0 }
 0x3e5   : > { %3924 = vmatmul.mubr.f32.gmra.mrb[40].mxu0 %v18941_v20 }
 0x3e6   : > { %3929 = vmatprep.mubr.f32.mxu0 %v23183_v0 }
 0x3e9   : > { %3932 = vmatmul.mubr.f32.gmra.mrb[42].mxu0 %v18949_v26 }
 0x3ea   : > { %3937 = vmatprep.mubr.f32.mxu0 %v23183_v0 }
 0x3ed   : > { %3940 = vmatmul.mubr.f32.gmra.mrb[44].mxu0 %v18963_v13  ;;  %v19299_v13 = vld [vmem:[%s23145_s10 + $0x78] sm:$0xff] }
 0x3ee   : > { %3945 = vmatprep.mubr.f32.mxu0 %v23183_v0 }
 0x3f1   : > { %3948 = vmatmul.mubr.f32.gmra.mrb[46].mxu0 %v18971_v27  ;;  %v4786_v27 = vand.u32 4294901760, %v19299_v13 }
 0x3f2   : > { %4026 = vmatprep.mubr.f32.mxu0 %v23183_v0 }
 0x3f5   : > { %4030 = vmatmul.mubr.f32.vlgmr.msra.gmra.mrb[16].mxu0 %v3354_v2 }
 0x3f6   : > { %15770 = vmatpush1.bf16.msra.mxu0 %v15769_v6  ;;  %4035 = vmatprep.mubr.f32.mxu0 %v23183_v0  ;;  %v19325_v6 = vsub.f32 %v4719_v10, %v4747_v57 }
 0x3f7   : > { %15772 = vmatprep.subr.bf16.mxu0 %v15771_v15 }
 0x3f8   : > { %23583 = vst [vmem:[#allocation2_spill] sm:$0xff] %v19325_v6 }
 0x3f9   : > { %4039 = vmatmul.mubr.f32.gmra.mrb[18].mxu0 %v23571_v22 }
 0x3fa   : > { %4044 = vmatprep.mubr.f32.mxu0 %v23183_v0  ;;  %15774 = vmatpush1.bf16.msra.mxu0 %v15773_v59  ;;  %v23200_v59 = vand.u32 4294901760, %v19325_v6 }
 0x3fb   : > { %15776 = vmatprep.subr.bf16.mxu0 %v18604_v41  ;;  %v23576_v41 = vand.u32 4294901760, %v18869_v56 }
 0x3fd   : > { %4048 = vmatmul.mubr.f32.gmra.mrb[20].mxu0 %v23572_v43 }
 0x3fe   : > { %4053 = vmatprep.mubr.f32.mxu0 %v23183_v0 }
 0x401   : > { %4057 = vmatmul.mubr.f32.gmra.mrb[22].mxu0 %v23573_v16  ;;  %v4999_v16 = vsub.f32 %v19325_v6, %v23200_v59 }
 0x402   : > { %4062 = vmatprep.mubr.f32.mxu0 %v23183_v0 }
 0x405   : > { %4066 = vmatmul.mubr.f32.gmra.mrb[24].mxu0 %v23574_v9 }
 0x406   : > { %4071 = vmatprep.mubr.f32.mxu0 %v23183_v0 }
 0x409   : > { %4075 = vmatmul.mubr.f32.gmra.mrb[26].mxu0 %v23575_v51 }
 0x40a   : > { %4080 = vmatprep.mubr.f32.mxu0 %v23183_v0 }
 0x40d   : > { %4084 = vmatmul.mubr.f32.gmra.mrb[28].mxu0 %v23576_v41 }
 0x40e   : > { %4089 = vmatprep.mubr.f32.mxu0 %v23183_v0 }
 0x411   : > { %4093 = vmatmul.mubr.f32.gmra.mrb[30].mxu0 %v23577_v54  ;;  %v5000_v54 = vand.u32 4294901760, %v4999_v16 }
 0x412   : > { %4098 = vmatprep.mubr.f32.mxu0 %v23183_v0 }
 0x415   : > { %4102 = vmatmul.mubr.f32.gmra.mrb[32].mxu0 %v23578_v14 }
 0x416   : > { %4107 = vmatprep.mubr.f32.mxu0 %v23183_v0 }
 0x419   : > { %4111 = vmatmul.mubr.f32.gmra.mrb[34].mxu0 %v23579_v28 }
 0x41a   : > { %4116 = vmatprep.mubr.f32.mxu0 %v23183_v0 }
 0x41d   : > { %4120 = vmatmul.mubr.f32.gmra.mrb[36].mxu0 %v23580_v21 }
 0x41e   : > { %4125 = vmatprep.mubr.f32.mxu0 %v23183_v0 }
 0x421   : > { %4129 = vmatmul.mubr.f32.gmra.mrb[38].mxu0 %v23581_v62 }
 0x422   : > { %4134 = vmatprep.mubr.f32.mxu0 %v23183_v0 }
 0x425   : > { %4138 = vmatmul.mubr.f32.gmra.mrb[40].mxu0 %v23582_v7 }
 0x426   : > { %4143 = vmatprep.mubr.f32.mxu0 %v23183_v0 }
 0x429   : > { %4147 = vmatmul.mubr.f32.gmra.mrb[42].mxu0 %v3497_v8 }
 0x42a   : > { %4152 = vmatprep.mubr.f32.mxu0 %v23183_v0 }
 0x42d   : > { %4156 = vmatmul.mubr.f32.gmra.mrb[44].mxu0 %v3508_v53 }
 0x42e   : > { %4161 = vmatprep.mubr.f32.mxu0 %v23183_v0 }
 0x431   : > { %4165 = vmatmul.mubr.f32.gmra.mrb[46].mxu0 %v3519_v48  ;;  %v19274_v48 = vld [vmem:[%s23145_s10 + $0x60] sm:$0xff] }
 0x432   : > { %4259 = vmatprep.mubr.f32.mxu0 %v23183_v0  ;;  %v4777_v20 = vand.u32 4294901760, %v19274_v48 }
 0x435   : > { %4261 = vmatmul.mubr.f32.vlgmr.msra.gmra.mrb[16].mxu0 %v18798_v38 }
 0x436   : > { %15778 = vmatpush1.bf16.msra.mxu0 %v18613_v12  ;;  %4266 = vmatprep.mubr.f32.mxu0 %v23183_v0  ;;  %v4717_v12 = vld [vmem:[%s23145_s10] sm:$0xff] }
 0x437   : > { %15780 = vmatprep.subr.bf16.mxu0 %v18718_v31  ;;  %v4718_v31 = vld [vmem:[%s23145_s10 + $0x8] sm:$0xff] }
 0x439   : > { %4268 = vmatmul.mubr.f32.gmra.mrb[18].mxu0 %v18794_v32 }
 0x43a   : > { %4273 = vmatprep.mubr.f32.mxu0 %v23183_v0  ;;  %15782 = vmatpush1.bf16.msra.mxu0 %v18731_v37  ;;  %v4741_v37 = vand.u32 4294901760, %v4717_v12 }
 0x43c   : > { %v19313_v29 = vsub.f32 %v4717_v12, %v4741_v37 }
 0x43d   : > { %4275 = vmatmul.mubr.f32.gmra.mrb[20].mxu0 %v18814_v55 }
 0x43e   : > { %4280 = vmatprep.mubr.f32.mxu0 %v23183_v0  ;;  %v23202_v34 = vand.u32 4294901760, %v19313_v29 }
 0x440   : > { %v4985_v17 = vsub.f32 %v19313_v29, %v23202_v34  ;;  %v4591_v34 = vld [vmem:[%s19518_s30 + $0x10] sm:$0xff] }
 0x441   : > { %4282 = vmatmul.mubr.f32.gmra.mrb[22].mxu0 %v18808_v11 }
 0x442   : > { %4287 = vmatprep.mubr.f32.mxu0 %v23183_v0  ;;  %v4986_v45 = vand.u32 4294901760, %v4985_v17 }
 0x445   : > { %4289 = vmatmul.mubr.f32.gmra.mrb[24].mxu0 %v18832_v60 }
 0x446   : > { %4294 = vmatprep.mubr.f32.mxu0 %v23183_v0 }
 0x449   : > { %4296 = vmatmul.mubr.f32.gmra.mrb[26].mxu0 %v18835_v25 }
 0x44a   : > { %4301 = vmatprep.mubr.f32.mxu0 %v23183_v0 }
 0x44d   : > { %4303 = vmatmul.mubr.f32.gmra.mrb[28].mxu0 %v18856_v1 }
 0x44e   : > { %4308 = vmatprep.mubr.f32.mxu0 %v23183_v0 }
 0x451   : > { %4310 = vmatmul.mubr.f32.gmra.mrb[30].mxu0 %v18865_v50 }
 0x452   : > { %4315 = vmatprep.mubr.f32.mxu0 %v23183_v0 }
 0x455   : > { %4317 = vmatmul.mubr.f32.gmra.mrb[32].mxu0 %v18883_v33 }
 0x456   : > { %4322 = vmatprep.mubr.f32.mxu0 %v23183_v0 }
 0x459   : > { %4324 = vmatmul.mubr.f32.gmra.mrb[34].mxu0 %v18889_v63 }
 0x45a   : > { %4329 = vmatprep.mubr.f32.mxu0 %v23183_v0 }
 0x45d   : > { %4331 = vmatmul.mubr.f32.gmra.mrb[36].mxu0 %v18907_v46 }
 0x45e   : > { %4336 = vmatprep.mubr.f32.mxu0 %v23183_v0 }
 0x461   : > { %4338 = vmatmul.mubr.f32.gmra.mrb[38].mxu0 %v18913_v36 }
 0x462   : > { %4343 = vmatprep.mubr.f32.mxu0 %v23183_v0 }
 0x465   : > { %4345 = vmatmul.mubr.f32.gmra.mrb[40].mxu0 %v18931_v3 }
 0x466   : > { %4350 = vmatprep.mubr.f32.mxu0 %v23183_v0 }
 0x469   : > { %4352 = vmatmul.mubr.f32.gmra.mrb[42].mxu0 %v18937_v5 }
 0x46a   : > { %4357 = vmatprep.mubr.f32.mxu0 %v23183_v0 }
 0x46d   : > { %4359 = vmatmul.mubr.f32.gmra.mrb[44].mxu0 %v18953_v44 }
 0x46e   : > { %4364 = vmatprep.mubr.f32.mxu0 %v23183_v0 }
 0x471   : > { %4366 = vmatmul.mubr.f32.gmra.mrb[46].mxu0 %v18959_v18 }
 0x472   : > { %4444 = vmatprep.mubr.f32.mxu0 %v23183_v0 }
 0x475   : > { %4446 = vmatmul.mubr.f32.vlgmr.msra.gmra.mrb[16].mxu0 %v18798_v38 }
 0x476   : > { %4451 = vmatprep.mubr.f32.mxu0 %v23183_v0 }
 0x479   : > { %4453 = vmatmul.mubr.f32.gmra.mrb[18].mxu0 %v18794_v32  ;;  %v4744_v32 = vand.u32 4294901760, %v4718_v31 }
 0x47a   : > { %4458 = vmatprep.mubr.f32.mxu0 %v23183_v0 }
 0x47b   : > { %v19203_v38 = vpack.c.bf16 %v4744_v32, %v4741_v37  ;;  %v19315_v23 = vsub.f32 %v4718_v31, %v4744_v32 }
 0x47d   : > { %4460 = vmatmul.mubr.f32.gmra.mrb[20].mxu0 %v18814_v55  ;;  %15784 = vmatprep.subr.bf16.mxu1 %v19203_v38  ;;  %v4721_v55 = vld [vmem:[%s23145_s10 + $0x20] sm:$0xff]  ;;  %v23201_v40 = vand.u32 4294901760, %v19315_v23 }
 0x47e   : > { %4465 = vmatprep.mubr.f32.mxu0 %v23183_v0  ;;  %15786 = vmatpush3.bf16.msra.mxu1 %v19203_v38  ;;  %v4753_v19 = vand.u32 4294901760, %v4721_v55 }
 0x47f   : > { %v4992_v39 = vsub.f32 %v19315_v23, %v23201_v40 }
 0x480   : > { %v19339_v51 = vsub.f32 %v4721_v55, %v4753_v19 }
 0x481   : > { %4467 = vmatmul.mubr.f32.gmra.mrb[22].mxu0 %v18808_v11  ;;  %v4993_v49 = vand.u32 4294901760, %v4992_v39 }
 0x482   : > { %4472 = vmatprep.mubr.f32.mxu0 %v23183_v0  ;;  %23585 = vst [vmem:[#allocation4_spill] sm:$0xff] %v19339_v51  ;;  %v23198_v28 = vand.u32 4294901760, %v19339_v51 }
 0x483   : > { %v19331_v43 = vpack.c.bf16 %v4993_v49, %v4986_v45 }
 0x484   : > { %v5013_v7 = vsub.f32 %v19339_v51, %v23198_v28  ;;  %v4685_v28 = vld [vmem:[%s19532_s6] sm:$0xff] }
 0x485   : > { %4474 = vmatmul.mubr.f32.gmra.mrb[24].mxu0 %v18832_v60  ;;  %v4756_v60 = vand.u32 4294901760, %v4722_v4 }
 0x486   : > { %4479 = vmatprep.mubr.f32.mxu0 %v23183_v0  ;;  %v5014_v32 = vand.u32 4294901760, %v5013_v7 }
 0x487   : > { %v19341_v41 = vsub.f32 %v4722_v4, %v4756_v60 }
 0x489   : > { %4481 = vmatmul.mubr.f32.gmra.mrb[26].mxu0 %v18835_v25  ;;  %v19223_v25 = vpack.c.bf16 %v4756_v60, %v4753_v19  ;;  %23586 = vst [vmem:[#allocation5_spill] sm:$0xff] %v19341_v41  ;;  %v23197_v21 = vand.u32 4294901760, %v19341_v41 }
 0x48a   : > { %4486 = vmatprep.mubr.f32.mxu0 %v23183_v0 }
 0x48b   : > { %v5020_v37 = vsub.f32 %v19341_v41, %v23197_v21 }
 0x48d   : > { %4488 = vmatmul.mubr.f32.gmra.mrb[28].mxu0 %v18856_v1  ;;  %v4759_v1 = vand.u32 4294901760, %v4723_v58 }
 0x48e   : > { %4493 = vmatprep.mubr.f32.mxu0 %v23183_v0 }
 0x48f   : > { %v19351_v12 = vsub.f32 %v4723_v58, %v4759_v1 }
 0x491   : > { %4495 = vmatmul.mubr.f32.gmra.mrb[30].mxu0 %v18865_v50  ;;  %v4762_v50 = vand.u32 4294901760, %v4724_v24  ;;  %23587 = vst [vmem:[#allocation6_spill] sm:$0xff] %v19351_v12  ;;  %v23196_v10 = vand.u32 4294901760, %v19351_v12 }
 0x492   : > { %4500 = vmatprep.mubr.f32.mxu0 %v23183_v0 }
 0x493   : > { %v19233_v56 = vpack.c.bf16 %v4762_v50, %v4759_v1  ;;  %v19353_v31 = vsub.f32 %v4724_v24, %v4762_v50 }
 0x495   : > { %4502 = vmatmul.mubr.f32.gmra.mrb[32].mxu0 %v18883_v33  ;;  %v19243_v33 = vld [vmem:[%s23145_s10 + $0x48] sm:$0xff]  ;;  %23588 = vst [vmem:[#allocation7_spill] sm:$0xff] %v19353_v31 }
 0x496   : > { %4507 = vmatprep.mubr.f32.mxu0 %v23183_v0  ;;  %v4768_v52 = vand.u32 4294901760, %v19243_v33 }
 0x498   : > { %v19370_v19 = vsub.f32 %v19243_v33, %v4768_v52 }
 0x499   : > { %4509 = vmatmul.mubr.f32.gmra.mrb[34].mxu0 %v18889_v63  ;;  %v4765_v63 = vand.u32 4294901760, %v19238_v35 }
 0x49a   : > { %4514 = vmatprep.mubr.f32.mxu0 %v23183_v0  ;;  %23590 = vst [vmem:[#allocation9_spill] sm:$0xff] %v19370_v19  ;;  %v23193_v50 = vand.u32 4294901760, %v19370_v19 }
 0x49b   : > { %v19249_v30 = vpack.c.bf16 %v4768_v52, %v4765_v63  ;;  %v19367_v4 = vsub.f32 %v19238_v35, %v4765_v63 }
 0x49c   : > { %v5048_v35 = vsub.f32 %v19370_v19, %v23193_v50 }
 0x49d   : > { %4516 = vmatmul.mubr.f32.gmra.mrb[36].mxu0 %v18907_v46  ;;  %v19254_v46 = vld [vmem:[%s23145_s10 + $0x50] sm:$0xff]  ;;  %23589 = vst [vmem:[#allocation8_spill] sm:$0xff] %v19367_v4  ;;  %v23194_v1 = vand.u32 4294901760, %v19367_v4 }
 0x49e   : > { %4521 = vmatprep.mubr.f32.mxu0 %v23183_v0  ;;  %v4771_v47 = vand.u32 4294901760, %v19254_v46  ;;  %v5049_v45 = vand.u32 4294901760, %v5048_v35  ;;  %v19448_v35 = vpack.c.bf16 %v19315_v23, %v19313_v29 }
 0x49f   : > { %v5041_v39 = vsub.f32 %v19367_v4, %v23194_v1 }
 0x4a0   : > { %v19387_v33 = vsub.f32 %v19254_v46, %v4771_v47  ;;  %v19404_v46 = vsub.f32 %v19274_v48, %v4777_v20 }
 0x4a1   : > { %4523 = vmatmul.mubr.f32.gmra.mrb[38].mxu0 %v18913_v36  ;;  %v19259_v36 = vld [vmem:[%s23145_s10 + $0x58] sm:$0xff]  ;;  %v5042_v52 = vand.u32 4294901760, %v5041_v39 }
 0x4a2   : > { %4528 = vmatprep.mubr.f32.mxu0 %v23183_v0  ;;  %v4774_v61 = vand.u32 4294901760, %v19259_v36  ;;  %23591 = vst [vmem:[#allocation10_spill] sm:$0xff] %v19387_v33  ;;  %v23192_v49 = vand.u32 4294901760, %v19387_v33  ;;  %23593 = vst [vmem:[#allocation12_spill] sm:$0xff] %v19404_v46 }
 0x4a4   : > { %v19392_v63 = vsub.f32 %v19259_v36, %v4774_v61 }
 0x4a5   : > { %4530 = vmatmul.mubr.f32.gmra.mrb[40].mxu0 %v18931_v3  ;;  %v19269_v3 = vpack.c.bf16 %v4774_v61, %v4771_v47 }
 0x4a6   : > { %4535 = vmatprep.mubr.f32.mxu0 %v23183_v0  ;;  %23592 = vst [vmem:[#allocation11_spill] sm:$0xff] %v19392_v63  ;;  %v23191_v16 = vand.u32 4294901760, %v19392_v63 }
 0x4a8   : > { %v5062_v47 = vsub.f32 %v19392_v63, %v23191_v16 }
 0x4a9   : > { %4537 = vmatmul.mubr.f32.gmra.mrb[42].mxu0 %v18937_v5  ;;  %v19279_v5 = vld [vmem:[%s23145_s10 + $0x68] sm:$0xff] }
 0x4aa   : > { %4542 = vmatprep.mubr.f32.mxu0 %v23183_v0  ;;  %v4780_v42 = vand.u32 4294901760, %v19279_v5 }
 0x4ac   : > { %v19289_v26 = vpack.c.bf16 %v4780_v42, %v4777_v20  ;;  %v19409_v36 = vsub.f32 %v19279_v5, %v4780_v42  ;;  %v19430_v42 = vsub.f32 %v19299_v13, %v4786_v27 }
 0x4ad   : > { %4544 = vmatmul.mubr.f32.gmra.mrb[44].mxu0 %v18953_v44  ;;  %v19294_v44 = vld [vmem:[%s23145_s10 + $0x70] sm:$0xff] }
 0x4ae   : > { %4549 = vmatprep.mubr.f32.mxu0 %v23183_v0  ;;  %v4783_v8 = vand.u32 4294901760, %v19294_v44  ;;  %23594 = vst [vmem:[#allocation13_spill] sm:$0xff] %v19409_v36  ;;  %v23189_v7 = vand.u32 4294901760, %v19409_v36  ;;  %23596 = vst [vmem:[#allocation15_spill] sm:$0xff] %v19430_v42 }
 0x4b0   : > { %v19309_v53 = vpack.c.bf16 %v4786_v27, %v4783_v8  ;;  %v5076_v20 = vsub.f32 %v19409_v36, %v23189_v7  ;;  %v19425_v5 = vsub.f32 %v19294_v44, %v4783_v8 }
 0x4b1   : > { %4551 = vmatmul.mubr.f32.gmra.mrb[46].mxu0 %v18959_v18  ;;  %v4720_v18 = vld [vmem:[%s23145_s10 + $0x18] sm:$0xff] }
 0x4b2   : > { %7735 = vmatprep.mubr.f32.mxu0 %v23183_v0  ;;  %v4750_v11 = vand.u32 4294901760, %v4720_v18  ;;  %23595 = vst [vmem:[#allocation14_spill] sm:$0xff] %v19425_v5 }
 0x4b4   : > { %v19213_v2 = vpack.c.bf16 %v4750_v11, %v4747_v57  ;;  %v19327_v15 = vsub.f32 %v4720_v18, %v4750_v11  ;;  %v23195_v18 = vand.u32 4294901760, %v19353_v31  ;;  %v5021_v57 = vand.u32 4294901760, %v5020_v37 }
 0x4b5   : > { %v5027_v11 = vsub.f32 %v19351_v12, %v23196_v10  ;;  %v5063_v37 = vand.u32 4294901760, %v5062_v47  ;;  %v19464_v47 = vpack.c.bf16 %v19370_v19, %v19367_v4  ;;  %v4596_v4 = vld [vmem:[%s19518_s30 + $0x38] sm:$0xff] }
 0x4b6   : > { %15788 = vmatprep.subr.bf16.mxu1 %v19213_v2  ;;  %23584 = vst [vmem:[#allocation3_spill] sm:$0xff] %v19327_v15  ;;  %v23199_v22 = vand.u32 4294901760, %v19327_v15  ;;  %v5034_v55 = vsub.f32 %v19353_v31, %v23195_v18  ;;  %v19372_v60 = vpack.c.bf16 %v5021_v57, %v5014_v32 }
 0x4b7   : > { %15790 = vmatpush3.bf16.msra.mxu1 %v19213_v2  ;;  %v5028_v58 = vand.u32 4294901760, %v5027_v11  ;;  %v5077_v11 = vand.u32 4294901760, %v5076_v20  ;;  %v19474_v20 = vpack.c.bf16 %v19409_v36, %v19404_v46  ;;  %v4593_v36 = vld [vmem:[%s19518_s30 + $0x20] sm:$0xff] }
 0x4b8   : > { %15792 = vmatprep.subr.bf16.mxu1 %v19223_v25  ;;  %v5006_v9 = vsub.f32 %v19327_v15, %v23199_v22  ;;  %v5035_v24 = vand.u32 4294901760, %v5034_v55  ;;  %v23188_v55 = vand.u32 4294901760, %v19425_v5 }
 0x4ba   : > { %v5007_v14 = vand.u32 4294901760, %v5006_v9  ;;  %v19376_v17 = vpack.c.bf16 %v5035_v24, %v5028_v58  ;;  %v19396_v9 = vpack.c.bf16 %v5049_v45, %v5042_v52  ;;  %v23185_v58 = vand.u32 4294901760, %v19430_v42 }
 0x4bb   : > { %15794 = vmatpush3.bf16.msra.mxu1 %v19223_v25  ;;  %v5083_v44 = vsub.f32 %v19425_v5, %v23188_v55  ;;  %v19452_v52 = vpack.c.bf16 %v19327_v15, %v19325_v6  ;;  %v19456_v45 = vpack.c.bf16 %v19341_v41, %v19339_v51 }
 0x4bc   : > { %15796 = vmatprep.subr.bf16.mxu1 %v19233_v56  ;;  %v19346_v62 = vpack.c.bf16 %v5007_v14, %v5000_v54  ;;  %v5055_v54 = vsub.f32 %v19387_v33, %v23192_v49  ;;  %v23190_v14 = vand.u32 4294901760, %v19404_v46  ;;  %v5090_v8 = vsub.f32 %v19430_v42, %v23185_v58 }
 0x4bd   : > { %v5084_v13 = vand.u32 4294901760, %v5083_v44 }
 0x4be   : > { %v5056_v61 = vand.u32 4294901760, %v5055_v54  ;;  %v5069_v48 = vsub.f32 %v19404_v46, %v23190_v14  ;;  %v5091_v27 = vand.u32 4294901760, %v5090_v8  ;;  %v19460_v54 = vpack.c.bf16 %v19353_v31, %v19351_v12 }
 0x4bf   : > { %15798 = vmatpush3.bf16.msra.mxu1 %v19233_v56  ;;  %v19483_v8 = vpack.c.bf16 %v19430_v42, %v19425_v5 }
 0x4c0   : > { %15800 = vmatprep.subr.bf16.mxu1 %v19249_v30  ;;  %v19432_v32 = vpack.c.bf16 %v5063_v37, %v5056_v61  ;;  %v5070_v57 = vand.u32 4294901760, %v5069_v48  ;;  %v19444_v39 = vpack.c.bf16 %v5091_v27, %v5084_v13  ;;  %v3221_v61 = vlaneseq }
 0x4c1   : > { %v19468_v37 = vpack.c.bf16 %v19392_v63, %v19387_v33  ;;  %v4594_v63 = vld [vmem:[%s19518_s30 + $0x28] sm:$0xff] }
 0x4c2   : > { %v19436_v24 = vpack.c.bf16 %v5077_v11, %v5070_v57  ;;  %v19470_v48 = vshrl.u32 %v3221_v61, 7  ;;  %v3219_v11 = vld [vmem:[%s23144_s9] sm:$0x3] }
 0x4c3   : > { %15802 = vmatpush3.bf16.msra.mxu1 %v19249_v30 }
 0x4c4   : > { %15804 = vmatprep.subr.bf16.mxu1 %v19269_v3  ;;  %23597 = vst [vmem:[#allocation16_spill] sm:$0xff] %v19470_v48  ;;  %v23186_v57 = vsub.s32 0, %v19470_v48  ;;  %v23187_v44 = vsub.s32 1, %v19470_v48 }
 0x4c6   : > { %v19488_v13 = vrot.slane %v3219_v11, %v23186_v57  ;;  %v19492_v27 = vrot.slane %v3219_v11, %v23187_v44 }
 0x4c7   : > { %15806 = vmatpush3.bf16.msra.mxu1 %v19269_v3 }
 0x4c8   : > { %15808 = vmatprep.subr.bf16.mxu1 %v19289_v26 }
 0x4cb   : > { %15810 = vmatpush3.bf16.msra.mxu1 %v19289_v26 }
 0x4cc   : > { %15812 = vmatprep.subr.bf16.mxu1 %v19309_v53 }
 0x4cf   : > { %15814 = vmatpush3.bf16.msra.mxu1 %v19309_v53 }
 0x4d0   : > { %15816 = vmatprep.subr.bf16.mxu1 %v19331_v43 }
 0x548   : > { %v4447_v61 = vpop.f32.mrb[16].mxu0 }
 0x549   : > { %v16583_v0 = vadd.f32 %v4447_v61, %v19488_v13  ;;  %v4449_v58 = vpop.f32.mrb[17].mxu0 }
 0x54a   : > { %v16584_v57 = vadd.f32 %v4449_v58, %v19492_v27 }
 0x54b   : > { %4557 = vst [vmem:[%s19497_s2] sm:$0xff] %v16583_v0 }
 0x54c   : > { %4558 = vst [vmem:[%s19497_s2 + $0x8] sm:$0xff] %v16584_v57  ;;  %v4605_v11 = vmul.f32 0.5, %v16584_v57  ;;  %v4454_v44 = vpop.f32.mrb[18].mxu0 }
 0x54d   : > { %v16585_v55 = vadd.f32 %v4454_v44, %v19488_v13  ;;  %v4456_v7 = vpop.f32.mrb[19].mxu0 }
 0x54e   : > { %v4621_v14 = vmul.f32 1.442695, %v4605_v11  ;;  %v16586_v16 = vadd.f32 %v4456_v7, %v19492_v27 }
 0x54f   : > { %4559 = vst [vmem:[%s19497_s2 + $0x10] sm:$0xff] %v16585_v55 }
 0x550   : > { %17712 = vpow2.f32 %v4621_v14  ;;  %4560 = vst [vmem:[%s19497_s2 + $0x18] sm:$0xff] %v16586_v16  ;;  %v4606_v61 = vmul.f32 0.5, %v16586_v16  ;;  %v4461_v49 = vpop.f32.mrb[20].mxu0 }
 0x551   : > { %v19508_v58 = vadd.f32 %v4461_v49, %v19488_v13  ;;  %v4463_v50 = vpop.f32.mrb[21].mxu0 }
 0x552   : > { %v4623_v57 = vmul.f32 1.442695, %v4606_v61  ;;  %v16588_v1 = vadd.f32 %v4463_v50, %v19492_v27 }
 0x553   : > { %4561 = vst [vmem:[%s19497_s2 + $0x20] sm:$0xff] %v19508_v58 }
 0x554   : > { %17714 = vpow2.f32 %v4623_v57  ;;  %4562 = vst [vmem:[%s19497_s2 + $0x28] sm:$0xff] %v16588_v1  ;;  %v4607_v7 = vmul.f32 0.5, %v16588_v1  ;;  %v4468_v44 = vpop.f32.mrb[22].mxu0  ;;  %v4589_v1 = vld [vmem:[%s19518_s30] sm:$0xff] }
 0x555   : > { %v19521_v49 = vadd.f32 %v4468_v44, %v19488_v13  ;;  %v4470_v16 = vpop.f32.mrb[23].mxu0 }
 0x556   : > { %v4625_v14 = vmul.f32 1.442695, %v4607_v7  ;;  %v16590_v50 = vadd.f32 %v4470_v16, %v19492_v27 }
 0x557   : > { %4563 = vst [vmem:[%s19497_s2 + $0x30] sm:$0xff] %v19521_v49 }
 0x558   : > { %17716 = vpow2.f32 %v4625_v14  ;;  %4564 = vst [vmem:[%s19497_s2 + $0x38] sm:$0xff] %v16590_v50  ;;  %v4608_v11 = vmul.f32 0.5, %v16590_v50  ;;  %v4475_v61 = vpop.f32.mrb[24].mxu0  ;;  %v4590_v14 = vld [vmem:[%s19518_s30 + $0x8] sm:$0xff] }
 0x559   : > { %v19535_v57 = vadd.f32 %v4475_v61, %v19488_v13  ;;  %v4477_v7 = vpop.f32.mrb[25].mxu0 }
 0x55a   : > { %v17713_v44 = vpop.eup %17712  ;;  %v4627_v16 = vmul.f32 1.442695, %v4608_v11  ;;  %v16592_v18 = vadd.f32 %v4477_v7, %v19492_v27 }
 0x55b   : > { %v4653_v10 = vmul.f32 %v17713_v44, %v4589_v1  ;;  %4565 = vst [vmem:[%s19497_s2 + $0x40] sm:$0xff] %v19535_v57 }
 0x55c   : > { %17718 = vpow2.f32 %v4627_v16  ;;  %4566 = vst [vmem:[%s19497_s2 + $0x48] sm:$0xff] %v16592_v18  ;;  %v4609_v50 = vmul.f32 0.5, %v16592_v18  ;;  %v4482_v21 = vpop.f32.mrb[26].mxu0  ;;  %v4686_v16 = vld [vmem:[%s19532_s6 + $0x8] sm:$0xff] }
 0x55d   : > { %v19544_v61 = vadd.f32 %v4482_v21, %v19488_v13  ;;  %v4484_v22 = vpop.f32.mrb[27].mxu0  ;;  %v4669_v11 = vadd.f32 %v16583_v0, %v4653_v10 }
 0x55e   : > { %v17715_v59 = vpop.eup %17714  ;;  %v4629_v7 = vmul.f32 1.442695, %v4609_v50  ;;  %v16594_v1 = vadd.f32 %v4484_v22, %v19492_v27 }
 0x55f   : > { %v4654_v44 = vmul.f32 %v17715_v59, %v4590_v14  ;;  %4567 = vst [vmem:[%s19497_s2 + $0x50] sm:$0xff] %v19544_v61  ;;  %v4701_v40 = vadd.f32 %v4685_v28, %v4669_v11 }
 0x560   : > { %17720 = vpow2.f32 %v4629_v7  ;;  %4568 = vst [vmem:[%s19497_s2 + $0x58] sm:$0xff] %v16594_v1  ;;  %v4610_v18 = vmul.f32 0.5, %v16594_v1  ;;  %v4489_v21 = vpop.f32.mrb[28].mxu0 }
 0x561   : > { %v4670_v48 = vadd.f32 %v16585_v55, %v4654_v44  ;;  %v19553_v0 = vadd.f32 %v4489_v21, %v19488_v13  ;;  %v4491_v10 = vpop.f32.mrb[29].mxu0  ;;  %v19555_v22 = vand.u32 4294901760, %v4701_v40  ;;  %v4592_v55 = vld [vmem:[%s19518_s30 + $0x18] sm:$0xff]  ;;  %v4687_v21 = vld [vmem:[%s19532_s6 + $0x10] sm:$0xff] }
 0x562   : > { %v17717_v59 = vpop.eup %17716  ;;  %v4631_v14 = vmul.f32 1.442695, %v4610_v18  ;;  %v16596_v28 = vadd.f32 %v4491_v10, %v19492_v27 }
 0x563   : > { %v4702_v50 = vadd.f32 %v4686_v16, %v4670_v48  ;;  %v4655_v11 = vmul.f32 %v17717_v59, %v4591_v34  ;;  %4569 = vst [vmem:[%s19497_s2 + $0x60] sm:$0xff] %v19553_v0  ;;  %v19561_v7 = vsub.f32 %v4701_v40, %v19555_v22 }
 0x564   : > { %17722 = vpow2.f32 %v4631_v14  ;;  %4570 = vst [vmem:[%s19497_s2 + $0x68] sm:$0xff] %v16596_v28  ;;  %v4611_v1 = vmul.f32 0.5, %v16596_v28  ;;  %v4496_v44 = vpop.f32.mrb[30].mxu0 }
 0x565   : > { %v19566_v42 = vand.u32 4294901760, %v4702_v50  ;;  %v19569_v18 = vadd.f32 %v4496_v44, %v19488_v13  ;;  %v4498_v34 = vpop.f32.mrb[31].mxu0  ;;  %v23208_v48 = vand.u32 4294901760, %v19561_v7  ;;  %v4671_v40 = vadd.f32 %v19508_v58, %v4655_v11 }
 0x566   : > { %v17719_v16 = vpop.eup %17718  ;;  %v4633_v10 = vmul.f32 1.442695, %v4611_v1  ;;  %v16598_v59 = vadd.f32 %v4498_v34, %v19492_v27 }
 0x567   : > { %v4656_v14 = vmul.f32 %v17719_v16, %v4592_v55  ;;  %4571 = vst [vmem:[%s19497_s2 + $0x70] sm:$0xff] %v19569_v18  ;;  %v4824_v28 = vsub.f32 %v19561_v7, %v23208_v48  ;;  %v19580_v44 = vsub.f32 %v4702_v50, %v19566_v42  ;;  %v4703_v5 = vadd.f32 %v4687_v21, %v4671_v40  ;;  %v4688_v50 = vld [vmem:[%s19532_s6 + $0x18] sm:$0xff] }
 0x568   : > { %17724 = vpow2.f32 %v4633_v10  ;;  %4572 = vst [vmem:[%s19497_s2 + $0x78] sm:$0xff] %v16598_v59  ;;  %v4612_v58 = vmul.f32 0.5, %v16598_v59  ;;  %v4503_v11 = vpop.f32.mrb[32].mxu0 }
 0x569   : > { %v19585_v1 = vadd.f32 %v4503_v11, %v19488_v13  ;;  %v4505_v55 = vpop.f32.mrb[33].mxu0  ;;  %v4825_v34 = vand.u32 4294901760, %v4824_v28  ;;  %v23212_v16 = vand.u32 4294901760, %v19580_v44  ;;  %v19588_v48 = vand.u32 4294901760, %v4703_v5 }
 0x56a   : > { %v17721_v21 = vpop.eup %17720  ;;  %v4635_v40 = vmul.f32 1.442695, %v4612_v58  ;;  %v16600_v10 = vadd.f32 %v4505_v55, %v19492_v27  ;;  %v4672_v59 = vadd.f32 %v19521_v49, %v4656_v14  ;;  %v4689_v49 = vld [vmem:[%s19532_s6 + $0x20] sm:$0xff] }
 0x56b   : > { %v4657_v46 = vmul.f32 %v17721_v21, %v4593_v36  ;;  %4573 = vst [vmem:[%s19497_s2 + $0x80] sm:$0xff] %v19585_v1  ;;  %14615 = vmatprep.mubr.f32.mxu1 %v4825_v34  ;;  %v4834_v28 = vsub.f32 %v19580_v44, %v23212_v16  ;;  %v19599_v11 = vsub.f32 %v4703_v5, %v19588_v48 }
 0x56c   : > { %17726 = vpow2.f32 %v4635_v40  ;;  %4574 = vst [vmem:[%s19497_s2 + $0x88] sm:$0xff] %v16600_v10  ;;  %v4613_v58 = vmul.f32 0.5, %v16600_v10  ;;  %v4510_v33 = vpop.f32.mrb[34].mxu0  ;;  %v4704_v55 = vadd.f32 %v4688_v50, %v4672_v59 }
 0x56d   : > { %v19605_v36 = vadd.f32 %v4510_v33, %v19488_v13  ;;  %v4512_v14 = vpop.f32.mrb[35].mxu0  ;;  %v4835_v34 = vand.u32 4294901760, %v4834_v28  ;;  %v23214_v21 = vand.u32 4294901760, %v19599_v11  ;;  %v4673_v5 = vadd.f32 %v19535_v57, %v4657_v46  ;;  %v4595_v28 = vld [vmem:[%s19518_s30 + $0x30] sm:$0xff] }
 0x56e   : > { %v17723_v16 = vpop.eup %17722  ;;  %v4637_v40 = vmul.f32 1.442695, %v4613_v58  ;;  %v16602_v19 = vadd.f32 %v4512_v14, %v19492_v27  ;;  %v19610_v10 = vand.u32 4294901760, %v4704_v55  ;;  %v4690_v14 = vld [vmem:[%s19532_s6 + $0x28] sm:$0xff] }
 0x56f   : > { %v4658_v50 = vmul.f32 %v17723_v16, %v4594_v63  ;;  %4575 = vst [vmem:[%s19497_s2 + $0x90] sm:$0xff] %v19605_v36  ;;  %14616 = vmatmul.mubr.f32.vlgmr.msra.gmra.mrb[16].mxu1 %v4835_v34  ;;  %v4844_v33 = vsub.f32 %v19599_v11, %v23214_v21  ;;  %v4705_v59 = vadd.f32 %v4689_v49, %v4673_v5 }
 0x570   : > { %17728 = vpow2.f32 %v4637_v40  ;;  %4576 = vst [vmem:[%s19497_s2 + $0x98] sm:$0xff] %v16602_v19  ;;  %v4614_v46 = vmul.f32 0.5, %v16602_v19  ;;  %v4517_v57 = vpop.f32.mrb[36].mxu0  ;;  %v19620_v58 = vsub.f32 %v4704_v55, %v19610_v10  ;;  %15818 = vmatpush3.bf16.msra.mxu1 %v19331_v43 }
 0x571   : > { %v19625_v63 = vadd.f32 %v4517_v57, %v19488_v13  ;;  %v4519_v16 = vpop.f32.mrb[37].mxu0  ;;  %v4845_v34 = vand.u32 4294901760, %v4844_v33  ;;  %v19627_v49 = vand.u32 4294901760, %v4705_v59  ;;  %v4674_v5 = vadd.f32 %v19544_v61, %v4658_v50  ;;  %15820 = vmatprep.subr.bf16.mxu1 %v19346_v62 }
 0x572   : > { %v17725_v19 = vpop.eup %17724  ;;  %v4639_v55 = vmul.f32 1.442695, %v4614_v46  ;;  %v16604_v40 = vadd.f32 %v4519_v16, %v19492_v27  ;;  %v23216_v43 = vand.u32 4294901760, %v19620_v58  ;;  %v4691_v16 = vld [vmem:[%s19532_s6 + $0x30] sm:$0xff] }
 0x573   : > { %v4659_v21 = vmul.f32 %v17725_v19, %v4595_v28  ;;  %4577 = vst [vmem:[%s19497_s2 + $0xa0] sm:$0xff] %v19625_v63  ;;  %14618 = vmatprep.mubr.f32.mxu1 %v4845_v34  ;;  %v19636_v57 = vsub.f32 %v4705_v59, %v19627_v49  ;;  %v4706_v33 = vadd.f32 %v4690_v14, %v4674_v5 }
 0x574   : > { %17730 = vpow2.f32 %v4639_v55  ;;  %4578 = vst [vmem:[%s19497_s2 + $0xa8] sm:$0xff] %v16604_v40  ;;  %v4615_v61 = vmul.f32 0.5, %v16604_v40  ;;  %v4524_v50 = vpop.f32.mrb[38].mxu0  ;;  %v4854_v46 = vsub.f32 %v19620_v58, %v23216_v43  ;;  %15822 = vmatpush3.bf16.msra.mxu1 %v19346_v62 }
 0x575   : > { %v19646_v28 = vadd.f32 %v4524_v50, %v19488_v13  ;;  %v4526_v59 = vpop.f32.mrb[39].mxu0  ;;  %v23219_v14 = vand.u32 4294901760, %v19636_v57  ;;  %v19649_v34 = vand.u32 4294901760, %v4706_v33  ;;  %v4675_v5 = vadd.f32 %v19553_v0, %v4659_v21  ;;  %15824 = vmatprep.subr.bf16.mxu1 %v19372_v60  ;;  %v4597_v0 = vld [vmem:[%s19518_s30 + $0x40] sm:$0xff] }
 0x576   : > { %v17727_v19 = vpop.eup %17726  ;;  %v4641_v55 = vmul.f32 1.442695, %v4615_v61  ;;  %v16606_v40 = vadd.f32 %v4526_v59, %v19492_v27  ;;  %v4855_v43 = vand.u32 4294901760, %v4854_v46 }
 0x577   : > { %v4660_v62 = vmul.f32 %v17727_v19, %v4596_v4  ;;  %4579 = vst [vmem:[%s19497_s2 + $0xb0] sm:$0xff] %v19646_v28  ;;  %v4864_v50 = vsub.f32 %v19636_v57, %v23219_v14  ;;  %v19660_v31 = vsub.f32 %v4706_v33, %v19649_v34  ;;  %v4707_v12 = vadd.f32 %v4691_v16, %v4675_v5  ;;  %v4692_v33 = vld [vmem:[%s19532_s6 + $0x38] sm:$0xff] }
 0x578   : > { %17732 = vpow2.f32 %v4641_v55  ;;  %4580 = vst [vmem:[%s19497_s2 + $0xb8] sm:$0xff] %v16606_v40  ;;  %v4616_v21 = vmul.f32 0.5, %v16606_v40  ;;  %14619 = vmatmul.mubr.f32.gmra.mrb[18].mxu1 %v4855_v43  ;;  %v4531_v61 = vpop.f32.mrb[40].mxu0 }
 0x579   : > { %v19665_v4 = vadd.f32 %v4531_v61, %v19488_v13  ;;  %v4533_v46 = vpop.f32.mrb[41].mxu0  ;;  %v4865_v59 = vand.u32 4294901760, %v4864_v50  ;;  %v23220_v19 = vand.u32 4294901760, %v19660_v31  ;;  %v19668_v14 = vand.u32 4294901760, %v4707_v12  ;;  %15826 = vmatpush3.bf16.msra.mxu1 %v19372_v60  ;;  %v4598_v60 = vld [vmem:[%s19518_s30 + $0x48] sm:$0xff] }
 0x57a   : > { %v17729_v16 = vpop.eup %17728  ;;  %v4643_v5 = vmul.f32 1.442695, %v4616_v21  ;;  %v16608_v43 = vadd.f32 %v4533_v46, %v19492_v27  ;;  %v4676_v55 = vadd.f32 %v19569_v18, %v4660_v62  ;;  %15828 = vmatprep.subr.bf16.mxu1 %v19376_v17  ;;  %v4693_v62 = vld [vmem:[%s19532_s6 + $0x40] sm:$0xff] }
 0x57b   : > { %v4661_v40 = vmul.f32 %v17729_v16, %v4597_v0  ;;  %4581 = vst [vmem:[%s19497_s2 + $0xc0] sm:$0xff] %v19665_v4  ;;  %14621 = vmatprep.mubr.f32.mxu1 %v4865_v59  ;;  %v4874_v50 = vsub.f32 %v19660_v31, %v23220_v19  ;;  %v19681_v61 = vsub.f32 %v4707_v12, %v19668_v14 }
 0x57c   : > { %17734 = vpow2.f32 %v4643_v5  ;;  %4582 = vst [vmem:[%s19497_s2 + $0xc8] sm:$0xff] %v16608_v43  ;;  %v4617_v21 = vmul.f32 0.5, %v16608_v43  ;;  %v4538_v46 = vpop.f32.mrb[42].mxu0  ;;  %v4708_v18 = vadd.f32 %v4692_v33, %v4676_v55 }
 0x57d   : > { %v19687_v0 = vadd.f32 %v4538_v46, %v19488_v13  ;;  %v4540_v59 = vpop.f32.mrb[43].mxu0  ;;  %v4875_v16 = vand.u32 4294901760, %v4874_v50  ;;  %v23223_v19 = vand.u32 4294901760, %v19681_v61  ;;  %v4677_v12 = vadd.f32 %v19585_v1, %v4661_v40  ;;  %15830 = vmatpush3.bf16.msra.mxu1 %v19376_v17  ;;  %v4599_v40 = vld [vmem:[%s19518_s30 + $0x50] sm:$0xff] }
 0x57e   : > { %v17731_v5 = vpop.eup %17730  ;;  %v4645_v43 = vmul.f32 1.442695, %v4617_v21  ;;  %v16610_v41 = vadd.f32 %v4540_v59, %v19492_v27  ;;  %v19693_v33 = vand.u32 4294901760, %v4708_v18  ;;  %15832 = vmatprep.subr.bf16.mxu1 %v19396_v9  ;;  %v4694_v59 = vld [vmem:[%s19532_s6 + $0x48] sm:$0xff] }
 0x57f   : > { %v4662_v55 = vmul.f32 %v17731_v5, %v4598_v60  ;;  %4583 = vst [vmem:[%s19497_s2 + $0xd0] sm:$0xff] %v19687_v0  ;;  %14622 = vmatmul.mubr.f32.gmra.mrb[20].mxu1 %v4875_v16  ;;  %v4884_v50 = vsub.f32 %v19681_v61, %v23223_v19  ;;  %v4709_v1 = vadd.f32 %v4693_v62, %v4677_v12 }
 0x580   : > { %17736 = vpow2.f32 %v4645_v43  ;;  %4584 = vst [vmem:[%s19497_s2 + $0xd8] sm:$0xff] %v16610_v41  ;;  %v4618_v17 = vmul.f32 0.5, %v16610_v41  ;;  %v4545_v21 = vpop.f32.mrb[44].mxu0  ;;  %v19704_v46 = vsub.f32 %v4708_v18, %v19693_v33 }
 0x581   : > { %v19708_v60 = vadd.f32 %v4545_v21, %v19488_v13  ;;  %v4547_v16 = vpop.f32.mrb[45].mxu0  ;;  %v4885_v5 = vand.u32 4294901760, %v4884_v50  ;;  %v19710_v51 = vand.u32 4294901760, %v4709_v1  ;;  %v4678_v62 = vadd.f32 %v19605_v36, %v4662_v55  ;;  %15834 = vmatpush3.bf16.msra.mxu1 %v19396_v9  ;;  %v4600_v36 = vld [vmem:[%s19518_s30 + $0x58] sm:$0xff] }
 0x582   : > { %v17733_v41 = vpop.eup %17732  ;;  %v4647_v12 = vmul.f32 1.442695, %v4618_v17  ;;  %v16612_v18 = vadd.f32 %v4547_v16, %v19492_v27  ;;  %v23224_v43 = vand.u32 4294901760, %v19704_v46  ;;  %15836 = vmatprep.subr.bf16.mxu1 %v19432_v32  ;;  %v4695_v16 = vld [vmem:[%s19532_s6 + $0x50] sm:$0xff] }
 0x583   : > { %v4663_v21 = vmul.f32 %v17733_v41, %v4599_v40  ;;  %4585 = vst [vmem:[%s19497_s2 + $0xe0] sm:$0xff] %v19708_v60  ;;  %14624 = vmatprep.mubr.f32.mxu1 %v4885_v5  ;;  %v19720_v50 = vsub.f32 %v4709_v1, %v19710_v51  ;;  %v4710_v19 = vadd.f32 %v4694_v59, %v4678_v62 }
 0x584   : > { %17738 = vpow2.f32 %v4647_v12  ;;  %4586 = vst [vmem:[%s19497_s2 + $0xe8] sm:$0xff] %v16612_v18  ;;  %v4619_v9 = vmul.f32 0.5, %v16612_v18  ;;  %v4552_v55 = vpop.f32.mrb[46].mxu0  ;;  %v4894_v17 = vsub.f32 %v19704_v46, %v23224_v43 }
 0x585   : > { %v19729_v40 = vadd.f32 %v4552_v55, %v19488_v13  ;;  %v4554_v5 = vpop.f32.mrb[47].mxu0  ;;  %v23228_v1 = vand.u32 4294901760, %v19720_v50  ;;  %v19732_v59 = vand.u32 4294901760, %v4710_v19  ;;  %v4679_v62 = vadd.f32 %v19625_v63, %v4663_v21  ;;  %15838 = vmatpush3.bf16.msra.mxu1 %v19432_v32  ;;  %v4601_v32 = vld [vmem:[%s19518_s30 + $0x60] sm:$0xff] }
 0x586   : > { %v17735_v41 = vpop.eup %17734  ;;  %v4649_v12 = vmul.f32 1.442695, %v4619_v9  ;;  %v16614_v18 = vadd.f32 %v4554_v5, %v19492_v27  ;;  %v4895_v43 = vand.u32 4294901760, %v4894_v17  ;;  %15840 = vmatprep.subr.bf16.mxu1 %v19436_v24  ;;  %v4696_v27 = vld [vmem:[%s19532_s6 + $0x58] sm:$0xff] }
 0x587   : > { %v4664_v13 = vmul.f32 %v17735_v41, %v4600_v36  ;;  %4587 = vst [vmem:[%s19497_s2 + $0xf0] sm:$0xff] %v19729_v40  ;;  %v4904_v55 = vsub.f32 %v19720_v50, %v23228_v1  ;;  %v19744_v15 = vsub.f32 %v4710_v19, %v19732_v59  ;;  %v4711_v63 = vadd.f32 %v4695_v16, %v4679_v62 }
 0x588   : > { %17740 = vpow2.f32 %v4649_v12  ;;  %4588 = vst [vmem:[%s19497_s2 + $0xf8] sm:$0xff] %v16614_v18  ;;  %v4620_v21 = vmul.f32 0.5, %v16614_v18  ;;  %14625 = vmatmul.mubr.f32.gmra.mrb[22].mxu1 %v4895_v43  ;;  %v4602_v18 = vld [vmem:[%s19518_s30 + $0x68] sm:$0xff]  ;;  %s23114_s2 = scalar_lea.vmem %s23157_s22, %s18000_s26 }
 0x589   : > { %v4905_v9 = vand.u32 4294901760, %v4904_v55  ;;  %v23227_v36 = vand.u32 4294901760, %v19744_v15  ;;  %v19750_v17 = vand.u32 4294901760, %v4711_v63  ;;  %v4680_v5 = vadd.f32 %v19646_v28, %v4664_v13  ;;  %15842 = vmatpush3.bf16.msra.mxu1 %v19436_v24  ;;  %v4697_v28 = vld [vmem:[%s19532_s6 + $0x60] sm:$0xff] }
 0x58a   : > { %v17737_v19 = vpop.eup %17736  ;;  %v4651_v41 = vmul.f32 1.442695, %v4620_v21  ;;  %15844 = vmatprep.subr.bf16.mxu1 %v19444_v39 }
 0x58b   : > { %v4665_v16 = vmul.f32 %v17737_v19, %v4601_v32  ;;  %14627 = vmatprep.mubr.f32.mxu1 %v4905_v9  ;;  %v4914_v43 = vsub.f32 %v19744_v15, %v23227_v36  ;;  %v19759_v62 = vsub.f32 %v4711_v63, %v19750_v17  ;;  %v4712_v12 = vadd.f32 %v4696_v27, %v4680_v5  ;;  %v4603_v19 = vld [vmem:[%s19518_s30 + $0x70] sm:$0xff] }
 0x58c   : > { %17742 = vpow2.f32 %v4651_v41  ;;  %v4698_v41 = vld [vmem:[%s19532_s6 + $0x68] sm:$0xff] }
 0x58d   : > { %v4915_v24 = vand.u32 4294901760, %v4914_v43  ;;  %v23226_v13 = vand.u32 4294901760, %v19759_v62  ;;  %v19764_v55 = vand.u32 4294901760, %v4712_v12  ;;  %v4681_v32 = vadd.f32 %v19665_v4, %v4665_v16  ;;  %15846 = vmatpush3.bf16.msra.mxu1 %v19444_v39 }
 0x58e   : > { %v17739_v21 = vpop.eup %17738  ;;  %15848 = vmatprep.subr.bf16.mxu1 %v19448_v35 }
 0x58f   : > { %v4666_v63 = vmul.f32 %v17739_v21, %v4602_v18  ;;  %14628 = vmatmul.mubr.f32.gmra.mrb[24].mxu1 %v4915_v24  ;;  %v4924_v27 = vsub.f32 %v19759_v62, %v23226_v13  ;;  %v19773_v9 = vsub.f32 %v4712_v12, %v19764_v55  ;;  %v4713_v5 = vadd.f32 %v4697_v28, %v4681_v32  ;;  %v4604_v32 = vld [vmem:[%s19518_s30 + $0x78] sm:$0xff]  ;;  %s21790_s30 = scalar_lea.vmem %s23156_s21, %s13334_s27 }
 0x591   : > { %v4925_v4 = vand.u32 4294901760, %v4924_v27  ;;  %v23229_v39 = vand.u32 4294901760, %v19773_v9  ;;  %v19778_v16 = vand.u32 4294901760, %v4713_v5  ;;  %v4682_v43 = vadd.f32 %v19687_v0, %v4666_v63  ;;  %v4699_v27 = vld [vmem:[%s19532_s6 + $0x70] sm:$0xff] }
 0x592   : > { %v17741_v18 = vpop.eup %17740 }
 0x593   : > { %v4667_v24 = vmul.f32 %v17741_v18, %v4603_v19  ;;  %14630 = vmatprep.mubr.f32.mxu1 %v4925_v4  ;;  %v4934_v21 = vsub.f32 %v19773_v9, %v23229_v39  ;;  %v19785_v12 = vsub.f32 %v4713_v5, %v19778_v16  ;;  %v4714_v28 = vadd.f32 %v4698_v41, %v4682_v43  ;;  %v4700_v43 = vld [vmem:[%s19532_s6 + $0x78] sm:$0xff] }
 0x595   : > { %v4935_v13 = vand.u32 4294901760, %v4934_v21  ;;  %v23237_v36 = vand.u32 4294901760, %v19785_v12  ;;  %v19790_v1 = vand.u32 4294901760, %v4714_v28  ;;  %v4683_v0 = vadd.f32 %v19708_v60, %v4667_v24 }
 0x596   : > { %v17743_v63 = vpop.eup %17742 }
 0x597   : > { %v4668_v19 = vmul.f32 %v17743_v63, %v4604_v32  ;;  %14631 = vmatmul.mubr.f32.gmra.mrb[26].mxu1 %v4935_v13  ;;  %v4944_v4 = vsub.f32 %v19785_v12, %v23237_v36  ;;  %v19797_v5 = vsub.f32 %v4714_v28, %v19790_v1  ;;  %v4715_v41 = vadd.f32 %v4699_v27, %v4683_v0 }
 0x599   : > { %v4945_v18 = vand.u32 4294901760, %v4944_v4  ;;  %v23236_v21 = vand.u32 4294901760, %v19797_v5  ;;  %v19801_v39 = vand.u32 4294901760, %v4715_v41  ;;  %v4684_v6 = vadd.f32 %v19729_v40, %v4668_v19 }
 0x59b   : > { %14633 = vmatprep.mubr.f32.mxu1 %v4945_v18  ;;  %v4954_v60 = vsub.f32 %v19797_v5, %v23236_v21  ;;  %v19808_v13 = vsub.f32 %v4715_v41, %v19801_v39  ;;  %v4716_v24 = vadd.f32 %v4700_v43, %v4684_v6  ;;  %v19881_v41 = vld [vmem:[%s23147_s12 + $0x48] sm:$0xff] }
 0x59c   : > { %23604 = vst [vmem:[#allocation21_spill] sm:$0xff] %v19881_v41  ;;  %v23240_v18 = vand.u32 4294901760, %v19881_v41  ;;  %v19943_v21 = vld [vmem:[%s23147_s12 + $0x88] sm:$0xff] }
 0x59d   : > { %v4955_v28 = vand.u32 4294901760, %v4954_v60  ;;  %v23235_v32 = vand.u32 4294901760, %v19808_v13  ;;  %v19811_v27 = vand.u32 4294901760, %v4716_v24  ;;  %v19894_v60 = vld [vmem:[%s23147_s12 + $0x40] sm:$0xff] }
 0x59f   : > { %23600 = vst [vmem:[#allocation17_spill] sm:$0xff] %v19811_v27  ;;  %14634 = vmatmul.mubr.f32.gmra.mrb[28].mxu1 %v4955_v28  ;;  %v4964_v0 = vsub.f32 %v19808_v13, %v23235_v32  ;;  %v19817_v40 = vsub.f32 %v4716_v24, %v19811_v27  ;;  %v19899_v24 = vld [vmem:[%s23147_s12 + $0x60] sm:$0xff]  ;;  %v6045_v28 = vld [vmem:[%s23147_s12 + $0x18] sm:$0xff]  ;;  %v19938_v32 = vsub.f32 %v19881_v41, %v23240_v18 }
 0x5a0   : > { %23606 = vst [vmem:[#allocation23_spill] sm:$0xff] %v19899_v24  ;;  %v7647_v18 = vand.u32 4294901760, %v6045_v28 }
 0x5a1   : > { %v4965_v63 = vand.u32 4294901760, %v4964_v0  ;;  %v23231_v19 = vand.u32 4294901760, %v19817_v40  ;;  %23611 = vst [vmem:[#allocation28_spill] sm:$0xff] %v19938_v32 }
 0x5a3   : > { %14636 = vmatprep.mubr.f32.mxu1 %v4965_v63  ;;  %v4974_v6 = vsub.f32 %v19817_v40, %v23231_v19  ;;  %v6049_v19 = vld [vmem:[%s23147_s12 + $0x38] sm:$0xff] }
 0x5a4   : > { %v7651_v32 = vand.u32 4294901760, %v6049_v19 }
 0x5a5   : > { %v4975_v4 = vand.u32 4294901760, %v4974_v6 }
 0x5a7   : > { %14637 = vmatmul.mubr.f32.gmra.mrb[30].mxu1 %v4975_v4 }
 0x5a8   : > { %14671 = vmatprep.mubr.f32.mxu1 %v19555_v22 }
 0x5ab   : > { %14672 = vmatmul.mubr.f32.vlgmr.msra.gmra.mrb[16].mxu1 %v19566_v42 }
 0x5ac   : > { %15850 = vmatpush3.bf16.msra.mxu1 %v19448_v35  ;;  %14674 = vmatprep.mubr.f32.mxu1 %v19588_v48  ;;  %v19856_v35 = vld [vmem:[%s23147_s12 + $0x8] sm:$0xff] }
 0x5ad   : > { %15852 = vmatprep.subr.bf16.mxu1 %v19452_v52 }
 0x5af   : > { %14675 = vmatmul.mubr.f32.gmra.mrb[18].mxu1 %v19610_v10 }
 0x5b0   : > { %15854 = vmatpush3.bf16.msra.mxu1 %v19452_v52  ;;  %14677 = vmatprep.mubr.f32.mxu1 %v19627_v49  ;;  %v19861_v52 = vld [vmem:[%s23147_s12 + $0x28] sm:$0xff] }
 0x5b1   : > { %15856 = vmatprep.subr.bf16.mxu1 %v19456_v45  ;;  %23601 = vst [vmem:[#allocation18_spill] sm:$0xff] %v19861_v52 }
 0x5b3   : > { %14678 = vmatmul.mubr.f32.gmra.mrb[20].mxu1 %v19649_v34 }
 0x5b4   : > { %15858 = vmatpush3.bf16.msra.mxu1 %v19456_v45  ;;  %14680 = vmatprep.mubr.f32.mxu1 %v19668_v14  ;;  %v19866_v45 = vld [vmem:[%s23147_s12] sm:$0xff] }
 0x5b5   : > { %15860 = vmatprep.subr.bf16.mxu1 %v19460_v54  ;;  %23602 = vst [vmem:[#allocation19_spill] sm:$0xff] %v19866_v45 }
 0x5b7   : > { %14681 = vmatmul.mubr.f32.gmra.mrb[22].mxu1 %v19693_v33 }
 0x5b8   : > { %15862 = vmatpush3.bf16.msra.mxu1 %v19460_v54  ;;  %14683 = vmatprep.mubr.f32.mxu1 %v19710_v51  ;;  %v23232_v54 = vand.u32 4294901760, %v19856_v35 }
 0x5b9   : > { %15864 = vmatprep.subr.bf16.mxu1 %v19464_v47 }
 0x5ba   : > { %v19907_v0 = vsub.f32 %v19856_v35, %v23232_v54  ;;  %v6044_v54 = vld [vmem:[%s23147_s12 + $0x10] sm:$0xff] }
 0x5bb   : > { %14684 = vmatmul.mubr.f32.gmra.mrb[24].mxu1 %v19732_v59 }
 0x5bc   : > { %15866 = vmatpush3.bf16.msra.mxu1 %v19464_v47  ;;  %14686 = vmatprep.mubr.f32.mxu1 %v19750_v17  ;;  %v23233_v47 = vand.u32 4294901760, %v19861_v52  ;;  %23607 = vst [vmem:[#allocation24_spill] sm:$0xff] %v19907_v0  ;;  %v19958_v0 = vld [vmem:[%s23147_s12 + $0xa8] sm:$0xff] }
 0x5bd   : > { %15868 = vmatprep.subr.bf16.mxu1 %v19468_v37 }
 0x5be   : > { %v19912_v63 = vsub.f32 %v19861_v52, %v23233_v47  ;;  %v6048_v47 = vld [vmem:[%s23147_s12 + $0x30] sm:$0xff]  ;;  %v6057_v52 = vld [vmem:[%s23147_s12 + $0x78] sm:$0xff] }
 0x5bf   : > { %14687 = vmatmul.mubr.f32.gmra.mrb[26].mxu1 %v19764_v55 }
 0x5c0   : > { %15870 = vmatpush3.bf16.msra.mxu1 %v19468_v37  ;;  %14689 = vmatprep.mubr.f32.mxu1 %v19778_v16  ;;  %v19875_v37 = vld [vmem:[%s23147_s12 + $0x20] sm:$0xff]  ;;  %23608 = vst [vmem:[#allocation25_spill] sm:$0xff] %v19912_v63  ;;  %v7653_v63 = vand.u32 4294901760, %v6048_v47 }
 0x5c1   : > { %15872 = vmatprep.subr.bf16.mxu1 %v19474_v20  ;;  %23603 = vst [vmem:[#allocation20_spill] sm:$0xff] %v19875_v37  ;;  %v23238_v43 = vand.u32 4294901760, %v19875_v37 }
 0x5c3   : > { %14690 = vmatmul.mubr.f32.gmra.mrb[28].mxu1 %v19790_v1 }
 0x5c4   : > { %15874 = vmatpush3.bf16.msra.mxu1 %v19474_v20  ;;  %14692 = vmatprep.mubr.f32.mxu1 %v19801_v39  ;;  %v23234_v20 = vand.u32 4294901760, %v19866_v45 }
 0x5c5   : > { %15876 = vmatprep.subr.bf16.mxu1 %v19483_v8 }
 0x5c6   : > { %v19917_v6 = vsub.f32 %v19866_v45, %v23234_v20  ;;  %v19933_v20 = vsub.f32 %v19875_v37, %v23238_v43  ;;  %v23254_v43 = vand.u32 4294901760, %v19894_v60  ;;  %v19980_v37 = vsub.f32 %v6045_v28, %v7647_v18 }
 0x5c7   : > { %14693 = vmatmul.mubr.f32.gmra.mrb[30].mxu1 %v19811_v27  ;;  %v6053_v27 = vld [vmem:[%s23147_s12 + $0x58] sm:$0xff]  ;;  %v19995_v28 = vsub.f32 %v6049_v19, %v7651_v32 }
 0x5c8   : > { %15878 = vmatpush3.bf16.msra.mxu1 %v19483_v8  ;;  %14727 = vmatprep.mubr.f32.mxu1 %v19561_v7  ;;  %v19886_v8 = vld [vmem:[%s23147_s12 + $0x68] sm:$0xff]  ;;  %23609 = vst [vmem:[#allocation26_spill] sm:$0xff] %v19917_v6  ;;  %23610 = vst [vmem:[#allocation27_spill] sm:$0xff] %v19933_v20  ;;  %v7649_v6 = vand.u32 4294901760, %v6044_v54  ;;  %v19968_v20 = vld [vmem:[%s23147_s12 + $0xa0] sm:$0xff] }
 0x5c9   : > { %23605 = vst [vmem:[#allocation22_spill] sm:$0xff] %v19886_v8  ;;  %15880 = vmatprep.subr.bf16.mxu1 %v19203_v38  ;;  %v23245_v4 = vand.u32 4294901760, %v19886_v8  ;;  %23616 = vst [vmem:[#allocation32_spill] sm:$0xff] %v19980_v37 }
 0x5ca   : > { %23618 = vst [vmem:[#allocation34_spill] sm:$0xff] %v19995_v28  ;;  %v19997_v37 = vpack.c.bf16 %v7653_v63, %v7649_v6  ;;  %v19999_v45 = vsub.f32 %v6044_v54, %v7649_v6  ;;  %v23269_v54 = vand.u32 4294901760, %v19968_v20  ;;  %v7655_v6 = vand.u32 4294901760, %v6053_v27 }
 0x5cb   : > { %14728 = vmatmul.mubr.f32.vlgmr.msra.gmra.mrb[16].mxu1 %v19580_v44  ;;  %v19950_v36 = vsub.f32 %v19886_v8, %v23245_v4  ;;  %v19963_v4 = vld [vmem:[%s23147_s12 + $0x80] sm:$0xff]  ;;  %v23614_v8 = vand.u32 4294901760, %v19899_v24 }
 0x5cc   : > { %15882 = vmatpush3.bf16.msra.mxu1 %v19203_v38  ;;  %14730 = vmatprep.mubr.f32.mxu1 %v19599_v11  ;;  %23619 = vst [vmem:[#allocation35_spill] sm:$0xff] %v19997_v37  ;;  %23620 = vst [vmem:[#allocation36_spill] sm:$0xff] %v19999_v45  ;;  %v23267_v19 = vand.u32 4294901760, %v19963_v4  ;;  %v7659_v45 = vand.u32 4294901760, %v6057_v52 }
 0x5cd   : > { %23612 = vst [vmem:[#allocation29_spill] sm:$0xff] %v19950_v36  ;;  %15884 = vmatprep.subr.bf16.mxu1 %v19213_v2  ;;  %v19973_v36 = vsub.f32 %v19894_v60, %v23254_v43  ;;  %v19978_v41 = vsub.f32 %v19899_v24, %v23614_v8  ;;  %v6052_v43 = vld [vmem:[%s23147_s12 + $0x50] sm:$0xff]  ;;  %v19993_v8 = vpack.c.bf16 %v7651_v32, %v7647_v18  ;;  %v23266_v24 = vand.u32 4294901760, %v19958_v0 }
 0x5ce   : > { %v23622_v18 = vand.u32 4294901760, %v19943_v21  ;;  %v7657_v28 = vand.u32 4294901760, %v6052_v43 }
 0x5cf   : > { %23613 = vst [vmem:[#allocation30_spill] sm:$0xff] %v19973_v36  ;;  %23615 = vst [vmem:[#allocation31_spill] sm:$0xff] %v19978_v41  ;;  %14731 = vmatmul.mubr.f32.gmra.mrb[18].mxu1 %v19620_v58  ;;  %v6056_v41 = vld [vmem:[%s23147_s12 + $0x70] sm:$0xff]  ;;  %v20006_v36 = vsub.f32 %v6048_v47, %v7653_v63  ;;  %16120 = vmatprep.subr.bf16.mxu0 %v19993_v8  ;;  %v20022_v47 = vsub.f32 %v19958_v0, %v23266_v24 }
 0x5d0   : > { %23617 = vst [vmem:[#allocation33_spill] sm:$0xff] %v19993_v8  ;;  %15886 = vmatpush3.bf16.msra.mxu1 %v19213_v2  ;;  %14733 = vmatprep.mubr.f32.mxu1 %v19636_v57  ;;  %v20012_v32 = vsub.f32 %v19943_v21, %v23622_v18  ;;  %v20027_v63 = vsub.f32 %v19963_v4, %v23267_v19  ;;  %v7661_v18 = vand.u32 4294901760, %v6056_v41 }
 0x5d1   : > { %23621 = vst [vmem:[#allocation37_spill] sm:$0xff] %v20006_v36  ;;  %15888 = vmatprep.subr.bf16.mxu1 %v19223_v25  ;;  %16122 = vmatpush1.bf16.msra.mxu0 %v19997_v37  ;;  %23624 = vst [vmem:[#allocation39_spill] sm:$0xff] %v20022_v47  ;;  %v20033_v8 = vsub.f32 %v19968_v20, %v23269_v54  ;;  %v20035_v36 = vpack.c.bf16 %v7659_v45, %v7655_v6 }
 0x5d2   : > { %23623 = vst [vmem:[#allocation38_spill] sm:$0xff] %v20012_v32  ;;  %23625 = vst [vmem:[#allocation40_spill] sm:$0xff] %v20027_v63  ;;  %v20037_v37 = vsub.f32 %v6053_v27, %v7655_v6  ;;  %v20041_v24 = vsub.f32 %v6057_v52, %v7659_v45  ;;  %v20043_v19 = vpack.c.bf16 %v7661_v18, %v7657_v28  ;;  %v23630_v27 = vand.u32 4294901760, %v19313_v29  ;;  %v23635_v6 = vld [vmem:[#allocation3_spill] sm:$0xff] }
 0x5d3   : > { %14734 = vmatmul.mubr.f32.gmra.mrb[20].mxu1 %v19660_v31  ;;  %23626 = vst [vmem:[#allocation41_spill] sm:$0xff] %v20033_v8  ;;  %23627 = vst [vmem:[#allocation42_spill] sm:$0xff] %v20035_v36  ;;  %v20045_v63 = vsub.f32 %v6052_v43, %v7657_v28  ;;  %16124 = vmatprep.subr.bf16.mxu0 %v20035_v36  ;;  %v20049_v54 = vsub.f32 %v6056_v41, %v7661_v18  ;;  %v23631_v52 = vand.u32 4294901760, %v19315_v23  ;;  %v23633_v43 = vld [vmem:[#allocation2_spill] sm:$0xff]  ;;  %v23639_v23 = vld [vmem:[#allocation4_spill] sm:$0xff] }
 0x5d4   : > { %15890 = vmatpush3.bf16.msra.mxu1 %v19223_v25  ;;  %14736 = vmatprep.mubr.f32.mxu1 %v19681_v61  ;;  %23628 = vst [vmem:[#allocation43_spill] sm:$0xff] %v20043_v19  ;;  %v23632_v41 = vand.u32 4294901760, %v19561_v7  ;;  %v23634_v28 = vand.u32 4294901760, %v23633_v43  ;;  %v23636_v18 = vand.u32 4294901760, %v23635_v6  ;;  %v23637_v36 = vand.u32 4294901760, %v19580_v44  ;;  %v23645_v44 = vld [vmem:[#allocation6_spill] sm:$0xff] }
 0x5d5   : > { %15892 = vmatprep.subr.bf16.mxu1 %v19233_v56  ;;  %23629 = vst [vmem:[#allocation44_spill] sm:$0xff] %v20049_v54  ;;  %16126 = vmatpush1.bf16.msra.mxu0 %v20043_v19  ;;  %v15911_v45 = vpack.c.bf16 %v23631_v52, %v23630_v27  ;;  %v23638_v29 = vand.u32 4294901760, %v19599_v11  ;;  %v23640_v27 = vand.u32 4294901760, %v23639_v23  ;;  %v23641_v52 = vld [vmem:[#allocation5_spill] sm:$0xff]  ;;  %v23644_v43 = vand.u32 4294901760, %v19636_v57 }
 0x5d6   : > { %v15915_v19 = vpack.c.bf16 %v23636_v18, %v23634_v28  ;;  %v23642_v54 = vand.u32 4294901760, %v23641_v52  ;;  %v23649_v6 = vand.u32 4294901760, %v19660_v31  ;;  %v23650_v18 = vand.u32 4294901760, %v19681_v61  ;;  %v23657_v31 = vld [vmem:[#allocation10_spill] sm:$0xff] }
 0x5d7   : > { %14737 = vmatmul.mubr.f32.gmra.mrb[22].mxu1 %v19704_v46  ;;  %v23655_v23 = vand.u32 4294901760, %v19704_v46  ;;  %v23658_v52 = vand.u32 4294901760, %v23657_v31  ;;  %v23663_v46 = vld [vmem:[#allocation12_spill] sm:$0xff] }
 0x5d8   : > { %15894 = vmatpush3.bf16.msra.mxu1 %v19233_v56  ;;  %14739 = vmatprep.mubr.f32.mxu1 %v19720_v50  ;;  %v15919_v7 = vpack.c.bf16 %v23642_v54, %v23640_v27  ;;  %v23656_v27 = vand.u32 4294901760, %v19720_v50 }
 0x5d9   : > { %15896 = vmatprep.subr.bf16.mxu1 %v19249_v30 }
 0x5db   : > { %14740 = vmatmul.mubr.f32.gmra.mrb[24].mxu1 %v19744_v15 }
 0x5dc   : > { %15898 = vmatpush3.bf16.msra.mxu1 %v19249_v30  ;;  %14742 = vmatprep.mubr.f32.mxu1 %v19759_v62 }
 0x5dd   : > { %15900 = vmatprep.subr.bf16.mxu1 %v19269_v3 }
 0x5df   : > { %14743 = vmatmul.mubr.f32.gmra.mrb[26].mxu1 %v19773_v9 }
 0x5e0   : > { %15902 = vmatpush3.bf16.msra.mxu1 %v19269_v3  ;;  %14745 = vmatprep.mubr.f32.mxu1 %v19785_v12 }
 0x5e1   : > { %15904 = vmatprep.subr.bf16.mxu1 %v19289_v26 }
 0x5e3   : > { %14746 = vmatmul.mubr.f32.gmra.mrb[28].mxu1 %v19797_v5 }
 0x5e4   : > { %15906 = vmatpush3.bf16.msra.mxu1 %v19289_v26  ;;  %14748 = vmatprep.mubr.f32.mxu1 %v19808_v13 }
 0x5e5   : > { %15908 = vmatprep.subr.bf16.mxu1 %v19309_v53 }
 0x5e7   : > { %14749 = vmatmul.mubr.f32.gmra.mrb[30].mxu1 %v19817_v40 }
 0x5e8   : > { %15910 = vmatpush3.bf16.msra.mxu1 %v19309_v53  ;;  %14783 = vmatprep.mubr.f32.mxu1 %v23632_v41  ;;  %v23643_v41 = vand.u32 4294901760, %v19620_v58  ;;  %v23651_v58 = vld [vmem:[#allocation8_spill] sm:$0xff] }
 0x5e9   : > { %15912 = vmatprep.subr.bf16.mxu1 %v15911_v45  ;;  %v23652_v54 = vand.u32 4294901760, %v23651_v58  ;;  %v23671_v58 = vld [vmem:[#allocation15_spill] sm:$0xff] }
 0x5eb   : > { %14784 = vmatmul.mubr.f32.vlgmr.msra.gmra.mrb[16].mxu1 %v23637_v36  ;;  %v23646_v36 = vand.u32 4294901760, %v23645_v44  ;;  %v23662_v44 = vand.u32 4294901760, %v19759_v62 }
 0x5ec   : > { %15914 = vmatpush3.bf16.msra.mxu1 %v15911_v45  ;;  %14786 = vmatprep.mubr.f32.mxu1 %v23638_v29  ;;  %v23647_v45 = vld [vmem:[#allocation7_spill] sm:$0xff] }
 0x5ed   : > { %15916 = vmatprep.subr.bf16.mxu1 %v15915_v19  ;;  %v23648_v28 = vand.u32 4294901760, %v23647_v45  ;;  %v23665_v45 = vld [vmem:[#allocation13_spill] sm:$0xff] }
 0x5ef   : > { %14787 = vmatmul.mubr.f32.gmra.mrb[18].mxu1 %v23643_v41  ;;  %v15923_v11 = vpack.c.bf16 %v23648_v28, %v23646_v36  ;;  %v23664_v36 = vand.u32 4294901760, %v23663_v46  ;;  %v23666_v28 = vand.u32 4294901760, %v23665_v45  ;;  %v6073_v46 = vld [vmem:[%s23147_s12 + $0xf8] sm:$0xff] }
 0x5f0   : > { %15918 = vmatpush3.bf16.msra.mxu1 %v15915_v19  ;;  %14789 = vmatprep.mubr.f32.mxu1 %v23644_v43  ;;  %v23653_v19 = vld [vmem:[#allocation9_spill] sm:$0xff]  ;;  %v23661_v43 = vand.u32 4294901760, %v19744_v15  ;;  %v23669_v15 = vld [vmem:[#allocation14_spill] sm:$0xff] }
 0x5f1   : > { %15920 = vmatprep.subr.bf16.mxu1 %v15919_v7  ;;  %v23654_v29 = vand.u32 4294901760, %v23653_v19  ;;  %v15935_v50 = vpack.c.bf16 %v23666_v28, %v23664_v36  ;;  %v23673_v19 = vand.u32 4294901760, %v19797_v5  ;;  %v23683_v5 = vld [vmem:[#allocation20_spill] sm:$0xff] }
 0x5f3   : > { %14790 = vmatmul.mubr.f32.gmra.mrb[20].mxu1 %v23649_v6  ;;  %v15927_v57 = vpack.c.bf16 %v23654_v29, %v23652_v54  ;;  %v23668_v6 = vand.u32 4294901760, %v19785_v12  ;;  %v23672_v54 = vand.u32 4294901760, %v23671_v58  ;;  %v23674_v29 = vand.u32 4294901760, %v19808_v13 }
 0x5f4   : > { %15922 = vmatpush3.bf16.msra.mxu1 %v15919_v7  ;;  %14792 = vmatprep.mubr.f32.mxu1 %v23650_v18  ;;  %v23659_v7 = vld [vmem:[#allocation11_spill] sm:$0xff]  ;;  %v23670_v18 = vand.u32 4294901760, %v23669_v15 }
 0x5f5   : > { %15924 = vmatprep.subr.bf16.mxu1 %v15923_v11  ;;  %v23660_v41 = vand.u32 4294901760, %v23659_v7  ;;  %v23695_v7 = vand.u32 4294901760, %v19943_v21 }
 0x5f6   : > { %v15939_v62 = vpack.c.bf16 %v23672_v54, %v23670_v18 }
 0x5f7   : > { %14793 = vmatmul.mubr.f32.gmra.mrb[22].mxu1 %v23655_v23  ;;  %v15931_v61 = vpack.c.bf16 %v23660_v41, %v23658_v52  ;;  %v23696_v41 = vand.u32 4294901760, %v19958_v0 }
 0x5f8   : > { %15926 = vmatpush3.bf16.msra.mxu1 %v15923_v11  ;;  %14795 = vmatprep.mubr.f32.mxu1 %v23656_v27  ;;  %v23667_v11 = vand.u32 4294901760, %v19773_v9  ;;  %v23675_v9 = vand.u32 4294901760, %v19817_v40  ;;  %v23686_v40 = vld [vmem:[#allocation21_spill] sm:$0xff] }
 0x5f9   : > { %15928 = vmatprep.subr.bf16.mxu1 %v15927_v57 }
 0x5fb   : > { %14796 = vmatmul.mubr.f32.gmra.mrb[24].mxu1 %v23661_v43  ;;  %v6066_v43 = vld [vmem:[%s23147_s12 + $0xc0] sm:$0xff] }
 0x5fc   : > { %15930 = vmatpush3.bf16.msra.mxu1 %v15927_v57  ;;  %14798 = vmatprep.mubr.f32.mxu1 %v23662_v44  ;;  %v23688_v57 = vld [vmem:[#allocation22_spill] sm:$0xff]  ;;  %v6187_v36 = vand.u32 4294901760, %v6066_v43 }
 0x5fd   : > { %15932 = vmatprep.subr.bf16.mxu1 %v15931_v61  ;;  %v23689_v23 = vand.u32 4294901760, %v23688_v57  ;;  %v6070_v44 = vld [vmem:[%s23147_s12 + $0xe0] sm:$0xff] }
 0x5fe   : > { %v6191_v45 = vand.u32 4294901760, %v6070_v44 }
 0x5ff   : > { %14799 = vmatmul.mubr.f32.gmra.mrb[26].mxu1 %v23667_v11  ;;  %v6068_v11 = vld [vmem:[%s23147_s12 + $0xd0] sm:$0xff] }
 0x600   : > { %15934 = vmatpush3.bf16.msra.mxu1 %v15931_v61  ;;  %14801 = vmatprep.mubr.f32.mxu1 %v23668_v6  ;;  %v20200_v61 = vpack.c.bf16 %v23696_v41, %v23695_v7  ;;  %v6072_v6 = vld [vmem:[%s23147_s12 + $0xf0] sm:$0xff]  ;;  %v7673_v18 = vand.u32 4294901760, %v6068_v11  ;;  %v20292_v54 = vpack.c.bf16 %v6191_v45, %v6187_v36 }
 0x601   : > { %15936 = vmatprep.subr.bf16.mxu1 %v15935_v50  ;;  %v7677_v58 = vand.u32 4294901760, %v6072_v6 }
 0x602   : > { %23697 = vst [vmem:[#allocation6_spill] sm:$0xff] %v20200_v61  ;;  %23705 = vst [vmem:[#allocation11_spill] sm:$0xff] %v20292_v54 }
 0x603   : > { %14802 = vmatmul.mubr.f32.gmra.mrb[28].mxu1 %v23673_v19  ;;  %v6075_v19 = vld [vmem:[%s23147_s12 + $0x108] sm:$0xff] }
 0x604   : > { %15938 = vmatpush3.bf16.msra.mxu1 %v15935_v50  ;;  %14804 = vmatprep.mubr.f32.mxu1 %v23674_v29  ;;  %v7675_v50 = vand.u32 4294901760, %v6073_v46  ;;  %v6079_v29 = vld [vmem:[%s23147_s12 + $0x128] sm:$0xff] }
 0x605   : > { %15940 = vmatprep.subr.bf16.mxu1 %v15939_v62 }
 0x607   : > { %14805 = vmatmul.mubr.f32.gmra.mrb[30].mxu1 %v23675_v9  ;;  %v6077_v9 = vld [vmem:[%s23147_s12 + $0x118] sm:$0xff] }
 0x608   : > { %15942 = vmatpush3.bf16.msra.mxu1 %v15939_v62  ;;  %14839 = vmatprep.mubr.f32.mxu1 %v19555_v22 }
 0x609   : > { %15944 = vmatprep.subr.bf16.mxu1 %v19203_v38 }
 0x60b   : > { %14840 = vmatmul.mubr.f32.vlgmr.msra.gmra.mrb[16].mxu1 %v19566_v42 }
 0x60c   : > { %15946 = vmatpush3.bf16.msra.mxu1 %v19203_v38  ;;  %14842 = vmatprep.mubr.f32.mxu1 %v19588_v48  ;;  %v23676_v38 = vand.u32 4294901760, %v19856_v35  ;;  %v23687_v35 = vand.u32 4294901760, %v23686_v40 }
 0x60d   : > { %15948 = vmatprep.subr.bf16.mxu1 %v19213_v2 }
 0x60e   : > { %v20184_v27 = vpack.c.bf16 %v23689_v23, %v23687_v35  ;;  %v6076_v23 = vld [vmem:[%s23147_s12 + $0x110] sm:$0xff] }
 0x60f   : > { %14843 = vmatmul.mubr.f32.gmra.mrb[18].mxu1 %v19610_v10  ;;  %v7681_v7 = vand.u32 4294901760, %v6076_v23 }
 0x610   : > { %15950 = vmatpush3.bf16.msra.mxu1 %v19213_v2  ;;  %14845 = vmatprep.mubr.f32.mxu1 %v19627_v49  ;;  %v23677_v2 = vld [vmem:[#allocation18_spill] sm:$0xff]  ;;  %23690 = vst [vmem:[#allocation4_spill] sm:$0xff] %v20184_v27 }
 0x611   : > { %15952 = vmatprep.subr.bf16.mxu1 %v19223_v25 }
 0x613   : > { %14846 = vmatmul.mubr.f32.gmra.mrb[20].mxu1 %v19649_v34 }
 0x614   : > { %15954 = vmatpush3.bf16.msra.mxu1 %v19223_v25  ;;  %14848 = vmatprep.mubr.f32.mxu1 %v19668_v14  ;;  %v23678_v25 = vand.u32 4294901760, %v23677_v2  ;;  %v6197_v2 = vand.u32 4294901760, %v6079_v29 }
 0x615   : > { %15956 = vmatprep.subr.bf16.mxu1 %v19233_v56 }
 0x617   : > { %14849 = vmatmul.mubr.f32.gmra.mrb[22].mxu1 %v19693_v33 }
 0x618   : > { %15958 = vmatpush3.bf16.msra.mxu1 %v19233_v56  ;;  %14851 = vmatprep.mubr.f32.mxu1 %v19710_v51  ;;  %v20168_v56 = vpack.c.bf16 %v23678_v25, %v23676_v38  ;;  %v6193_v38 = vand.u32 4294901760, %v6075_v19  ;;  %v20306_v25 = vpack.c.bf16 %v7677_v58, %v7673_v18 }
 0x619   : > { %15960 = vmatprep.subr.bf16.mxu1 %v19249_v30 }
 0x61a   : > { %23679 = vst [vmem:[#allocation2_spill] sm:$0xff] %v20168_v56  ;;  %23707 = vst [vmem:[#allocation13_spill] sm:$0xff] %v20306_v25 }
 0x61b   : > { %14852 = vmatmul.mubr.f32.gmra.mrb[24].mxu1 %v19732_v59 }
 0x61c   : > { %15962 = vmatpush3.bf16.msra.mxu1 %v19249_v30  ;;  %14854 = vmatprep.mubr.f32.mxu1 %v19750_v17  ;;  %v23680_v30 = vld [vmem:[#allocation17_spill] sm:$0xff] }
 0x61d   : > { %15964 = vmatprep.subr.bf16.mxu1 %v19269_v3 }
 0x61f   : > { %14855 = vmatmul.mubr.f32.gmra.mrb[26].mxu1 %v19764_v55 }
 0x620   : > { %15966 = vmatpush3.bf16.msra.mxu1 %v19269_v3  ;;  %14857 = vmatprep.mubr.f32.mxu1 %v19778_v16  ;;  %v23681_v3 = vld [vmem:[#allocation19_spill] sm:$0xff] }
 0x621   : > { %15968 = vmatprep.subr.bf16.mxu1 %v19289_v26  ;;  %v23682_v12 = vand.u32 4294901760, %v23681_v3  ;;  %v6078_v3 = vld [vmem:[%s23147_s12 + $0x120] sm:$0xff] }
 0x622   : > { %v6199_v57 = vand.u32 4294901760, %v6078_v3 }
 0x623   : > { %14858 = vmatmul.mubr.f32.gmra.mrb[28].mxu1 %v19790_v1 }
 0x624   : > { %15970 = vmatpush3.bf16.msra.mxu1 %v19289_v26  ;;  %14860 = vmatprep.mubr.f32.mxu1 %v19801_v39  ;;  %v23684_v26 = vand.u32 4294901760, %v23683_v5  ;;  %v7679_v5 = vand.u32 4294901760, %v6077_v9 }
 0x625   : > { %15972 = vmatprep.subr.bf16.mxu1 %v19309_v53 }
 0x626   : > { %v20177_v13 = vpack.c.bf16 %v23684_v26, %v23682_v12  ;;  %v6081_v12 = vld [vmem:[%s23147_s12 + $0x138] sm:$0xff] }
 0x627   : > { %14861 = vmatmul.mubr.f32.gmra.mrb[30].mxu1 %v23680_v30 }
 0x628   : > { %15974 = vmatpush3.bf16.msra.mxu1 %v19309_v53  ;;  %14895 = vmatprep.mubr.f32.mxu1 %v19555_v22  ;;  %23685 = vst [vmem:[#allocation3_spill] sm:$0xff] %v20177_v13  ;;  %v23691_v53 = vand.u32 4294901760, %v19894_v60  ;;  %v23692_v22 = vld [vmem:[#allocation23_spill] sm:$0xff] }
 0x629   : > { %15976 = vmatprep.subr.bf16.mxu1 %v20168_v56  ;;  %v23693_v31 = vand.u32 4294901760, %v23692_v22  ;;  %v20329_v22 = vpack.c.bf16 %v6197_v2, %v6193_v38 }
 0x62b   : > { %14896 = vmatmul.mubr.f32.vlgmr.msra.gmra.mrb[16].mxu1 %v19566_v42  ;;  %v20193_v52 = vpack.c.bf16 %v23693_v31, %v23691_v53  ;;  %v23698_v42 = vand.u32 4294901760, %v19963_v4  ;;  %v6080_v53 = vld [vmem:[%s23147_s12 + $0x130] sm:$0xff]  ;;  %23710 = vst [vmem:[#allocation18_spill] sm:$0xff] %v20329_v22  ;;  %v7683_v31 = vand.u32 4294901760, %v6081_v12 }
 0x62c   : > { %14898 = vmatprep.mubr.f32.mxu1 %v19588_v48  ;;  %15978 = vmatpush1.bf16.msra.mxu1 %v20177_v13  ;;  %v23699_v48 = vand.u32 4294901760, %v19968_v20  ;;  %v20270_v20 = vld [vmem:[%s23147_s12 + $0xd8] sm:$0xff]  ;;  %v7685_v41 = vand.u32 4294901760, %v6080_v53 }
 0x62d   : > { %23694 = vst [vmem:[#allocation5_spill] sm:$0xff] %v20193_v52  ;;  %15980 = vmatprep.subr.bf16.mxu1 %v20184_v27  ;;  %v7671_v28 = vand.u32 4294901760, %v20270_v20 }
 0x62e   : > { %v20209_v60 = vpack.c.bf16 %v23699_v48, %v23698_v42  ;;  %v6083_v48 = vld [vmem:[%s23147_s12 + $0x148] sm:$0xff] }
 0x62f   : > { %14899 = vmatmul.mubr.f32.gmra.mrb[18].mxu1 %v19610_v10  ;;  %v23701_v10 = vmov 0.0   ;;  %v20294_v62 = vpack.c.bf16 %v7675_v50, %v7671_v28 }
 0x630   : > { %14901 = vmatprep.mubr.f32.mxu1 %v19627_v49  ;;  %15982 = vmatpush1.bf16.msra.mxu1 %v20193_v52  ;;  %23700 = vst [vmem:[#allocation7_spill] sm:$0xff] %v20209_v60  ;;  %v20233_v49 = vld [vmem:[%s23147_s12 + $0xb8] sm:$0xff] }
 0x631   : > { %15984 = vmatprep.subr.bf16.mxu1 %v20200_v61  ;;  %23706 = vst [vmem:[#allocation12_spill] sm:$0xff] %v20294_v62  ;;  %v23718_v52 = vand.u32 4294901760, %v20233_v49 }
 0x633   : > { %14902 = vmatmul.mubr.f32.gmra.mrb[20].mxu1 %v19649_v34  ;;  %v23277_v34 = vand.u32 4294901760, %v20233_v49  ;;  %v20370_v27 = vsub.f32 %v20233_v49, %v23718_v52  ;;  %v20389_v52 = vsub.f32 %v6075_v19, %v6193_v38  ;;  %v20391_v49 = vsub.f32 %v6079_v29, %v6197_v2 }
 0x634   : > { %14904 = vmatprep.mubr.f32.mxu1 %v19668_v14  ;;  %15986 = vmatpush1.bf16.msra.mxu1 %v20209_v60 }
 0x635   : > { %23719 = vst [vmem:[#allocation45_spill] sm:$0xff] %v20370_v27  ;;  %23726 = vst [vmem:[#allocation50_spill] sm:$0xff] %v20389_v52 }
 0x636   : > { %23727 = vst [vmem:[#allocation51_spill] sm:$0xff] %v20391_v49 }
 0x637   : > { %14905 = vmatmul.mubr.f32.gmra.mrb[22].mxu1 %v19693_v33  ;;  %v20240_v33 = vld [vmem:[%s23147_s12 + $0x90] sm:$0xff] }
 0x638   : > { %14907 = vmatprep.mubr.f32.mxu1 %v19710_v51  ;;  %v20228_v51 = vld [vmem:[%s23147_s12 + $0x98] sm:$0xff] }
 0x639   : > { %v23278_v14 = vand.u32 4294901760, %v20228_v51  ;;  %v23716_v60 = vand.u32 4294901760, %v20228_v51 }
 0x63b   : > { %14908 = vmatmul.mubr.f32.gmra.mrb[24].mxu1 %v19732_v59  ;;  %v23276_v59 = vand.u32 4294901760, %v20240_v33  ;;  %v20365_v61 = vsub.f32 %v20228_v51, %v23716_v60  ;;  %v20384_v60 = vsub.f32 %v20270_v20, %v7671_v28  ;;  %v20386_v51 = vsub.f32 %v6073_v46, %v7675_v50  ;;  %v6088_v50 = vld [vmem:[%s23147_s12 + $0x170] sm:$0xff] }
 0x63c   : > { %14910 = vmatprep.mubr.f32.mxu1 %v19750_v17  ;;  %v20402_v20 = vsub.f32 %v6078_v3, %v6199_v57 }
 0x63d   : > { %23717 = vst [vmem:[#allocation23_spill] sm:$0xff] %v20365_v61  ;;  %23724 = vst [vmem:[#allocation48_spill] sm:$0xff] %v20384_v60 }
 0x63e   : > { %23725 = vst [vmem:[#allocation49_spill] sm:$0xff] %v20386_v51  ;;  %23731 = vst [vmem:[#allocation55_spill] sm:$0xff] %v20402_v20 }
 0x63f   : > { %14911 = vmatmul.mubr.f32.gmra.mrb[26].mxu1 %v19764_v55  ;;  %v20253_v55 = vpack.c.bf16 %v23277_v34, %v23278_v14  ;;  %v6082_v34 = vld [vmem:[%s23147_s12 + $0x140] sm:$0xff] }
 0x640   : > { %14913 = vmatprep.mubr.f32.mxu1 %v19778_v16  ;;  %v6071_v16 = vld [vmem:[%s23147_s12 + $0xe8] sm:$0xff]  ;;  %v6086_v14 = vld [vmem:[%s23147_s12 + $0x160] sm:$0xff] }
 0x641   : > { %23702 = vst [vmem:[#allocation8_spill] sm:$0xff] %v20253_v55  ;;  %v6189_v4 = vand.u32 4294901760, %v6071_v16  ;;  %16128 = vmatprep.subr.bf16.mxu0 %v20253_v55  ;;  %v20360_v55 = vsub.f32 %v6070_v44, %v6191_v45 }
 0x643   : > { %14914 = vmatmul.mubr.f32.gmra.mrb[28].mxu1 %v19790_v1  ;;  %v20245_v1 = vld [vmem:[%s23147_s12 + $0xb0] sm:$0xff]  ;;  %v20319_v40 = vsub.f32 %v6071_v16, %v6189_v4  ;;  %v6085_v16 = vld [vmem:[%s23147_s12 + $0x158] sm:$0xff]  ;;  %23715 = vst [vmem:[#allocation22_spill] sm:$0xff] %v20360_v55 }
 0x644   : > { %14916 = vmatprep.mubr.f32.mxu1 %v19801_v39  ;;  %v23275_v17 = vand.u32 4294901760, %v20245_v1  ;;  %v6067_v39 = vld [vmem:[%s23147_s12 + $0xc8] sm:$0xff] }
 0x645   : > { %v6185_v0 = vand.u32 4294901760, %v6067_v39  ;;  %23709 = vst [vmem:[#allocation15_spill] sm:$0xff] %v20319_v40 }
 0x646   : > { %v20265_v21 = vpack.c.bf16 %v23275_v17, %v23276_v59  ;;  %v6201_v17 = vand.u32 4294901760, %v6083_v48 }
 0x647   : > { %14917 = vmatmul.mubr.f32.gmra.mrb[30].mxu1 %v23680_v30  ;;  %v20290_v15 = vpack.c.bf16 %v6189_v4, %v6185_v0  ;;  %v6074_v30 = vld [vmem:[%s23147_s12 + $0x100] sm:$0xff]  ;;  %v20317_v26 = vsub.f32 %v6067_v39, %v6185_v0  ;;  %v6087_v39 = vld [vmem:[%s23147_s12 + $0x168] sm:$0xff]  ;;  %v20344_v0 = vpack.c.bf16 %v7683_v31, %v7679_v5  ;;  %v20346_v4 = vpack.c.bf16 %v7685_v41, %v7681_v7 }
 0x648   : > { %6249 = vmatprep.mubr.f32.mxu1 %v23701_v10  ;;  %23703 = vst [vmem:[#allocation9_spill] sm:$0xff] %v20265_v21  ;;  %16130 = vmatpush1.bf16.msra.mxu0 %v20265_v21  ;;  %v6195_v35 = vand.u32 4294901760, %v6074_v30  ;;  %v6205_v59 = vand.u32 4294901760, %v6087_v39  ;;  %v20420_v19 = vsub.f32 %v6083_v48, %v6201_v17 }
 0x649   : > { %23704 = vst [vmem:[#allocation10_spill] sm:$0xff] %v20290_v15  ;;  %15988 = vmatprep.subr.bf16.mxu1 %v20290_v15  ;;  %23708 = vst [vmem:[#allocation14_spill] sm:$0xff] %v20317_v26  ;;  %16132 = vmatprep.subr.bf16.mxu0 %v20294_v62  ;;  %v6207_v62 = vand.u32 4294901760, %v6086_v14  ;;  %v20358_v15 = vsub.f32 %v6066_v43, %v6187_v36  ;;  %v23722_v43 = vand.u32 4294901760, %v20245_v1 }
 0x64a   : > { %15990 = vmatpush1.bf16.msra.mxu1 %v20292_v54  ;;  %v20332_v42 = vpack.c.bf16 %v6199_v57, %v6195_v35  ;;  %23712 = vst [vmem:[#allocation19_spill] sm:$0xff] %v20344_v0  ;;  %23713 = vst [vmem:[#allocation20_spill] sm:$0xff] %v20346_v4  ;;  %v7687_v54 = vand.u32 4294901760, %v6085_v16  ;;  %v20393_v36 = vsub.f32 %v6068_v11, %v7673_v18  ;;  %v23747_v57 = vld [vmem:[#allocation24_spill] sm:$0xff] }
 0x64b   : > { %15992 = vmatprep.subr.bf16.mxu1 %v20329_v22  ;;  %v6203_v22 = vand.u32 4294901760, %v6082_v34  ;;  %23714 = vst [vmem:[#allocation21_spill] sm:$0xff] %v20358_v15  ;;  %v20381_v44 = vsub.f32 %v20245_v1, %v23722_v43  ;;  %v6084_v1 = vld [vmem:[%s23147_s12 + $0x150] sm:$0xff]  ;;  %v20400_v45 = vsub.f32 %v6074_v30, %v6195_v35  ;;  %v20404_v46 = vpack.c.bf16 %v6205_v59, %v6201_v17 }
 0x64c   : > { %16134 = vmatpush1.bf16.msra.mxu0 %v20306_v25  ;;  %23711 = vst [vmem:[#allocation17_spill] sm:$0xff] %v20332_v42  ;;  %v6089_v25 = vld [vmem:[%s23147_s12 + $0x178] sm:$0xff]  ;;  %23728 = vst [vmem:[#allocation52_spill] sm:$0xff] %v20393_v36  ;;  %v20411_v11 = vsub.f32 %v6077_v9, %v7679_v5  ;;  %v20415_v18 = vsub.f32 %v6076_v23, %v7681_v7  ;;  %v20422_v29 = vsub.f32 %v6087_v39, %v6205_v59 }
 0x64d   : > { %v7691_v21 = vand.u32 4294901760, %v6089_v25  ;;  %16136 = vmatprep.subr.bf16.mxu0 %v20344_v0  ;;  %23723 = vst [vmem:[#allocation47_spill] sm:$0xff] %v20381_v44  ;;  %23730 = vst [vmem:[#allocation54_spill] sm:$0xff] %v20400_v45  ;;  %v20406_v28 = vpack.c.bf16 %v6207_v62, %v6203_v22  ;;  %v7689_v2 = vand.u32 4294901760, %v6084_v1  ;;  %v7693_v30 = vand.u32 4294901760, %v6088_v50 }
 0x64e   : > { %15994 = vmatpush1.bf16.msra.mxu1 %v20332_v42  ;;  %v23720_v42 = vand.u32 4294901760, %v20240_v33  ;;  %23732 = vst [vmem:[#allocation56_spill] sm:$0xff] %v20404_v46  ;;  %23734 = vst [vmem:[#allocation58_spill] sm:$0xff] %v20411_v11  ;;  %v20427_v9 = vsub.f32 %v6082_v34, %v6203_v22  ;;  %v20429_v3 = vsub.f32 %v6086_v14, %v6207_v62  ;;  %v23310_v23 = vand.u32 4294901760, %v23747_v57  ;;  %v23748_v34 = vld [vmem:[#allocation25_spill] sm:$0xff]  ;;  %v23749_v14 = vld [vmem:[#allocation26_spill] sm:$0xff] }
 0x64f   : > { %23733 = vst [vmem:[#allocation57_spill] sm:$0xff] %v20406_v28  ;;  %23736 = vst [vmem:[#allocation60_spill] sm:$0xff] %v20415_v18  ;;  %15996 = vmatprep.subr.bf16.mxu1 %v20404_v46  ;;  %v20424_v38 = vpack.c.bf16 %v7691_v21, %v7687_v54  ;;  %v20434_v5 = vsub.f32 %v6089_v25, %v7691_v21  ;;  %v20436_v17 = vpack.c.bf16 %v7693_v30, %v7689_v2  ;;  %v23750_v22 = vld [vmem:[#allocation27_spill] sm:$0xff] }
 0x650   : > { %v20376_v13 = vsub.f32 %v20240_v33, %v23720_v42  ;;  %16138 = vmatpush1.bf16.msra.mxu0 %v20346_v4  ;;  %v20395_v33 = vsub.f32 %v6072_v6, %v7677_v58  ;;  %v20413_v6 = vsub.f32 %v6081_v12, %v7683_v31  ;;  %v20417_v58 = vsub.f32 %v6080_v53, %v7685_v41 }
 0x651   : > { %23738 = vst [vmem:[#allocation62_spill] sm:$0xff] %v20420_v19  ;;  %23739 = vst [vmem:[#allocation63_spill] sm:$0xff] %v20422_v29  ;;  %16140 = vmatprep.subr.bf16.mxu0 %v20424_v38  ;;  %v20432_v12 = vsub.f32 %v6085_v16, %v7687_v54  ;;  %v20438_v59 = vsub.f32 %v6084_v1, %v7689_v2  ;;  %v20440_v35 = vsub.f32 %v6088_v50, %v7693_v30  ;;  %v23751_v1 = vld [vmem:[#allocation28_spill] sm:$0xff]  ;;  %v23752_v2 = vld [vmem:[#allocation29_spill] sm:$0xff] }
 0x652   : > { %23721 = vst [vmem:[#allocation46_spill] sm:$0xff] %v20376_v13  ;;  %23729 = vst [vmem:[#allocation53_spill] sm:$0xff] %v20395_v33  ;;  %15998 = vmatpush1.bf16.msra.mxu1 %v20406_v28  ;;  %v23308_v53 = vand.u32 4294901760, %v23748_v34  ;;  %v23305_v62 = vand.u32 4294901760, %v23749_v14  ;;  %v23306_v31 = vand.u32 4294901760, %v23750_v22  ;;  %v6429_v21 = vsub.f32 %v23747_v57, %v23310_v23 }
 0x653   : > { %23735 = vst [vmem:[#allocation59_spill] sm:$0xff] %v20413_v6  ;;  %23737 = vst [vmem:[#allocation61_spill] sm:$0xff] %v20417_v58  ;;  %v23307_v50 = vand.u32 4294901760, %v23751_v1  ;;  %v23309_v30 = vand.u32 4294901760, %v23752_v2  ;;  %v23330_v23 = vand.u32 4294901760, %v20033_v8 }
 0x654   : > { %23740 = vst [vmem:[#allocation64_spill] sm:$0xff] %v20424_v38  ;;  %23741 = vst [vmem:[#allocation65_spill] sm:$0xff] %v20427_v9  ;;  %16142 = vmatpush1.bf16.msra.mxu0 %v20436_v17  ;;  %v6441_v54 = vsub.f32 %v23748_v34, %v23308_v53  ;;  %v6435_v25 = vsub.f32 %v23749_v14, %v23305_v62  ;;  %v6447_v7 = vsub.f32 %v23750_v22, %v23306_v31  ;;  %v23755_v53 = vld [vmem:[#allocation40_spill] sm:$0xff] }
 0x655   : > { %23742 = vst [vmem:[#allocation66_spill] sm:$0xff] %v20429_v3  ;;  %23743 = vst [vmem:[#allocation67_spill] sm:$0xff] %v20432_v12  ;;  %v6430_v41 = vand.u32 4294901760, %v6429_v21  ;;  %v6453_v62 = vsub.f32 %v23751_v1, %v23307_v50  ;;  %v6465_v31 = vsub.f32 %v23752_v2, %v23309_v30  ;;  %v23753_v21 = vld [vmem:[#allocation30_spill] sm:$0xff]  ;;  %v23328_v30 = vand.u32 4294901760, %v23755_v53 }
 0x656   : > { %23744 = vst [vmem:[#allocation68_spill] sm:$0xff] %v20434_v5  ;;  %23745 = vst [vmem:[#allocation69_spill] sm:$0xff] %v20436_v17  ;;  %v6442_v42 = vand.u32 4294901760, %v6441_v54  ;;  %v6436_v48 = vand.u32 4294901760, %v6435_v25  ;;  %v6448_v39 = vand.u32 4294901760, %v6447_v7  ;;  %v23315_v54 = vand.u32 4294901760, %v23753_v21 }
 0x657   : > { %23746 = vst [vmem:[#allocation70_spill] sm:$0xff] %v20440_v35  ;;  %v23754_v25 = vld [vmem:[#allocation31_spill] sm:$0xff]  ;;  %v6495_v28 = vsub.f32 %v20033_v8, %v23330_v23 }
 0x658   : > { %v15999_v16 = vpack.c.bf16 %v6442_v42, %v6430_v41  ;;  %v20459_v43 = vpack.c.bf16 %v6448_v39, %v6436_v48  ;;  %v23316_v7 = vand.u32 4294901760, %v23754_v25  ;;  %v6454_v41 = vand.u32 4294901760, %v6453_v62 }
 0x659   : > { %v6466_v42 = vand.u32 4294901760, %v6465_v31  ;;  %v23323_v48 = vand.u32 4294901760, %v20012_v32  ;;  %v23332_v39 = vand.u32 4294901760, %v20022_v47 }
 0x65a   : > { %16000 = vmatprep.subr.bf16.mxu1 %v15999_v16  ;;  %v6459_v16 = vsub.f32 %v23753_v21, %v23315_v54  ;;  %v6471_v50 = vsub.f32 %v23754_v25, %v23316_v7  ;;  %v6483_v7 = vsub.f32 %v23755_v53, %v23328_v30 }
 0x65b   : > { %v20481_v17 = vpack.c.bf16 %v6466_v42, %v6454_v41  ;;  %v6477_v62 = vsub.f32 %v20012_v32, %v23323_v48  ;;  %v6489_v31 = vsub.f32 %v20022_v47, %v23332_v39  ;;  %v6496_v48 = vand.u32 4294901760, %v6495_v28 }
 0x65c   : > { %v6460_v38 = vand.u32 4294901760, %v6459_v16  ;;  %v6472_v54 = vand.u32 4294901760, %v6471_v50  ;;  %v6484_v46 = vand.u32 4294901760, %v6483_v7  ;;  %v23329_v50 = vand.u32 4294901760, %v20317_v26 }
 0x65d   : > { %v6478_v41 = vand.u32 4294901760, %v6477_v62  ;;  %v6490_v42 = vand.u32 4294901760, %v6489_v31  ;;  %v23331_v16 = vand.u32 4294901760, %v20319_v40  ;;  %v23334_v28 = vand.u32 4294901760, %v20360_v55  ;;  %v23758_v31 = vld [vmem:[#allocation32_spill] sm:$0xff] }
 0x65e   : > { %v20495_v4 = vpack.c.bf16 %v6472_v54, %v6460_v38  ;;  %v20499_v56 = vpack.c.bf16 %v6496_v48, %v6484_v46  ;;  %v6501_v30 = vsub.f32 %v20317_v26, %v23329_v50  ;;  %v23333_v38 = vand.u32 4294901760, %v20358_v15 }
 0x65f   : > { %v20497_v0 = vpack.c.bf16 %v6490_v42, %v6478_v41  ;;  %v6513_v62 = vsub.f32 %v20319_v40, %v23331_v16  ;;  %v6519_v48 = vsub.f32 %v20360_v55, %v23334_v28  ;;  %v23337_v41 = vand.u32 4294901760, %v23758_v31  ;;  %v23759_v42 = vld [vmem:[#allocation34_spill] sm:$0xff] }
 0x660   : > { %23757 = vst [vmem:[#allocation25_spill] sm:$0xff] %v20499_v56  ;;  %v6502_v54 = vand.u32 4294901760, %v6501_v30  ;;  %v6507_v46 = vsub.f32 %v20358_v15, %v23333_v38  ;;  %v23336_v50 = vand.u32 4294901760, %v23759_v42 }
 0x661   : > { %23756 = vst [vmem:[#allocation24_spill] sm:$0xff] %v20497_v0  ;;  %v6514_v7 = vand.u32 4294901760, %v6513_v62  ;;  %v6520_v39 = vand.u32 4294901760, %v6519_v48  ;;  %v7915_v30 = vsub.f32 %v23758_v31, %v23337_v41  ;;  %v23338_v0 = vand.u32 4294901760, %v20389_v52 }
 0x662   : > { %v6508_v16 = vand.u32 4294901760, %v6507_v46  ;;  %v7927_v62 = vsub.f32 %v23759_v42, %v23336_v50  ;;  %v23341_v46 = vand.u32 4294901760, %v20402_v20 }
 0x663   : > { %v20519_v23 = vpack.c.bf16 %v6514_v7, %v6502_v54  ;;  %v7916_v56 = vand.u32 4294901760, %v7915_v30  ;;  %v23339_v54 = vand.u32 4294901760, %v20391_v49  ;;  %v23340_v7 = vand.u32 4294901760, %v20400_v45 }
 0x664   : > { %v20527_v38 = vpack.c.bf16 %v6520_v39, %v6508_v16  ;;  %v7928_v28 = vand.u32 4294901760, %v7927_v62  ;;  %v6525_v48 = vsub.f32 %v20389_v52, %v23338_v0  ;;  %v6543_v16 = vsub.f32 %v20402_v20, %v23341_v46 }
 0x665   : > { %v6537_v39 = vsub.f32 %v20391_v49, %v23339_v54  ;;  %v23343_v0 = vand.u32 4294901760, %v20420_v19  ;;  %v23342_v54 = vand.u32 4294901760, %v20422_v29  ;;  %v23376_v20 = vand.u32 4294901760, %v20376_v13 }
 0x666   : > { %v16143_v35 = vpack.c.bf16 %v7928_v28, %v7916_v56  ;;  %v6531_v56 = vsub.f32 %v20400_v45, %v23340_v7  ;;  %v6526_v28 = vand.u32 4294901760, %v6525_v48 }
 0x667   : > { %v6538_v30 = vand.u32 4294901760, %v6537_v39  ;;  %v6549_v7 = vsub.f32 %v20420_v19, %v23343_v0  ;;  %v6561_v46 = vsub.f32 %v20422_v29, %v23342_v54  ;;  %v23761_v0 = vld [vmem:[#allocation37_spill] sm:$0xff] }
 0x668   : > { %16144 = vmatprep.subr.bf16.mxu0 %v16143_v35  ;;  %v6532_v62 = vand.u32 4294901760, %v6531_v56  ;;  %v6544_v35 = vand.u32 4294901760, %v6543_v16 }
 0x669   : > { %v20545_v50 = vpack.c.bf16 %v6538_v30, %v6526_v28  ;;  %v6550_v48 = vand.u32 4294901760, %v6549_v7  ;;  %v6562_v39 = vand.u32 4294901760, %v6561_v46  ;;  %v23353_v28 = vand.u32 4294901760, %v23761_v0 }
 0x66a   : > { %v20547_v41 = vpack.c.bf16 %v6544_v35, %v6532_v62  ;;  %v23356_v30 = vand.u32 4294901760, %v20037_v37  ;;  %v23357_v62 = vand.u32 4294901760, %v20041_v24  ;;  %v23762_v35 = vld [vmem:[#allocation44_spill] sm:$0xff] }
 0x66b   : > { %v20557_v56 = vpack.c.bf16 %v6562_v39, %v6550_v48  ;;  %v23760_v39 = vld [vmem:[#allocation36_spill] sm:$0xff]  ;;  %v7933_v48 = vsub.f32 %v23761_v0, %v23353_v28  ;;  %v23764_v46 = vand.u32 4294901760, %v23762_v35  ;;  %v23371_v28 = vand.u32 4294901760, %v20365_v61 }
 0x66c   : > { %v23348_v54 = vand.u32 4294901760, %v23760_v39  ;;  %v7939_v15 = vsub.f32 %v20037_v37, %v23356_v30  ;;  %v7951_v16 = vsub.f32 %v20041_v24, %v23357_v62  ;;  %v20608_v62 = vld [vmem:[%s23146_s11] ss:$0 sm:$0xff] }
 0x66d   : > { %v7957_v52 = vsub.f32 %v23762_v35, %v23764_v46  ;;  %v7934_v26 = vand.u32 4294901760, %v7933_v48  ;;  %v7963_v46 = vsub.f32 %v20365_v61, %v23371_v28  ;;  %v7969_v28 = vsub.f32 %v20376_v13, %v23376_v20 }
 0x66e   : > { %v7921_v7 = vsub.f32 %v23760_v39, %v23348_v54  ;;  %v23763_v54 = vand.u32 4294901760, %v20045_v63  ;;  %v7940_v32 = vand.u32 4294901760, %v7939_v15  ;;  %v7952_v45 = vand.u32 4294901760, %v7951_v16 }
 0x66f   : > { %v7958_v40 = vand.u32 4294901760, %v7957_v52  ;;  %v23765_v15 = vand.u32 4294901760, %v20370_v27  ;;  %v7970_v61 = vand.u32 4294901760, %v7969_v28  ;;  %v23773_v13 = vand.u32 4294901760, %v20393_v36 }
 0x670   : > { %v7945_v55 = vsub.f32 %v20045_v63, %v23763_v54  ;;  %v7922_v49 = vand.u32 4294901760, %v7921_v7  ;;  %v20623_v48 = vpack.c.bf16 %v7952_v45, %v7940_v32 }
 0x671   : > { %v7975_v16 = vsub.f32 %v20370_v27, %v23765_v15  ;;  %v23766_v15 = vand.u32 4294901760, %v20381_v44 }
 0x672   : > { %v7946_v54 = vand.u32 4294901760, %v7945_v55  ;;  %v20621_v52 = vpack.c.bf16 %v7934_v26, %v7922_v49  ;;  %v23767_v26 = vand.u32 4294901760, %v20384_v60  ;;  %v23770_v49 = vand.u32 4294901760, %v20386_v51 }
 0x674   : > { %v20628_v30 = vpack.c.bf16 %v7958_v40, %v7946_v54  ;;  %v7987_v32 = vsub.f32 %v20384_v60, %v23767_v26  ;;  %v7976_v54 = vand.u32 4294901760, %v7975_v16 }
 0x676   : > { %v7988_v60 = vand.u32 4294901760, %v7987_v32 }
 0x6fe   : > { %v14897_v53 = vpop.f32.mrb[16].mxu1 }
 0x6ff   : > { %v16615_v8 = vadd.f32 %v14897_v53, %v20608_v62  ;;  %v5932_v47 = vpop.f32.mrb[17].mxu1  ;;  %v7964_v53 = vand.u32 4294901760, %v7963_v46 }
 0x700   : > { %v16616_v55 = vadd.f32 %v20608_v62, %v5932_v47  ;;  %v7981_v47 = vsub.f32 %v20381_v44, %v23766_v15 }
 0x701   : > { %v6027_v7 = vmax.f32 %v16615_v8, 0.0 }
 0x702   : > { %v6026_v21 = vmax.f32 %v16616_v55, 0.0  ;;  %v14900_v25 = vpop.f32.mrb[18].mxu1  ;;  %v7982_v29 = vand.u32 4294901760, %v7981_v47 }
 0x703   : > { %v6117_v45 = vsel %vm6112_vm1, %v6027_v7, 0  ;;  %v16617_v8 = vadd.f32 %v14900_v25, %v20608_v62  ;;  %v5944_v40 = vpop.f32.mrb[19].mxu1  ;;  %v7999_v7 = vsub.f32 %v20386_v51, %v23770_v49  ;;  %v20663_v49 = vsub.f32 %v20393_v36, %v23773_v13 }
 0x704   : > { %v20642_v55 = vand.u32 4294901760, %v6117_v45  ;;  %v6114_v20 = vsel %vm6112_vm1, %v6026_v21, 0  ;;  %v16618_v15 = vadd.f32 %v20608_v62, %v5944_v40  ;;  %v20678_v36 = vpack.c.bf16 %v7976_v54, %v7964_v53 }
 0x705   : > { %v20646_v44 = vand.u32 4294901760, %v6114_v20  ;;  %v6029_v26 = vmax.f32 %v16617_v8, 0.0  ;;  %v8000_v27 = vand.u32 4294901760, %v7999_v7 }
 0x706   : > { %23768 = vst [vmem:[#allocation26_spill] sm:$0xff] %v20642_v55  ;;  %v20653_v16 = vsub.f32 %v6117_v45, %v20642_v55  ;;  %v6028_v46 = vmax.f32 %v16618_v15, 0.0  ;;  %v14903_v19 = vpop.f32.mrb[20].mxu1 }
 0x707   : > { %23769 = vst [vmem:[#allocation27_spill] sm:$0xff] %v20646_v44  ;;  %v20656_v21 = vsub.f32 %v6114_v20, %v20646_v44  ;;  %v6123_v28 = vsel %vm6112_vm1, %v6029_v26, 0  ;;  %v16619_v8 = vadd.f32 %v14903_v19, %v20608_v62  ;;  %v5956_v40 = vpop.f32.mrb[21].mxu1 }
 0x708   : > { %23771 = vst [vmem:[#allocation28_spill] sm:$0xff] %v20653_v16  ;;  %v20665_v25 = vand.u32 4294901760, %v6123_v28  ;;  %v6120_v45 = vsel %vm6112_vm1, %v6028_v46, 0  ;;  %v16620_v47 = vadd.f32 %v20608_v62, %v5956_v40  ;;  %v20670_v32 = vand.u32 4294901760, %v20653_v16 }
 0x709   : > { %23772 = vst [vmem:[#allocation29_spill] sm:$0xff] %v20656_v21  ;;  %v20673_v20 = vand.u32 4294901760, %v20656_v21  ;;  %v20675_v15 = vand.u32 4294901760, %v6120_v45  ;;  %v6031_v19 = vmax.f32 %v16619_v8, 0.0  ;;  %v23778_v46 = vand.u32 4294901760, %v20395_v33 }
 0x70a   : > { %23774 = vst [vmem:[#allocation32_spill] sm:$0xff] %v20665_v25  ;;  %23775 = vst [vmem:[#allocation34_spill] sm:$0xff] %v20670_v32  ;;  %v6030_v51 = vmax.f32 %v16620_v47, 0.0  ;;  %v14906_v13 = vpop.f32.mrb[22].mxu1  ;;  %v20688_v35 = vsub.f32 %v6123_v28, %v20665_v25  ;;  %v20705_v47 = vpack.c.bf16 %v7982_v29, %v7970_v61  ;;  %v23784_v61 = vand.u32 4294901760, %v20427_v9 }
 0x70b   : > { %23776 = vst [vmem:[#allocation36_spill] sm:$0xff] %v20673_v20  ;;  %23777 = vst [vmem:[#allocation37_spill] sm:$0xff] %v20675_v15  ;;  %v20683_v40 = vsub.f32 %v20395_v33, %v23778_v46  ;;  %v6253_v55 = vsub.f32 %v20656_v21, %v20673_v20  ;;  %v20691_v8 = vsub.f32 %v6120_v45, %v20675_v15  ;;  %v5968_v26 = vpop.f32.mrb[23].mxu1  ;;  %v6129_v20 = vsel %vm6112_vm1, %v6031_v19, 0 }
 0x70c   : > { %23779 = vst [vmem:[#allocation71_spill] sm:$0xff] %v20688_v35  ;;  %v6126_v53 = vsel %vm6112_vm1, %v6030_v51, 0  ;;  %v16621_v54 = vadd.f32 %v14906_v13, %v20608_v62  ;;  %v16622_v7 = vadd.f32 %v20608_v62, %v5968_v26  ;;  %v6264_v46 = vsub.f32 %v20653_v16, %v20670_v32 }
 0x70d   : > { %23780 = vst [vmem:[#allocation72_spill] sm:$0xff] %v20691_v8  ;;  %v20700_v21 = vand.u32 4294901760, %v6126_v53  ;;  %v6254_v28 = vand.u32 4294901760, %v6253_v55  ;;  %v20703_v45 = vand.u32 4294901760, %v20691_v8  ;;  %v7994_v51 = vand.u32 4294901760, %v20663_v49 }
 0x70e   : > { %v6032_v25 = vmax.f32 %v16622_v7, 0.0  ;;  %v14909_v33 = vpop.f32.mrb[24].mxu1  ;;  %v23412_v13 = vand.u32 4294901760, %v20429_v3  ;;  %v20709_v32 = vpack.c.bf16 %v8000_v27, %v7988_v60  ;;  %v8006_v19 = vand.u32 4294901760, %v20683_v40 }
 0x70f   : > { %23781 = vst [vmem:[#allocation73_spill] sm:$0xff] %v20700_v21  ;;  %23782 = vst [vmem:[#allocation74_spill] sm:$0xff] %v20703_v45  ;;  %v5980_v26 = vpop.f32.mrb[25].mxu1  ;;  %6255 = vmatmul.mubr.f32.vlgmr.msra.gmra.mrb[32].mxu1 %v6254_v28  ;;  %7741 = vmatmul.mubr.f32.vlgmr.msra.gmra.mrb[48].mxu0 %v6254_v28  ;;  %v23413_v55 = vand.u32 4294901760, %v20413_v6  ;;  %v20714_v15 = vand.u32 4294901760, %v6129_v20  ;;  %v6033_v7 = vmax.f32 %v16621_v54, 0.0  ;;  %v20721_v29 = vsub.f32 %v20427_v9, %v23784_v61 }
 0x710   : > { %16002 = vmatpush1.bf16.msra.mxu1 %v20459_v43  ;;  %6260 = vmatprep.mubr.f32.mxu1 %v23701_v10  ;;  %v23785_v27 = vand.u32 4294901760, %v20411_v11  ;;  %v20729_v49 = vsub.f32 %v6126_v53, %v20700_v21  ;;  %v6265_v40 = vand.u32 4294901760, %v6264_v46  ;;  %v6275_v43 = vsub.f32 %v20691_v8, %v20703_v45 }
 0x711   : > { %23783 = vst [vmem:[#allocation75_spill] sm:$0xff] %v20714_v15  ;;  %7746 = vmatprep.mubr.f32.mxu0 %v23701_v10  ;;  %16004 = vmatprep.subr.bf16.mxu1 %v20481_v17  ;;  %v20736_v54 = vand.u32 4294901760, %v20688_v35  ;;  %v6132_v28 = vsel %vm6112_vm1, %v6032_v25, 0  ;;  %v16624_v61 = vadd.f32 %v20608_v62, %v5980_v26  ;;  %v20746_v53 = vsub.f32 %v20429_v3, %v23412_v13 }
 0x712   : > { %v20726_v60 = vsub.f32 %v20411_v11, %v23785_v27  ;;  %23786 = vst [vmem:[#allocation76_spill] sm:$0xff] %v20729_v49  ;;  %v20740_v27 = vpop.f32.mrb[26].mxu1  ;;  %16146 = vmatpush1.bf16.msra.mxu0 %v20621_v52  ;;  %v8023_v17 = vsub.f32 %v20413_v6, %v23413_v55  ;;  %v23788_v25 = vand.u32 4294901760, %v20415_v18  ;;  %v20760_v13 = vsub.f32 %v6129_v20, %v20714_v15  ;;  %v23791_v52 = vld [vmem:[#allocation24_spill] sm:$0xff]  ;;  %v23793_v15 = vld [vmem:[#allocation70_spill] sm:$0xff] }
 0x713   : > { %23787 = vst [vmem:[#allocation77_spill] sm:$0xff] %v20736_v54  ;;  %v5992_v16 = vpop.f32.mrb[27].mxu1  ;;  %6266 = vmatmul.mubr.f32.gmra.mrb[34].mxu1 %v6265_v40  ;;  %7752 = vmatmul.mubr.f32.gmra.mrb[50].mxu0 %v6265_v40  ;;  %v6135_v46 = vsel %vm6112_vm1, %v6033_v7, 0  ;;  %v16623_v40 = vadd.f32 %v14909_v33, %v20608_v62  ;;  %v20767_v8 = vand.u32 4294901760, %v6132_v28  ;;  %v6286_v45 = vsub.f32 %v20688_v35, %v20736_v54 }
 0x714   : > { %v20755_v26 = vsub.f32 %v20415_v18, %v23788_v25  ;;  %6271 = vmatprep.mubr.f32.mxu1 %v23701_v10  ;;  %7757 = vmatprep.mubr.f32.mxu0 %v23701_v10  ;;  %v6276_v25 = vand.u32 4294901760, %v6275_v43  ;;  %v20773_v20 = vand.u32 4294901760, %v20729_v49  ;;  %v6034_v33 = vmax.f32 %v16624_v61, 0.0 }
 0x715   : > { %23789 = vst [vmem:[#allocation78_spill] sm:$0xff] %v20767_v8  ;;  %16006 = vmatpush1.bf16.msra.mxu1 %v20495_v4  ;;  %16148 = vmatprep.subr.bf16.mxu0 %v20623_v48  ;;  %v16157_v55 = vpack.c.bf16 %v8006_v19, %v7994_v51  ;;  %v23792_v43 = vand.u32 4294901760, %v20417_v58  ;;  %v8012_v48 = vand.u32 4294901760, %v20726_v60  ;;  %v8024_v61 = vand.u32 4294901760, %v8023_v17 }
 0x716   : > { %23790 = vst [vmem:[#allocation79_spill] sm:$0xff] %v20773_v20  ;;  %v20776_v7 = vpop.f32.mrb[28].mxu1  ;;  %16008 = vmatprep.subr.bf16.mxu1 %v23791_v52  ;;  %16150 = vmatpush1.bf16.msra.mxu0 %v20628_v30  ;;  %v8018_v35 = vand.u32 4294901760, %v20755_v26  ;;  %v23794_v52 = vand.u32 4294901760, %v20432_v12  ;;  %v20791_v51 = vand.u32 4294901760, %v6135_v46  ;;  %v6035_v19 = vmax.f32 %v16623_v40, 0.0 }
 0x717   : > { %v8029_v4 = vsub.f32 %v20417_v58, %v23792_v43  ;;  %v20784_v54 = vpop.f32.mrb[29].mxu1  ;;  %6277 = vmatmul.mubr.f32.gmra.mrb[36].mxu1 %v6276_v25  ;;  %7763 = vmatmul.mubr.f32.gmra.mrb[52].mxu0 %v6276_v25  ;;  %v23796_v43 = vand.u32 4294901760, %v20434_v5  ;;  %v23797_v60 = vand.u32 4294901760, %v20438_v59  ;;  %v20802_v26 = vsub.f32 %v6132_v28, %v20767_v8 }
 0x718   : > { %v8035_v30 = vsub.f32 %v20432_v12, %v23794_v52  ;;  %23795 = vst [vmem:[#allocation24_spill] sm:$0xff] %v20791_v51  ;;  %6282 = vmatprep.mubr.f32.mxu1 %v23701_v10  ;;  %7768 = vmatprep.mubr.f32.mxu0 %v23701_v10  ;;  %v6287_v3 = vand.u32 4294901760, %v6286_v45  ;;  %v6297_v52 = vsub.f32 %v20729_v49, %v20773_v20  ;;  %v20807_v40 = vand.u32 4294901760, %v20760_v13  ;;  %v23799_v12 = vld [vmem:[#allocation25_spill] sm:$0xff] }
 0x719   : > { %v8047_v25 = vsub.f32 %v20434_v5, %v23796_v43  ;;  %v8041_v17 = vsub.f32 %v20438_v59, %v23797_v60  ;;  %16010 = vmatpush1.bf16.msra.mxu1 %v23799_v12  ;;  %16152 = vmatprep.subr.bf16.mxu0 %v20678_v36  ;;  %v6138_v43 = vsel %vm6112_vm1, %v6034_v33, 0  ;;  %v16626_v5 = vadd.f32 %v20608_v62, %v5992_v16 }
 0x71a   : > { %23798 = vst [vmem:[#allocation70_spill] sm:$0xff] %v20807_v40  ;;  %v20813_v9 = vpop.f32.mrb[30].mxu1  ;;  %16012 = vmatprep.subr.bf16.mxu1 %v20519_v23  ;;  %16154 = vmatpush1.bf16.msra.mxu0 %v20705_v47  ;;  %v8030_v45 = vand.u32 4294901760, %v8029_v4  ;;  %v23800_v28 = vand.u32 4294901760, %v23793_v15  ;;  %v6556_v36 = vand.u32 4294901760, %v20721_v29  ;;  %v6568_v12 = vand.u32 4294901760, %v20746_v53 }
 0x71b   : > { %v20820_v20 = vpop.f32.mrb[31].mxu1  ;;  %6288 = vmatmul.mubr.f32.gmra.mrb[38].mxu1 %v6287_v3  ;;  %7774 = vmatmul.mubr.f32.gmra.mrb[54].mxu0 %v6287_v3  ;;  %v16159_v16 = vpack.c.bf16 %v8024_v61, %v8012_v48  ;;  %v8036_v33 = vand.u32 4294901760, %v8035_v30  ;;  %v20825_v49 = vsub.f32 %v6135_v46, %v20791_v51  ;;  %v6141_v23 = vsel %vm6112_vm1, %v6035_v19, 0 }
 0x71c   : > { %v8053_v60 = vsub.f32 %v23793_v15, %v23800_v28  ;;  %v16625_v47 = vadd.f32 %v20740_v27, %v20608_v62  ;;  %6293 = vmatprep.mubr.f32.mxu1 %v23701_v10  ;;  %7779 = vmatprep.mubr.f32.mxu0 %v23701_v10  ;;  %v8048_v4 = vand.u32 4294901760, %v8047_v25  ;;  %v20832_v3 = vand.u32 4294901760, %v6138_v43 }
 0x71d   : > { %v6298_v29 = vand.u32 4294901760, %v6297_v52  ;;  %v6308_v53 = vsub.f32 %v20760_v13, %v20807_v40  ;;  %v20837_v48 = vand.u32 4294901760, %v20802_v26  ;;  %16014 = vmatpush1.bf16.msra.mxu1 %v20527_v38  ;;  %16156 = vmatprep.subr.bf16.mxu0 %v20709_v32  ;;  %v6036_v46 = vmax.f32 %v16626_v5, 0.0  ;;  %v23843_v40 = vld [vmem:[#allocation52_spill] sm:$0xff] }
 0x71e   : > { %23801 = vst [vmem:[#allocation25_spill] sm:$0xff] %v20832_v3  ;;  %16016 = vmatprep.subr.bf16.mxu1 %v20545_v50  ;;  %16158 = vmatpush1.bf16.msra.mxu0 %v16157_v55  ;;  %v16161_v27 = vpack.c.bf16 %v8030_v45, %v8018_v35  ;;  %v8042_v61 = vand.u32 4294901760, %v8041_v17  ;;  %v8054_v30 = vand.u32 4294901760, %v8053_v60  ;;  %v20842_v19 = vand.u32 4294901760, %v6141_v23 }
 0x71f   : > { %23802 = vst [vmem:[#allocation80_spill] sm:$0xff] %v20837_v48  ;;  %6299 = vmatmul.mubr.f32.gmra.mrb[40].mxu1 %v6298_v29  ;;  %7785 = vmatmul.mubr.f32.gmra.mrb[56].mxu0 %v6298_v29  ;;  %v6037_v25 = vmax.f32 %v16625_v47, 0.0  ;;  %v16021_v52 = vpack.c.bf16 %v6568_v12, %v6556_v36  ;;  %v16163_v38 = vpack.c.bf16 %v8048_v4, %v8036_v33  ;;  %v6309_v5 = vand.u32 4294901760, %v6308_v53 }
 0x720   : > { %23803 = vst [vmem:[#allocation81_spill] sm:$0xff] %v20842_v19  ;;  %6304 = vmatprep.mubr.f32.mxu1 %v23701_v10  ;;  %7790 = vmatprep.mubr.f32.mxu0 %v23701_v10  ;;  %v20847_v32 = vsub.f32 %v6138_v43, %v20832_v3  ;;  %v6319_v50 = vsub.f32 %v20802_v26, %v20837_v48  ;;  %v20852_v35 = vand.u32 4294901760, %v20825_v49  ;;  %v6144_v55 = vsel %vm6112_vm1, %v6036_v46, 0 }
 0x721   : > { %16018 = vmatpush1.bf16.msra.mxu1 %v20547_v41  ;;  %16160 = vmatprep.subr.bf16.mxu0 %v16159_v16  ;;  %v16628_v17 = vadd.f32 %v20608_v62, %v20784_v54  ;;  %v16165_v43 = vpack.c.bf16 %v8054_v30, %v8042_v61  ;;  %v20860_v45 = vsub.f32 %v6141_v23, %v20842_v19  ;;  %v6147_v28 = vsel %vm6112_vm1, %v6037_v25, 0 }
 0x722   : > { %23804 = vst [vmem:[#allocation82_spill] sm:$0xff] %v20852_v35  ;;  %16020 = vmatprep.subr.bf16.mxu1 %v20557_v56  ;;  %16162 = vmatpush1.bf16.msra.mxu0 %v16161_v27  ;;  %v16627_v41 = vadd.f32 %v20776_v7, %v20608_v62  ;;  %v16167_v54 = vpack.c.bf16 %v23759_v42, %v23758_v31  ;;  %v20869_v56 = vand.u32 4294901760, %v6144_v55  ;;  %v6320_v60 = vand.u32 4294901760, %v6319_v50 }
 0x723   : > { %6310 = vmatmul.mubr.f32.gmra.mrb[42].mxu1 %v6309_v5  ;;  %7796 = vmatmul.mubr.f32.gmra.mrb[58].mxu0 %v6309_v5  ;;  %v6330_v36 = vsub.f32 %v20825_v49, %v20852_v35  ;;  %v20874_v12 = vand.u32 4294901760, %v20847_v32  ;;  %v6038_v16 = vmax.f32 %v16628_v17, 0.0  ;;  %v23807_v7 = vpack.c.bf16 %v23748_v34, %v23747_v57  ;;  %v23841_v35 = vld [vmem:[#allocation14_spill] sm:$0xff] }
 0x724   : > { %6315 = vmatprep.mubr.f32.mxu1 %v23701_v10  ;;  %7801 = vmatprep.mubr.f32.mxu0 %v23701_v10  ;;  %23805 = vst [vmem:[#allocation83_spill] sm:$0xff] %v20869_v56  ;;  %v20879_v33 = vand.u32 4294901760, %v6147_v28  ;;  %v6039_v23 = vmax.f32 %v16627_v41, 0.0  ;;  %v20884_v47 = vsub.f32 %v6144_v55, %v20869_v56  ;;  %v20889_v53 = vand.u32 4294901760, %v20860_v45 }
 0x725   : > { %23806 = vst [vmem:[#allocation84_spill] sm:$0xff] %v20874_v12  ;;  %16022 = vmatpush1.bf16.msra.mxu1 %v16021_v52  ;;  %16164 = vmatprep.subr.bf16.mxu0 %v16163_v38  ;;  %v6331_v4 = vand.u32 4294901760, %v6330_v36  ;;  %v6341_v29 = vsub.f32 %v20847_v32, %v20874_v12  ;;  %v6150_v46 = vsel %vm6112_vm1, %v6038_v16, 0  ;;  %v16630_v27 = vadd.f32 %v20608_v62, %v20820_v20  ;;  %v23839_v12 = vld [vmem:[#allocation49_spill] sm:$0xff] }
 0x726   : > { %16166 = vmatpush1.bf16.msra.mxu0 %v16165_v43  ;;  %16024 = vmatprep.subr.bf16.mxu1 %v23807_v7  ;;  %23808 = vst [vmem:[#allocation85_spill] sm:$0xff] %v20879_v33  ;;  %23809 = vst [vmem:[#allocation86_spill] sm:$0xff] %v20889_v53  ;;  %v20895_v61 = vsub.f32 %v6147_v28, %v20879_v33  ;;  %v6153_v30 = vsel %vm6112_vm1, %v6039_v23, 0  ;;  %v16629_v25 = vadd.f32 %v20813_v9, %v20608_v62 }
 0x727   : > { %6321 = vmatmul.mubr.f32.gmra.mrb[44].mxu1 %v6320_v60  ;;  %7807 = vmatmul.mubr.f32.gmra.mrb[60].mxu0 %v6320_v60  ;;  %v20902_v52 = vand.u32 4294901760, %v6150_v46  ;;  %v6342_v38 = vand.u32 4294901760, %v6341_v29  ;;  %v6352_v20 = vsub.f32 %v20860_v45, %v20889_v53  ;;  %v20907_v5 = vand.u32 4294901760, %v20884_v47  ;;  %v23838_v53 = vld [vmem:[#allocation48_spill] sm:$0xff] }
 0x728   : > { %6326 = vmatprep.mubr.f32.mxu1 %v23701_v10  ;;  %7812 = vmatprep.mubr.f32.mxu0 %v23701_v10  ;;  %v6040_v50 = vmax.f32 %v16630_v27, 0.0  ;;  %v20909_v55 = vand.u32 4294901760, %v6153_v30  ;;  %v6041_v17 = vmax.f32 %v16629_v25, 0.0  ;;  %v20919_v28 = vand.u32 4294901760, %v20895_v61 }
 0x729   : > { %16168 = vmatprep.subr.bf16.mxu0 %v16167_v54  ;;  %23810 = vst [vmem:[#allocation87_spill] sm:$0xff] %v20902_v52  ;;  %23811 = vst [vmem:[#allocation88_spill] sm:$0xff] %v20907_v5  ;;  %v20914_v9 = vsub.f32 %v6150_v46, %v20902_v52  ;;  %v6353_v62 = vand.u32 4294901760, %v6352_v20  ;;  %v6363_v43 = vsub.f32 %v20884_v47, %v20907_v5 }
 0x72a   : > { %23812 = vst [vmem:[#allocation89_spill] sm:$0xff] %v20909_v55  ;;  %23813 = vst [vmem:[#allocation90_spill] sm:$0xff] %v20919_v28  ;;  %v6156_v41 = vsel %vm6112_vm1, %v6040_v50, 0  ;;  %v20923_v54 = vsub.f32 %v6153_v30, %v20909_v55  ;;  %v6159_v60 = vsel %vm6112_vm1, %v6041_v17, 0  ;;  %v6374_v7 = vsub.f32 %v20895_v61, %v20919_v28  ;;  %v23834_v28 = vld [vmem:[#allocation37_spill] sm:$0xff] }
 0x72b   : > { %6332 = vmatmul.mubr.f32.gmra.mrb[46].mxu1 %v6331_v4  ;;  %7818 = vmatmul.mubr.f32.gmra.mrb[62].mxu0 %v6331_v4  ;;  %v20928_v36 = vand.u32 4294901760, %v6156_v41  ;;  %v6364_v16 = vand.u32 4294901760, %v6363_v43  ;;  %v20933_v23 = vand.u32 4294901760, %v20914_v9  ;;  %v20935_v4 = vand.u32 4294901760, %v6159_v60 }
 0x72c   : > { %6337 = vmatprep.mubr.f32.mxu1 %v23701_v10  ;;  %7823 = vmatprep.mubr.f32.mxu0 %v23701_v10  ;;  %v6375_v46 = vand.u32 4294901760, %v6374_v7  ;;  %v20945_v30 = vand.u32 4294901760, %v20923_v54  ;;  %v16169_v7 = vpack.c.bf16 %v23761_v0, %v23760_v39 }
 0x72d   : > { %23814 = vst [vmem:[#allocation91_spill] sm:$0xff] %v20928_v36  ;;  %23815 = vst [vmem:[#allocation92_spill] sm:$0xff] %v20933_v23  ;;  %v20940_v29 = vsub.f32 %v6156_v41, %v20928_v36  ;;  %v6385_v27 = vsub.f32 %v20914_v9, %v20933_v23  ;;  %v20950_v25 = vsub.f32 %v6159_v60, %v20935_v4  ;;  %v23833_v23 = vld [vmem:[#allocation47_spill] sm:$0xff] }
 0x72e   : > { %23816 = vst [vmem:[#allocation93_spill] sm:$0xff] %v20935_v4  ;;  %23817 = vst [vmem:[#allocation94_spill] sm:$0xff] %v20945_v30  ;;  %v6396_v20 = vsub.f32 %v20923_v54, %v20945_v30  ;;  %v23832_v30 = vld [vmem:[#allocation46_spill] sm:$0xff] }
 0x72f   : > { %6343 = vmatmul.mubr.f32.gmra.mrb[48].mxu1 %v6342_v38  ;;  %7829 = vmatmul.mubr.f32.gmra.mrb[64].mxu0 %v6342_v38  ;;  %v6386_v38 = vand.u32 4294901760, %v6385_v27  ;;  %v20955_v50 = vand.u32 4294901760, %v20940_v29  ;;  %v20962_v43 = vand.u32 4294901760, %v20950_v25  ;;  %v23821_v27 = vpack.c.bf16 %v23752_v2, %v23751_v1 }
 0x730   : > { %6348 = vmatprep.mubr.f32.mxu1 %v23701_v10  ;;  %7834 = vmatprep.mubr.f32.mxu0 %v23701_v10  ;;  %v6397_v17 = vand.u32 4294901760, %v6396_v20  ;;  %v23822_v20 = vld [vmem:[#allocation44_spill] sm:$0xff] }
 0x731   : > { %23818 = vst [vmem:[#allocation95_spill] sm:$0xff] %v20955_v50  ;;  %23819 = vst [vmem:[#allocation96_spill] sm:$0xff] %v20962_v43  ;;  %v6418_v60 = vsub.f32 %v20950_v25, %v20962_v43  ;;  %v23830_v43 = vld [vmem:[#allocation38_spill] sm:$0xff] }
 0x733   : > { %6354 = vmatmul.mubr.f32.gmra.mrb[50].mxu1 %v6353_v62  ;;  %7840 = vmatmul.mubr.f32.gmra.mrb[66].mxu0 %v6353_v62  ;;  %v6407_v62 = vsub.f32 %v20940_v29, %v20955_v50 }
 0x734   : > { %6359 = vmatprep.mubr.f32.mxu1 %v23701_v10  ;;  %7845 = vmatprep.mubr.f32.mxu0 %v23701_v10 }
 0x735   : > { %v6408_v41 = vand.u32 4294901760, %v6407_v62  ;;  %v23823_v62 = vld [vmem:[#allocation26_spill] sm:$0xff] }
 0x737   : > { %6365 = vmatmul.mubr.f32.gmra.mrb[52].mxu1 %v6364_v16  ;;  %7851 = vmatmul.mubr.f32.gmra.mrb[68].mxu0 %v6364_v16  ;;  %v6419_v16 = vand.u32 4294901760, %v6418_v60  ;;  %v23825_v60 = vld [vmem:[#allocation30_spill] sm:$0xff] }
 0x738   : > { %6370 = vmatprep.mubr.f32.mxu1 %v23701_v10  ;;  %7856 = vmatprep.mubr.f32.mxu0 %v23701_v10 }
 0x73b   : > { %6376 = vmatmul.mubr.f32.gmra.mrb[54].mxu1 %v6375_v46  ;;  %7862 = vmatmul.mubr.f32.gmra.mrb[70].mxu0 %v6375_v46  ;;  %v23820_v46 = vpack.c.bf16 %v23750_v22, %v23749_v14 }
 0x73c   : > { %6381 = vmatprep.mubr.f32.mxu1 %v23701_v10  ;;  %7867 = vmatprep.mubr.f32.mxu0 %v23701_v10 }
 0x73f   : > { %6387 = vmatmul.mubr.f32.gmra.mrb[56].mxu1 %v6386_v38  ;;  %7873 = vmatmul.mubr.f32.gmra.mrb[72].mxu0 %v6386_v38  ;;  %v16171_v38 = vpack.c.bf16 %v20041_v24, %v20037_v37 }
 0x740   : > { %6392 = vmatprep.mubr.f32.mxu1 %v23701_v10  ;;  %7878 = vmatprep.mubr.f32.mxu0 %v23701_v10 }
 0x743   : > { %6398 = vmatmul.mubr.f32.gmra.mrb[58].mxu1 %v6397_v17  ;;  %7884 = vmatmul.mubr.f32.gmra.mrb[74].mxu0 %v6397_v17  ;;  %v16173_v17 = vpack.c.bf16 %v23822_v20, %v20045_v63 }
 0x744   : > { %6403 = vmatprep.mubr.f32.mxu1 %v23701_v10  ;;  %7889 = vmatprep.mubr.f32.mxu0 %v23701_v10 }
 0x747   : > { %6409 = vmatmul.mubr.f32.gmra.mrb[60].mxu1 %v6408_v41  ;;  %7895 = vmatmul.mubr.f32.gmra.mrb[76].mxu0 %v6408_v41  ;;  %v23824_v41 = vld [vmem:[#allocation31_spill] sm:$0xff] }
 0x748   : > { %6414 = vmatprep.mubr.f32.mxu1 %v23701_v10  ;;  %7900 = vmatprep.mubr.f32.mxu0 %v23701_v10 }
 0x74b   : > { %6420 = vmatmul.mubr.f32.gmra.mrb[62].mxu1 %v6419_v16  ;;  %7906 = vmatmul.mubr.f32.gmra.mrb[78].mxu0 %v6419_v16  ;;  %v23826_v16 = vpack.c.bf16 %v23824_v41, %v23825_v60 }
 0x74c   : > { %6610 = vmatprep.mubr.f32.mxu1 %v23701_v10  ;;  %8096 = vmatprep.mubr.f32.mxu0 %v23701_v10 }
 0x74f   : > { %6612 = vmatmul.mubr.f32.vlgmr.msra.gmra.mrb[32].mxu1 %v20646_v44  ;;  %8098 = vmatmul.mubr.f32.vlgmr.msra.gmra.mrb[48].mxu0 %v20646_v44 }
 0x750   : > { %16026 = vmatpush1.bf16.msra.mxu1 %v23820_v46  ;;  %6617 = vmatprep.mubr.f32.mxu1 %v23701_v10  ;;  %v23827_v46 = vld [vmem:[#allocation23_spill] sm:$0xff] }
 0x751   : > { %8103 = vmatprep.mubr.f32.mxu0 %v23701_v10  ;;  %16028 = vmatprep.subr.bf16.mxu1 %v23821_v27  ;;  %v23828_v27 = vld [vmem:[#allocation45_spill] sm:$0xff] }
 0x752   : > { %16170 = vmatpush1.bf16.msra.mxu0 %v16169_v7  ;;  %v16175_v44 = vpack.c.bf16 %v23828_v27, %v23827_v46  ;;  %v23829_v7 = vld [vmem:[#allocation39_spill] sm:$0xff] }
 0x753   : > { %6619 = vmatmul.mubr.f32.gmra.mrb[34].mxu1 %v23823_v62  ;;  %8105 = vmatmul.mubr.f32.gmra.mrb[50].mxu0 %v23823_v62  ;;  %v23831_v50 = vpack.c.bf16 %v23829_v7, %v23830_v43  ;;  %v16177_v62 = vpack.c.bf16 %v23833_v23, %v23832_v30  ;;  %v23844_v23 = vld [vmem:[#allocation53_spill] sm:$0xff]  ;;  %v23845_v30 = vld [vmem:[#allocation32_spill] sm:$0xff] }
 0x754   : > { %6624 = vmatprep.mubr.f32.mxu1 %v23701_v10  ;;  %8110 = vmatprep.mubr.f32.mxu0 %v23701_v10 }
 0x755   : > { %16030 = vmatpush1.bf16.msra.mxu1 %v23826_v16  ;;  %16172 = vmatprep.subr.bf16.mxu0 %v16171_v38  ;;  %v23835_v38 = vld [vmem:[#allocation41_spill] sm:$0xff]  ;;  %v23836_v16 = vld [vmem:[#allocation40_spill] sm:$0xff] }
 0x756   : > { %16032 = vmatprep.subr.bf16.mxu1 %v23831_v50  ;;  %16174 = vmatpush1.bf16.msra.mxu0 %v16173_v17  ;;  %v23837_v5 = vpack.c.bf16 %v23835_v38, %v23836_v16  ;;  %v16179_v50 = vpack.c.bf16 %v23839_v12, %v23838_v53  ;;  %v23840_v17 = vld [vmem:[#allocation15_spill] sm:$0xff]  ;;  %v23850_v12 = vld [vmem:[#allocation50_spill] sm:$0xff] }
 0x757   : > { %6626 = vmatmul.mubr.f32.gmra.mrb[36].mxu1 %v23834_v28  ;;  %8112 = vmatmul.mubr.f32.gmra.mrb[52].mxu0 %v23834_v28  ;;  %v23842_v48 = vpack.c.bf16 %v23840_v17, %v23841_v35  ;;  %v16181_v28 = vpack.c.bf16 %v23844_v23, %v23843_v40 }
 0x758   : > { %6631 = vmatprep.mubr.f32.mxu1 %v23701_v10  ;;  %8117 = vmatprep.mubr.f32.mxu0 %v23701_v10 }
 0x759   : > { %16034 = vmatpush1.bf16.msra.mxu1 %v23837_v5  ;;  %16176 = vmatprep.subr.bf16.mxu0 %v16175_v44  ;;  %v23846_v44 = vld [vmem:[#allocation22_spill] sm:$0xff]  ;;  %v23847_v5 = vld [vmem:[#allocation21_spill] sm:$0xff] }
 0x75a   : > { %16036 = vmatprep.subr.bf16.mxu1 %v23842_v48  ;;  %16178 = vmatpush1.bf16.msra.mxu0 %v16177_v62  ;;  %v23848_v27 = vpack.c.bf16 %v23846_v44, %v23847_v5  ;;  %v16183_v48 = vpack.c.bf16 %v20413_v6, %v20411_v11  ;;  %v23849_v62 = vld [vmem:[#allocation51_spill] sm:$0xff]  ;;  %v23855_v6 = vld [vmem:[#allocation65_spill] sm:$0xff]  ;;  %v23856_v11 = vld [vmem:[#allocation66_spill] sm:$0xff] }
 0x75b   : > { %6633 = vmatmul.mubr.f32.gmra.mrb[38].mxu1 %v23845_v30  ;;  %8119 = vmatmul.mubr.f32.gmra.mrb[54].mxu0 %v23845_v30  ;;  %v23851_v53 = vpack.c.bf16 %v23849_v62, %v23850_v12  ;;  %v16185_v30 = vpack.c.bf16 %v20417_v58, %v20415_v18  ;;  %v16045_v40 = vpack.c.bf16 %v23856_v11, %v23855_v6  ;;  %v23859_v58 = vld [vmem:[#allocation63_spill] sm:$0xff]  ;;  %v23860_v18 = vld [vmem:[#allocation62_spill] sm:$0xff] }
 0x75c   : > { %6638 = vmatprep.mubr.f32.mxu1 %v23701_v10  ;;  %8124 = vmatprep.mubr.f32.mxu0 %v23701_v10  ;;  %v23861_v12 = vpack.c.bf16 %v23859_v58, %v23860_v18  ;;  %v23862_v44 = vld [vmem:[#allocation75_spill] sm:$0xff] }
 0x75d   : > { %16038 = vmatpush1.bf16.msra.mxu1 %v23848_v27  ;;  %16180 = vmatprep.subr.bf16.mxu0 %v16179_v50  ;;  %v23852_v27 = vld [vmem:[#allocation55_spill] sm:$0xff]  ;;  %v23853_v50 = vld [vmem:[#allocation54_spill] sm:$0xff] }
 0x75e   : > { %16040 = vmatprep.subr.bf16.mxu1 %v23851_v53  ;;  %16182 = vmatpush1.bf16.msra.mxu0 %v16181_v28  ;;  %v23854_v23 = vpack.c.bf16 %v23852_v27, %v23853_v50  ;;  %v23857_v53 = vld [vmem:[#allocation67_spill] sm:$0xff]  ;;  %v23858_v28 = vld [vmem:[#allocation68_spill] sm:$0xff] }
 0x75f   : > { %6640 = vmatmul.mubr.f32.gmra.mrb[40].mxu1 %v20700_v21  ;;  %8126 = vmatmul.mubr.f32.gmra.mrb[56].mxu0 %v20700_v21  ;;  %v16187_v62 = vpack.c.bf16 %v23858_v28, %v23857_v53  ;;  %v16189_v21 = vpack.c.bf16 %v23793_v15, %v20438_v59 }
 0x760   : > { %6645 = vmatprep.mubr.f32.mxu1 %v23701_v10  ;;  %8131 = vmatprep.mubr.f32.mxu0 %v23701_v10 }
 0x761   : > { %16042 = vmatpush1.bf16.msra.mxu1 %v23854_v23  ;;  %16184 = vmatprep.subr.bf16.mxu0 %v16183_v48  ;;  %v23863_v23 = vld [vmem:[#allocation2_spill] sm:$0xff]  ;;  %v23868_v48 = vld [vmem:[#allocation35_spill] sm:$0xff] }
 0x762   : > { %16044 = vmatprep.subr.bf16.mxu1 %v23861_v12  ;;  %16186 = vmatpush1.bf16.msra.mxu0 %v16185_v30  ;;  %v23864_v12 = vld [vmem:[#allocation33_spill] sm:$0xff]  ;;  %v23867_v30 = vld [vmem:[#allocation4_spill] sm:$0xff] }
 0x763   : > { %6647 = vmatmul.mubr.f32.gmra.mrb[42].mxu1 %v23862_v44  ;;  %8133 = vmatmul.mubr.f32.gmra.mrb[58].mxu0 %v23862_v44  ;;  %v23883_v44 = vld [vmem:[#allocation13_spill] sm:$0xff] }
 0x764   : > { %6652 = vmatprep.mubr.f32.mxu1 %v23701_v10  ;;  %8138 = vmatprep.mubr.f32.mxu0 %v23701_v10 }
 0x765   : > { %16046 = vmatpush1.bf16.msra.mxu1 %v16045_v40  ;;  %16188 = vmatprep.subr.bf16.mxu0 %v16187_v62  ;;  %v23866_v40 = vld [vmem:[#allocation3_spill] sm:$0xff]  ;;  %v23869_v62 = vld [vmem:[#allocation28_spill] sm:$0xff] }
 0x766   : > { %16190 = vmatpush1.bf16.msra.mxu0 %v16189_v21  ;;  %16048 = vmatprep.subr.bf16.mxu1 %v23863_v23  ;;  %v23865_v21 = vld [vmem:[#allocation29_spill] sm:$0xff] }
 0x767   : > { %6654 = vmatmul.mubr.f32.gmra.mrb[44].mxu1 %v20767_v8  ;;  %8140 = vmatmul.mubr.f32.gmra.mrb[60].mxu0 %v20767_v8  ;;  %v23882_v8 = vld [vmem:[#allocation18_spill] sm:$0xff] }
 0x768   : > { %6659 = vmatprep.mubr.f32.mxu1 %v23701_v10  ;;  %8145 = vmatprep.mubr.f32.mxu0 %v23701_v10 }
 0x769   : > { %16192 = vmatprep.subr.bf16.mxu0 %v23864_v12 }
 0x76b   : > { %6661 = vmatmul.mubr.f32.gmra.mrb[46].mxu1 %v20791_v51  ;;  %8147 = vmatmul.mubr.f32.gmra.mrb[62].mxu0 %v20791_v51  ;;  %v23881_v51 = vld [vmem:[#allocation12_spill] sm:$0xff] }
 0x76c   : > { %6666 = vmatprep.mubr.f32.mxu1 %v23701_v10  ;;  %8152 = vmatprep.mubr.f32.mxu0 %v23701_v10 }
 0x76f   : > { %6668 = vmatmul.mubr.f32.gmra.mrb[48].mxu1 %v20832_v3  ;;  %8154 = vmatmul.mubr.f32.gmra.mrb[64].mxu0 %v20832_v3  ;;  %v23879_v3 = vld [vmem:[#allocation71_spill] sm:$0xff] }
 0x770   : > { %6673 = vmatprep.mubr.f32.mxu1 %v23701_v10  ;;  %8159 = vmatprep.mubr.f32.mxu0 %v23701_v10 }
 0x773   : > { %6675 = vmatmul.mubr.f32.gmra.mrb[50].mxu1 %v20842_v19  ;;  %8161 = vmatmul.mubr.f32.gmra.mrb[66].mxu0 %v20842_v19  ;;  %v23878_v19 = vld [vmem:[#allocation9_spill] sm:$0xff] }
 0x774   : > { %6680 = vmatprep.mubr.f32.mxu1 %v23701_v10  ;;  %8166 = vmatprep.mubr.f32.mxu0 %v23701_v10 }
 0x777   : > { %6682 = vmatmul.mubr.f32.gmra.mrb[52].mxu1 %v20869_v56  ;;  %8168 = vmatmul.mubr.f32.gmra.mrb[68].mxu0 %v20869_v56  ;;  %v23877_v56 = vld [vmem:[#allocation10_spill] sm:$0xff] }
 0x778   : > { %6687 = vmatprep.mubr.f32.mxu1 %v23701_v10  ;;  %8173 = vmatprep.mubr.f32.mxu0 %v23701_v10 }
 0x77b   : > { %6689 = vmatmul.mubr.f32.gmra.mrb[54].mxu1 %v20879_v33  ;;  %8175 = vmatmul.mubr.f32.gmra.mrb[70].mxu0 %v20879_v33  ;;  %v23876_v33 = vld [vmem:[#allocation8_spill] sm:$0xff] }
 0x77c   : > { %6694 = vmatprep.mubr.f32.mxu1 %v23701_v10  ;;  %8180 = vmatprep.mubr.f32.mxu0 %v23701_v10 }
 0x77f   : > { %6696 = vmatmul.mubr.f32.gmra.mrb[56].mxu1 %v20902_v52  ;;  %8182 = vmatmul.mubr.f32.gmra.mrb[72].mxu0 %v20902_v52  ;;  %v23874_v52 = vld [vmem:[#allocation72_spill] sm:$0xff] }
 0x780   : > { %6701 = vmatprep.mubr.f32.mxu1 %v23701_v10  ;;  %8187 = vmatprep.mubr.f32.mxu0 %v23701_v10 }
 0x783   : > { %6703 = vmatmul.mubr.f32.gmra.mrb[58].mxu1 %v20909_v55  ;;  %8189 = vmatmul.mubr.f32.gmra.mrb[74].mxu0 %v20909_v55  ;;  %v23873_v55 = vld [vmem:[#allocation43_spill] sm:$0xff] }
 0x784   : > { %6708 = vmatprep.mubr.f32.mxu1 %v23701_v10  ;;  %8194 = vmatprep.mubr.f32.mxu0 %v23701_v10 }
 0x787   : > { %6710 = vmatmul.mubr.f32.gmra.mrb[60].mxu1 %v20928_v36  ;;  %8196 = vmatmul.mubr.f32.gmra.mrb[76].mxu0 %v20928_v36  ;;  %v23872_v36 = vld [vmem:[#allocation6_spill] sm:$0xff] }
 0x788   : > { %6715 = vmatprep.mubr.f32.mxu1 %v23701_v10  ;;  %8201 = vmatprep.mubr.f32.mxu0 %v23701_v10 }
 0x78b   : > { %6717 = vmatmul.mubr.f32.gmra.mrb[62].mxu1 %v20935_v4  ;;  %8203 = vmatmul.mubr.f32.gmra.mrb[78].mxu0 %v20935_v4  ;;  %v23870_v4 = vld [vmem:[#allocation5_spill] sm:$0xff] }
 0x78c   : > { %6835 = vmatprep.mubr.f32.mxu1 %v23701_v10  ;;  %8321 = vmatprep.mubr.f32.mxu0 %v23701_v10 }
 0x78f   : > { %6838 = vmatmul.mubr.f32.vlgmr.msra.gmra.mrb[32].mxu1 %v23865_v21  ;;  %8324 = vmatmul.mubr.f32.vlgmr.msra.gmra.mrb[48].mxu0 %v23865_v21  ;;  %v23871_v21 = vld [vmem:[#allocation42_spill] sm:$0xff] }
 0x790   : > { %16050 = vmatpush1.bf16.msra.mxu1 %v23866_v40  ;;  %6843 = vmatprep.mubr.f32.mxu1 %v23701_v10 }
 0x791   : > { %8329 = vmatprep.mubr.f32.mxu0 %v23701_v10  ;;  %16052 = vmatprep.subr.bf16.mxu1 %v23867_v30 }
 0x792   : > { %16194 = vmatpush1.bf16.msra.mxu0 %v23868_v48 }
 0x793   : > { %6846 = vmatmul.mubr.f32.gmra.mrb[34].mxu1 %v23869_v62  ;;  %8332 = vmatmul.mubr.f32.gmra.mrb[50].mxu0 %v23869_v62  ;;  %v23875_v62 = vld [vmem:[#allocation7_spill] sm:$0xff] }
 0x794   : > { %6851 = vmatprep.mubr.f32.mxu1 %v23701_v10  ;;  %8337 = vmatprep.mubr.f32.mxu0 %v23701_v10 }
 0x795   : > { %16054 = vmatpush1.bf16.msra.mxu1 %v23870_v4  ;;  %16196 = vmatprep.subr.bf16.mxu0 %v23871_v21 }
 0x796   : > { %16056 = vmatprep.subr.bf16.mxu1 %v23872_v36  ;;  %16198 = vmatpush1.bf16.msra.mxu0 %v23873_v55 }
 0x797   : > { %6854 = vmatmul.mubr.f32.gmra.mrb[36].mxu1 %v23874_v52  ;;  %8340 = vmatmul.mubr.f32.gmra.mrb[52].mxu0 %v23874_v52  ;;  %v23880_v52 = vld [vmem:[#allocation11_spill] sm:$0xff] }
 0x798   : > { %6859 = vmatprep.mubr.f32.mxu1 %v23701_v10  ;;  %8345 = vmatprep.mubr.f32.mxu0 %v23701_v10 }
 0x799   : > { %16058 = vmatpush1.bf16.msra.mxu1 %v23875_v62  ;;  %16200 = vmatprep.subr.bf16.mxu0 %v23876_v33  ;;  %v23884_v33 = vld [vmem:[#allocation76_spill] sm:$0xff] }
 0x79a   : > { %16060 = vmatprep.subr.bf16.mxu1 %v23877_v56  ;;  %16202 = vmatpush1.bf16.msra.mxu0 %v23878_v19  ;;  %v23886_v19 = vld [vmem:[#allocation19_spill] sm:$0xff]  ;;  %v23887_v56 = vld [vmem:[#allocation56_spill] sm:$0xff] }
 0x79b   : > { %6862 = vmatmul.mubr.f32.gmra.mrb[38].mxu1 %v23879_v3  ;;  %8348 = vmatmul.mubr.f32.gmra.mrb[54].mxu0 %v23879_v3  ;;  %v23885_v3 = vld [vmem:[#allocation17_spill] sm:$0xff] }
 0x79c   : > { %6867 = vmatprep.mubr.f32.mxu1 %v23701_v10  ;;  %8353 = vmatprep.mubr.f32.mxu0 %v23701_v10 }
 0x79d   : > { %16062 = vmatpush1.bf16.msra.mxu1 %v23880_v52  ;;  %16204 = vmatprep.subr.bf16.mxu0 %v23881_v51  ;;  %v23888_v52 = vld [vmem:[#allocation20_spill] sm:$0xff] }
 0x79e   : > { %16064 = vmatprep.subr.bf16.mxu1 %v23882_v8  ;;  %16206 = vmatpush1.bf16.msra.mxu0 %v23883_v44  ;;  %v23889_v8 = vand.u32 4294901760, %v23747_v57  ;;  %v23890_v44 = vand.u32 4294901760, %v23748_v34  ;;  %v23896_v34 = vand.u32 4294901760, %v23749_v14  ;;  %v23903_v14 = vand.u32 4294901760, %v23825_v60 }
 0x79f   : > { %6870 = vmatmul.mubr.f32.gmra.mrb[40].mxu1 %v23884_v33  ;;  %8356 = vmatmul.mubr.f32.gmra.mrb[56].mxu0 %v23884_v33  ;;  %v23891_v33 = vld [vmem:[#allocation57_spill] sm:$0xff] }
 0x7a0   : > { %6875 = vmatprep.mubr.f32.mxu1 %v23701_v10  ;;  %8361 = vmatprep.mubr.f32.mxu0 %v23701_v10  ;;  %v16071_v51 = vpack.c.bf16 %v23890_v44, %v23889_v8  ;;  %v23898_v8 = vand.u32 4294901760, %v23751_v1  ;;  %v23918_v44 = vand.u32 4294901760, %v23840_v17 }
 0x7a1   : > { %16066 = vmatpush1.bf16.msra.mxu1 %v23885_v3  ;;  %16208 = vmatprep.subr.bf16.mxu0 %v23886_v19  ;;  %v23892_v19 = vld [vmem:[#allocation64_spill] sm:$0xff]  ;;  %v23895_v3 = vld [vmem:[#allocation69_spill] sm:$0xff] }
 0x7a2   : > { %16068 = vmatprep.subr.bf16.mxu1 %v23887_v56  ;;  %16210 = vmatpush1.bf16.msra.mxu0 %v23888_v52  ;;  %v23893_v56 = vand.u32 4294901760, %v23758_v31  ;;  %v23894_v52 = vand.u32 4294901760, %v23759_v42  ;;  %v23897_v31 = vand.u32 4294901760, %v23750_v22  ;;  %v23904_v22 = vand.u32 4294901760, %v23824_v41  ;;  %v23915_v41 = vld [vmem:[#allocation45_spill] sm:$0xff] }
 0x7a3   : > { %6878 = vmatmul.mubr.f32.gmra.mrb[42].mxu1 %v20760_v13  ;;  %8364 = vmatmul.mubr.f32.gmra.mrb[58].mxu0 %v20760_v13  ;;  %v23899_v13 = vand.u32 4294901760, %v23752_v2  ;;  %v23905_v2 = vand.u32 4294901760, %v20037_v37  ;;  %v23912_v37 = vand.u32 4294901760, %v23836_v16 }
 0x7a4   : > { %6883 = vmatprep.mubr.f32.mxu1 %v23701_v10  ;;  %8369 = vmatprep.mubr.f32.mxu0 %v23701_v10  ;;  %v16215_v57 = vpack.c.bf16 %v23894_v52, %v23893_v56  ;;  %v16073_v42 = vpack.c.bf16 %v23897_v31, %v23896_v34  ;;  %v16077_v1 = vpack.c.bf16 %v23904_v22, %v23903_v14  ;;  %v23907_v56 = vand.u32 4294901760, %v23830_v43  ;;  %v23921_v31 = vld [vmem:[#allocation47_spill] sm:$0xff] }
 0x7a5   : > { %16070 = vmatpush1.bf16.msra.mxu1 %v23891_v33  ;;  %16212 = vmatprep.subr.bf16.mxu0 %v23892_v19  ;;  %v23922_v16 = vand.u32 4294901760, %v23921_v31  ;;  %v23933_v22 = vld [vmem:[#allocation51_spill] sm:$0xff]  ;;  %v23955_v31 = vand.u32 4294901760, %v23857_v53  ;;  %v23964_v53 = vld [vmem:[#allocation88_spill] sm:$0xff] }
 0x7a6   : > { %16214 = vmatpush1.bf16.msra.mxu0 %v23895_v3  ;;  %16072 = vmatprep.subr.bf16.mxu1 %v16071_v51  ;;  %v23900_v51 = vand.u32 4294901760, %v23760_v39 }
 0x7a7   : > { %6886 = vmatmul.mubr.f32.gmra.mrb[44].mxu1 %v20802_v26  ;;  %8372 = vmatmul.mubr.f32.gmra.mrb[60].mxu0 %v20802_v26  ;;  %v23901_v26 = vand.u32 4294901760, %v23761_v0  ;;  %v23906_v0 = vand.u32 4294901760, %v20041_v24  ;;  %v23913_v24 = vand.u32 4294901760, %v23835_v38  ;;  %v23923_v38 = vld [vmem:[#allocation74_spill] sm:$0xff] }
 0x7a8   : > { %6891 = vmatprep.mubr.f32.mxu1 %v23701_v10  ;;  %8377 = vmatprep.mubr.f32.mxu0 %v23701_v10 }
 0x7a9   : > { %16216 = vmatprep.subr.bf16.mxu0 %v16215_v57  ;;  %v16219_v39 = vpack.c.bf16 %v23906_v0, %v23905_v2  ;;  %v16081_v43 = vpack.c.bf16 %v23913_v24, %v23912_v37  ;;  %v23919_v57 = vld [vmem:[#allocation46_spill] sm:$0xff]  ;;  %v23935_v0 = vld [vmem:[#allocation52_spill] sm:$0xff]  ;;  %v23944_v24 = vld [vmem:[#allocation59_spill] sm:$0xff] }
 0x7aa   : > { %v23920_v34 = vand.u32 4294901760, %v23919_v57 }
 0x7ab   : > { %6894 = vmatmul.mubr.f32.gmra.mrb[46].mxu1 %v20825_v49  ;;  %8380 = vmatmul.mubr.f32.gmra.mrb[62].mxu0 %v20825_v49  ;;  %v16075_v49 = vpack.c.bf16 %v23899_v13, %v23898_v8  ;;  %v23927_v13 = vld [vmem:[#allocation48_spill] sm:$0xff] }
 0x7ac   : > { %6899 = vmatprep.mubr.f32.mxu1 %v23701_v10  ;;  %8385 = vmatprep.mubr.f32.mxu0 %v23701_v10 }
 0x7af   : > { %6902 = vmatmul.mubr.f32.gmra.mrb[48].mxu1 %v20847_v32  ;;  %8388 = vmatmul.mubr.f32.gmra.mrb[64].mxu0 %v20847_v32  ;;  %v16217_v32 = vpack.c.bf16 %v23901_v26, %v23900_v51  ;;  %v23929_v51 = vld [vmem:[#allocation49_spill] sm:$0xff] }
 0x7b0   : > { %6907 = vmatprep.mubr.f32.mxu1 %v23701_v10  ;;  %8393 = vmatprep.mubr.f32.mxu0 %v23701_v10  ;;  %v23930_v26 = vand.u32 4294901760, %v23929_v51  ;;  %v23971_v51 = vld [vmem:[#allocation26_spill] sm:$0xff] }
 0x7b3   : > { %6910 = vmatmul.mubr.f32.gmra.mrb[50].mxu1 %v20860_v45  ;;  %8396 = vmatmul.mubr.f32.gmra.mrb[66].mxu0 %v20860_v45  ;;  %v23902_v45 = vld [vmem:[#allocation36_spill] sm:$0xff] }
 0x7b4   : > { %6915 = vmatprep.mubr.f32.mxu1 %v23701_v10  ;;  %8401 = vmatprep.mubr.f32.mxu0 %v23701_v10 }
 0x7b7   : > { %6918 = vmatmul.mubr.f32.gmra.mrb[52].mxu1 %v20884_v47  ;;  %8404 = vmatmul.mubr.f32.gmra.mrb[68].mxu0 %v20884_v47  ;;  %v23908_v47 = vand.u32 4294901760, %v23829_v7  ;;  %v23917_v7 = vand.u32 4294901760, %v23841_v35  ;;  %v23924_v35 = vand.u32 4294901760, %v23847_v5 }
 0x7b8   : > { %6923 = vmatprep.mubr.f32.mxu1 %v23701_v10  ;;  %8409 = vmatprep.mubr.f32.mxu0 %v23701_v10 }
 0x7b9   : > { %v16083_v52 = vpack.c.bf16 %v23918_v44, %v23917_v7  ;;  %v23948_v7 = vld [vmem:[#allocation60_spill] sm:$0xff] }
 0x7ba   : > { %v23949_v44 = vand.u32 4294901760, %v23948_v7  ;;  %v9394_v7 = vld [vmem:[%s23149_s14 + $0x28] sm:$0xff] }
 0x7bb   : > { %6926 = vmatmul.mubr.f32.gmra.mrb[54].mxu1 %v20895_v61  ;;  %8412 = vmatmul.mubr.f32.gmra.mrb[70].mxu0 %v20895_v61  ;;  %v16079_v61 = vpack.c.bf16 %v23908_v47, %v23907_v56  ;;  %v23937_v56 = vld [vmem:[#allocation53_spill] sm:$0xff] }
 0x7bc   : > { %6931 = vmatprep.mubr.f32.mxu1 %v23701_v10  ;;  %8417 = vmatprep.mubr.f32.mxu0 %v23701_v10  ;;  %v23938_v5 = vand.u32 4294901760, %v23937_v56  ;;  %v23992_v56 = vld [vmem:[#allocation85_spill] sm:$0xff] }
 0x7bf   : > { %6934 = vmatmul.mubr.f32.gmra.mrb[56].mxu1 %v20914_v9  ;;  %8420 = vmatmul.mubr.f32.gmra.mrb[72].mxu0 %v20914_v9  ;;  %v23909_v9 = vand.u32 4294901760, %v20045_v63  ;;  %v23914_v63 = vand.u32 4294901760, %v23827_v46  ;;  %v23925_v46 = vld [vmem:[#allocation22_spill] sm:$0xff] }
 0x7c0   : > { %6939 = vmatprep.mubr.f32.mxu1 %v23701_v10  ;;  %8425 = vmatprep.mubr.f32.mxu0 %v23701_v10  ;;  %v23926_v17 = vand.u32 4294901760, %v23925_v46 }
 0x7c2   : > { %v16085_v8 = vpack.c.bf16 %v23926_v17, %v23924_v35  ;;  %v23958_v35 = vand.u32 4294901760, %v23793_v15  ;;  %v23959_v17 = vld [vmem:[#allocation70_spill] sm:$0xff] }
 0x7c3   : > { %6942 = vmatmul.mubr.f32.gmra.mrb[58].mxu1 %v20923_v54  ;;  %8428 = vmatmul.mubr.f32.gmra.mrb[74].mxu0 %v20923_v54  ;;  %v23910_v54 = vand.u32 4294901760, %v23822_v20  ;;  %v23916_v20 = vand.u32 4294901760, %v23915_v41  ;;  %v23946_v41 = vand.u32 4294901760, %v23860_v18  ;;  %v23953_v18 = vand.u32 4294901760, %v23855_v6  ;;  %v23961_v6 = vld [vmem:[#allocation82_spill] sm:$0xff] }
 0x7c4   : > { %6947 = vmatprep.mubr.f32.mxu1 %v23701_v10  ;;  %8433 = vmatprep.mubr.f32.mxu0 %v23701_v10  ;;  %v23963_v15 = vld [vmem:[#allocation86_spill] sm:$0xff] }
 0x7c5   : > { %v16223_v60 = vpack.c.bf16 %v23916_v20, %v23914_v63  ;;  %v23947_v20 = vand.u32 4294901760, %v23859_v58  ;;  %v23954_v58 = vand.u32 4294901760, %v23856_v11  ;;  %v23960_v11 = vld [vmem:[#allocation80_spill] sm:$0xff] }
 0x7c7   : > { %6950 = vmatmul.mubr.f32.gmra.mrb[60].mxu1 %v20940_v29  ;;  %8436 = vmatmul.mubr.f32.gmra.mrb[76].mxu0 %v20940_v29  ;;  %v16221_v29 = vpack.c.bf16 %v23910_v54, %v23909_v9  ;;  %v23940_v9 = vand.u32 4294901760, %v23853_v50  ;;  %v23941_v54 = vand.u32 4294901760, %v23852_v27  ;;  %v23952_v27 = vld [vmem:[#allocation79_spill] sm:$0xff] }
 0x7c8   : > { %6955 = vmatprep.mubr.f32.mxu1 %v23701_v10  ;;  %8441 = vmatprep.mubr.f32.mxu0 %v23701_v10 }
 0x7cb   : > { %6958 = vmatmul.mubr.f32.gmra.mrb[62].mxu1 %v20950_v25  ;;  %8444 = vmatmul.mubr.f32.gmra.mrb[78].mxu0 %v20950_v25  ;;  %v23911_v25 = vld [vmem:[#allocation34_spill] sm:$0xff] }
 0x7cc   : > { %7052 = vmatprep.mubr.f32.mxu1 %v23701_v10  ;;  %8538 = vmatprep.mubr.f32.mxu0 %v23701_v10 }
 0x7cf   : > { %7056 = vmatmul.mubr.f32.vlgmr.msra.gmra.mrb[32].mxu1 %v23902_v45  ;;  %8542 = vmatmul.mubr.f32.vlgmr.msra.gmra.mrb[48].mxu0 %v23902_v45  ;;  %v23931_v45 = vld [vmem:[#allocation50_spill] sm:$0xff] }
 0x7d0   : > { %16074 = vmatpush1.bf16.msra.mxu1 %v16073_v42  ;;  %7061 = vmatprep.mubr.f32.mxu1 %v23701_v10  ;;  %v16225_v42 = vpack.c.bf16 %v23922_v16, %v23920_v34  ;;  %v23932_v14 = vand.u32 4294901760, %v23931_v45  ;;  %v16093_v34 = vpack.c.bf16 %v23954_v58, %v23953_v18  ;;  %v23956_v16 = vand.u32 4294901760, %v23858_v28  ;;  %v23965_v28 = vld [vmem:[#allocation90_spill] sm:$0xff]  ;;  %v23982_v45 = vld [vmem:[#allocation17_spill] sm:$0xff] }
 0x7d1   : > { %8547 = vmatprep.mubr.f32.mxu0 %v23701_v10  ;;  %16076 = vmatprep.subr.bf16.mxu1 %v16075_v49  ;;  %v23928_v49 = vand.u32 4294901760, %v23927_v13  ;;  %v23969_v13 = vld [vmem:[#allocation96_spill] sm:$0xff] }
 0x7d2   : > { %16218 = vmatpush1.bf16.msra.mxu0 %v16217_v32 }
 0x7d3   : > { %7065 = vmatmul.mubr.f32.gmra.mrb[34].mxu1 %v23911_v25  ;;  %8551 = vmatmul.mubr.f32.gmra.mrb[50].mxu0 %v23911_v25  ;;  %v16227_v32 = vpack.c.bf16 %v23930_v26, %v23928_v49  ;;  %v23942_v25 = vld [vmem:[#allocation58_spill] sm:$0xff]  ;;  %v23970_v49 = vld [vmem:[#allocation27_spill] sm:$0xff] }
 0x7d4   : > { %7070 = vmatprep.mubr.f32.mxu1 %v23701_v10  ;;  %8556 = vmatprep.mubr.f32.mxu0 %v23701_v10  ;;  %v23943_v37 = vand.u32 4294901760, %v23942_v25  ;;  %v23979_v26 = vld [vmem:[#allocation18_spill] sm:$0xff] }
 0x7d5   : > { %16078 = vmatpush1.bf16.msra.mxu1 %v16077_v1  ;;  %16220 = vmatprep.subr.bf16.mxu0 %v16219_v39  ;;  %v23934_v1 = vand.u32 4294901760, %v23933_v22  ;;  %v23936_v39 = vand.u32 4294901760, %v23935_v0  ;;  %v23984_v22 = vld [vmem:[#allocation56_spill] sm:$0xff]  ;;  %v23987_v0 = vld [vmem:[#allocation78_spill] sm:$0xff] }
 0x7d6   : > { %16080 = vmatprep.subr.bf16.mxu1 %v16079_v61  ;;  %16222 = vmatpush1.bf16.msra.mxu0 %v16221_v29  ;;  %v23939_v61 = vld [vmem:[#allocation77_spill] sm:$0xff]  ;;  %v16089_v29 = vpack.c.bf16 %v23941_v54, %v23940_v9  ;;  %v9389_v54 = vld [vmem:[%s23149_s14] sm:$0xff] }
 0x7d7   : > { %7074 = vmatmul.mubr.f32.gmra.mrb[36].mxu1 %v23923_v38  ;;  %8560 = vmatmul.mubr.f32.gmra.mrb[52].mxu0 %v23923_v38  ;;  %v16087_v2 = vpack.c.bf16 %v23934_v1, %v23932_v14  ;;  %v16229_v47 = vpack.c.bf16 %v23938_v5, %v23936_v39  ;;  %v23957_v38 = vand.u32 4294901760, %v20438_v59  ;;  %v23962_v59 = vld [vmem:[#allocation84_spill] sm:$0xff]  ;;  %v23983_v14 = vld [vmem:[#allocation19_spill] sm:$0xff]  ;;  %v23996_v9 = vld [vmem:[#allocation93_spill] sm:$0xff]  ;;  %v9413_v25 = vand.u32 4294901760, %v9389_v54 }
 0x7d8   : > { %7079 = vmatprep.mubr.f32.mxu1 %v23701_v10  ;;  %8565 = vmatprep.mubr.f32.mxu0 %v23701_v10  ;;  %v23985_v1 = vld [vmem:[#allocation20_spill] sm:$0xff]  ;;  %v23993_v5 = vld [vmem:[#allocation87_spill] sm:$0xff] }
 0x7d9   : > { %16082 = vmatpush1.bf16.msra.mxu1 %v16081_v43  ;;  %16224 = vmatprep.subr.bf16.mxu0 %v16223_v60  ;;  %v23945_v43 = vand.u32 4294901760, %v23944_v24  ;;  %v16091_v60 = vpack.c.bf16 %v23947_v20, %v23946_v41  ;;  %v16237_v46 = vpack.c.bf16 %v23958_v35, %v23957_v38  ;;  %v23988_v39 = vld [vmem:[#allocation24_spill] sm:$0xff] }
 0x7da   : > { %16084 = vmatprep.subr.bf16.mxu1 %v16083_v52  ;;  %16226 = vmatpush1.bf16.msra.mxu0 %v16225_v42  ;;  %v23950_v52 = vld [vmem:[#allocation61_spill] sm:$0xff]  ;;  %v16235_v42 = vpack.c.bf16 %v23956_v16, %v23955_v31  ;;  %v21529_v31 = vld [vmem:[%s23149_s14 + $0x40] sm:$0xff]  ;;  %v21534_v16 = vld [vmem:[%s23149_s14 + $0x48] sm:$0xff] }
 0x7db   : > { %7083 = vmatmul.mubr.f32.gmra.mrb[38].mxu1 %v23939_v61  ;;  %8569 = vmatmul.mubr.f32.gmra.mrb[54].mxu0 %v23939_v61  ;;  %v16231_v63 = vpack.c.bf16 %v23945_v43, %v23943_v37  ;;  %v23951_v50 = vand.u32 4294901760, %v23950_v52  ;;  %v23995_v61 = vld [vmem:[#allocation91_spill] sm:$0xff]  ;;  %v9392_v43 = vld [vmem:[%s23149_s14 + $0x18] sm:$0xff]  ;;  %v9428_v52 = vand.u32 4294901760, %v9394_v7  ;;  %v9440_v38 = vand.u32 4294901760, %v21534_v16 }
 0x7dc   : > { %7088 = vmatprep.mubr.f32.mxu1 %v23701_v10  ;;  %8574 = vmatprep.mubr.f32.mxu0 %v23701_v10  ;;  %v9422_v41 = vand.u32 4294901760, %v9392_v43 }
 0x7dd   : > { %16086 = vmatpush1.bf16.msra.mxu1 %v16085_v8  ;;  %16228 = vmatprep.subr.bf16.mxu0 %v16227_v32  ;;  %v16233_v57 = vpack.c.bf16 %v23951_v50, %v23949_v44  ;;  %v23968_v8 = vld [vmem:[#allocation95_spill] sm:$0xff]  ;;  %v23981_v32 = vld [vmem:[#allocation73_spill] sm:$0xff] }
 0x7de   : > { %16088 = vmatprep.subr.bf16.mxu1 %v16087_v2  ;;  %16230 = vmatpush1.bf16.msra.mxu0 %v16229_v47  ;;  %v23986_v2 = vld [vmem:[#allocation75_spill] sm:$0xff]  ;;  %v23994_v47 = vld [vmem:[#allocation89_spill] sm:$0xff] }
 0x7df   : > { %7092 = vmatmul.mubr.f32.gmra.mrb[40].mxu1 %v23952_v27  ;;  %8578 = vmatmul.mubr.f32.gmra.mrb[56].mxu0 %v23952_v27  ;;  %v9396_v27 = vld [vmem:[%s23149_s14 + $0x38] sm:$0xff] }
 0x7e0   : > { %7097 = vmatprep.mubr.f32.mxu1 %v23701_v10  ;;  %8583 = vmatprep.mubr.f32.mxu0 %v23701_v10  ;;  %v9434_v58 = vand.u32 4294901760, %v9396_v27 }
 0x7e1   : > { %16090 = vmatpush1.bf16.msra.mxu1 %v16089_v29  ;;  %16232 = vmatprep.subr.bf16.mxu0 %v16231_v63  ;;  %v9390_v29 = vld [vmem:[%s23149_s14 + $0x8] sm:$0xff] }
 0x7e2   : > { %16092 = vmatprep.subr.bf16.mxu1 %v16091_v60  ;;  %16234 = vmatpush1.bf16.msra.mxu0 %v16233_v57  ;;  %v9416_v37 = vand.u32 4294901760, %v9390_v29  ;;  %v9393_v60 = vld [vmem:[%s23149_s14 + $0x20] sm:$0xff]  ;;  %v9395_v57 = vld [vmem:[%s23149_s14 + $0x30] sm:$0xff] }
 0x7e3   : > { %7101 = vmatmul.mubr.f32.gmra.mrb[42].mxu1 %v23959_v17  ;;  %8587 = vmatmul.mubr.f32.gmra.mrb[58].mxu0 %v23959_v17  ;;  %v9425_v44 = vand.u32 4294901760, %v9393_v60  ;;  %v9431_v18 = vand.u32 4294901760, %v9395_v57  ;;  %v21550_v17 = vld [vmem:[%s23149_s14 + $0x58] sm:$0xff] }
 0x7e4   : > { %7106 = vmatprep.mubr.f32.mxu1 %v23701_v10  ;;  %8592 = vmatprep.mubr.f32.mxu0 %v23701_v10  ;;  %v21494_v24 = vpack.c.bf16 %v9416_v37, %v9413_v25 }
 0x7e5   : > { %16094 = vmatpush1.bf16.msra.mxu1 %v16093_v34  ;;  %16236 = vmatprep.subr.bf16.mxu0 %v16235_v42  ;;  %v21514_v50 = vpack.c.bf16 %v9428_v52, %v9425_v44  ;;  %v21524_v34 = vpack.c.bf16 %v9434_v58, %v9431_v18  ;;  %v9437_v42 = vand.u32 4294901760, %v21529_v31 }
 0x7e6   : > { %16238 = vmatpush1.bf16.msra.mxu0 %v16237_v46  ;;  %16096 = vmatprep.subr.bf16.mxu1 %v23863_v23  ;;  %v23966_v23 = vld [vmem:[#allocation92_spill] sm:$0xff] }
 0x7e7   : > { %7110 = vmatmul.mubr.f32.gmra.mrb[44].mxu1 %v23960_v11  ;;  %8596 = vmatmul.mubr.f32.gmra.mrb[60].mxu0 %v23960_v11  ;;  %v21540_v35 = vpack.c.bf16 %v9440_v38, %v9437_v42  ;;  %v21545_v46 = vld [vmem:[%s23149_s14 + $0x50] sm:$0xff] }
 0x7e8   : > { %7115 = vmatprep.mubr.f32.mxu1 %v23701_v10  ;;  %8601 = vmatprep.mubr.f32.mxu0 %v23701_v10  ;;  %v9443_v11 = vand.u32 4294901760, %v21545_v46 }
 0x7e9   : > { %16240 = vmatprep.subr.bf16.mxu0 %v23864_v12  ;;  %v23967_v12 = vld [vmem:[#allocation94_spill] sm:$0xff] }
 0x7eb   : > { %7119 = vmatmul.mubr.f32.gmra.mrb[46].mxu1 %v23961_v6  ;;  %8605 = vmatmul.mubr.f32.gmra.mrb[62].mxu0 %v23961_v6  ;;  %v9446_v6 = vand.u32 4294901760, %v21550_v17 }
 0x7ec   : > { %7124 = vmatprep.mubr.f32.mxu1 %v23701_v10  ;;  %8610 = vmatprep.mubr.f32.mxu0 %v23701_v10 }
 0x7ef   : > { %7128 = vmatmul.mubr.f32.gmra.mrb[48].mxu1 %v23962_v59  ;;  %8614 = vmatmul.mubr.f32.gmra.mrb[64].mxu0 %v23962_v59  ;;  %v21560_v59 = vpack.c.bf16 %v9446_v6, %v9443_v11 }
 0x7f0   : > { %7133 = vmatprep.mubr.f32.mxu1 %v23701_v10  ;;  %8619 = vmatprep.mubr.f32.mxu0 %v23701_v10 }
 0x7f1   : > { %23997 = vst [vmem:[#allocation44_spill] sm:$0xff] %v21560_v59 }
 0x7f3   : > { %7137 = vmatmul.mubr.f32.gmra.mrb[50].mxu1 %v23963_v15  ;;  %8623 = vmatmul.mubr.f32.gmra.mrb[66].mxu0 %v23963_v15  ;;  %v21565_v15 = vld [vmem:[%s23149_s14 + $0x60] sm:$0xff] }
 0x7f4   : > { %7142 = vmatprep.mubr.f32.mxu1 %v23701_v10  ;;  %8628 = vmatprep.mubr.f32.mxu0 %v23701_v10 }
 0x7f7   : > { %7146 = vmatmul.mubr.f32.gmra.mrb[52].mxu1 %v23964_v53  ;;  %8632 = vmatmul.mubr.f32.gmra.mrb[68].mxu0 %v23964_v53  ;;  %v21570_v53 = vld [vmem:[%s23149_s14 + $0x68] sm:$0xff] }
 0x7f8   : > { %7151 = vmatprep.mubr.f32.mxu1 %v23701_v10  ;;  %8637 = vmatprep.mubr.f32.mxu0 %v23701_v10 }
 0x7fb   : > { %7155 = vmatmul.mubr.f32.gmra.mrb[54].mxu1 %v23965_v28  ;;  %8641 = vmatmul.mubr.f32.gmra.mrb[70].mxu0 %v23965_v28  ;;  %v9449_v28 = vand.u32 4294901760, %v21565_v15 }
 0x7fc   : > { %7160 = vmatprep.mubr.f32.mxu1 %v23701_v10  ;;  %8646 = vmatprep.mubr.f32.mxu0 %v23701_v10 }
 0x7ff   : > { %7164 = vmatmul.mubr.f32.gmra.mrb[56].mxu1 %v23966_v23  ;;  %8650 = vmatmul.mubr.f32.gmra.mrb[72].mxu0 %v23966_v23  ;;  %v9452_v23 = vand.u32 4294901760, %v21570_v53 }
 0x800   : > { %7169 = vmatprep.mubr.f32.mxu1 %v23701_v10  ;;  %8655 = vmatprep.mubr.f32.mxu0 %v23701_v10 }
 0x803   : > { %7173 = vmatmul.mubr.f32.gmra.mrb[58].mxu1 %v23967_v12  ;;  %8659 = vmatmul.mubr.f32.gmra.mrb[74].mxu0 %v23967_v12  ;;  %v21580_v12 = vpack.c.bf16 %v9452_v23, %v9449_v28 }
 0x804   : > { %7178 = vmatprep.mubr.f32.mxu1 %v23701_v10  ;;  %8664 = vmatprep.mubr.f32.mxu0 %v23701_v10 }
 0x805   : > { %23998 = vst [vmem:[#allocation31_spill] sm:$0xff] %v21580_v12 }
 0x807   : > { %7182 = vmatmul.mubr.f32.gmra.mrb[60].mxu1 %v23968_v8  ;;  %8668 = vmatmul.mubr.f32.gmra.mrb[76].mxu0 %v23968_v8  ;;  %v21585_v8 = vld [vmem:[%s23149_s14 + $0x70] sm:$0xff] }
 0x808   : > { %7187 = vmatprep.mubr.f32.mxu1 %v23701_v10  ;;  %8673 = vmatprep.mubr.f32.mxu0 %v23701_v10 }
 0x80b   : > { %7191 = vmatmul.mubr.f32.gmra.mrb[62].mxu1 %v23969_v13  ;;  %8677 = vmatmul.mubr.f32.gmra.mrb[78].mxu0 %v23969_v13  ;;  %v21590_v13 = vld [vmem:[%s23149_s14 + $0x78] sm:$0xff] }
 0x80c   : > { %7333 = vmatprep.mubr.f32.mxu1 %v23701_v10  ;;  %8819 = vmatprep.mubr.f32.mxu0 %v23701_v10 }
 0x80f   : > { %7335 = vmatmul.mubr.f32.vlgmr.msra.gmra.mrb[32].mxu1 %v23970_v49  ;;  %8821 = vmatmul.mubr.f32.vlgmr.msra.gmra.mrb[48].mxu0 %v23970_v49 }
 0x810   : > { %16098 = vmatpush1.bf16.msra.mxu1 %v23866_v40  ;;  %7340 = vmatprep.mubr.f32.mxu1 %v23701_v10  ;;  %v23972_v40 = vld [vmem:[#allocation37_spill] sm:$0xff] }
 0x811   : > { %8826 = vmatprep.mubr.f32.mxu0 %v23701_v10  ;;  %16100 = vmatprep.subr.bf16.mxu1 %v23867_v30  ;;  %v23973_v30 = vld [vmem:[#allocation8_spill] sm:$0xff] }
 0x812   : > { %16242 = vmatpush1.bf16.msra.mxu0 %v23868_v48  ;;  %v23974_v48 = vld [vmem:[#allocation10_spill] sm:$0xff] }
 0x813   : > { %7342 = vmatmul.mubr.f32.gmra.mrb[34].mxu1 %v23971_v51  ;;  %8828 = vmatmul.mubr.f32.gmra.mrb[50].mxu0 %v23971_v51 }
 0x814   : > { %7347 = vmatprep.mubr.f32.mxu1 %v23701_v10  ;;  %8833 = vmatprep.mubr.f32.mxu0 %v23701_v10 }
 0x815   : > { %16102 = vmatpush1.bf16.msra.mxu1 %v23870_v4  ;;  %16244 = vmatprep.subr.bf16.mxu0 %v23871_v21  ;;  %v23975_v4 = vld [vmem:[#allocation9_spill] sm:$0xff]  ;;  %v23976_v21 = vld [vmem:[#allocation32_spill] sm:$0xff] }
 0x816   : > { %16104 = vmatprep.subr.bf16.mxu1 %v23872_v36  ;;  %16246 = vmatpush1.bf16.msra.mxu0 %v23873_v55  ;;  %v23977_v55 = vld [vmem:[#allocation11_spill] sm:$0xff]  ;;  %v23978_v36 = vld [vmem:[#allocation12_spill] sm:$0xff] }
 0x817   : > { %7349 = vmatmul.mubr.f32.gmra.mrb[36].mxu1 %v23972_v40  ;;  %8835 = vmatmul.mubr.f32.gmra.mrb[52].mxu0 %v23972_v40 }
 0x818   : > { %7354 = vmatprep.mubr.f32.mxu1 %v23701_v10  ;;  %8840 = vmatprep.mubr.f32.mxu0 %v23701_v10 }
 0x819   : > { %16106 = vmatpush1.bf16.msra.mxu1 %v23875_v62  ;;  %16248 = vmatprep.subr.bf16.mxu0 %v23973_v30  ;;  %v23980_v62 = vld [vmem:[#allocation13_spill] sm:$0xff]  ;;  %v21604_v30 = vsub.f32 %v9389_v54, %v9413_v25  ;;  %v21644_v54 = vsub.f32 %v9396_v27, %v9434_v58 }
 0x81a   : > { %16108 = vmatprep.subr.bf16.mxu1 %v23974_v48  ;;  %16250 = vmatpush1.bf16.msra.mxu0 %v23975_v4  ;;  %v21606_v48 = vsub.f32 %v9390_v29, %v9416_v37 }
 0x81b   : > { %7356 = vmatmul.mubr.f32.gmra.mrb[38].mxu1 %v23976_v21  ;;  %8842 = vmatmul.mubr.f32.gmra.mrb[54].mxu0 %v23976_v21  ;;  %24000 = vst [vmem:[#allocation23_spill] sm:$0xff] %v21604_v30  ;;  %v23503_v4 = vand.u32 4294901760, %v21604_v30  ;;  %24007 = vst [vmem:[#allocation21_spill] sm:$0xff] %v21644_v54 }
 0x81c   : > { %7361 = vmatprep.mubr.f32.mxu1 %v23701_v10  ;;  %8847 = vmatprep.mubr.f32.mxu0 %v23701_v10  ;;  %24001 = vst [vmem:[#allocation39_spill] sm:$0xff] %v21606_v48 }
 0x81d   : > { %16110 = vmatpush1.bf16.msra.mxu1 %v23977_v55  ;;  %16252 = vmatprep.subr.bf16.mxu0 %v23978_v36  ;;  %v9657_v55 = vsub.f32 %v21604_v30, %v23503_v4 }
 0x81e   : > { %16112 = vmatprep.subr.bf16.mxu1 %v23979_v26  ;;  %16254 = vmatpush1.bf16.msra.mxu0 %v23980_v62  ;;  %v21618_v62 = vsub.f32 %v9392_v43, %v9422_v41 }
 0x81f   : > { %7363 = vmatmul.mubr.f32.gmra.mrb[40].mxu1 %v23981_v32  ;;  %8849 = vmatmul.mubr.f32.gmra.mrb[56].mxu0 %v23981_v32 }
 0x820   : > { %7368 = vmatprep.mubr.f32.mxu1 %v23701_v10  ;;  %8854 = vmatprep.mubr.f32.mxu0 %v23701_v10  ;;  %24003 = vst [vmem:[#allocation41_spill] sm:$0xff] %v21618_v62 }
 0x821   : > { %16114 = vmatpush1.bf16.msra.mxu1 %v23982_v45  ;;  %16256 = vmatprep.subr.bf16.mxu0 %v23983_v14 }
 0x822   : > { %16116 = vmatprep.subr.bf16.mxu1 %v23984_v22  ;;  %16258 = vmatpush1.bf16.msra.mxu0 %v23985_v1  ;;  %v23500_v22 = vand.u32 4294901760, %v21618_v62 }
 0x823   : > { %7370 = vmatmul.mubr.f32.gmra.mrb[42].mxu1 %v23986_v2  ;;  %8856 = vmatmul.mubr.f32.gmra.mrb[58].mxu0 %v23986_v2 }
 0x824   : > { %7375 = vmatprep.mubr.f32.mxu1 %v23701_v10  ;;  %8861 = vmatprep.mubr.f32.mxu0 %v23701_v10 }
 0x825   : > { %16118 = vmatpush1.bf16.msra.mxu1 %v23891_v33  ;;  %16260 = vmatprep.subr.bf16.mxu0 %v23892_v19  ;;  %v23989_v33 = vld [vmem:[#allocation25_spill] sm:$0xff] }
 0x826   : > { %16262 = vmatpush1.bf16.msra.mxu0 %v23895_v3  ;;  %v23990_v19 = vld [vmem:[#allocation81_spill] sm:$0xff]  ;;  %v23991_v3 = vld [vmem:[#allocation83_spill] sm:$0xff]  ;;  %16264 = vmatprep.subr.bf16.mxu1 %v21494_v24 }
 0x827   : > { %7377 = vmatmul.mubr.f32.gmra.mrb[44].mxu1 %v23987_v0  ;;  %8863 = vmatmul.mubr.f32.gmra.mrb[60].mxu0 %v23987_v0 }
 0x828   : > { %7382 = vmatprep.mubr.f32.mxu1 %v23701_v10  ;;  %8868 = vmatprep.mubr.f32.mxu0 %v23701_v10 }
 0x82b   : > { %7384 = vmatmul.mubr.f32.gmra.mrb[46].mxu1 %v23988_v39  ;;  %8870 = vmatmul.mubr.f32.gmra.mrb[62].mxu0 %v23988_v39 }
 0x82c   : > { %7389 = vmatprep.mubr.f32.mxu1 %v23701_v10  ;;  %8875 = vmatprep.mubr.f32.mxu0 %v23701_v10 }
 0x82f   : > { %7391 = vmatmul.mubr.f32.gmra.mrb[48].mxu1 %v23989_v33  ;;  %8877 = vmatmul.mubr.f32.gmra.mrb[64].mxu0 %v23989_v33 }
 0x830   : > { %7396 = vmatprep.mubr.f32.mxu1 %v23701_v10  ;;  %8882 = vmatprep.mubr.f32.mxu0 %v23701_v10 }
 0x833   : > { %7398 = vmatmul.mubr.f32.gmra.mrb[50].mxu1 %v23990_v19  ;;  %8884 = vmatmul.mubr.f32.gmra.mrb[66].mxu0 %v23990_v19 }
 0x834   : > { %7403 = vmatprep.mubr.f32.mxu1 %v23701_v10  ;;  %8889 = vmatprep.mubr.f32.mxu0 %v23701_v10 }
 0x837   : > { %7405 = vmatmul.mubr.f32.gmra.mrb[52].mxu1 %v23991_v3  ;;  %8891 = vmatmul.mubr.f32.gmra.mrb[68].mxu0 %v23991_v3 }
 0x838   : > { %7410 = vmatprep.mubr.f32.mxu1 %v23701_v10  ;;  %8896 = vmatprep.mubr.f32.mxu0 %v23701_v10 }
 0x83b   : > { %7412 = vmatmul.mubr.f32.gmra.mrb[54].mxu1 %v23992_v56  ;;  %8898 = vmatmul.mubr.f32.gmra.mrb[70].mxu0 %v23992_v56 }
 0x83c   : > { %7417 = vmatprep.mubr.f32.mxu1 %v23701_v10  ;;  %8903 = vmatprep.mubr.f32.mxu0 %v23701_v10 }
 0x83f   : > { %7419 = vmatmul.mubr.f32.gmra.mrb[56].mxu1 %v23993_v5  ;;  %8905 = vmatmul.mubr.f32.gmra.mrb[72].mxu0 %v23993_v5 }
 0x840   : > { %7424 = vmatprep.mubr.f32.mxu1 %v23701_v10  ;;  %8910 = vmatprep.mubr.f32.mxu0 %v23701_v10 }
 0x843   : > { %7426 = vmatmul.mubr.f32.gmra.mrb[58].mxu1 %v23994_v47  ;;  %8912 = vmatmul.mubr.f32.gmra.mrb[74].mxu0 %v23994_v47 }
 0x844   : > { %7431 = vmatprep.mubr.f32.mxu1 %v23701_v10  ;;  %8917 = vmatprep.mubr.f32.mxu0 %v23701_v10 }
 0x847   : > { %7433 = vmatmul.mubr.f32.gmra.mrb[60].mxu1 %v23995_v61  ;;  %8919 = vmatmul.mubr.f32.gmra.mrb[76].mxu0 %v23995_v61 }
 0x848   : > { %7438 = vmatprep.mubr.f32.mxu1 %v23701_v10  ;;  %8924 = vmatprep.mubr.f32.mxu0 %v23701_v10 }
 0x84b   : > { %7440 = vmatmul.mubr.f32.gmra.mrb[62].mxu1 %v23996_v9  ;;  %8926 = vmatmul.mubr.f32.gmra.mrb[78].mxu0 %v23996_v9 }
 0x84c   : > { %7534 = vmatprep.mubr.f32.mxu1 %v23701_v10  ;;  %9020 = vmatprep.mubr.f32.mxu0 %v23701_v10 }
 0x84f   : > { %7536 = vmatmul.mubr.f32.vlgmr.msra.gmra.mrb[32].mxu1 %v23970_v49  ;;  %9022 = vmatmul.mubr.f32.vlgmr.msra.gmra.mrb[48].mxu0 %v23970_v49  ;;  %v9455_v49 = vand.u32 4294901760, %v21585_v8 }
 0x850   : > { %7541 = vmatprep.mubr.f32.mxu1 %v23701_v10  ;;  %9027 = vmatprep.mubr.f32.mxu0 %v23701_v10 }
 0x851   : > { %16266 = vmatpush3.bf16.msra.mxu1 %v21494_v24 }
 0x853   : > { %7543 = vmatmul.mubr.f32.gmra.mrb[34].mxu1 %v23971_v51  ;;  %9029 = vmatmul.mubr.f32.gmra.mrb[50].mxu0 %v23971_v51  ;;  %v9458_v51 = vand.u32 4294901760, %v21590_v13 }
 0x854   : > { %7548 = vmatprep.mubr.f32.mxu1 %v23701_v10  ;;  %9034 = vmatprep.mubr.f32.mxu0 %v23701_v10 }
 0x857   : > { %7550 = vmatmul.mubr.f32.gmra.mrb[36].mxu1 %v23972_v40  ;;  %9036 = vmatmul.mubr.f32.gmra.mrb[52].mxu0 %v23972_v40  ;;  %v21600_v40 = vpack.c.bf16 %v9458_v51, %v9455_v49 }
 0x858   : > { %7555 = vmatprep.mubr.f32.mxu1 %v23701_v10  ;;  %9041 = vmatprep.mubr.f32.mxu0 %v23701_v10 }
 0x859   : > { %23999 = vst [vmem:[#allocation30_spill] sm:$0xff] %v21600_v40 }
 0x85b   : > { %7557 = vmatmul.mubr.f32.gmra.mrb[38].mxu1 %v23976_v21  ;;  %9043 = vmatmul.mubr.f32.gmra.mrb[54].mxu0 %v23976_v21  ;;  %v23502_v21 = vand.u32 4294901760, %v21606_v48 }
 0x85c   : > { %7562 = vmatprep.mubr.f32.mxu1 %v23701_v10  ;;  %9048 = vmatprep.mubr.f32.mxu0 %v23701_v10 }
 0x85d   : > { %v9664_v36 = vsub.f32 %v21606_v48, %v23502_v21 }
 0x85f   : > { %7564 = vmatmul.mubr.f32.gmra.mrb[40].mxu1 %v23981_v32  ;;  %9050 = vmatmul.mubr.f32.gmra.mrb[56].mxu0 %v23981_v32  ;;  %v9658_v32 = vand.u32 4294901760, %v9657_v55  ;;  %v9665_v45 = vand.u32 4294901760, %v9664_v36 }
 0x860   : > { %7569 = vmatprep.mubr.f32.mxu1 %v23701_v10  ;;  %9055 = vmatprep.mubr.f32.mxu0 %v23701_v10 }
 0x861   : > { %v21622_v1 = vpack.c.bf16 %v9665_v45, %v9658_v32 }
 0x863   : > { %7571 = vmatmul.mubr.f32.gmra.mrb[42].mxu1 %v23986_v2  ;;  %9057 = vmatmul.mubr.f32.gmra.mrb[58].mxu0 %v23986_v2 }
 0x864   : > { %7576 = vmatprep.mubr.f32.mxu1 %v23701_v10  ;;  %9062 = vmatprep.mubr.f32.mxu0 %v23701_v10 }
 0x867   : > { %7578 = vmatmul.mubr.f32.gmra.mrb[44].mxu1 %v23987_v0  ;;  %9064 = vmatmul.mubr.f32.gmra.mrb[60].mxu0 %v23987_v0  ;;  %v9678_v0 = vsub.f32 %v21618_v62, %v23500_v22 }
 0x868   : > { %7583 = vmatprep.mubr.f32.mxu1 %v23701_v10  ;;  %9069 = vmatprep.mubr.f32.mxu0 %v23701_v10 }
 0x86b   : > { %7585 = vmatmul.mubr.f32.gmra.mrb[46].mxu1 %v23988_v39  ;;  %9071 = vmatmul.mubr.f32.gmra.mrb[62].mxu0 %v23988_v39  ;;  %v21630_v39 = vsub.f32 %v9393_v60, %v9425_v44  ;;  %v21658_v60 = vsub.f32 %v21529_v31, %v9437_v42  ;;  %v21683_v42 = vsub.f32 %v21550_v17, %v9446_v6 }
 0x86c   : > { %7590 = vmatprep.mubr.f32.mxu1 %v23701_v10  ;;  %9076 = vmatprep.mubr.f32.mxu0 %v23701_v10  ;;  %v21700_v17 = vsub.f32 %v21570_v53, %v9452_v23  ;;  %v21715_v53 = vsub.f32 %v21590_v13, %v9458_v51 }
 0x86d   : > { %24004 = vst [vmem:[#allocation40_spill] sm:$0xff] %v21630_v39  ;;  %24008 = vst [vmem:[#allocation55_spill] sm:$0xff] %v21658_v60  ;;  %v23495_v27 = vand.u32 4294901760, %v21658_v60  ;;  %v23492_v45 = vand.u32 4294901760, %v21683_v42 }
 0x86e   : > { %24011 = vst [vmem:[#allocation66_spill] sm:$0xff] %v21683_v42  ;;  %24013 = vst [vmem:[#allocation68_spill] sm:$0xff] %v21700_v17 }
 0x86f   : > { %7592 = vmatmul.mubr.f32.gmra.mrb[48].mxu1 %v23989_v33  ;;  %9078 = vmatmul.mubr.f32.gmra.mrb[64].mxu0 %v23989_v33  ;;  %v21632_v33 = vsub.f32 %v9394_v7, %v9428_v52  ;;  %v21661_v7 = vsub.f32 %v21534_v16, %v9440_v38  ;;  %v9713_v55 = vsub.f32 %v21658_v60, %v23495_v27 }
 0x870   : > { %7597 = vmatprep.mubr.f32.mxu1 %v23701_v10  ;;  %9083 = vmatprep.mubr.f32.mxu0 %v23701_v10  ;;  %v21678_v16 = vsub.f32 %v21545_v46, %v9443_v11  ;;  %v21695_v46 = vsub.f32 %v21565_v15, %v9449_v28  ;;  %v9734_v11 = vsub.f32 %v21683_v42, %v23492_v45 }
 0x871   : > { %24005 = vst [vmem:[#allocation15_spill] sm:$0xff] %v21632_v33  ;;  %24009 = vst [vmem:[#allocation54_spill] sm:$0xff] %v21661_v7  ;;  %v9714_v38 = vand.u32 4294901760, %v9713_v55  ;;  %v21719_v28 = vpack.c.bf16 %v21606_v48, %v21604_v30 }
 0x872   : > { %24010 = vst [vmem:[#allocation65_spill] sm:$0xff] %v21678_v16  ;;  %v23493_v32 = vand.u32 4294901760, %v21678_v16  ;;  %24012 = vst [vmem:[#allocation67_spill] sm:$0xff] %v21695_v46  ;;  %v9735_v15 = vand.u32 4294901760, %v9734_v11  ;;  %v21759_v11 = vpack.c.bf16 %v21683_v42, %v21678_v16 }
 0x873   : > { %7599 = vmatmul.mubr.f32.gmra.mrb[50].mxu1 %v23990_v19  ;;  %9085 = vmatmul.mubr.f32.gmra.mrb[66].mxu0 %v23990_v19  ;;  %24015 = vst [vmem:[#allocation62_spill] sm:$0xff] %v21715_v53 }
 0x874   : > { %7604 = vmatprep.mubr.f32.mxu1 %v23701_v10  ;;  %9090 = vmatprep.mubr.f32.mxu0 %v23701_v10 }
 0x877   : > { %7606 = vmatmul.mubr.f32.gmra.mrb[52].mxu1 %v23991_v3  ;;  %9092 = vmatmul.mubr.f32.gmra.mrb[68].mxu0 %v23991_v3  ;;  %v9679_v3 = vand.u32 4294901760, %v9678_v0  ;;  %v9727_v0 = vsub.f32 %v21678_v16, %v23493_v32 }
 0x878   : > { %7611 = vmatprep.mubr.f32.mxu1 %v23701_v10  ;;  %9097 = vmatprep.mubr.f32.mxu0 %v23701_v10 }
 0x879   : > { %v9728_v6 = vand.u32 4294901760, %v9727_v0  ;;  %v21755_v0 = vpack.c.bf16 %v21661_v7, %v21658_v60 }
 0x87b   : > { %7613 = vmatmul.mubr.f32.gmra.mrb[54].mxu1 %v23992_v56  ;;  %9099 = vmatmul.mubr.f32.gmra.mrb[70].mxu0 %v23992_v56  ;;  %v23499_v56 = vand.u32 4294901760, %v21630_v39 }
 0x87c   : > { %7618 = vmatprep.mubr.f32.mxu1 %v23701_v10  ;;  %9104 = vmatprep.mubr.f32.mxu0 %v23701_v10 }
 0x87f   : > { %7620 = vmatmul.mubr.f32.gmra.mrb[56].mxu1 %v23993_v5  ;;  %9106 = vmatmul.mubr.f32.gmra.mrb[72].mxu0 %v23993_v5  ;;  %v23498_v5 = vand.u32 4294901760, %v21632_v33 }
 0x880   : > { %7625 = vmatprep.mubr.f32.mxu1 %v23701_v10  ;;  %9111 = vmatprep.mubr.f32.mxu0 %v23701_v10 }
 0x881   : > { %v9692_v29 = vsub.f32 %v21632_v33, %v23498_v5 }
 0x883   : > { %7627 = vmatmul.mubr.f32.gmra.mrb[58].mxu1 %v23994_v47  ;;  %9113 = vmatmul.mubr.f32.gmra.mrb[74].mxu0 %v23994_v47  ;;  %v9693_v43 = vand.u32 4294901760, %v9692_v29 }
 0x884   : > { %7632 = vmatprep.mubr.f32.mxu1 %v23701_v10  ;;  %9118 = vmatprep.mubr.f32.mxu0 %v23701_v10 }
 0x887   : > { %7634 = vmatmul.mubr.f32.gmra.mrb[60].mxu1 %v23995_v61  ;;  %9120 = vmatmul.mubr.f32.gmra.mrb[76].mxu0 %v23995_v61  ;;  %v9685_v61 = vsub.f32 %v21630_v39, %v23499_v56 }
 0x888   : > { %7639 = vmatprep.mubr.f32.mxu1 %v23701_v10  ;;  %9125 = vmatprep.mubr.f32.mxu0 %v23701_v10  ;;  %v9391_v10 = vld [vmem:[%s23149_s14 + $0x10] sm:$0xff] }
 0x889   : > { %v9419_v63 = vand.u32 4294901760, %v9391_v10  ;;  %v9686_v25 = vand.u32 4294901760, %v9685_v61  ;;  %v21710_v61 = vsub.f32 %v21585_v8, %v9455_v49  ;;  %v21728_v49 = vpack.c.bf16 %v9735_v15, %v9728_v6  ;;  %v24016_v15 = vld [vmem:[#allocation16_spill] sm:$0xff] }
 0x88a   : > { %v21763_v6 = vpack.c.bf16 %v21700_v17, %v21695_v46 }
 0x88b   : > { %7641 = vmatmul.mubr.f32.gmra.mrb[62].mxu1 %v23996_v9  ;;  %9127 = vmatmul.mubr.f32.gmra.mrb[78].mxu0 %v23996_v9  ;;  %v21504_v20 = vpack.c.bf16 %v9422_v41, %v9419_v63  ;;  %v21616_v26 = vsub.f32 %v9391_v10, %v9419_v63  ;;  %v21642_v9 = vsub.f32 %v9395_v57, %v9431_v18  ;;  %v23496_v10 = vand.u32 4294901760, %v21644_v54 }
 0x88c   : > { %v21663_v44 = vpack.c.bf16 %v9693_v43, %v9686_v25  ;;  %v23494_v18 = vand.u32 4294901760, %v21661_v7  ;;  %24014 = vst [vmem:[#allocation63_spill] sm:$0xff] %v21710_v61  ;;  %v23489_v8 = vand.u32 4294901760, %v21710_v61  ;;  %v23488_v25 = vand.u32 4294901760, %v21715_v53 }
 0x88d   : > { %16268 = vmatprep.subr.bf16.mxu1 %v21504_v20  ;;  %24002 = vst [vmem:[#allocation38_spill] sm:$0xff] %v21616_v26  ;;  %v23501_v14 = vand.u32 4294901760, %v21616_v26  ;;  %24006 = vst [vmem:[#allocation14_spill] sm:$0xff] %v21642_v9  ;;  %v23497_v37 = vand.u32 4294901760, %v21642_v9  ;;  %v9706_v41 = vsub.f32 %v21644_v54, %v23496_v10 }
 0x88e   : > { %16270 = vmatpush3.bf16.msra.mxu1 %v21504_v20  ;;  %v9720_v31 = vsub.f32 %v21661_v7, %v23494_v18  ;;  %v9755_v43 = vsub.f32 %v21710_v61, %v23489_v8 }
 0x88f   : > { %16272 = vmatprep.subr.bf16.mxu1 %v21514_v50  ;;  %v9671_v2 = vsub.f32 %v21616_v26, %v23501_v14  ;;  %v9699_v63 = vsub.f32 %v21642_v9, %v23497_v37  ;;  %v9707_v57 = vand.u32 4294901760, %v9706_v41  ;;  %v21739_v41 = vpack.c.bf16 %v21618_v62, %v21616_v26  ;;  %v9293_v14 = vld [vmem:[%s21826_s5] sm:$0xff] }
 0x890   : > { %v9721_v36 = vand.u32 4294901760, %v9720_v31 }
 0x891   : > { %v9672_v19 = vand.u32 4294901760, %v9671_v2  ;;  %v9700_v52 = vand.u32 4294901760, %v9699_v63  ;;  %v9762_v63 = vsub.f32 %v21715_v53, %v23488_v25 }
 0x892   : > { %16274 = vmatpush3.bf16.msra.mxu1 %v21514_v50  ;;  %v21687_v2 = vpack.c.bf16 %v9721_v36, %v9714_v38  ;;  %v21747_v38 = vpack.c.bf16 %v21632_v33, %v21630_v39  ;;  %v21751_v36 = vpack.c.bf16 %v21644_v54, %v21642_v9 }
 0x893   : > { %16276 = vmatprep.subr.bf16.mxu1 %v21524_v34  ;;  %v21637_v47 = vpack.c.bf16 %v9679_v3, %v9672_v19  ;;  %v21667_v58 = vpack.c.bf16 %v9707_v57, %v9700_v52  ;;  %v23491_v19 = vand.u32 4294901760, %v21695_v46  ;;  %v23490_v3 = vand.u32 4294901760, %v21700_v17 }
 0x894   : > { %v9756_v57 = vand.u32 4294901760, %v9755_v43  ;;  %v9763_v55 = vand.u32 4294901760, %v9762_v63  ;;  %v24017_v43 = vsub.s32 0, %v24016_v15 }
 0x895   : > { %v9741_v23 = vsub.f32 %v21695_v46, %v23491_v19  ;;  %v9748_v29 = vsub.f32 %v21700_v17, %v23490_v3 }
 0x896   : > { %16278 = vmatpush3.bf16.msra.mxu1 %v21524_v34  ;;  %v21743_v31 = vpack.c.bf16 %v9763_v55, %v9756_v57  ;;  %v24018_v55 = vsub.s32 1, %v24016_v15 }
 0x897   : > { %16280 = vmatprep.subr.bf16.mxu1 %v21540_v35  ;;  %v9742_v13 = vand.u32 4294901760, %v9741_v23  ;;  %v9749_v51 = vand.u32 4294901760, %v9748_v29  ;;  %v6102_v23 = vsub.s32 2, %v24016_v15  ;;  %v6090_v29 = vld [vmem:[%s23148_s13] sm:$0xf] }
 0x898   : > { %v21777_v63 = vrot.slane %v6090_v29, %v24017_v43  ;;  %v21783_v25 = vrot.slane %v6090_v29, %v24018_v55 }
 0x899   : > { %v21741_v52 = vpack.c.bf16 %v9749_v51, %v9742_v13  ;;  %v6106_v13 = vsub.s32 3, %v24016_v15  ;;  %v21772_v51 = vpack.c.bf16 %v21715_v53, %v21710_v61  ;;  %v21779_v57 = vrot.slane %v6090_v29, %v6102_v23 }
 0x89a   : > { %16282 = vmatpush3.bf16.msra.mxu1 %v21540_v35 }
 0x89b   : > { %16284 = vmatprep.subr.bf16.mxu1 %v21560_v59  ;;  %v21785_v8 = vrot.slane %v6090_v29, %v6106_v13 }
 0x89e   : > { %16286 = vmatpush3.bf16.msra.mxu1 %v21560_v59 }
 0x89f   : > { %16288 = vmatprep.subr.bf16.mxu1 %v21580_v12 }
 0x8a2   : > { %16290 = vmatpush3.bf16.msra.mxu1 %v21580_v12  ;;  %v9302_v12 = vld [vmem:[%s21826_s5 + $0x48] sm:$0xff] }
 0x8a3   : > { %16292 = vmatprep.subr.bf16.mxu1 %v21600_v40 }
 0x8a6   : > { %16294 = vmatpush3.bf16.msra.mxu1 %v21600_v40 }
 0x8a7   : > { %16296 = vmatprep.subr.bf16.mxu1 %v21622_v1 }
 0x922   : > { %v7537_v3 = vpop.f32.mrb[32].mxu1  ;;  %v9023_v19 = vpop.f32.mrb[48].mxu0 }
 0x923   : > { %v21793_v43 = vadd.f32 %v7537_v3, %v21777_v63  ;;  %v16663_v23 = vadd.f32 %v9023_v19, %v21779_v57  ;;  %v7539_v15 = vpop.f32.mrb[33].mxu1  ;;  %v9025_v55 = vpop.f32.mrb[49].mxu0 }
 0x924   : > { %v16632_v29 = vadd.f32 %v7539_v15, %v21783_v25  ;;  %v16664_v13 = vadd.f32 %v9025_v55, %v21785_v8 }
 0x925   : > { %9133 = vst [vmem:[%s21790_s30] sm:$0xff] %v21793_v43  ;;  %9135 = vst [vmem:[%s21790_s30 + $0x10] sm:$0xff] %v16663_v23 }
 0x926   : > { %9134 = vst [vmem:[%s21790_s30 + $0x8] sm:$0xff] %v16632_v29  ;;  %v9309_v45 = vmul.f32 0.5, %v16632_v29  ;;  %v13312_v32 = vmul.f32 -1.442695, %v16664_v13  ;;  %v7544_v18 = vpop.f32.mrb[34].mxu1  ;;  %v9030_v3 = vpop.f32.mrb[50].mxu0 }
 0x927   : > { %v21803_v27 = vadd.f32 %v7544_v18, %v21777_v63  ;;  %v16665_v19 = vadd.f32 %v9030_v3, %v21779_v57  ;;  %v7546_v10 = vpop.f32.mrb[35].mxu1  ;;  %v9032_v15 = vpop.f32.mrb[51].mxu0 }
 0x928   : > { %v9325_v37 = vmul.f32 1.442695, %v9309_v45  ;;  %17744 = vpow2.f32 %v13312_v32  ;;  %v16634_v55 = vadd.f32 %v7546_v10, %v21783_v25  ;;  %v16666_v5 = vadd.f32 %v9032_v15, %v21785_v8 }
 0x929   : > { %9136 = vst [vmem:[%s21790_s30 + $0x20] sm:$0xff] %v21803_v27  ;;  %9138 = vst [vmem:[%s21790_s30 + $0x30] sm:$0xff] %v16665_v19 }
 0x92a   : > { %17746 = vpow2.f32 %v9325_v37  ;;  %9137 = vst [vmem:[%s21790_s30 + $0x28] sm:$0xff] %v16634_v55  ;;  %v9310_v18 = vmul.f32 0.5, %v16634_v55  ;;  %v13313_v23 = vmul.f32 -1.442695, %v16666_v5  ;;  %v7551_v29 = vpop.f32.mrb[36].mxu1  ;;  %v9037_v13 = vpop.f32.mrb[52].mxu0 }
 0x92b   : > { %v21813_v3 = vadd.f32 %v7551_v29, %v21777_v63  ;;  %v16667_v10 = vadd.f32 %v9037_v13, %v21779_v57  ;;  %v7553_v32 = vpop.f32.mrb[37].mxu1  ;;  %v9039_v45 = vpop.f32.mrb[53].mxu0 }
 0x92c   : > { %v9327_v15 = vmul.f32 1.442695, %v9310_v18  ;;  %17748 = vpow2.f32 %v13313_v23  ;;  %v16636_v19 = vadd.f32 %v7553_v32, %v21783_v25  ;;  %v16668_v37 = vadd.f32 %v9039_v45, %v21785_v8 }
 0x92d   : > { %9139 = vst [vmem:[%s21790_s30 + $0x40] sm:$0xff] %v21813_v3  ;;  %9141 = vst [vmem:[%s21790_s30 + $0x50] sm:$0xff] %v16667_v10 }
 0x92e   : > { %17750 = vpow2.f32 %v9327_v15  ;;  %9140 = vst [vmem:[%s21790_s30 + $0x48] sm:$0xff] %v16636_v19  ;;  %v9311_v5 = vmul.f32 0.5, %v16636_v19  ;;  %v13314_v55 = vmul.f32 -1.442695, %v16668_v37  ;;  %v7558_v29 = vpop.f32.mrb[38].mxu1  ;;  %v9044_v13 = vpop.f32.mrb[54].mxu0 }
 0x92f   : > { %v21829_v18 = vadd.f32 %v7558_v29, %v21777_v63  ;;  %v16669_v23 = vadd.f32 %v9044_v13, %v21779_v57  ;;  %v7560_v10 = vpop.f32.mrb[39].mxu1  ;;  %v9046_v32 = vpop.f32.mrb[55].mxu0 }
 0x930   : > { %v9329_v45 = vmul.f32 1.442695, %v9311_v5  ;;  %17752 = vpow2.f32 %v13314_v55  ;;  %v16638_v15 = vadd.f32 %v7560_v10, %v21783_v25  ;;  %v16670_v19 = vadd.f32 %v9046_v32, %v21785_v8 }
 0x931   : > { %9142 = vst [vmem:[%s21790_s30 + $0x60] sm:$0xff] %v21829_v18  ;;  %9144 = vst [vmem:[%s21790_s30 + $0x70] sm:$0xff] %v16669_v23 }
 0x932   : > { %v17745_v37 = vpop.eup %17744  ;;  %17754 = vpow2.f32 %v9329_v45  ;;  %9143 = vst [vmem:[%s21790_s30 + $0x68] sm:$0xff] %v16638_v15  ;;  %v9312_v56 = vmul.f32 0.5, %v16638_v15  ;;  %v13315_v29 = vmul.f32 -1.442695, %v16670_v19  ;;  %v7565_v13 = vpop.f32.mrb[40].mxu1 }
 0x933   : > { %v9051_v22 = vpop.f32.mrb[56].mxu0  ;;  %v9229_v5 = vadd.f32 1.0, %v17745_v37  ;;  %v21840_v55 = vadd.f32 %v7565_v13, %v21777_v63  ;;  %v7567_v32 = vpop.f32.mrb[41].mxu1  ;;  %v9294_v13 = vld [vmem:[%s21826_s5 + $0x8] sm:$0xff] }
 0x934   : > { %v16671_v10 = vadd.f32 %v9051_v22, %v21779_v57  ;;  %v9053_v23 = vpop.f32.mrb[57].mxu0  ;;  %v17747_v21 = vpop.eup %17746  ;;  %v9331_v45 = vmul.f32 1.442695, %v9312_v56  ;;  %17756 = vpow2.f32 %v13315_v29  ;;  %v16640_v15 = vadd.f32 %v7567_v32, %v21783_v25 }
 0x935   : > { %v16672_v19 = vadd.f32 %v9053_v23, %v21785_v8  ;;  %17758 = vrcp.f32 %v9229_v5  ;;  %9145 = vst [vmem:[%s21790_s30 + $0x80] sm:$0xff] %v21840_v55  ;;  %v9357_v37 = vmul.f32 %v17747_v21, %v9293_v14 }
 0x936   : > { %9147 = vst [vmem:[%s21790_s30 + $0x90] sm:$0xff] %v16671_v10  ;;  %v17749_v4 = vpop.eup %17748  ;;  %17760 = vpow2.f32 %v9331_v45  ;;  %9146 = vst [vmem:[%s21790_s30 + $0x88] sm:$0xff] %v16640_v15  ;;  %v9313_v53 = vmul.f32 0.5, %v16640_v15  ;;  %v7572_v61 = vpop.f32.mrb[42].mxu1 }
 0x937   : > { %v13316_v22 = vmul.f32 -1.442695, %v16672_v19  ;;  %v9058_v56 = vpop.f32.mrb[58].mxu0  ;;  %v9230_v29 = vadd.f32 1.0, %v17749_v4  ;;  %v21851_v32 = vadd.f32 %v7572_v61, %v21777_v63  ;;  %v7574_v23 = vpop.f32.mrb[43].mxu1  ;;  %v9373_v21 = vadd.f32 %v21793_v43, %v9357_v37 }
 0x938   : > { %v16673_v5 = vadd.f32 %v9058_v56, %v21779_v57  ;;  %v9060_v10 = vpop.f32.mrb[59].mxu0  ;;  %v17751_v14 = vpop.eup %17750  ;;  %v9333_v45 = vmul.f32 1.442695, %v9313_v53  ;;  %v16642_v15 = vadd.f32 %v7574_v23, %v21783_v25 }
 0x939   : > { %17762 = vpow2.f32 %v13316_v22  ;;  %v16674_v19 = vadd.f32 %v9060_v10, %v21785_v8  ;;  %v9358_v17 = vmul.f32 %v17751_v14, %v9294_v13  ;;  %9148 = vst [vmem:[%s21790_s30 + $0xa0] sm:$0xff] %v21851_v32  ;;  %v21860_v4 = vand.u32 4294901760, %v9373_v21  ;;  %v9295_v22 = vld [vmem:[%s21826_s5 + $0x10] sm:$0xff] }
 0x93a   : > { %17764 = vrcp.f32 %v9230_v29  ;;  %9150 = vst [vmem:[%s21790_s30 + $0xb0] sm:$0xff] %v16673_v5  ;;  %v17753_v61 = vpop.eup %17752  ;;  %9149 = vst [vmem:[%s21790_s30 + $0xa8] sm:$0xff] %v16642_v15  ;;  %v9314_v56 = vmul.f32 0.5, %v16642_v15  ;;  %v7579_v37 = vpop.f32.mrb[44].mxu1 }
 0x93b   : > { %17766 = vpow2.f32 %v9333_v45  ;;  %v13317_v43 = vmul.f32 -1.442695, %v16674_v19  ;;  %v9065_v53 = vpop.f32.mrb[60].mxu0  ;;  %v9374_v23 = vadd.f32 %v21803_v27, %v9358_v17  ;;  %v9231_v10 = vadd.f32 1.0, %v17753_v61  ;;  %v7581_v5 = vpop.f32.mrb[45].mxu1 }
 0x93c   : > { %v21866_v13 = vadd.f32 %v7579_v37, %v21777_v63  ;;  %v16675_v29 = vadd.f32 %v9065_v53, %v21779_v57  ;;  %v9067_v14 = vpop.f32.mrb[61].mxu0  ;;  %v17755_v45 = vpop.eup %17754  ;;  %v9335_v46 = vmul.f32 1.442695, %v9314_v56  ;;  %v16644_v15 = vadd.f32 %v7581_v5, %v21783_v25 }
 0x93d   : > { %17768 = vpow2.f32 %v13317_v43  ;;  %v16676_v19 = vadd.f32 %v9067_v14, %v21785_v8  ;;  %v21871_v42 = vand.u32 4294901760, %v9374_v23  ;;  %v21877_v27 = vsub.f32 %v9373_v21, %v21860_v4 }
 0x93e   : > { %17770 = vrcp.f32 %v9231_v10  ;;  %9151 = vst [vmem:[%s21790_s30 + $0xc0] sm:$0xff] %v21866_v13  ;;  %9153 = vst [vmem:[%s21790_s30 + $0xd0] sm:$0xff] %v16675_v29  ;;  %v9359_v17 = vmul.f32 %v17755_v45, %v9295_v22  ;;  %v17757_v61 = vpop.eup %17756  ;;  %v9315_v56 = vmul.f32 0.5, %v16644_v15  ;;  %v7586_v37 = vpop.f32.mrb[46].mxu1 }
 0x93f   : > { %17772 = vpow2.f32 %v9335_v46  ;;  %9152 = vst [vmem:[%s21790_s30 + $0xc8] sm:$0xff] %v16644_v15  ;;  %v13318_v43 = vmul.f32 -1.442695, %v16676_v19  ;;  %v9072_v53 = vpop.f32.mrb[62].mxu0  ;;  %v17759_v5 = vpop.eup %17758  ;;  %v9232_v10 = vadd.f32 1.0, %v17757_v61  ;;  %v21881_v14 = vadd.f32 %v7586_v37, %v21777_v63  ;;  %v9296_v46 = vld [vmem:[%s21826_s5 + $0x18] sm:$0xff] }
 0x940   : > { %v16677_v21 = vadd.f32 %v9072_v53, %v21779_v57  ;;  %v7588_v29 = vpop.f32.mrb[47].mxu1  ;;  %v9074_v16 = vpop.f32.mrb[63].mxu0  ;;  %v23512_v22 = vand.u32 4294901760, %v21877_v27  ;;  %9277 = vst [vmem:[%s21790_s30 + $0x18] sm:$0xff] %v17759_v5  ;;  %v9337_v15 = vmul.f32 1.442695, %v9315_v56  ;;  %v21896_v37 = vsub.f32 %v9374_v23, %v21871_v42 }
 0x941   : > { %v17761_v45 = vpop.eup %17760  ;;  %17774 = vpow2.f32 %v13318_v43  ;;  %v16646_v19 = vadd.f32 %v7588_v29, %v21783_v25  ;;  %v16678_v7 = vadd.f32 %v9074_v16, %v21785_v8  ;;  %9154 = vst [vmem:[%s21790_s30 + $0xe0] sm:$0xff] %v21881_v14  ;;  %v9375_v53 = vadd.f32 %v21813_v3, %v9359_v17 }
 0x942   : > { %17776 = vrcp.f32 %v9232_v10  ;;  %9156 = vst [vmem:[%s21790_s30 + $0xf0] sm:$0xff] %v16677_v21  ;;  %v9496_v61 = vsub.f32 %v21877_v27, %v23512_v22  ;;  %v7593_v5 = vpop.f32.mrb[48].mxu1  ;;  %v9079_v10 = vpop.f32.mrb[64].mxu0  ;;  %v9360_v29 = vmul.f32 %v17761_v45, %v9296_v46 }
 0x943   : > { %v17763_v56 = vpop.eup %17762  ;;  %17778 = vpow2.f32 %v9337_v15  ;;  %9155 = vst [vmem:[%s21790_s30 + $0xe8] sm:$0xff] %v16646_v19  ;;  %v9316_v43 = vmul.f32 0.5, %v16646_v19  ;;  %v13319_v16 = vmul.f32 -1.442695, %v16678_v7  ;;  %v21901_v22 = vadd.f32 %v7593_v5, %v21777_v63  ;;  %v7595_v3 = vpop.f32.mrb[49].mxu1  ;;  %v9297_v15 = vld [vmem:[%s21826_s5 + $0x20] sm:$0xff] }
 0x944   : > { %v17765_v21 = vpop.eup %17764  ;;  %v9233_v60 = vadd.f32 1.0, %v17763_v56  ;;  %v16679_v23 = vadd.f32 %v9079_v10, %v21779_v57  ;;  %v9081_v17 = vpop.f32.mrb[65].mxu0  ;;  %v9497_v54 = vand.u32 4294901760, %v9496_v61  ;;  %v16648_v46 = vadd.f32 %v7595_v3, %v21783_v25 }
 0x945   : > { %v17767_v9 = vpop.eup %17766  ;;  %9278 = vst [vmem:[%s21790_s30 + $0x38] sm:$0xff] %v17765_v21  ;;  %v9339_v7 = vmul.f32 1.442695, %v9316_v43  ;;  %17780 = vpow2.f32 %v13319_v16  ;;  %v16680_v45 = vadd.f32 %v9081_v17, %v21785_v8  ;;  %9157 = vst [vmem:[%s21790_s30 + $0x100] sm:$0xff] %v21901_v22  ;;  %v21912_v56 = vand.u32 4294901760, %v9375_v53 }
 0x946   : > { %17782 = vrcp.f32 %v9233_v60  ;;  %9159 = vst [vmem:[%s21790_s30 + $0x110] sm:$0xff] %v16679_v23  ;;  %14951 = vmatprep.mubr.f32.mxu1 %v9497_v54  ;;  %v9376_v61 = vadd.f32 %v21829_v18, %v9360_v29  ;;  %9158 = vst [vmem:[%s21790_s30 + $0x108] sm:$0xff] %v16648_v46  ;;  %v9317_v43 = vmul.f32 0.5, %v16648_v46  ;;  %v7600_v10 = vpop.f32.mrb[50].mxu1  ;;  %v9086_v21 = vpop.f32.mrb[66].mxu0  ;;  %v9361_v60 = vmul.f32 %v17767_v9, %v9297_v15 }
 0x947   : > { %v17769_v5 = vpop.eup %17768  ;;  %17784 = vpow2.f32 %v9339_v7  ;;  %v13320_v16 = vmul.f32 -1.442695, %v16680_v45  ;;  %v21917_v54 = vadd.f32 %v7600_v10, %v21777_v63  ;;  %v16681_v17 = vadd.f32 %v9086_v21, %v21779_v57  ;;  %v7602_v19 = vpop.f32.mrb[51].mxu1 }
 0x948   : > { %v17771_v3 = vpop.eup %17770  ;;  %v9234_v23 = vadd.f32 1.0, %v17769_v5  ;;  %v9088_v18 = vpop.f32.mrb[67].mxu0  ;;  %v24020_v29 = vand.u32 4294901760, %v21896_v37  ;;  %v9341_v45 = vmul.f32 1.442695, %v9317_v43  ;;  %v16650_v9 = vadd.f32 %v7602_v19, %v21783_v25 }
 0x949   : > { %v17773_v46 = vpop.eup %17772  ;;  %9279 = vst [vmem:[%s21790_s30 + $0x58] sm:$0xff] %v17771_v3  ;;  %17786 = vpow2.f32 %v13320_v16  ;;  %v16682_v15 = vadd.f32 %v9088_v18, %v21785_v8  ;;  %9160 = vst [vmem:[%s21790_s30 + $0x120] sm:$0xff] %v21917_v54  ;;  %v21930_v10 = vsub.f32 %v9375_v53, %v21912_v56  ;;  %v21932_v21 = vand.u32 4294901760, %v9376_v61 }
 0x94a   : > { %v9506_v7 = vsub.f32 %v21896_v37, %v24020_v29  ;;  %17788 = vrcp.f32 %v9234_v23  ;;  %9162 = vst [vmem:[%s21790_s30 + $0x130] sm:$0xff] %v16681_v17  ;;  %9161 = vst [vmem:[%s21790_s30 + $0x128] sm:$0xff] %v16650_v9  ;;  %v9318_v43 = vmul.f32 0.5, %v16650_v9  ;;  %v7607_v19 = vpop.f32.mrb[52].mxu1  ;;  %v9093_v3 = vpop.f32.mrb[68].mxu0  ;;  %v9377_v23 = vadd.f32 %v21840_v55, %v9361_v60  ;;  %v9298_v9 = vld [vmem:[%s21826_s5 + $0x28] sm:$0xff] }
 0x94b   : > { %v17775_v33 = vpop.eup %17774  ;;  %17790 = vpow2.f32 %v9341_v45  ;;  %v13321_v16 = vmul.f32 -1.442695, %v16682_v15  ;;  %v21937_v53 = vadd.f32 %v7607_v19, %v21777_v63  ;;  %v16683_v17 = vadd.f32 %v9093_v3, %v21779_v57  ;;  %v9095_v45 = vpop.f32.mrb[69].mxu0 }
 0x94c   : > { %v9507_v5 = vand.u32 4294901760, %v9506_v7  ;;  %v17777_v18 = vpop.eup %17776  ;;  %v9235_v29 = vadd.f32 1.0, %v17775_v33  ;;  %v7609_v7 = vpop.f32.mrb[53].mxu1  ;;  %v23518_v39 = vand.u32 4294901760, %v21930_v10  ;;  %v9343_v62 = vmul.f32 1.442695, %v9318_v43 }
 0x94d   : > { %v17779_v15 = vpop.eup %17778  ;;  %9280 = vst [vmem:[%s21790_s30 + $0x78] sm:$0xff] %v17777_v18  ;;  %17792 = vpow2.f32 %v13321_v16  ;;  %v16652_v33 = vadd.f32 %v7609_v7, %v21783_v25  ;;  %v16684_v55 = vadd.f32 %v9095_v45, %v21785_v8  ;;  %9163 = vst [vmem:[%s21790_s30 + $0x140] sm:$0xff] %v21937_v53  ;;  %v21955_v19 = vand.u32 4294901760, %v9377_v23 }
 0x94e   : > { %14952 = vmatmul.mubr.f32.vlgmr.msra.gmra.mrb[64].mxu1 %v9507_v5  ;;  %17794 = vrcp.f32 %v9235_v29  ;;  %9165 = vst [vmem:[%s21790_s30 + $0x150] sm:$0xff] %v16683_v17  ;;  %v9516_v60 = vsub.f32 %v21930_v10, %v23518_v39  ;;  %v21953_v5 = vsub.f32 %v9376_v61, %v21932_v21  ;;  %v7614_v3 = vpop.f32.mrb[54].mxu1  ;;  %v9100_v18 = vpop.f32.mrb[70].mxu0  ;;  %v9362_v29 = vmul.f32 %v17773_v46, %v9298_v9 }
 0x94f   : > { %16298 = vmatpush3.bf16.msra.mxu1 %v21622_v1  ;;  %v17781_v43 = vpop.eup %17780  ;;  %17796 = vpow2.f32 %v9343_v62  ;;  %9164 = vst [vmem:[%s21790_s30 + $0x148] sm:$0xff] %v16652_v33  ;;  %v9319_v1 = vmul.f32 0.5, %v16652_v33  ;;  %v13322_v16 = vmul.f32 -1.442695, %v16684_v55  ;;  %v21960_v61 = vadd.f32 %v7614_v3, %v21777_v63  ;;  %v7616_v26 = vpop.f32.mrb[55].mxu1  ;;  %v9299_v62 = vld [vmem:[%s21826_s5 + $0x30] sm:$0xff] }
 0x950   : > { %16300 = vmatprep.subr.bf16.mxu1 %v21637_v47  ;;  %v17783_v17 = vpop.eup %17782  ;;  %v9236_v7 = vadd.f32 1.0, %v17781_v43  ;;  %v9517_v45 = vand.u32 4294901760, %v9516_v60  ;;  %v16685_v39 = vadd.f32 %v9100_v18, %v21779_v57  ;;  %v9102_v48 = vpop.f32.mrb[71].mxu0  ;;  %v16654_v46 = vadd.f32 %v7616_v26, %v21783_v25 }
 0x951   : > { %v21964_v30 = vpop.eup %17784  ;;  %9281 = vst [vmem:[%s21790_s30 + $0x98] sm:$0xff] %v17783_v17  ;;  %v9345_v33 = vmul.f32 1.442695, %v9319_v1  ;;  %17798 = vpow2.f32 %v13322_v16  ;;  %v16686_v9 = vadd.f32 %v9102_v48, %v21785_v8  ;;  %9166 = vst [vmem:[%s21790_s30 + $0x160] sm:$0xff] %v21960_v61  ;;  %v23522_v55 = vand.u32 4294901760, %v21953_v5 }
 0x952   : > { %17800 = vrcp.f32 %v9236_v7  ;;  %14954 = vmatprep.mubr.f32.mxu1 %v9517_v45  ;;  %9168 = vst [vmem:[%s21790_s30 + $0x170] sm:$0xff] %v16685_v39  ;;  %v21975_v60 = vsub.f32 %v9377_v23, %v21955_v19  ;;  %v9378_v43 = vadd.f32 %v21851_v32, %v9362_v29  ;;  %9167 = vst [vmem:[%s21790_s30 + $0x168] sm:$0xff] %v16654_v46  ;;  %v9320_v48 = vmul.f32 0.5, %v16654_v46  ;;  %v9107_v16 = vpop.f32.mrb[72].mxu0 }
 0x953   : > { %16302 = vmatpush3.bf16.msra.mxu1 %v21637_v47  ;;  %v17787_v1 = vpop.eup %17786  ;;  %17802 = vpow2.f32 %v9345_v33  ;;  %v13323_v26 = vmul.f32 -1.442695, %v16686_v9  ;;  %v7621_v47 = vpop.f32.mrb[56].mxu1  ;;  %v9363_v3 = vmul.f32 %v17779_v15, %v9299_v62  ;;  %v9526_v23 = vsub.f32 %v21953_v5, %v23522_v55 }
 0x954   : > { %16304 = vmatprep.subr.bf16.mxu1 %v21663_v44  ;;  %v17789_v18 = vpop.eup %17788  ;;  %v9237_v39 = vadd.f32 1.0, %v17787_v1  ;;  %v21984_v32 = vadd.f32 %v7621_v47, %v21777_v63  ;;  %v16687_v29 = vadd.f32 %v9107_v16, %v21779_v57  ;;  %v7623_v17 = vpop.f32.mrb[57].mxu1  ;;  %v9347_v15 = vmul.f32 1.442695, %v9320_v48 }
 0x955   : > { %v9109_v7 = vpop.f32.mrb[73].mxu0  ;;  %v21987_v45 = vpop.eup %17790  ;;  %9282 = vst [vmem:[%s21790_s30 + $0xb8] sm:$0xff] %v17789_v18  ;;  %17804 = vpow2.f32 %v13323_v26  ;;  %v16656_v62 = vadd.f32 %v7623_v17, %v21783_v25  ;;  %v9527_v46 = vand.u32 4294901760, %v9526_v23  ;;  %v23523_v9 = vand.u32 4294901760, %v21975_v60 }
 0x956   : > { %v16688_v33 = vadd.f32 %v9109_v7, %v21785_v8  ;;  %17806 = vrcp.f32 %v9237_v39  ;;  %9169 = vst [vmem:[%s21790_s30 + $0x180] sm:$0xff] %v21984_v32  ;;  %9171 = vst [vmem:[%s21790_s30 + $0x190] sm:$0xff] %v16687_v29  ;;  %v21997_v1 = vand.u32 4294901760, %v9378_v43  ;;  %v7628_v16 = vpop.f32.mrb[58].mxu1  ;;  %v9379_v18 = vadd.f32 %v21866_v13, %v9363_v3 }
 0x957   : > { %16306 = vmatpush3.bf16.msra.mxu1 %v21663_v44  ;;  %v17793_v47 = vpop.eup %17792  ;;  %17808 = vpow2.f32 %v9347_v15  ;;  %9170 = vst [vmem:[%s21790_s30 + $0x188] sm:$0xff] %v16656_v62  ;;  %v9321_v48 = vmul.f32 0.5, %v16656_v62  ;;  %v9114_v44 = vpop.f32.mrb[74].mxu0  ;;  %v9536_v29 = vsub.f32 %v21975_v60, %v23523_v9  ;;  %v22006_v17 = vadd.f32 %v7628_v16, %v21777_v63 }
 0x958   : > { %16308 = vmatprep.subr.bf16.mxu1 %v21667_v58  ;;  %v13324_v26 = vmul.f32 -1.442695, %v16688_v33  ;;  %v17795_v39 = vpop.eup %17794  ;;  %v9238_v23 = vadd.f32 1.0, %v17793_v47  ;;  %14955 = vmatmul.mubr.f32.gmra.mrb[66].mxu1 %v9527_v46  ;;  %v16689_v7 = vadd.f32 %v9114_v44, %v21779_v57  ;;  %v7630_v15 = vpop.f32.mrb[59].mxu1  ;;  %v9300_v33 = vld [vmem:[%s21826_s5 + $0x38] sm:$0xff]  ;;  %v22020_v16 = vsub.f32 %v9378_v43, %v21997_v1 }
 0x959   : > { %v9116_v62 = vpop.f32.mrb[75].mxu0  ;;  %v22010_v55 = vpop.eup %17796  ;;  %9283 = vst [vmem:[%s21790_s30 + $0xd8] sm:$0xff] %v17795_v39  ;;  %v9349_v13 = vmul.f32 1.442695, %v9321_v48  ;;  %v16658_v3 = vadd.f32 %v7630_v15, %v21783_v25  ;;  %v9537_v47 = vand.u32 4294901760, %v9536_v29  ;;  %9172 = vst [vmem:[%s21790_s30 + $0x1a0] sm:$0xff] %v22006_v17  ;;  %v9364_v29 = vmul.f32 %v21964_v30, %v9300_v33 }
 0x95a   : > { %17810 = vpow2.f32 %v13324_v26  ;;  %v16690_v46 = vadd.f32 %v9116_v62, %v21785_v8  ;;  %9174 = vst [vmem:[%s21790_s30 + $0x1b0] sm:$0xff] %v16689_v7  ;;  %v22022_v44 = vand.u32 4294901760, %v9379_v18  ;;  %v23526_v43 = vand.u32 4294901760, %v22020_v16 }
 0x95b   : > { %16310 = vmatpush3.bf16.msra.mxu1 %v21667_v58  ;;  %17812 = vrcp.f32 %v9238_v23  ;;  %v17799_v48 = vpop.eup %17798  ;;  %9173 = vst [vmem:[%s21790_s30 + $0x1a8] sm:$0xff] %v16658_v3  ;;  %v9322_v26 = vmul.f32 0.5, %v16658_v3  ;;  %v7635_v58 = vpop.f32.mrb[60].mxu1  ;;  %14957 = vmatprep.mubr.f32.mxu1 %v9537_v47  ;;  %v9301_v3 = vld [vmem:[%s21826_s5 + $0x40] sm:$0xff] }
 0x95c   : > { %16312 = vmatprep.subr.bf16.mxu1 %v21687_v2  ;;  %17814 = vpow2.f32 %v9349_v13  ;;  %v13325_v39 = vmul.f32 -1.442695, %v16690_v46  ;;  %v9121_v23 = vpop.f32.mrb[76].mxu0  ;;  %v17801_v15 = vpop.eup %17800  ;;  %v9239_v7 = vadd.f32 1.0, %v17799_v48  ;;  %v22029_v62 = vadd.f32 %v7635_v58, %v21777_v63 }
 0x95d   : > { %v16691_v13 = vadd.f32 %v9121_v23, %v21779_v57  ;;  %v7637_v9 = vpop.f32.mrb[61].mxu1  ;;  %v9123_v40 = vpop.f32.mrb[77].mxu0  ;;  %9284 = vst [vmem:[%s21790_s30 + $0xf8] sm:$0xff] %v17801_v15  ;;  %v9351_v30 = vmul.f32 1.442695, %v9322_v26  ;;  %v9546_v48 = vsub.f32 %v22020_v16, %v23526_v43  ;;  %v22046_v58 = vsub.f32 %v9379_v18, %v22022_v44 }
 0x95e   : > { %v22033_v46 = vpop.eup %17802  ;;  %17816 = vpow2.f32 %v13325_v39  ;;  %v16660_v33 = vadd.f32 %v7637_v9, %v21783_v25  ;;  %v16692_v47 = vadd.f32 %v9123_v40, %v21785_v8  ;;  %9175 = vst [vmem:[%s21790_s30 + $0x1c0] sm:$0xff] %v22029_v62  ;;  %v9380_v26 = vadd.f32 %v21881_v14, %v9364_v29  ;;  %v7642_v39 = vpop.f32.mrb[62].mxu1 }
 0x95f   : > { %16314 = vmatpush3.bf16.msra.mxu1 %v21687_v2  ;;  %17818 = vrcp.f32 %v9239_v7  ;;  %9177 = vst [vmem:[%s21790_s30 + $0x1d0] sm:$0xff] %v16691_v13  ;;  %v17805_v9 = vpop.eup %17804  ;;  %v9128_v23 = vpop.f32.mrb[78].mxu0  ;;  %v9365_v15 = vmul.f32 %v21987_v45, %v9301_v3  ;;  %v9547_v43 = vand.u32 4294901760, %v9546_v48  ;;  %v9555_v18 = vand.u32 4294901760, %v22046_v58 }
 0x960   : > { %16316 = vmatprep.subr.bf16.mxu1 %v21728_v49  ;;  %17820 = vpow2.f32 %v9351_v30  ;;  %9176 = vst [vmem:[%s21790_s30 + $0x1c8] sm:$0xff] %v16660_v33  ;;  %v9323_v40 = vmul.f32 0.5, %v16660_v33  ;;  %v13326_v2 = vmul.f32 -1.442695, %v16692_v47  ;;  %v17807_v7 = vpop.eup %17806  ;;  %v9240_v13 = vadd.f32 1.0, %v17805_v9  ;;  %v7644_v29 = vpop.f32.mrb[63].mxu1 }
 0x961   : > { %v22054_v14 = vadd.f32 %v7642_v39, %v21777_v63  ;;  %v9130_v30 = vpop.f32.mrb[79].mxu0  ;;  %v17809_v59 = vpop.eup %17808  ;;  %9285 = vst [vmem:[%s21790_s30 + $0x118] sm:$0xff] %v17807_v7  ;;  %v16693_v45 = vadd.f32 %v9128_v23, %v21779_v57  ;;  %v16662_v3 = vadd.f32 %v7644_v29, %v21783_v25  ;;  %14958 = vmatmul.mubr.f32.gmra.mrb[68].mxu1 %v9547_v43  ;;  %v22067_v48 = vand.u32 4294901760, %v9380_v26  ;;  %v9303_v9 = vld [vmem:[%s21826_s5 + $0x50] sm:$0xff] }
 0x962   : > { %v9353_v33 = vmul.f32 1.442695, %v9323_v40  ;;  %17822 = vpow2.f32 %v13326_v2  ;;  %v9556_v63 = vsub.f32 %v22046_v58, %v9555_v18  ;;  %v16694_v47 = vadd.f32 %v9130_v30, %v21785_v8  ;;  %v9304_v40 = vld [vmem:[%s21826_s5 + $0x58] sm:$0xff]  ;;  %v9305_v2 = vld [vmem:[%s21826_s5 + $0x60] sm:$0xff] }
 0x963   : > { %16318 = vmatpush3.bf16.msra.mxu1 %v21728_v49  ;;  %17824 = vrcp.f32 %v9240_v13  ;;  %9178 = vst [vmem:[%s21790_s30 + $0x1e0] sm:$0xff] %v22054_v14  ;;  %9180 = vst [vmem:[%s21790_s30 + $0x1f0] sm:$0xff] %v16693_v45  ;;  %v9324_v49 = vmul.f32 0.5, %v16662_v3  ;;  %v9381_v57 = vadd.f32 %v21901_v22, %v9365_v15  ;;  %v9366_v43 = vmul.f32 %v22010_v55, %v9302_v12 }
 0x964   : > { %16320 = vmatprep.subr.bf16.mxu1 %v21741_v52  ;;  %v17811_v25 = vpop.eup %17810  ;;  %17826 = vpow2.f32 %v9353_v33  ;;  %9179 = vst [vmem:[%s21790_s30 + $0x1e8] sm:$0xff] %v16662_v3  ;;  %v9557_v8 = vand.u32 4294901760, %v9556_v63  ;;  %v13327_v7 = vmul.f32 -1.442695, %v16694_v47  ;;  %v22078_v13 = vsub.f32 %v9380_v26, %v22067_v48 }
 0x965   : > { %v17813_v39 = vpop.eup %17812  ;;  %v9241_v23 = vadd.f32 1.0, %v17811_v25  ;;  %v9355_v30 = vmul.f32 1.442695, %v9324_v49  ;;  %v22081_v33 = vand.u32 4294901760, %v9381_v57  ;;  %v9382_v45 = vadd.f32 %v21917_v54, %v9366_v43 }
 0x966   : > { %v17815_v29 = vpop.eup %17814  ;;  %9286 = vst [vmem:[%s21790_s30 + $0x138] sm:$0xff] %v17813_v39  ;;  %v9367_v22 = vmul.f32 %v22033_v46, %v9303_v9  ;;  %14960 = vmatprep.mubr.f32.mxu1 %v9557_v8  ;;  %v9565_v12 = vand.u32 4294901760, %v22078_v13  ;;  %v9368_v55 = vmul.f32 %v17809_v59, %v9304_v40  ;;  %v9306_v46 = vld [vmem:[%s21826_s5 + $0x68] sm:$0xff] }
 0x967   : > { %16322 = vmatpush3.bf16.msra.mxu1 %v21741_v52  ;;  %17828 = vrcp.f32 %v9241_v23  ;;  %v9369_v26 = vmul.f32 %v17815_v29, %v9305_v2  ;;  %v22089_v3 = vsub.f32 %v9381_v57, %v22081_v33  ;;  %v22091_v63 = vand.u32 4294901760, %v9382_v45 }
 0x968   : > { %16324 = vmatprep.subr.bf16.mxu1 %v21743_v31  ;;  %v17817_v15 = vpop.eup %17816  ;;  %17830 = vpow2.f32 %v9355_v30  ;;  %v9383_v54 = vadd.f32 %v21937_v53, %v9367_v22  ;;  %v9566_v59 = vsub.f32 %v22078_v13, %v9565_v12  ;;  %v9384_v9 = vadd.f32 %v21960_v61, %v9368_v55 }
 0x969   : > { %v17819_v52 = vpop.eup %17818  ;;  %v9242_v47 = vadd.f32 1.0, %v17817_v15  ;;  %17832 = vpow2.f32 %v13327_v7  ;;  %v9575_v49 = vand.u32 4294901760, %v22089_v3  ;;  %v22102_v57 = vsub.f32 %v9382_v45, %v22091_v63 }
 0x96a   : > { %v17821_v25 = vpop.eup %17820  ;;  %9287 = vst [vmem:[%s21790_s30 + $0x158] sm:$0xff] %v17819_v52  ;;  %v22104_v43 = vand.u32 4294901760, %v9383_v54  ;;  %v9385_v53 = vadd.f32 %v21984_v32, %v9369_v26  ;;  %v9567_v40 = vand.u32 4294901760, %v9566_v59  ;;  %v22108_v2 = vand.u32 4294901760, %v9384_v9 }
 0x96b   : > { %16326 = vmatpush3.bf16.msra.mxu1 %v21743_v31  ;;  %17834 = vrcp.f32 %v9242_v47  ;;  %v9370_v61 = vmul.f32 %v17821_v25, %v9306_v46  ;;  %v9576_v23 = vsub.f32 %v22089_v3, %v9575_v49  ;;  %v9585_v8 = vand.u32 4294901760, %v22102_v57  ;;  %v9307_v31 = vld [vmem:[%s21826_s5 + $0x70] sm:$0xff] }
 0x96c   : > { %16328 = vmatprep.subr.bf16.mxu1 %v21719_v28  ;;  %v17823_v39 = vpop.eup %17822  ;;  %v22116_v7 = vsub.f32 %v9383_v54, %v22104_v43  ;;  %v22118_v32 = vand.u32 4294901760, %v9385_v53  ;;  %14961 = vmatmul.mubr.f32.gmra.mrb[70].mxu1 %v9567_v40  ;;  %v22122_v45 = vsub.f32 %v9384_v9, %v22108_v2  ;;  %v9308_v40 = vld [vmem:[%s21826_s5 + $0x78] sm:$0xff] }
 0x96d   : > { %v17825_v29 = vpop.eup %17824  ;;  %v9243_v30 = vadd.f32 1.0, %v17823_v39  ;;  %v9386_v22 = vadd.f32 %v22006_v17, %v9370_v61  ;;  %v9577_v26 = vand.u32 4294901760, %v9576_v23  ;;  %v9586_v15 = vsub.f32 %v22102_v57, %v9585_v8 }
 0x96e   : > { %v17827_v55 = vpop.eup %17826  ;;  %9288 = vst [vmem:[%s21790_s30 + $0x178] sm:$0xff] %v17825_v29  ;;  %v23531_v54 = vand.u32 4294901760, %v22116_v7  ;;  %v22131_v46 = vsub.f32 %v9385_v53, %v22118_v32  ;;  %v23532_v52 = vand.u32 4294901760, %v22122_v45 }
 0x96f   : > { %17836 = vrcp.f32 %v9243_v30  ;;  %v22134_v47 = vand.u32 4294901760, %v9386_v22  ;;  %v9371_v59 = vmul.f32 %v17827_v55, %v9307_v31  ;;  %14963 = vmatprep.mubr.f32.mxu1 %v9577_v26  ;;  %v9587_v17 = vand.u32 4294901760, %v9586_v15 }
 0x970   : > { %v9596_v9 = vsub.f32 %v22116_v7, %v23531_v54  ;;  %v9615_v25 = vand.u32 4294901760, %v22131_v46  ;;  %v9606_v53 = vsub.f32 %v22122_v45, %v23532_v52 }
 0x971   : > { %v17829_v61 = vpop.eup %17828  ;;  %v22145_v39 = vsub.f32 %v9386_v22, %v22134_v47  ;;  %v9387_v23 = vadd.f32 %v22029_v62, %v9371_v59  ;;  %14964 = vmatmul.mubr.f32.gmra.mrb[72].mxu1 %v9587_v17 }
 0x972   : > { %v17831_v31 = vpop.eup %17830  ;;  %9289 = vst [vmem:[%s21790_s30 + $0x198] sm:$0xff] %v17829_v61  ;;  %v9597_v29 = vand.u32 4294901760, %v9596_v9  ;;  %v9616_v30 = vsub.f32 %v22131_v46, %v9615_v25  ;;  %v9607_v26 = vand.u32 4294901760, %v9606_v53 }
 0x973   : > { %v17833_v55 = vpop.eup %17832  ;;  %v23539_v15 = vand.u32 4294901760, %v22145_v39  ;;  %v22153_v54 = vand.u32 4294901760, %v9387_v23  ;;  %v9372_v52 = vmul.f32 %v17831_v31, %v9308_v40 }
 0x974   : > { %v9244_v22 = vadd.f32 1.0, %v17833_v55  ;;  %14966 = vmatprep.mubr.f32.mxu1 %v9597_v29  ;;  %v9617_v62 = vand.u32 4294901760, %v9616_v30 }
 0x975   : > { %v17835_v59 = vpop.eup %17834  ;;  %v9626_v17 = vsub.f32 %v22145_v39, %v23539_v15  ;;  %v22159_v9 = vsub.f32 %v9387_v23, %v22153_v54  ;;  %v9388_v61 = vadd.f32 %v22054_v14, %v9372_v52  ;;  %14967 = vmatmul.mubr.f32.gmra.mrb[74].mxu1 %v9607_v26 }
 0x976   : > { %9290 = vst [vmem:[%s21790_s30 + $0x1b8] sm:$0xff] %v17835_v59  ;;  %17838 = vrcp.f32 %v9244_v22  ;;  %14969 = vmatprep.mubr.f32.mxu1 %v9617_v62 }
 0x977   : > { %v9627_v40 = vand.u32 4294901760, %v9626_v17  ;;  %v23538_v53 = vand.u32 4294901760, %v22159_v9  ;;  %v22164_v31 = vand.u32 4294901760, %v9388_v61  ;;  %v24021_v17 = vld [vmem:[#allocation44_spill] sm:$0xff] }
 0x979   : > { %v17837_v29 = vpop.eup %17836  ;;  %v9636_v30 = vsub.f32 %v22159_v9, %v23538_v53  ;;  %v22170_v23 = vsub.f32 %v9388_v61, %v22164_v31  ;;  %14970 = vmatmul.mubr.f32.gmra.mrb[76].mxu1 %v9627_v40  ;;  %v24022_v61 = vld [vmem:[#allocation31_spill] sm:$0xff]  ;;  %v24023_v40 = vld [vmem:[#allocation30_spill] sm:$0xff]  ;;  %v24033_v53 = vand.u32 4294901760, %v21896_v37 }
 0x97a   : > { %9291 = vst [vmem:[%s21790_s30 + $0x1d8] sm:$0xff] %v17837_v29  ;;  %v24024_v29 = vld [vmem:[#allocation23_spill] sm:$0xff] }
 0x97b   : > { %v9637_v14 = vand.u32 4294901760, %v9636_v30  ;;  %v23537_v52 = vand.u32 4294901760, %v22170_v23  ;;  %v24025_v30 = vand.u32 4294901760, %v24024_v29  ;;  %v24034_v29 = vand.u32 4294901760, %v21930_v10 }
 0x97d   : > { %14972 = vmatprep.mubr.f32.mxu1 %v9637_v14  ;;  %v9646_v55 = vsub.f32 %v22170_v23, %v23537_v52  ;;  %v24026_v14 = vld [vmem:[#allocation39_spill] sm:$0xff] }
 0x97f   : > { %v9647_v26 = vand.u32 4294901760, %v9646_v55  ;;  %v24027_v55 = vand.u32 4294901760, %v24026_v14 }
 0x980   : > { %v17839_v22 = vpop.eup %17838 }
 0x981   : > { %9292 = vst [vmem:[%s21790_s30 + $0x1f8] sm:$0xff] %v17839_v22  ;;  %14973 = vmatmul.mubr.f32.gmra.mrb[78].mxu1 %v9647_v26  ;;  %v16391_v26 = vpack.c.bf16 %v24027_v55, %v24025_v30  ;;  %v24028_v22 = vand.u32 4294901760, %v21877_v27  ;;  %v24035_v30 = vld [vmem:[#allocation40_spill] sm:$0xff]  ;;  %v24037_v55 = vld [vmem:[#allocation15_spill] sm:$0xff] }
 0x982   : > { %15007 = vmatprep.mubr.f32.mxu1 %v21860_v4  ;;  %v24036_v14 = vand.u32 4294901760, %v24035_v30  ;;  %v24038_v15 = vand.u32 4294901760, %v24037_v55  ;;  %v24052_v30 = vld [vmem:[#allocation66_spill] sm:$0xff]  ;;  %v24057_v55 = vld [vmem:[#allocation68_spill] sm:$0xff] }
 0x985   : > { %15008 = vmatmul.mubr.f32.vlgmr.msra.gmra.mrb[64].mxu1 %v21871_v42 }
 0x986   : > { %16330 = vmatpush3.bf16.msra.mxu1 %v21719_v28  ;;  %15010 = vmatprep.mubr.f32.mxu1 %v21912_v56  ;;  %v22211_v28 = vld [vmem:[%s23151_s16] sm:$0xff] }
 0x987   : > { %16332 = vmatprep.subr.bf16.mxu1 %v21739_v41 }
 0x989   : > { %15011 = vmatmul.mubr.f32.gmra.mrb[66].mxu1 %v21932_v21 }
 0x98a   : > { %16334 = vmatpush3.bf16.msra.mxu1 %v21739_v41  ;;  %15013 = vmatprep.mubr.f32.mxu1 %v21955_v19  ;;  %v22216_v41 = vld [vmem:[%s23151_s16 + $0x8] sm:$0xff] }
 0x98b   : > { %16336 = vmatprep.subr.bf16.mxu1 %v21747_v38 }
 0x98d   : > { %15014 = vmatmul.mubr.f32.gmra.mrb[68].mxu1 %v21997_v1 }
 0x98e   : > { %16338 = vmatpush3.bf16.msra.mxu1 %v21747_v38  ;;  %15016 = vmatprep.mubr.f32.mxu1 %v22022_v44  ;;  %v22221_v38 = vld [vmem:[%s23151_s16 + $0x10] sm:$0xff] }
 0x98f   : > { %16340 = vmatprep.subr.bf16.mxu1 %v21751_v36 }
 0x991   : > { %15017 = vmatmul.mubr.f32.gmra.mrb[70].mxu1 %v22067_v48 }
 0x992   : > { %16342 = vmatpush3.bf16.msra.mxu1 %v21751_v36  ;;  %15019 = vmatprep.mubr.f32.mxu1 %v22081_v33  ;;  %v23536_v36 = vand.u32 4294901760, %v22211_v28 }
 0x993   : > { %16344 = vmatprep.subr.bf16.mxu1 %v21755_v0 }
 0x995   : > { %15020 = vmatmul.mubr.f32.gmra.mrb[72].mxu1 %v22091_v63 }
 0x996   : > { %16346 = vmatpush3.bf16.msra.mxu1 %v21755_v0  ;;  %15022 = vmatprep.mubr.f32.mxu1 %v22104_v43  ;;  %v23535_v0 = vand.u32 4294901760, %v22216_v41 }
 0x997   : > { %16348 = vmatprep.subr.bf16.mxu1 %v21759_v11 }
 0x999   : > { %15023 = vmatmul.mubr.f32.gmra.mrb[74].mxu1 %v22108_v2 }
 0x99a   : > { %16350 = vmatpush3.bf16.msra.mxu1 %v21759_v11  ;;  %15025 = vmatprep.mubr.f32.mxu1 %v22118_v32  ;;  %v22230_v11 = vld [vmem:[%s23151_s16 + $0x18] sm:$0xff] }
 0x99b   : > { %16352 = vmatprep.subr.bf16.mxu1 %v21763_v6  ;;  %v23533_v62 = vand.u32 4294901760, %v22230_v11 }
 0x99d   : > { %15026 = vmatmul.mubr.f32.gmra.mrb[76].mxu1 %v22134_v47 }
 0x99e   : > { %16354 = vmatpush3.bf16.msra.mxu1 %v21763_v6  ;;  %15028 = vmatprep.mubr.f32.mxu1 %v22153_v54  ;;  %v23534_v6 = vand.u32 4294901760, %v22221_v38 }
 0x99f   : > { %16356 = vmatprep.subr.bf16.mxu1 %v21772_v51 }
 0x9a0   : > { %v22246_v59 = vpack.c.bf16 %v23533_v62, %v23534_v6  ;;  %v24029_v62 = vld [vmem:[#allocation38_spill] sm:$0xff] }
 0x9a1   : > { %15029 = vmatmul.mubr.f32.gmra.mrb[78].mxu1 %v22164_v31  ;;  %v24030_v6 = vand.u32 4294901760, %v24029_v62  ;;  %v24045_v62 = vand.u32 4294901760, %v22020_v16 }
 0x9a2   : > { %16358 = vmatpush3.bf16.msra.mxu1 %v21772_v51  ;;  %15063 = vmatprep.mubr.f32.mxu1 %v21877_v27  ;;  %v22239_v51 = vpack.c.bf16 %v23535_v0, %v23536_v36  ;;  %v24031_v0 = vld [vmem:[#allocation41_spill] sm:$0xff]  ;;  %v16399_v27 = vpack.c.bf16 %v24038_v15, %v24036_v14  ;;  %v24053_v14 = vand.u32 4294901760, %v24052_v30 }
 0x9a3   : > { %16360 = vmatprep.subr.bf16.mxu1 %v21494_v24  ;;  %v24032_v36 = vand.u32 4294901760, %v24031_v0  ;;  %v24040_v0 = vand.u32 4294901760, %v21975_v60 }
 0x9a4   : > { %16456 = vmatprep.subr.bf16.mxu0 %v22239_v51 }
 0x9a5   : > { %15064 = vmatmul.mubr.f32.vlgmr.msra.gmra.mrb[64].mxu1 %v21896_v37  ;;  %16458 = vmatpush3.bf16.msra.mxu0 %v22239_v51  ;;  %v16395_v52 = vpack.c.bf16 %v24032_v36, %v24030_v6  ;;  %v24041_v37 = vld [vmem:[#allocation14_spill] sm:$0xff]  ;;  %v24043_v36 = vld [vmem:[#allocation21_spill] sm:$0xff] }
 0x9a6   : > { %16362 = vmatpush3.bf16.msra.mxu1 %v21494_v24  ;;  %15066 = vmatprep.mubr.f32.mxu1 %v21930_v10  ;;  %v24044_v6 = vand.u32 4294901760, %v24043_v36 }
 0x9a7   : > { %16364 = vmatprep.subr.bf16.mxu1 %v21504_v20  ;;  %16460 = vmatprep.subr.bf16.mxu0 %v22246_v59 }
 0x9a9   : > { %15067 = vmatmul.mubr.f32.gmra.mrb[66].mxu1 %v21953_v5  ;;  %16462 = vmatpush3.bf16.msra.mxu0 %v22246_v59 }
 0x9aa   : > { %16366 = vmatpush3.bf16.msra.mxu1 %v21504_v20  ;;  %15069 = vmatprep.mubr.f32.mxu1 %v21975_v60 }
 0x9ab   : > { %16368 = vmatprep.subr.bf16.mxu1 %v21514_v50 }
 0x9ad   : > { %15070 = vmatmul.mubr.f32.gmra.mrb[68].mxu1 %v22020_v16  ;;  %v24050_v16 = vld [vmem:[#allocation65_spill] sm:$0xff] }
 0x9ae   : > { %16370 = vmatpush3.bf16.msra.mxu1 %v21514_v50  ;;  %15072 = vmatprep.mubr.f32.mxu1 %v22046_v58 }
 0x9af   : > { %16372 = vmatprep.subr.bf16.mxu1 %v21524_v34 }
 0x9b1   : > { %15073 = vmatmul.mubr.f32.gmra.mrb[70].mxu1 %v22078_v13  ;;  %v24055_v13 = vld [vmem:[#allocation67_spill] sm:$0xff] }
 0x9b2   : > { %16374 = vmatpush3.bf16.msra.mxu1 %v21524_v34  ;;  %15075 = vmatprep.mubr.f32.mxu1 %v22089_v3 }
 0x9b3   : > { %16376 = vmatprep.subr.bf16.mxu1 %v21540_v35 }
 0x9b5   : > { %15076 = vmatmul.mubr.f32.gmra.mrb[72].mxu1 %v22102_v57  ;;  %v24060_v57 = vld [vmem:[#allocation63_spill] sm:$0xff] }
 0x9b6   : > { %16378 = vmatpush3.bf16.msra.mxu1 %v21540_v35  ;;  %15078 = vmatprep.mubr.f32.mxu1 %v22116_v7 }
 0x9b7   : > { %16380 = vmatprep.subr.bf16.mxu1 %v24021_v17 }
 0x9b9   : > { %15079 = vmatmul.mubr.f32.gmra.mrb[74].mxu1 %v22122_v45 }
 0x9ba   : > { %16382 = vmatpush3.bf16.msra.mxu1 %v24021_v17  ;;  %15081 = vmatprep.mubr.f32.mxu1 %v22131_v46 }
 0x9bb   : > { %16384 = vmatprep.subr.bf16.mxu1 %v24022_v61 }
 0x9bd   : > { %15082 = vmatmul.mubr.f32.gmra.mrb[76].mxu1 %v22145_v39 }
 0x9be   : > { %16386 = vmatpush3.bf16.msra.mxu1 %v24022_v61  ;;  %15084 = vmatprep.mubr.f32.mxu1 %v22159_v9 }
 0x9bf   : > { %16388 = vmatprep.subr.bf16.mxu1 %v24023_v40 }
 0x9c1   : > { %15085 = vmatmul.mubr.f32.gmra.mrb[78].mxu1 %v22170_v23 }
 0x9c2   : > { %16390 = vmatpush3.bf16.msra.mxu1 %v24023_v40  ;;  %15119 = vmatprep.mubr.f32.mxu1 %v24028_v22  ;;  %v24039_v22 = vand.u32 4294901760, %v21953_v5  ;;  %v24046_v5 = vld [vmem:[#allocation55_spill] sm:$0xff] }
 0x9c3   : > { %16392 = vmatprep.subr.bf16.mxu1 %v16391_v26  ;;  %v24047_v15 = vand.u32 4294901760, %v24046_v5 }
 0x9c5   : > { %15120 = vmatmul.mubr.f32.vlgmr.msra.gmra.mrb[64].mxu1 %v24033_v53  ;;  %v24042_v53 = vand.u32 4294901760, %v24041_v37  ;;  %v24064_v37 = vand.u32 4294901760, %v22145_v39 }
 0x9c6   : > { %16394 = vmatpush3.bf16.msra.mxu1 %v16391_v26  ;;  %15122 = vmatprep.mubr.f32.mxu1 %v24034_v29  ;;  %v24051_v29 = vand.u32 4294901760, %v24050_v16 }
 0x9c7   : > { %16396 = vmatprep.subr.bf16.mxu1 %v16395_v52  ;;  %v16403_v10 = vpack.c.bf16 %v24044_v6, %v24042_v53  ;;  %v24065_v53 = vand.u32 4294901760, %v22159_v9 }
 0x9c8   : > { %v16411_v58 = vpack.c.bf16 %v24053_v14, %v24051_v29 }
 0x9c9   : > { %15123 = vmatmul.mubr.f32.gmra.mrb[66].mxu1 %v24039_v22  ;;  %v24062_v22 = vld [vmem:[#allocation62_spill] sm:$0xff] }
 0x9ca   : > { %16398 = vmatpush3.bf16.msra.mxu1 %v16395_v52  ;;  %15125 = vmatprep.mubr.f32.mxu1 %v24040_v0  ;;  %v24048_v52 = vld [vmem:[#allocation54_spill] sm:$0xff]  ;;  %v24063_v0 = vand.u32 4294901760, %v24062_v22 }
 0x9cb   : > { %16400 = vmatprep.subr.bf16.mxu1 %v16399_v27  ;;  %v24049_v26 = vand.u32 4294901760, %v24048_v52 }
 0x9cd   : > { %15126 = vmatmul.mubr.f32.gmra.mrb[68].mxu1 %v24045_v62  ;;  %v16407_v60 = vpack.c.bf16 %v24049_v26, %v24047_v15 }
 0x9ce   : > { %16402 = vmatpush3.bf16.msra.mxu1 %v16399_v27  ;;  %15128 = vmatprep.mubr.f32.mxu1 %v9555_v18  ;;  %v24054_v18 = vand.u32 4294901760, %v22116_v7  ;;  %v24058_v27 = vand.u32 4294901760, %v24057_v55 }
 0x9cf   : > { %16404 = vmatprep.subr.bf16.mxu1 %v16403_v10 }
 0x9d1   : > { %15129 = vmatmul.mubr.f32.gmra.mrb[70].mxu1 %v9565_v12  ;;  %v24056_v12 = vand.u32 4294901760, %v24055_v13 }
 0x9d2   : > { %16406 = vmatpush3.bf16.msra.mxu1 %v16403_v10  ;;  %15131 = vmatprep.mubr.f32.mxu1 %v9575_v49  ;;  %v24059_v49 = vand.u32 4294901760, %v22122_v45  ;;  %v24066_v45 = vand.u32 4294901760, %v22170_v23 }
 0x9d3   : > { %16408 = vmatprep.subr.bf16.mxu1 %v16407_v60  ;;  %v16415_v3 = vpack.c.bf16 %v24058_v27, %v24056_v12 }
 0x9d5   : > { %15132 = vmatmul.mubr.f32.gmra.mrb[72].mxu1 %v9585_v8  ;;  %v24061_v8 = vand.u32 4294901760, %v24060_v57 }
 0x9d6   : > { %16410 = vmatpush3.bf16.msra.mxu1 %v16407_v60  ;;  %15134 = vmatprep.mubr.f32.mxu1 %v24054_v18 }
 0x9d7   : > { %16412 = vmatprep.subr.bf16.mxu1 %v16411_v58  ;;  %v16419_v7 = vpack.c.bf16 %v24063_v0, %v24061_v8 }
 0x9d9   : > { %15135 = vmatmul.mubr.f32.gmra.mrb[74].mxu1 %v24059_v49 }
 0x9da   : > { %16414 = vmatpush3.bf16.msra.mxu1 %v16411_v58  ;;  %15137 = vmatprep.mubr.f32.mxu1 %v9615_v25 }
 0x9db   : > { %16416 = vmatprep.subr.bf16.mxu1 %v16415_v3 }
 0x9dd   : > { %15138 = vmatmul.mubr.f32.gmra.mrb[76].mxu1 %v24064_v37 }
 0x9de   : > { %16418 = vmatpush3.bf16.msra.mxu1 %v16415_v3  ;;  %15140 = vmatprep.mubr.f32.mxu1 %v24065_v53 }
 0x9df   : > { %16420 = vmatprep.subr.bf16.mxu1 %v16419_v7 }
 0x9e1   : > { %15141 = vmatmul.mubr.f32.gmra.mrb[78].mxu1 %v24066_v45 }
 0x9e2   : > { %16422 = vmatpush3.bf16.msra.mxu1 %v16419_v7  ;;  %15175 = vmatprep.mubr.f32.mxu1 %v21860_v4 }
 0x9e3   : > { %16424 = vmatprep.subr.bf16.mxu1 %v21494_v24 }
 0x9e5   : > { %15176 = vmatmul.mubr.f32.vlgmr.msra.gmra.mrb[64].mxu1 %v21871_v42 }
 0x9e6   : > { %16426 = vmatpush3.bf16.msra.mxu1 %v21494_v24  ;;  %15178 = vmatprep.mubr.f32.mxu1 %v21912_v56  ;;  %v24067_v24 = vand.u32 4294901760, %v22211_v28 }
 0x9e7   : > { %16428 = vmatprep.subr.bf16.mxu1 %v21504_v20 }
 0x9e9   : > { %15179 = vmatmul.mubr.f32.gmra.mrb[66].mxu1 %v21932_v21 }
 0x9ea   : > { %16430 = vmatpush3.bf16.msra.mxu1 %v21504_v20  ;;  %15181 = vmatprep.mubr.f32.mxu1 %v21955_v19  ;;  %v22396_v20 = vsub.f32 %v22211_v28, %v24067_v24 }
 0x9eb   : > { %16432 = vmatprep.subr.bf16.mxu1 %v21514_v50 }
 0x9ed   : > { %15182 = vmatmul.mubr.f32.gmra.mrb[68].mxu1 %v21997_v1 }
 0x9ee   : > { %16434 = vmatpush3.bf16.msra.mxu1 %v21514_v50  ;;  %15184 = vmatprep.mubr.f32.mxu1 %v22022_v44  ;;  %v24068_v50 = vand.u32 4294901760, %v22216_v41 }
 0x9ef   : > { %16436 = vmatprep.subr.bf16.mxu1 %v21524_v34 }
 0x9f1   : > { %15185 = vmatmul.mubr.f32.gmra.mrb[70].mxu1 %v22067_v48 }
 0x9f2   : > { %16438 = vmatpush3.bf16.msra.mxu1 %v21524_v34  ;;  %15187 = vmatprep.mubr.f32.mxu1 %v22081_v33  ;;  %v22401_v34 = vsub.f32 %v22216_v41, %v24068_v50 }
 0x9f3   : > { %16440 = vmatprep.subr.bf16.mxu1 %v21540_v35 }
 0x9f5   : > { %15188 = vmatmul.mubr.f32.gmra.mrb[72].mxu1 %v22091_v63 }
 0x9f6   : > { %16442 = vmatpush3.bf16.msra.mxu1 %v21540_v35  ;;  %15190 = vmatprep.mubr.f32.mxu1 %v22104_v43  ;;  %v11005_v35 = vand.u32 4294901760, %v22396_v20 }
 0x9f7   : > { %16444 = vmatprep.subr.bf16.mxu1 %v24021_v17 }
 0x9f9   : > { %15191 = vmatmul.mubr.f32.gmra.mrb[74].mxu1 %v22108_v2 }
 0x9fa   : > { %16446 = vmatpush3.bf16.msra.mxu1 %v24021_v17  ;;  %15193 = vmatprep.mubr.f32.mxu1 %v22118_v32 }
 0x9fb   : > { %16448 = vmatprep.subr.bf16.mxu1 %v24022_v61 }
 0x9fd   : > { %15194 = vmatmul.mubr.f32.gmra.mrb[76].mxu1 %v22134_v47 }
 0x9fe   : > { %16450 = vmatpush3.bf16.msra.mxu1 %v24022_v61  ;;  %15196 = vmatprep.mubr.f32.mxu1 %v22153_v54 }
 0x9ff   : > { %16452 = vmatprep.subr.bf16.mxu1 %v24023_v40 }
 0xa01   : > { %15197 = vmatmul.mubr.f32.gmra.mrb[78].mxu1 %v22164_v31 }
 0xa02   : > { %16454 = vmatpush3.bf16.msra.mxu1 %v24023_v40  ;;  %15231 = vmatprep.mubr.f32.mxu1 %v21860_v4  ;;  %v11006_v4 = vsub.f32 %v22396_v20, %v11005_v35 }
 0xa05   : > { %15232 = vmatmul.mubr.f32.vlgmr.msra.gmra.mrb[64].mxu1 %v21871_v42  ;;  %v11012_v42 = vand.u32 4294901760, %v22401_v34 }
 0xa06   : > { %15234 = vmatprep.mubr.f32.mxu1 %v21912_v56 }
 0xa07   : > { %v11013_v56 = vsub.f32 %v22401_v34, %v11012_v42 }
 0xa09   : > { %15235 = vmatmul.mubr.f32.gmra.mrb[66].mxu1 %v21932_v21  ;;  %v11007_v21 = vand.u32 4294901760, %v11006_v4 }
 0xa0a   : > { %15237 = vmatprep.mubr.f32.mxu1 %v21955_v19  ;;  %v11014_v19 = vand.u32 4294901760, %v11013_v56 }
 0xa0d   : > { %15238 = vmatmul.mubr.f32.gmra.mrb[68].mxu1 %v21997_v1  ;;  %v22411_v1 = vpack.c.bf16 %v11014_v19, %v11007_v21 }
 0xa0e   : > { %15240 = vmatprep.mubr.f32.mxu1 %v22022_v44  ;;  %v22416_v44 = vpack.c.bf16 %v22401_v34, %v22396_v20 }
 0xa0f   : > { %16464 = vmatprep.subr.bf16.mxu0 %v22411_v1 }
 0xa11   : > { %15241 = vmatmul.mubr.f32.gmra.mrb[70].mxu1 %v22067_v48  ;;  %v24069_v48 = vand.u32 4294901760, %v22221_v38 }
 0xa12   : > { %15243 = vmatprep.mubr.f32.mxu1 %v22081_v33 }
 0xa13   : > { %v22421_v33 = vsub.f32 %v22221_v38, %v24069_v48 }
 0xa15   : > { %15244 = vmatmul.mubr.f32.gmra.mrb[72].mxu1 %v22091_v63  ;;  %v24070_v63 = vand.u32 4294901760, %v22230_v11 }
 0xa16   : > { %15246 = vmatprep.mubr.f32.mxu1 %v22104_v43 }
 0xa17   : > { %v22426_v43 = vsub.f32 %v22230_v11, %v24070_v63 }
 0xa19   : > { %15247 = vmatmul.mubr.f32.gmra.mrb[74].mxu1 %v22108_v2  ;;  %v22431_v2 = vld [vmem:[%s23150_s15] ss:$0 sm:$0xff]  ;;  %v11026_v25 = vand.u32 4294901760, %v22426_v43 }
 0xa1a   : > { %15249 = vmatprep.mubr.f32.mxu1 %v22118_v32 }
 0xa1b   : > { %v11027_v17 = vsub.f32 %v22426_v43, %v11026_v25 }
 0xa1d   : > { %15250 = vmatmul.mubr.f32.gmra.mrb[76].mxu1 %v22134_v47  ;;  %v11028_v30 = vand.u32 4294901760, %v11027_v17 }
 0xa1e   : > { %15252 = vmatprep.mubr.f32.mxu1 %v22153_v54  ;;  %v11019_v54 = vand.u32 4294901760, %v22421_v33 }
 0xa20   : > { %v11020_v28 = vsub.f32 %v22421_v33, %v11019_v54  ;;  %v16491_v20 = vpack.c.bf16 %v11026_v25, %v11019_v54 }
 0xa21   : > { %15253 = vmatmul.mubr.f32.gmra.mrb[78].mxu1 %v22164_v31 }
 0xa22   : > { %v11021_v52 = vand.u32 4294901760, %v11020_v28 }
 0xa24   : > { %v16467_v4 = vpack.c.bf16 %v11028_v30, %v11021_v52 }
 0xad8   : > { %v15233_v32 = vpop.f32.mrb[64].mxu1 }
 0xad9   : > { %v16695_v46 = vadd.f32 %v15233_v32, %v22431_v2  ;;  %v10604_v47 = vpop.f32.mrb[65].mxu1 }
 0xada   : > { %v16696_v39 = vadd.f32 %v22431_v2, %v10604_v47 }
 0xadb   : > { %v10699_v9 = vmax.f32 %v16695_v46, 0.0 }
 0xadc   : > { %v10698_v31 = vmax.f32 %v16696_v39, 0.0  ;;  %v15236_v23 = vpop.f32.mrb[66].mxu1 }
 0xadd   : > { %v10729_v41 = vsel %vm811_vm0, %v10699_v9, 0  ;;  %v16697_v38 = vadd.f32 %v15236_v23, %v22431_v2  ;;  %v10616_v11 = vpop.f32.mrb[67].mxu1 }
 0xade   : > { %v22445_v61 = vand.u32 4294901760, %v10729_v41  ;;  %v10726_v40 = vsel %vm811_vm0, %v10698_v31, 0  ;;  %v16698_v36 = vadd.f32 %v22431_v2, %v10616_v11 }
 0xadf   : > { %v22449_v6 = vand.u32 4294901760, %v10726_v40  ;;  %v10701_v10 = vmax.f32 %v16697_v38, 0.0 }
 0xae0   : > { %v22452_v62 = vsub.f32 %v10729_v41, %v22445_v61  ;;  %v10700_v5 = vmax.f32 %v16698_v36, 0.0  ;;  %v15239_v15 = vpop.f32.mrb[68].mxu1 }
 0xae1   : > { %v22455_v26 = vsub.f32 %v10726_v40, %v22449_v6  ;;  %v10735_v60 = vsel %vm811_vm0, %v10701_v10, 0  ;;  %v16699_v16 = vadd.f32 %v15239_v15, %v22431_v2  ;;  %v10628_v29 = vpop.f32.mrb[69].mxu1 }
 0xae2   : > { %v10854_v14 = vand.u32 4294901760, %v22452_v62  ;;  %v22460_v58 = vand.u32 4294901760, %v10735_v60  ;;  %v10732_v18 = vsel %vm811_vm0, %v10700_v5, 0  ;;  %v16700_v13 = vadd.f32 %v22431_v2, %v10628_v29 }
 0xae3   : > { %v22464_v12 = vand.u32 4294901760, %v10732_v18  ;;  %v10703_v55 = vmax.f32 %v16699_v16, 0.0  ;;  %v10844_v27 = vand.u32 4294901760, %v22455_v26 }
 0xae4   : > { %v10855_v3 = vsub.f32 %v22452_v62, %v10854_v14  ;;  %v22471_v49 = vsub.f32 %v10735_v60, %v22460_v58  ;;  %v10702_v57 = vmax.f32 %v16700_v13, 0.0  ;;  %v15242_v8 = vpop.f32.mrb[70].mxu1 }
 0xae5   : > { %v22474_v22 = vsub.f32 %v10732_v18, %v22464_v12  ;;  %v10741_v0 = vsel %vm811_vm0, %v10703_v55, 0  ;;  %v16701_v7 = vadd.f32 %v15242_v8, %v22431_v2  ;;  %v10640_v37 = vpop.f32.mrb[71].mxu1  ;;  %v10845_v53 = vsub.f32 %v22455_v26, %v10844_v27 }
 0xae6   : > { %v22481_v45 = vand.u32 4294901760, %v10741_v0  ;;  %v10738_v24 = vsel %vm811_vm0, %v10702_v57, 0  ;;  %v16702_v50 = vadd.f32 %v22431_v2, %v10640_v37  ;;  %v10856_v63 = vand.u32 4294901760, %v10855_v3 }
 0xae7   : > { %v22485_v56 = vand.u32 4294901760, %v10738_v24  ;;  %v10705_v21 = vmax.f32 %v16701_v7, 0.0  ;;  %v10846_v19 = vand.u32 4294901760, %v10845_v53  ;;  %v10864_v48 = vand.u32 4294901760, %v22474_v22 }
 0xae8   : > { %v22489_v32 = vsub.f32 %v10741_v0, %v22481_v45  ;;  %v10704_v46 = vmax.f32 %v16702_v50, 0.0  ;;  %v15245_v47 = vpop.f32.mrb[72].mxu1  ;;  %v10874_v39 = vand.u32 4294901760, %v22471_v49 }
 0xae9   : > { %v22493_v9 = vsub.f32 %v10738_v24, %v22485_v56  ;;  %v10747_v31 = vsel %vm811_vm0, %v10705_v21, 0  ;;  %v16703_v23 = vadd.f32 %v15245_v47, %v22431_v2  ;;  %v10652_v28 = vpop.f32.mrb[73].mxu1  ;;  %15263 = vmatprep.mubr.f32.mxu0 %v10846_v19  ;;  %v10865_v41 = vsub.f32 %v22474_v22, %v10864_v48 }
 0xaea   : > { %v22500_v38 = vand.u32 4294901760, %v10747_v31  ;;  %v10744_v11 = vsel %vm811_vm0, %v10704_v46, 0  ;;  %v16704_v17 = vadd.f32 %v22431_v2, %v10652_v28  ;;  %15264 = vmatmul.mubr.f32.vlgmr.msra.gmra.mrb[80].mxu0 %v10856_v63  ;;  %v10875_v40 = vsub.f32 %v22471_v49, %v10874_v39 }
 0xaeb   : > { %v22507_v36 = vand.u32 4294901760, %v10744_v11  ;;  %v10707_v10 = vmax.f32 %v16703_v23, 0.0  ;;  %16466 = vmatpush3.bf16.msra.mxu0 %v22411_v1  ;;  %v10866_v5 = vand.u32 4294901760, %v10865_v41  ;;  %v10884_v15 = vand.u32 4294901760, %v22493_v9 }
 0xaec   : > { %v22512_v52 = vsub.f32 %v10747_v31, %v22500_v38  ;;  %v10706_v60 = vmax.f32 %v16704_v17, 0.0  ;;  %v15248_v16 = vpop.f32.mrb[74].mxu1  ;;  %v10876_v29 = vand.u32 4294901760, %v10875_v40  ;;  %v10894_v30 = vand.u32 4294901760, %v22489_v32  ;;  %16468 = vmatprep.subr.bf16.mxu0 %v16467_v4 }
 0xaed   : > { %v22516_v18 = vsub.f32 %v10744_v11, %v22507_v36  ;;  %v10753_v13 = vsel %vm811_vm0, %v10707_v10, 0  ;;  %v16705_v55 = vadd.f32 %v15248_v16, %v22431_v2  ;;  %v10664_v1 = vpop.f32.mrb[75].mxu1  ;;  %15266 = vmatprep.mubr.f32.mxu0 %v10866_v5  ;;  %v10885_v3 = vsub.f32 %v22493_v9, %v10884_v15 }
 0xaee   : > { %v22523_v57 = vand.u32 4294901760, %v10753_v13  ;;  %v10750_v8 = vsel %vm811_vm0, %v10706_v60, 0  ;;  %v16706_v0 = vadd.f32 %v22431_v2, %v10664_v1  ;;  %15267 = vmatmul.mubr.f32.gmra.mrb[82].mxu0 %v10876_v29  ;;  %v10895_v7 = vsub.f32 %v22489_v32, %v10894_v30 }
 0xaef   : > { %v22530_v37 = vand.u32 4294901760, %v10750_v8  ;;  %v10709_v53 = vmax.f32 %v16705_v55, 0.0  ;;  %v10886_v24 = vand.u32 4294901760, %v10885_v3  ;;  %v10904_v50 = vand.u32 4294901760, %v22516_v18  ;;  %16470 = vmatpush3.bf16.msra.mxu0 %v16467_v4 }
 0xaf0   : > { %v22534_v21 = vsub.f32 %v10753_v13, %v22523_v57  ;;  %v10708_v19 = vmax.f32 %v16706_v0, 0.0  ;;  %v15251_v63 = vpop.f32.mrb[76].mxu1  ;;  %v10896_v46 = vand.u32 4294901760, %v10895_v7  ;;  %v10914_v47 = vand.u32 4294901760, %v22512_v52  ;;  %16472 = vmatprep.subr.bf16.mxu0 %v22416_v44 }
 0xaf1   : > { %v22539_v31 = vsub.f32 %v10750_v8, %v22530_v37  ;;  %v10759_v23 = vsel %vm811_vm0, %v10709_v53, 0  ;;  %v16707_v28 = vadd.f32 %v15251_v63, %v22431_v2  ;;  %v10676_v41 = vpop.f32.mrb[77].mxu1  ;;  %15269 = vmatprep.mubr.f32.mxu0 %v10886_v24  ;;  %v10905_v4 = vsub.f32 %v22516_v18, %v10904_v50 }
 0xaf2   : > { %v22546_v11 = vand.u32 4294901760, %v10759_v23  ;;  %v10756_v17 = vsel %vm811_vm0, %v10708_v19, 0  ;;  %v16708_v40 = vadd.f32 %v22431_v2, %v10676_v41  ;;  %15270 = vmatmul.mubr.f32.gmra.mrb[84].mxu0 %v10896_v46  ;;  %v10915_v10 = vsub.f32 %v22512_v52, %v10914_v47 }
 0xaf3   : > { %v22553_v5 = vand.u32 4294901760, %v10756_v17  ;;  %v10711_v60 = vmax.f32 %v16707_v28, 0.0  ;;  %v10906_v16 = vand.u32 4294901760, %v10905_v4  ;;  %v10924_v29 = vand.u32 4294901760, %v22539_v31 }
 0xaf4   : > { %v22557_v13 = vsub.f32 %v10759_v23, %v22546_v11  ;;  %v10710_v55 = vmax.f32 %v16708_v40, 0.0  ;;  %v15254_v1 = vpop.f32.mrb[78].mxu1  ;;  %v10916_v3 = vand.u32 4294901760, %v10915_v10  ;;  %v23542_v8 = vand.u32 4294901760, %v22534_v21 }
 0xaf5   : > { %v22561_v0 = vsub.f32 %v10756_v17, %v22553_v5  ;;  %v10765_v7 = vsel %vm811_vm0, %v10711_v60, 0  ;;  %v16709_v53 = vadd.f32 %v15254_v1, %v22431_v2  ;;  %v10688_v24 = vpop.f32.mrb[79].mxu1  ;;  %15272 = vmatprep.mubr.f32.mxu0 %v10906_v16  ;;  %v10925_v19 = vsub.f32 %v22539_v31, %v10924_v29 }
 0xaf6   : > { %v22568_v63 = vand.u32 4294901760, %v10765_v7  ;;  %v10762_v46 = vsel %vm811_vm0, %v10710_v55, 0  ;;  %v16710_v23 = vadd.f32 %v22431_v2, %v10688_v24  ;;  %15273 = vmatmul.mubr.f32.gmra.mrb[86].mxu0 %v10916_v3  ;;  %v10935_v28 = vsub.f32 %v22534_v21, %v23542_v8 }
 0xaf7   : > { %v22575_v41 = vand.u32 4294901760, %v10762_v46  ;;  %v10713_v4 = vmax.f32 %v16709_v53, 0.0  ;;  %v10926_v17 = vand.u32 4294901760, %v10925_v19  ;;  %v23541_v40 = vand.u32 4294901760, %v22561_v0 }
 0xaf8   : > { %v22579_v10 = vsub.f32 %v10765_v7, %v22568_v63  ;;  %v10712_v60 = vmax.f32 %v16710_v23, 0.0  ;;  %v10936_v16 = vand.u32 4294901760, %v10935_v28  ;;  %v23540_v55 = vand.u32 4294901760, %v22557_v13 }
 0xaf9   : > { %v22583_v2 = vsub.f32 %v10762_v46, %v22575_v41  ;;  %v10771_v1 = vsel %vm811_vm0, %v10713_v4, 0  ;;  %15275 = vmatprep.mubr.f32.mxu0 %v10926_v17  ;;  %v10945_v3 = vsub.f32 %v22561_v0, %v23541_v40  ;;  %v24071_v34 = vand.u32 4294901760, %v22534_v21 }
 0xafa   : > { %v22589_v53 = vand.u32 4294901760, %v10771_v1  ;;  %v10768_v24 = vsel %vm811_vm0, %v10712_v60, 0  ;;  %15276 = vmatmul.mubr.f32.gmra.mrb[88].mxu0 %v10936_v16  ;;  %v10955_v7 = vsub.f32 %v22557_v13, %v23540_v55  ;;  %v23543_v19 = vand.u32 4294901760, %v22579_v10 }
 0xafb   : > { %v22596_v46 = vand.u32 4294901760, %v10768_v24  ;;  %v10946_v23 = vand.u32 4294901760, %v10945_v3  ;;  %v10964_v28 = vand.u32 4294901760, %v22583_v2 }
 0xafc   : > { %v22600_v4 = vsub.f32 %v10771_v1, %v22589_v53  ;;  %v10956_v17 = vand.u32 4294901760, %v10955_v7  ;;  %v10975_v60 = vsub.f32 %v22579_v10, %v23543_v19 }
 0xafd   : > { %v22606_v16 = vsub.f32 %v10768_v24, %v22596_v46  ;;  %15278 = vmatprep.mubr.f32.mxu0 %v10946_v23  ;;  %v10965_v55 = vsub.f32 %v22583_v2, %v10964_v28 }
 0xafe   : > { %15279 = vmatmul.mubr.f32.gmra.mrb[90].mxu0 %v10956_v17  ;;  %v10994_v3 = vand.u32 4294901760, %v22600_v4  ;;  %v10976_v8 = vand.u32 4294901760, %v10975_v60  ;;  %v16487_v60 = vpack.c.bf16 %v11012_v42, %v11005_v35  ;;  %v24072_v35 = vand.u32 4294901760, %v22561_v0 }
 0xaff   : > { %v10966_v40 = vand.u32 4294901760, %v10965_v55  ;;  %v10984_v1 = vand.u32 4294901760, %v22606_v16  ;;  %v16475_v55 = vpack.c.bf16 %v22426_v43, %v22421_v33  ;;  %v24073_v42 = vand.u32 4294901760, %v22557_v13 }
 0xb00   : > { %v10995_v7 = vsub.f32 %v22600_v4, %v10994_v3  ;;  %v24074_v33 = vand.u32 4294901760, %v22579_v10 }
 0xb01   : > { %15281 = vmatprep.mubr.f32.mxu0 %v10966_v40  ;;  %v10985_v24 = vsub.f32 %v22606_v16, %v10984_v1 }
 0xb02   : > { %15282 = vmatmul.mubr.f32.gmra.mrb[92].mxu0 %v10976_v8  ;;  %v10996_v19 = vand.u32 4294901760, %v10995_v7  ;;  %v22647_v8 = vld [vmem:[%s23153_s18 + $0x8] sm:$0xff] }
 0xb03   : > { %v10986_v23 = vand.u32 4294901760, %v10985_v24 }
 0xb05   : > { %15284 = vmatprep.mubr.f32.mxu0 %v10986_v23 }
 0xb06   : > { %15285 = vmatmul.mubr.f32.gmra.mrb[94].mxu0 %v10996_v19  ;;  %v11982_v19 = vand.u32 4294901760, %v22647_v8 }
 0xb07   : > { %15295 = vmatprep.mubr.f32.mxu0 %v22449_v6 }
 0xb0a   : > { %15296 = vmatmul.mubr.f32.vlgmr.msra.gmra.mrb[80].mxu0 %v22445_v61 }
 0xb0b   : > { %16474 = vmatpush3.bf16.msra.mxu0 %v22416_v44  ;;  %15298 = vmatprep.mubr.f32.mxu0 %v22464_v12  ;;  %v22642_v44 = vld [vmem:[%s23153_s18] sm:$0xff] }
 0xb0c   : > { %16476 = vmatprep.subr.bf16.mxu0 %v16475_v55  ;;  %v11979_v40 = vand.u32 4294901760, %v22642_v44 }
 0xb0e   : > { %15299 = vmatmul.mubr.f32.gmra.mrb[82].mxu0 %v22460_v58  ;;  %v22656_v17 = vpack.c.bf16 %v11982_v19, %v11979_v40 }
 0xb0f   : > { %15301 = vmatprep.mubr.f32.mxu0 %v22485_v56  ;;  %16478 = vmatpush3.bf16.msra.mxu0 %v16475_v55 }
 0xb10   : > { %16480 = vmatprep.subr.bf16.mxu0 %v22239_v51  ;;  %16504 = vmatprep.subr.bf16.mxu1 %v22656_v17 }
 0xb11   : > { %16506 = vmatpush3.bf16.msra.mxu1 %v22656_v17 }
 0xb12   : > { %15302 = vmatmul.mubr.f32.gmra.mrb[84].mxu0 %v22481_v45 }
 0xb13   : > { %15304 = vmatprep.mubr.f32.mxu0 %v22507_v36 }
 0xb16   : > { %15305 = vmatmul.mubr.f32.gmra.mrb[86].mxu0 %v22500_v38 }
 0xb17   : > { %15307 = vmatprep.mubr.f32.mxu0 %v22530_v37 }
 0xb1a   : > { %15308 = vmatmul.mubr.f32.gmra.mrb[88].mxu0 %v22523_v57 }
 0xb1b   : > { %15310 = vmatprep.mubr.f32.mxu0 %v22553_v5 }
 0xb1e   : > { %15311 = vmatmul.mubr.f32.gmra.mrb[90].mxu0 %v22546_v11 }
 0xb1f   : > { %15313 = vmatprep.mubr.f32.mxu0 %v22575_v41 }
 0xb22   : > { %15314 = vmatmul.mubr.f32.gmra.mrb[92].mxu0 %v22568_v63 }
 0xb23   : > { %15316 = vmatprep.mubr.f32.mxu0 %v22596_v46 }
 0xb26   : > { %15317 = vmatmul.mubr.f32.gmra.mrb[94].mxu0 %v22589_v53 }
 0xb27   : > { %15327 = vmatprep.mubr.f32.mxu0 %v22455_v26 }
 0xb2a   : > { %15328 = vmatmul.mubr.f32.vlgmr.msra.gmra.mrb[80].mxu0 %v22452_v62 }
 0xb2b   : > { %16482 = vmatpush3.bf16.msra.mxu0 %v22239_v51  ;;  %15330 = vmatprep.mubr.f32.mxu0 %v22474_v22 }
 0xb2c   : > { %16484 = vmatprep.subr.bf16.mxu0 %v22246_v59 }
 0xb2e   : > { %15331 = vmatmul.mubr.f32.gmra.mrb[82].mxu0 %v22471_v49 }
 0xb2f   : > { %15333 = vmatprep.mubr.f32.mxu0 %v22493_v9  ;;  %16486 = vmatpush3.bf16.msra.mxu0 %v22246_v59 }
 0xb30   : > { %16488 = vmatprep.subr.bf16.mxu0 %v16487_v60 }
 0xb32   : > { %15334 = vmatmul.mubr.f32.gmra.mrb[84].mxu0 %v22489_v32 }
 0xb33   : > { %15336 = vmatprep.mubr.f32.mxu0 %v22516_v18 }
 0xb36   : > { %15337 = vmatmul.mubr.f32.gmra.mrb[86].mxu0 %v22512_v52 }
 0xb37   : > { %15339 = vmatprep.mubr.f32.mxu0 %v22539_v31 }
 0xb3a   : > { %15340 = vmatmul.mubr.f32.gmra.mrb[88].mxu0 %v22534_v21 }
 0xb3b   : > { %15342 = vmatprep.mubr.f32.mxu0 %v22561_v0 }
 0xb3e   : > { %15343 = vmatmul.mubr.f32.gmra.mrb[90].mxu0 %v22557_v13 }
 0xb3f   : > { %15345 = vmatprep.mubr.f32.mxu0 %v22583_v2 }
 0xb42   : > { %15346 = vmatmul.mubr.f32.gmra.mrb[92].mxu0 %v22579_v10 }
 0xb43   : > { %15348 = vmatprep.mubr.f32.mxu0 %v22606_v16 }
 0xb46   : > { %15349 = vmatmul.mubr.f32.gmra.mrb[94].mxu0 %v22600_v4 }
 0xb47   : > { %15359 = vmatprep.mubr.f32.mxu0 %v10844_v27 }
 0xb4a   : > { %15360 = vmatmul.mubr.f32.vlgmr.msra.gmra.mrb[80].mxu0 %v10854_v14 }
 0xb4b   : > { %16490 = vmatpush3.bf16.msra.mxu0 %v16487_v60  ;;  %15362 = vmatprep.mubr.f32.mxu0 %v10864_v48 }
 0xb4c   : > { %16492 = vmatprep.subr.bf16.mxu0 %v16491_v20 }
 0xb4e   : > { %15363 = vmatmul.mubr.f32.gmra.mrb[82].mxu0 %v10874_v39 }
 0xb4f   : > { %15365 = vmatprep.mubr.f32.mxu0 %v10884_v15  ;;  %16494 = vmatpush3.bf16.msra.mxu0 %v16491_v20 }
 0xb50   : > { %16496 = vmatprep.subr.bf16.mxu0 %v22239_v51 }
 0xb52   : > { %15366 = vmatmul.mubr.f32.gmra.mrb[84].mxu0 %v10894_v30  ;;  %v22810_v30 = vld [vmem:[%s23152_s17] ss:$0 sm:$0xff] }
 0xb53   : > { %15368 = vmatprep.mubr.f32.mxu0 %v10904_v50 }
 0xb56   : > { %15369 = vmatmul.mubr.f32.gmra.mrb[86].mxu0 %v10914_v47 }
 0xb57   : > { %15371 = vmatprep.mubr.f32.mxu0 %v10924_v29 }
 0xb5a   : > { %15372 = vmatmul.mubr.f32.gmra.mrb[88].mxu0 %v24071_v34 }
 0xb5b   : > { %15374 = vmatprep.mubr.f32.mxu0 %v24072_v35 }
 0xb5e   : > { %15375 = vmatmul.mubr.f32.gmra.mrb[90].mxu0 %v24073_v42 }
 0xb5f   : > { %15377 = vmatprep.mubr.f32.mxu0 %v10964_v28 }
 0xb62   : > { %15378 = vmatmul.mubr.f32.gmra.mrb[92].mxu0 %v24074_v33 }
 0xb63   : > { %15380 = vmatprep.mubr.f32.mxu0 %v10984_v1 }
 0xb66   : > { %15381 = vmatmul.mubr.f32.gmra.mrb[94].mxu0 %v10994_v3 }
 0xb67   : > { %15391 = vmatprep.mubr.f32.mxu0 %v22449_v6 }
 0xb6a   : > { %15392 = vmatmul.mubr.f32.vlgmr.msra.gmra.mrb[80].mxu0 %v22445_v61 }
 0xb6b   : > { %16498 = vmatpush3.bf16.msra.mxu0 %v22239_v51  ;;  %15394 = vmatprep.mubr.f32.mxu0 %v22464_v12  ;;  %v11921_v51 = vld [vmem:[%s23153_s18 + $0x10] sm:$0xff] }
 0xb6c   : > { %16500 = vmatprep.subr.bf16.mxu0 %v22246_v59  ;;  %v11985_v43 = vand.u32 4294901760, %v11921_v51 }
 0xb6e   : > { %15395 = vmatmul.mubr.f32.gmra.mrb[82].mxu0 %v22460_v58  ;;  %v22785_v22 = vsub.f32 %v11921_v51, %v11985_v43 }
 0xb6f   : > { %15397 = vmatprep.mubr.f32.mxu0 %v22485_v56  ;;  %16502 = vmatpush3.bf16.msra.mxu0 %v22246_v59  ;;  %v11922_v59 = vld [vmem:[%s23153_s18 + $0x18] sm:$0xff] }
 0xb70   : > { %v11988_v54 = vand.u32 4294901760, %v11922_v59 }
 0xb72   : > { %15398 = vmatmul.mubr.f32.gmra.mrb[84].mxu0 %v22481_v45  ;;  %v22760_v25 = vpack.c.bf16 %v11988_v54, %v11985_v43 }
 0xb73   : > { %15400 = vmatprep.mubr.f32.mxu0 %v22507_v36 }
 0xb74   : > { %16508 = vmatprep.subr.bf16.mxu1 %v22760_v25 }
 0xb75   : > { %16510 = vmatpush3.bf16.msra.mxu1 %v22760_v25 }
 0xb76   : > { %15401 = vmatmul.mubr.f32.gmra.mrb[86].mxu0 %v22500_v38 }
 0xb77   : > { %15403 = vmatprep.mubr.f32.mxu0 %v22530_v37 }
 0xb7a   : > { %15404 = vmatmul.mubr.f32.gmra.mrb[88].mxu0 %v22523_v57 }
 0xb7b   : > { %15406 = vmatprep.mubr.f32.mxu0 %v22553_v5 }
 0xb7e   : > { %15407 = vmatmul.mubr.f32.gmra.mrb[90].mxu0 %v22546_v11 }
 0xb7f   : > { %15409 = vmatprep.mubr.f32.mxu0 %v22575_v41 }
 0xb82   : > { %15410 = vmatmul.mubr.f32.gmra.mrb[92].mxu0 %v22568_v63 }
 0xb83   : > { %15412 = vmatprep.mubr.f32.mxu0 %v22596_v46 }
 0xb86   : > { %15413 = vmatmul.mubr.f32.gmra.mrb[94].mxu0 %v22589_v53 }
 0xb87   : > { %15423 = vmatprep.mubr.f32.mxu0 %v22449_v6  ;;  %v22772_v6 = vsub.f32 %v22647_v8, %v11982_v19 }
 0xb89   : > { %v12217_v26 = vand.u32 4294901760, %v22772_v6 }
 0xb8a   : > { %15424 = vmatmul.mubr.f32.vlgmr.msra.gmra.mrb[80].mxu0 %v22445_v61  ;;  %v22767_v61 = vsub.f32 %v22642_v44, %v11979_v40 }
 0xb8b   : > { %15426 = vmatprep.mubr.f32.mxu0 %v22464_v12 }
 0xb8c   : > { %v12210_v62 = vand.u32 4294901760, %v22767_v61  ;;  %v22801_v15 = vpack.c.bf16 %v22772_v6, %v22767_v61 }
 0xb8e   : > { %15427 = vmatmul.mubr.f32.gmra.mrb[82].mxu0 %v22460_v58  ;;  %v12211_v14 = vsub.f32 %v22767_v61, %v12210_v62  ;;  %v12218_v58 = vsub.f32 %v22772_v6, %v12217_v26 }
 0xb8f   : > { %15429 = vmatprep.mubr.f32.mxu0 %v22485_v56  ;;  %v12224_v56 = vand.u32 4294901760, %v22785_v22 }
 0xb90   : > { %v12212_v12 = vand.u32 4294901760, %v12211_v14  ;;  %v12219_v27 = vand.u32 4294901760, %v12218_v58 }
 0xb91   : > { %v12225_v32 = vsub.f32 %v22785_v22, %v12224_v56 }
 0xb92   : > { %15430 = vmatmul.mubr.f32.gmra.mrb[84].mxu0 %v22481_v45  ;;  %v22782_v49 = vpack.c.bf16 %v12219_v27, %v12212_v12  ;;  %v22787_v45 = vsub.f32 %v11922_v59, %v11988_v54 }
 0xb93   : > { %15432 = vmatprep.mubr.f32.mxu0 %v22507_v36  ;;  %v12226_v9 = vand.u32 4294901760, %v12225_v32 }
 0xb94   : > { %16512 = vmatprep.subr.bf16.mxu1 %v22782_v49  ;;  %v12231_v48 = vand.u32 4294901760, %v22787_v45  ;;  %v22805_v52 = vpack.c.bf16 %v22787_v45, %v22785_v22 }
 0xb96   : > { %15433 = vmatmul.mubr.f32.gmra.mrb[86].mxu0 %v22500_v38  ;;  %v12232_v39 = vsub.f32 %v22787_v45, %v12231_v48  ;;  %v16539_v61 = vpack.c.bf16 %v12231_v48, %v12224_v56 }
 0xb97   : > { %15435 = vmatprep.mubr.f32.mxu0 %v22530_v37 }
 0xb98   : > { %v12233_v38 = vand.u32 4294901760, %v12232_v39 }
 0xb9a   : > { %15436 = vmatmul.mubr.f32.gmra.mrb[88].mxu0 %v22523_v57  ;;  %v22797_v36 = vpack.c.bf16 %v12233_v38, %v12226_v9 }
 0xb9b   : > { %15438 = vmatprep.mubr.f32.mxu0 %v22553_v5 }
 0xb9e   : > { %15439 = vmatmul.mubr.f32.gmra.mrb[90].mxu0 %v22546_v11 }
 0xb9f   : > { %15441 = vmatprep.mubr.f32.mxu0 %v22575_v41 }
 0xba2   : > { %15442 = vmatmul.mubr.f32.gmra.mrb[92].mxu0 %v22568_v63 }
 0xba3   : > { %15444 = vmatprep.mubr.f32.mxu0 %v22596_v46 }
 0xba6   : > { %15445 = vmatmul.mubr.f32.gmra.mrb[94].mxu0 %v22589_v53 }
 0xc5d   : > { %v15425_v18 = vpop.f32.mrb[80].mxu0 }
 0xc5e   : > { %v16711_v57 = vadd.f32 %v15425_v18, %v22810_v30  ;;  %v11809_v37 = vpop.f32.mrb[81].mxu0 }
 0xc5f   : > { %v16712_v50 = vadd.f32 %v22810_v30, %v11809_v37 }
 0xc60   : > { %v11904_v21 = vmax.f32 %v16711_v57, 0.0 }
 0xc61   : > { %v11903_v47 = vmax.f32 %v16712_v50, 0.0  ;;  %v15428_v31 = vpop.f32.mrb[82].mxu0 }
 0xc62   : > { %v11934_v11 = vsel %vm811_vm0, %v11904_v21, 0  ;;  %v16713_v5 = vadd.f32 %v15428_v31, %v22810_v30  ;;  %v11821_v29 = vpop.f32.mrb[83].mxu0 }
 0xc63   : > { %v22816_v13 = vand.u32 4294901760, %v11934_v11  ;;  %v11931_v0 = vsel %vm811_vm0, %v11903_v47, 0  ;;  %v16714_v63 = vadd.f32 %v22810_v30, %v11821_v29 }
 0xc64   : > { %v22820_v41 = vand.u32 4294901760, %v11931_v0  ;;  %v11906_v10 = vmax.f32 %v16713_v5, 0.0 }
 0xc65   : > { %v22823_v2 = vsub.f32 %v11934_v11, %v22816_v13  ;;  %v11905_v53 = vmax.f32 %v16714_v63, 0.0  ;;  %v15431_v46 = vpop.f32.mrb[84].mxu0 }
 0xc66   : > { %v22826_v28 = vsub.f32 %v11931_v0, %v22820_v41  ;;  %v11940_v4 = vsel %vm811_vm0, %v11906_v10, 0  ;;  %v16715_v16 = vadd.f32 %v15431_v46, %v22810_v30  ;;  %v11833_v3 = vpop.f32.mrb[85].mxu0 }
 0xc67   : > { %v12059_v1 = vand.u32 4294901760, %v22823_v2  ;;  %v22831_v7 = vand.u32 4294901760, %v11940_v4  ;;  %v11937_v24 = vsel %vm811_vm0, %v11905_v53, 0  ;;  %v16716_v23 = vadd.f32 %v22810_v30, %v11833_v3 }
 0xc68   : > { %v22835_v55 = vand.u32 4294901760, %v11937_v24  ;;  %v11908_v44 = vmax.f32 %v16715_v16, 0.0  ;;  %v12049_v8 = vand.u32 4294901760, %v22826_v28 }
 0xc69   : > { %v12060_v40 = vsub.f32 %v22823_v2, %v12059_v1  ;;  %v22842_v19 = vsub.f32 %v11940_v4, %v22831_v7  ;;  %v11907_v60 = vmax.f32 %v16716_v23, 0.0  ;;  %v15434_v20 = vpop.f32.mrb[86].mxu0 }
 0xc6a   : > { %v22845_v34 = vsub.f32 %v11937_v24, %v22835_v55  ;;  %v11946_v35 = vsel %vm811_vm0, %v11908_v44, 0  ;;  %v16717_v42 = vadd.f32 %v15434_v20, %v22810_v30  ;;  %v11845_v33 = vpop.f32.mrb[87].mxu0  ;;  %v12050_v51 = vsub.f32 %v22826_v28, %v12049_v8 }
 0xc6b   : > { %v22852_v59 = vand.u32 4294901760, %v11946_v35  ;;  %v11943_v43 = vsel %vm811_vm0, %v11907_v60, 0  ;;  %v16718_v54 = vadd.f32 %v22810_v30, %v11845_v33  ;;  %v12061_v32 = vand.u32 4294901760, %v12060_v40 }
 0xc6c   : > { %v22856_v14 = vand.u32 4294901760, %v11943_v43  ;;  %v11910_v58 = vmax.f32 %v16717_v42, 0.0  ;;  %v12051_v12 = vand.u32 4294901760, %v12050_v51  ;;  %v12069_v27 = vand.u32 4294901760, %v22845_v34 }
 0xc6d   : > { %v22860_v39 = vsub.f32 %v11946_v35, %v22852_v59  ;;  %v11909_v9 = vmax.f32 %v16718_v54, 0.0  ;;  %v15437_v38 = vpop.f32.mrb[88].mxu0  ;;  %v12079_v18 = vand.u32 4294901760, %v22842_v19 }
 0xc6e   : > { %v22864_v57 = vsub.f32 %v11943_v43, %v22856_v14  ;;  %v11952_v37 = vsel %vm811_vm0, %v11910_v58, 0  ;;  %v16719_v50 = vadd.f32 %v15437_v38, %v22810_v30  ;;  %v11857_v21 = vpop.f32.mrb[89].mxu0  ;;  %15455 = vmatprep.mubr.f32.mxu1 %v12051_v12  ;;  %v12070_v47 = vsub.f32 %v22845_v34, %v12069_v27 }
 0xc6f   : > { %v22871_v31 = vand.u32 4294901760, %v11952_v37  ;;  %v11949_v11 = vsel %vm811_vm0, %v11909_v9, 0  ;;  %v16720_v5 = vadd.f32 %v22810_v30, %v11857_v21  ;;  %15456 = vmatmul.mubr.f32.vlgmr.msra.gmra.mrb[80].mxu1 %v12061_v32  ;;  %v12080_v29 = vsub.f32 %v22842_v19, %v12079_v18 }
 0xc70   : > { %v22878_v0 = vand.u32 4294901760, %v11949_v11  ;;  %v11912_v63 = vmax.f32 %v16719_v50, 0.0  ;;  %16514 = vmatpush3.bf16.msra.mxu1 %v22782_v49  ;;  %v12071_v10 = vand.u32 4294901760, %v12070_v47  ;;  %v12089_v53 = vand.u32 4294901760, %v22864_v57 }
 0xc71   : > { %v22883_v46 = vsub.f32 %v11952_v37, %v22871_v31  ;;  %v11911_v4 = vmax.f32 %v16720_v5, 0.0  ;;  %v15440_v16 = vpop.f32.mrb[90].mxu0  ;;  %v12081_v3 = vand.u32 4294901760, %v12080_v29  ;;  %v12099_v24 = vand.u32 4294901760, %v22860_v39  ;;  %16516 = vmatprep.subr.bf16.mxu1 %v22797_v36 }
 0xc72   : > { %v22888_v23 = vsub.f32 %v11949_v11, %v22878_v0  ;;  %v11958_v44 = vsel %vm811_vm0, %v11912_v63, 0  ;;  %v16721_v49 = vadd.f32 %v15440_v16, %v22810_v30  ;;  %v11869_v40 = vpop.f32.mrb[91].mxu0  ;;  %15458 = vmatprep.mubr.f32.mxu1 %v12071_v10  ;;  %v12090_v60 = vsub.f32 %v22864_v57, %v12089_v53 }
 0xc73   : > { %v22895_v20 = vand.u32 4294901760, %v11958_v44  ;;  %v11955_v35 = vsel %vm811_vm0, %v11911_v4, 0  ;;  %v16722_v42 = vadd.f32 %v22810_v30, %v11869_v40  ;;  %15459 = vmatmul.mubr.f32.gmra.mrb[82].mxu1 %v12081_v3  ;;  %v12100_v33 = vsub.f32 %v22860_v39, %v12099_v24 }
 0xc74   : > { %v22902_v51 = vand.u32 4294901760, %v11955_v35  ;;  %v11914_v43 = vmax.f32 %v16721_v49, 0.0  ;;  %v12091_v54 = vand.u32 4294901760, %v12090_v60  ;;  %v12109_v58 = vand.u32 4294901760, %v22888_v23  ;;  %16518 = vmatpush3.bf16.msra.mxu1 %v22797_v36 }
 0xc75   : > { %v22907_v12 = vsub.f32 %v11958_v44, %v22895_v20  ;;  %v11913_v32 = vmax.f32 %v16722_v42, 0.0  ;;  %v15443_v9 = vpop.f32.mrb[92].mxu0  ;;  %v12101_v38 = vand.u32 4294901760, %v12100_v33  ;;  %v12119_v37 = vand.u32 4294901760, %v22883_v46  ;;  %16520 = vmatprep.subr.bf16.mxu1 %v22801_v15 }
 0xc76   : > { %v22912_v50 = vsub.f32 %v11955_v35, %v22902_v51  ;;  %v11964_v21 = vsel %vm811_vm0, %v11914_v43, 0  ;;  %v16723_v47 = vadd.f32 %v15443_v9, %v22810_v30  ;;  %v11881_v11 = vpop.f32.mrb[93].mxu0  ;;  %15461 = vmatprep.mubr.f32.mxu1 %v12091_v54  ;;  %v12110_v36 = vsub.f32 %v22888_v23, %v12109_v58 }
 0xc77   : > { %v22919_v5 = vand.u32 4294901760, %v11964_v21  ;;  %v11961_v29 = vsel %vm811_vm0, %v11913_v32, 0  ;;  %v16724_v63 = vadd.f32 %v22810_v30, %v11881_v11  ;;  %15462 = vmatmul.mubr.f32.gmra.mrb[84].mxu1 %v12101_v38  ;;  %v12120_v10 = vsub.f32 %v22883_v46, %v12119_v37 }
 0xc78   : > { %v22926_v4 = vand.u32 4294901760, %v11961_v29  ;;  %v11916_v16 = vmax.f32 %v16723_v47, 0.0  ;;  %v12111_v3 = vand.u32 4294901760, %v12110_v36  ;;  %v23547_v44 = vand.u32 4294901760, %v22912_v50 }
 0xc79   : > { %v22930_v49 = vsub.f32 %v11964_v21, %v22919_v5  ;;  %v11915_v40 = vmax.f32 %v16724_v63, 0.0  ;;  %v15446_v60 = vpop.f32.mrb[94].mxu0  ;;  %v12121_v35 = vand.u32 4294901760, %v12120_v10  ;;  %v23546_v42 = vand.u32 4294901760, %v22907_v12 }
 0xc7a   : > { %v22934_v33 = vsub.f32 %v11961_v29, %v22926_v4  ;;  %v11970_v43 = vsel %vm811_vm0, %v11916_v16, 0  ;;  %v16725_v54 = vadd.f32 %v15446_v60, %v22810_v30  ;;  %v11893_v32 = vpop.f32.mrb[95].mxu0  ;;  %15464 = vmatprep.mubr.f32.mxu1 %v12111_v3  ;;  %v12130_v9 = vsub.f32 %v22912_v50, %v23547_v44 }
 0xc7b   : > { %v22941_v38 = vand.u32 4294901760, %v11970_v43  ;;  %v11967_v21 = vsel %vm811_vm0, %v11915_v40, 0  ;;  %v16726_v47 = vadd.f32 %v22810_v30, %v11893_v32  ;;  %15465 = vmatmul.mubr.f32.gmra.mrb[86].mxu1 %v12121_v35  ;;  %v12140_v11 = vsub.f32 %v22907_v12, %v23546_v42 }
 0xc7c   : > { %v22948_v36 = vand.u32 4294901760, %v11967_v21  ;;  %v11918_v29 = vmax.f32 %v16725_v54, 0.0  ;;  %v12131_v63 = vand.u32 4294901760, %v12130_v9  ;;  %v23544_v10 = vand.u32 4294901760, %v22934_v33 }
 0xc7d   : > { %v22952_v16 = vsub.f32 %v11970_v43, %v22941_v38  ;;  %v11917_v3 = vmax.f32 %v16726_v47, 0.0  ;;  %v12141_v60 = vand.u32 4294901760, %v12140_v11  ;;  %v23545_v40 = vand.u32 4294901760, %v22930_v49 }
 0xc7e   : > { %v22956_v30 = vsub.f32 %v11967_v21, %v22948_v36  ;;  %v11976_v35 = vsel %vm811_vm0, %v11918_v29, 0  ;;  %15467 = vmatprep.mubr.f32.mxu1 %v12131_v63  ;;  %v12150_v54 = vsub.f32 %v22934_v33, %v23544_v10  ;;  %v24075_v6 = vand.u32 4294901760, %v22912_v50 }
 0xc7f   : > { %v22962_v32 = vand.u32 4294901760, %v11976_v35  ;;  %v11973_v9 = vsel %vm811_vm0, %v11917_v3, 0  ;;  %15468 = vmatmul.mubr.f32.gmra.mrb[88].mxu1 %v12141_v60  ;;  %v12160_v43 = vsub.f32 %v22930_v49, %v23545_v40  ;;  %v23548_v47 = vand.u32 4294901760, %v22952_v16 }
 0xc80   : > { %v22969_v21 = vand.u32 4294901760, %v11973_v9  ;;  %v12151_v11 = vand.u32 4294901760, %v12150_v54  ;;  %v12169_v29 = vand.u32 4294901760, %v22956_v30  ;;  %v24078_v22 = vand.u32 4294901760, %v22930_v49 }
 0xc81   : > { %v22973_v63 = vsub.f32 %v11976_v35, %v22962_v32  ;;  %v12161_v10 = vand.u32 4294901760, %v12160_v43  ;;  %v12180_v3 = vsub.f32 %v22952_v16, %v23548_v47  ;;  %v24079_v45 = vand.u32 4294901760, %v22952_v16 }
 0xc82   : > { %v22979_v60 = vsub.f32 %v11973_v9, %v22969_v21  ;;  %15470 = vmatprep.mubr.f32.mxu1 %v12151_v11  ;;  %v12170_v40 = vsub.f32 %v22956_v30, %v12169_v29 }
 0xc83   : > { %15471 = vmatmul.mubr.f32.gmra.mrb[90].mxu1 %v12161_v10  ;;  %v12199_v54 = vand.u32 4294901760, %v22973_v63  ;;  %v12181_v44 = vand.u32 4294901760, %v12180_v3 }
 0xc84   : > { %v12171_v42 = vand.u32 4294901760, %v12170_v40  ;;  %v12189_v35 = vand.u32 4294901760, %v22979_v60 }
 0xc85   : > { %v12200_v43 = vsub.f32 %v22973_v63, %v12199_v54 }
 0xc86   : > { %15473 = vmatprep.mubr.f32.mxu1 %v12171_v42  ;;  %v12190_v9 = vsub.f32 %v22979_v60, %v12189_v35 }
 0xc87   : > { %15474 = vmatmul.mubr.f32.gmra.mrb[92].mxu1 %v12181_v44  ;;  %v12201_v47 = vand.u32 4294901760, %v12200_v43 }
 0xc88   : > { %v12191_v11 = vand.u32 4294901760, %v12190_v9 }
 0xc8a   : > { %15476 = vmatprep.mubr.f32.mxu1 %v12191_v11 }
 0xc8b   : > { %15477 = vmatmul.mubr.f32.gmra.mrb[94].mxu1 %v12201_v47 }
 0xc8c   : > { %15487 = vmatprep.mubr.f32.mxu1 %v22820_v41 }
 0xc8f   : > { %15488 = vmatmul.mubr.f32.vlgmr.msra.gmra.mrb[80].mxu1 %v22816_v13 }
 0xc90   : > { %16522 = vmatpush3.bf16.msra.mxu1 %v22801_v15  ;;  %15490 = vmatprep.mubr.f32.mxu1 %v22835_v55  ;;  %v16535_v15 = vpack.c.bf16 %v12217_v26, %v12210_v62  ;;  %v24076_v62 = vand.u32 4294901760, %v22907_v12  ;;  %v24077_v26 = vand.u32 4294901760, %v22934_v33 }
 0xc91   : > { %16524 = vmatprep.subr.bf16.mxu1 %v22805_v52 }
 0xc93   : > { %15491 = vmatmul.mubr.f32.gmra.mrb[82].mxu1 %v22831_v7 }
 0xc94   : > { %15493 = vmatprep.mubr.f32.mxu1 %v22856_v14  ;;  %16526 = vmatpush3.bf16.msra.mxu1 %v22805_v52 }
 0xc95   : > { %16528 = vmatprep.subr.bf16.mxu1 %v22656_v17 }
 0xc97   : > { %15494 = vmatmul.mubr.f32.gmra.mrb[84].mxu1 %v22852_v59 }
 0xc98   : > { %15496 = vmatprep.mubr.f32.mxu1 %v22878_v0 }
 0xc9b   : > { %15497 = vmatmul.mubr.f32.gmra.mrb[86].mxu1 %v22871_v31 }
 0xc9c   : > { %15499 = vmatprep.mubr.f32.mxu1 %v22902_v51 }
 0xc9f   : > { %15500 = vmatmul.mubr.f32.gmra.mrb[88].mxu1 %v22895_v20 }
 0xca0   : > { %15502 = vmatprep.mubr.f32.mxu1 %v22926_v4 }
 0xca3   : > { %15503 = vmatmul.mubr.f32.gmra.mrb[90].mxu1 %v22919_v5 }
 0xca4   : > { %15505 = vmatprep.mubr.f32.mxu1 %v22948_v36 }
 0xca7   : > { %15506 = vmatmul.mubr.f32.gmra.mrb[92].mxu1 %v22941_v38 }
 0xca8   : > { %15508 = vmatprep.mubr.f32.mxu1 %v22969_v21 }
 0xcab   : > { %15509 = vmatmul.mubr.f32.gmra.mrb[94].mxu1 %v22962_v32 }
 0xcac   : > { %15519 = vmatprep.mubr.f32.mxu1 %v22826_v28 }
 0xcaf   : > { %15520 = vmatmul.mubr.f32.vlgmr.msra.gmra.mrb[80].mxu1 %v22823_v2 }
 0xcb0   : > { %16530 = vmatpush3.bf16.msra.mxu1 %v22656_v17  ;;  %15522 = vmatprep.mubr.f32.mxu1 %v22845_v34 }
 0xcb1   : > { %16532 = vmatprep.subr.bf16.mxu1 %v22760_v25 }
 0xcb3   : > { %15523 = vmatmul.mubr.f32.gmra.mrb[82].mxu1 %v22842_v19 }
 0xcb4   : > { %15525 = vmatprep.mubr.f32.mxu1 %v22864_v57  ;;  %16534 = vmatpush3.bf16.msra.mxu1 %v22760_v25 }
 0xcb5   : > { %16536 = vmatprep.subr.bf16.mxu1 %v16535_v15 }
 0xcb7   : > { %15526 = vmatmul.mubr.f32.gmra.mrb[84].mxu1 %v22860_v39 }
 0xcb8   : > { %15528 = vmatprep.mubr.f32.mxu1 %v22888_v23 }
 0xcbb   : > { %15529 = vmatmul.mubr.f32.gmra.mrb[86].mxu1 %v22883_v46 }
 0xcbc   : > { %15531 = vmatprep.mubr.f32.mxu1 %v22912_v50 }
 0xcbf   : > { %15532 = vmatmul.mubr.f32.gmra.mrb[88].mxu1 %v22907_v12 }
 0xcc0   : > { %15534 = vmatprep.mubr.f32.mxu1 %v22934_v33 }
 0xcc3   : > { %15535 = vmatmul.mubr.f32.gmra.mrb[90].mxu1 %v22930_v49 }
 0xcc4   : > { %15537 = vmatprep.mubr.f32.mxu1 %v22956_v30 }
 0xcc7   : > { %15538 = vmatmul.mubr.f32.gmra.mrb[92].mxu1 %v22952_v16 }
 0xcc8   : > { %15540 = vmatprep.mubr.f32.mxu1 %v22979_v60 }
 0xccb   : > { %15541 = vmatmul.mubr.f32.gmra.mrb[94].mxu1 %v22973_v63 }
 0xccc   : > { %15551 = vmatprep.mubr.f32.mxu1 %v12049_v8 }
 0xccf   : > { %15552 = vmatmul.mubr.f32.vlgmr.msra.gmra.mrb[80].mxu1 %v12059_v1 }
 0xcd0   : > { %16538 = vmatpush3.bf16.msra.mxu1 %v16535_v15  ;;  %15554 = vmatprep.mubr.f32.mxu1 %v12069_v27 }
 0xcd1   : > { %16540 = vmatprep.subr.bf16.mxu1 %v16539_v61 }
 0xcd3   : > { %15555 = vmatmul.mubr.f32.gmra.mrb[82].mxu1 %v12079_v18 }
 0xcd4   : > { %15557 = vmatprep.mubr.f32.mxu1 %v12089_v53  ;;  %16542 = vmatpush3.bf16.msra.mxu1 %v16539_v61 }
 0xcd5   : > { %16544 = vmatprep.subr.bf16.mxu1 %v22656_v17 }
 0xcd7   : > { %15558 = vmatmul.mubr.f32.gmra.mrb[84].mxu1 %v12099_v24 }
 0xcd8   : > { %15560 = vmatprep.mubr.f32.mxu1 %v12109_v58 }
 0xcdb   : > { %15561 = vmatmul.mubr.f32.gmra.mrb[86].mxu1 %v12119_v37 }
 0xcdc   : > { %15563 = vmatprep.mubr.f32.mxu1 %v24075_v6 }
 0xcdf   : > { %15564 = vmatmul.mubr.f32.gmra.mrb[88].mxu1 %v24076_v62 }
 0xce0   : > { %15566 = vmatprep.mubr.f32.mxu1 %v24077_v26 }
 0xce3   : > { %15567 = vmatmul.mubr.f32.gmra.mrb[90].mxu1 %v24078_v22 }
 0xce4   : > { %15569 = vmatprep.mubr.f32.mxu1 %v12169_v29 }
 0xce7   : > { %15570 = vmatmul.mubr.f32.gmra.mrb[92].mxu1 %v24079_v45 }
 0xce8   : > { %15572 = vmatprep.mubr.f32.mxu1 %v12189_v35 }
 0xceb   : > { %15573 = vmatmul.mubr.f32.gmra.mrb[94].mxu1 %v12199_v54 }
 0xcec   : > { %15583 = vmatprep.mubr.f32.mxu1 %v22820_v41 }
 0xcef   : > { %15584 = vmatmul.mubr.f32.vlgmr.msra.gmra.mrb[80].mxu1 %v22816_v13 }
 0xcf0   : > { %16546 = vmatpush3.bf16.msra.mxu1 %v22656_v17  ;;  %15586 = vmatprep.mubr.f32.mxu1 %v22835_v55  ;;  %v13330_v17 = vld [vmem:[%s23154_s19] ss:$0 sm:$0xff] }
 0xcf1   : > { %16548 = vmatprep.subr.bf16.mxu1 %v22760_v25 }
 0xcf3   : > { %15587 = vmatmul.mubr.f32.gmra.mrb[82].mxu1 %v22831_v7 }
 0xcf4   : > { %15589 = vmatprep.mubr.f32.mxu1 %v22856_v14  ;;  %16550 = vmatpush3.bf16.msra.mxu1 %v22760_v25 }
 0xcf7   : > { %15590 = vmatmul.mubr.f32.gmra.mrb[84].mxu1 %v22852_v59 }
 0xcf8   : > { %15592 = vmatprep.mubr.f32.mxu1 %v22878_v0 }
 0xcfb   : > { %15593 = vmatmul.mubr.f32.gmra.mrb[86].mxu1 %v22871_v31 }
 0xcfc   : > { %15595 = vmatprep.mubr.f32.mxu1 %v22902_v51 }
 0xcff   : > { %15596 = vmatmul.mubr.f32.gmra.mrb[88].mxu1 %v22895_v20 }
 0xd00   : > { %15598 = vmatprep.mubr.f32.mxu1 %v22926_v4 }
 0xd03   : > { %15599 = vmatmul.mubr.f32.gmra.mrb[90].mxu1 %v22919_v5 }
 0xd04   : > { %15601 = vmatprep.mubr.f32.mxu1 %v22948_v36 }
 0xd07   : > { %15602 = vmatmul.mubr.f32.gmra.mrb[92].mxu1 %v22941_v38 }
 0xd08   : > { %15604 = vmatprep.mubr.f32.mxu1 %v22969_v21 }
 0xd0b   : > { %15605 = vmatmul.mubr.f32.gmra.mrb[94].mxu1 %v22962_v32 }
 0xd0c   : > { %15615 = vmatprep.mubr.f32.mxu1 %v22820_v41 }
 0xd0f   : > { %15616 = vmatmul.mubr.f32.vlgmr.msra.gmra.mrb[80].mxu1 %v22816_v13 }
 0xd10   : > { %15618 = vmatprep.mubr.f32.mxu1 %v22835_v55 }
 0xd13   : > { %15619 = vmatmul.mubr.f32.gmra.mrb[82].mxu1 %v22831_v7 }
 0xd14   : > { %15621 = vmatprep.mubr.f32.mxu1 %v22856_v14 }
 0xd17   : > { %15622 = vmatmul.mubr.f32.gmra.mrb[84].mxu1 %v22852_v59 }
 0xd18   : > { %15624 = vmatprep.mubr.f32.mxu1 %v22878_v0 }
 0xd1b   : > { %15625 = vmatmul.mubr.f32.gmra.mrb[86].mxu1 %v22871_v31 }
 0xd1c   : > { %15627 = vmatprep.mubr.f32.mxu1 %v22902_v51 }
 0xd1f   : > { %15628 = vmatmul.mubr.f32.gmra.mrb[88].mxu1 %v22895_v20 }
 0xd20   : > { %15630 = vmatprep.mubr.f32.mxu1 %v22926_v4 }
 0xd23   : > { %15631 = vmatmul.mubr.f32.gmra.mrb[90].mxu1 %v22919_v5 }
 0xd24   : > { %15633 = vmatprep.mubr.f32.mxu1 %v22948_v36 }
 0xd27   : > { %15634 = vmatmul.mubr.f32.gmra.mrb[92].mxu1 %v22941_v38 }
 0xd28   : > { %15636 = vmatprep.mubr.f32.mxu1 %v22969_v21 }
 0xd2b   : > { %15637 = vmatmul.mubr.f32.gmra.mrb[94].mxu1 %v22962_v32 }
 0xde2   : > { %v15617_v25 = vpop.f32.mrb[80].mxu1 }
 0xde3   : > { %v16727_v56 = vadd.f32 %v15617_v25, %v13330_v17  ;;  %v13014_v48 = vpop.f32.mrb[81].mxu1 }
 0xde4   : > { %v16728_v52 = vadd.f32 %v13330_v17, %v13014_v48 }
 0xde5   : > { %13109 = vst [vmem:[%s23114_s2 + $0x8] sm:$0xff] %v16727_v56 }
 0xde6   : > { %13108 = vst [vmem:[%s23114_s2] sm:$0xff] %v16728_v52  ;;  %v15620_v13 = vpop.f32.mrb[82].mxu1 }
 0xde7   : > { %v16729_v41 = vadd.f32 %v15620_v13, %v13330_v17  ;;  %v13026_v2 = vpop.f32.mrb[83].mxu1 }
 0xde8   : > { %v16730_v28 = vadd.f32 %v13330_v17, %v13026_v2 }
 0xde9   : > { %13111 = vst [vmem:[%s23114_s2 + $0x18] sm:$0xff] %v16729_v41 }
 0xdea   : > { %13110 = vst [vmem:[%s23114_s2 + $0x10] sm:$0xff] %v16730_v28  ;;  %v15623_v1 = vpop.f32.mrb[84].mxu1 }
 0xdeb   : > { %v16731_v7 = vadd.f32 %v15623_v1, %v13330_v17  ;;  %v13038_v55 = vpop.f32.mrb[85].mxu1 }
 0xdec   : > { %v16732_v8 = vadd.f32 %v13330_v17, %v13038_v55 }
 0xded   : > { %13113 = vst [vmem:[%s23114_s2 + $0x28] sm:$0xff] %v16731_v7 }
 0xdee   : > { %13112 = vst [vmem:[%s23114_s2 + $0x20] sm:$0xff] %v16732_v8  ;;  %v15626_v19 = vpop.f32.mrb[86].mxu1 }
 0xdef   : > { %v16733_v34 = vadd.f32 %v15626_v19, %v13330_v17  ;;  %v13050_v59 = vpop.f32.mrb[87].mxu1 }
 0xdf0   : > { %v16734_v14 = vadd.f32 %v13330_v17, %v13050_v59 }
 0xdf1   : > { %13115 = vst [vmem:[%s23114_s2 + $0x38] sm:$0xff] %v16733_v34 }
 0xdf2   : > { %13114 = vst [vmem:[%s23114_s2 + $0x30] sm:$0xff] %v16734_v14  ;;  %v15629_v27 = vpop.f32.mrb[88].mxu1 }
 0xdf3   : > { %v16735_v39 = vadd.f32 %v15629_v27, %v13330_v17  ;;  %v13062_v18 = vpop.f32.mrb[89].mxu1 }
 0xdf4   : > { %v16736_v57 = vadd.f32 %v13330_v17, %v13062_v18 }
 0xdf5   : > { %13117 = vst [vmem:[%s23114_s2 + $0x48] sm:$0xff] %v16735_v39 }
 0xdf6   : > { %13116 = vst [vmem:[%s23114_s2 + $0x40] sm:$0xff] %v16736_v57  ;;  %v15632_v31 = vpop.f32.mrb[90].mxu1 }
 0xdf7   : > { %v16737_v0 = vadd.f32 %v15632_v31, %v13330_v17  ;;  %v13074_v53 = vpop.f32.mrb[91].mxu1 }
 0xdf8   : > { %v16738_v46 = vadd.f32 %v13330_v17, %v13074_v53 }
 0xdf9   : > { %13119 = vst [vmem:[%s23114_s2 + $0x58] sm:$0xff] %v16737_v0 }
 0xdfa   : > { %13118 = vst [vmem:[%s23114_s2 + $0x50] sm:$0xff] %v16738_v46  ;;  %v15635_v24 = vpop.f32.mrb[92].mxu1 }
 0xdfb   : > { %v16739_v23 = vadd.f32 %v15635_v24, %v13330_v17  ;;  %v13086_v20 = vpop.f32.mrb[93].mxu1 }
 0xdfc   : > { %v16740_v51 = vadd.f32 %v13330_v17, %v13086_v20 }
 0xdfd   : > { %13121 = vst [vmem:[%s23114_s2 + $0x68] sm:$0xff] %v16739_v23 }
 0xdfe   : > { %13120 = vst [vmem:[%s23114_s2 + $0x60] sm:$0xff] %v16740_v51  ;;  %v15638_v58 = vpop.f32.mrb[94].mxu1 }
 0xdff   : > { %v16741_v12 = vadd.f32 %v15638_v58, %v13330_v17  ;;  %v13098_v37 = vpop.f32.mrb[95].mxu1 }
 0xe00   : > { %v16742_v50 = vadd.f32 %v13330_v17, %v13098_v37 }
 0xe01   : > { %13123 = vst [vmem:[%s23114_s2 + $0x78] sm:$0xff] %v16741_v12 }
 0xe02   : > { %13122 = vst [vmem:[%s23114_s2 + $0x70] sm:$0xff] %v16742_v50 }
 0xe03 PF: > { %s33_s3 = sadd.s32 1, %s17846_s3  }
 0xe04   : > { %p30_p4 = scmp.ge.s32.totalorder %s33_s3, 4  }
 0xe06   :  { %32 = sbr.rel (!%p30_p4) target bundleno = 8 (0x8), region = 163 }

</bundles_post_ra>
